<compile_context>
chip_gen: v7x
topology: tpu7x:2x2x1
jax: 0.10.0
libtpu: 0.0.40
codegen_flags: <defaults>
</compile_context>

<pallas_src>
import jax
import jax.numpy as jnp
from jax import lax
from jax.experimental import pallas as pl
from jax.experimental.pallas import tpu as pltpu

HIDDEN = 768          # codebert-base hidden size (fc1 expects 2 * 768)
CHUNK = 512           # hard-coded chunk_size in the PyTorch forward
FC1 = 512             # nn.Linear(2*768, 512)
OUT_CLASSES = 8       # `output_layer` is undefined in the source; pick 8
OUT_PAD = 128         # lane-dense padded class dim for the fc2 / LogSoftmax tile
VOCAB = 128           # small synthetic vocab (exactly one MXU / lane tile)
NEG_BIAS = -1e30      # effective -inf for padded class lanes


# ---------------------------------------------------------------------------
# Single fused kernel: chunked synthetic-BERT pooling + classifier head.
# ---------------------------------------------------------------------------
def _bert_arch_kernel(ids_ref, mask_ref, embed_ref, wp_ref, bp_ref,
                      w1_ref, b1_ref, w2_ref, b2_ref, out_ref):
    B, S = ids_ref.shape
    n_chunks = S // CHUNK

    # --- fused gather + masked sum: per-chunk weighted histogram ("counts") --
    #   counts[b, v] = sum_t mask[b,t] * (ids[b,t] == v)
    counts_all = []
    for c in range(n_chunks):                     # static unroll (n_chunks = 2)
        lo = c * CHUNK
        ids_c = ids_ref[:, lo:lo + CHUNK]                       # (B, CHUNK) int32
        msk_c = mask_ref[:, lo:lo + CHUNK].astype(jnp.float32)  # (B, CHUNK) f32
        iota_v = lax.broadcasted_iota(jnp.int32, (B, CHUNK, VOCAB), 2)
        onehot_m = jnp.where(ids_c[:, :, None] == iota_v,
                             msk_c[:, :, None], 0.0)            # (B, CHUNK, VOCAB)
        counts_all.append(jnp.sum(onehot_m, axis=1))            # (B, VOCAB)
    counts = jnp.concatenate(counts_all, axis=0)                # (n_chunks*B, VOCAB)

    # masked mean: normalize the 128-lane counts (sum over VOCAB == sum of the
    # chunk mask), then ONE batched (n_chunks*B, VOCAB) @ (VOCAB, H) contraction
    # performs gather + sum + mean for every chunk at once.
    denom = jnp.maximum(jnp.sum(counts, axis=-1, keepdims=True), 1.0)
    counts_norm = counts * (1.0 / denom)
    means_all = jnp.dot(counts_norm, embed_ref[...],
                        preferred_element_type=jnp.float32)     # (n_chunks*B, H)

    # --- batched pooler dense + tanh: one (n_chunks*B, H) @ (H, H) matmul ---
    pooled = jnp.tanh(
        jnp.dot(means_all.astype(wp_ref.dtype), wp_ref[...],
                preferred_element_type=jnp.float32) + bp_ref[...])

    # torch.cat([...], dim=1)  ->  (B, n_chunks*H), lane-axis concat (free).
    cls_hs = jnp.concatenate(
        [pooled[c * B:(c + 1) * B, :] for c in range(n_chunks)], axis=1)

    # --- classifier head: fc1 -> ReLU -> dropout(eval = identity) -> fc2 ----
    h = jnp.dot(cls_hs.astype(w1_ref.dtype), w1_ref[...],
                preferred_element_type=jnp.float32) + b1_ref[...]
    h = jnp.maximum(h, 0.0)                                     # ReLU
    # nn.Dropout(0.2) is the identity in eval/inference mode.
    logits = jnp.dot(h.astype(w2_ref.dtype), w2_ref[...],
                     preferred_element_type=jnp.float32) + b2_ref[...]  # (B, 128)

    # LogSoftmax over the lane-dense padded class tile; padded lanes carry a
    # -1e30 bias so exp() underflows to 0 and the normalizer is exact.
    m = jnp.max(logits, axis=-1, keepdims=True)
    z = logits - m
    lse = jnp.log(jnp.sum(jnp.exp(z), axis=-1, keepdims=True))
    out_ref[...] = z - lse


def _full_spec(shape):
    # Whole-array VMEM block, constant across the (trivial) grid.
    return pl.BlockSpec(shape, lambda i, _n=len(shape): (0,) * _n)


# ---------------------------------------------------------------------------
# Full forward pass (mirrors BERT_Arch.forward).
# ---------------------------------------------------------------------------
def bert_arch_forward(sent_id, mask, params):
    B, S = sent_id.shape
    assert S % CHUNK == 0, "sequence length must be a multiple of 512"
    n_chunks = S // CHUNK
    assert params["w1"].shape[0] == n_chunks * HIDDEN, "fc1 expects n_chunks*768 features"

    # Pad the 8-class fc2 to a lane-dense 128-wide tile (zero weight columns,
    # -1e30 bias in the padded lanes so LogSoftmax ignores them).
    w2 = params["w2"]
    b2 = params["b2"]
    w2_pad = jnp.zeros((FC1, OUT_PAD), w2.dtype).at[:, :OUT_CLASSES].set(w2)
    b2_pad = jnp.full((1, OUT_PAD), NEG_BIAS, jnp.float32).at[:, :OUT_CLASSES].set(
        b2.astype(jnp.float32))

    out_pad = pl.pallas_call(
        _bert_arch_kernel,
        out_shape=jax.ShapeDtypeStruct((B, OUT_PAD), jnp.float32),
        grid=(1,),
        in_specs=[
            _full_spec((B, S)),                      # token ids (int32)
            _full_spec((B, S)),                      # attention mask (int32)
            _full_spec((VOCAB, HIDDEN)),             # embedding table (f32)
            _full_spec((HIDDEN, HIDDEN)),            # pooler dense (bf16)
            _full_spec((1, HIDDEN)),                 # pooler bias (f32)
            _full_spec((n_chunks * HIDDEN, FC1)),    # fc1 weight (bf16)
            _full_spec((1, FC1)),                    # fc1 bias (f32)
            _full_spec((FC1, OUT_PAD)),              # fc2 weight, lane-padded (bf16)
            _full_spec((1, OUT_PAD)),                # fc2 bias, lane-padded (f32)
        ],
        out_specs=_full_spec((B, OUT_PAD)),
        compiler_params=pltpu.CompilerParams(
            dimension_semantics=("arbitrary",),
            vmem_limit_bytes=32 * 1024 * 1024,       # ~7 MiB used; explicit headroom
        ),
    )(sent_id, mask, params["embed"], params["wp"], params["bp"],
      params["w1"], params["b1"], w2_pad, b2_pad)

    # Slice the lane-dense tile back to the real 8 classes.
    return out_pad[:, :OUT_CLASSES]


# ---------------------------------------------------------------------------
# Pure-JAX reference (same math, natural gather formulation) for validation.
# ---------------------------------------------------------------------------
def _reference_forward(sent_id, mask, params):
    B, S = sent_id.shape
    n_chunks = S // CHUNK
    pooled_chunks = []
    for c in range(n_chunks):
        ids_c = sent_id[:, c * CHUNK:(c + 1) * CHUNK]
        msk_c = mask[:, c * CHUNK:(c + 1) * CHUNK].astype(jnp.float32)
        gathered = params["embed"][ids_c]                        # (B, CHUNK, H)
        summed = jnp.sum(gathered * msk_c[:, :, None], axis=1)
        denom = jnp.maximum(jnp.sum(msk_c, axis=1, keepdims=True), 1.0)
        mean = summed / denom
        pooled = jnp.tanh(
            jnp.dot(mean.astype(jnp.bfloat16), params["wp"],
                    preferred_element_type=jnp.float32) + params["bp"])
        pooled_chunks.append(pooled)
    cls_hs = jnp.concatenate(pooled_chunks, axis=1)              # (B, n_chunks*H)
    h = jnp.dot(cls_hs.astype(jnp.bfloat16), params["w1"],
                preferred_element_type=jnp.float32) + params["b1"]
    h = jnp.maximum(h, 0.0)
    logits = jnp.dot(h.astype(jnp.bfloat16), params["w2"],
                     preferred_element_type=jnp.float32) + params["b2"]
    return jax.nn.log_softmax(logits, axis=-1)


if __name__ == "__main__":
    key = jax.random.PRNGKey(0)
    k_emb, k_wp, k_w1, k_w2, k_ids, k_mask = jax.random.split(key, 6)

    params = dict(
        embed=jax.random.normal(k_emb, (VOCAB, HIDDEN), jnp.float32),
        wp=(jax.random.normal(k_wp, (HIDDEN, HIDDEN), jnp.float32) * 0.05
            ).astype(jnp.bfloat16),
        bp=jnp.zeros((1, HIDDEN), jnp.float32),
        w1=(jax.random.normal(k_w1, (2 * HIDDEN, FC1), jnp.float32) * 0.05
            ).astype(jnp.bfloat16),
        b1=jnp.zeros((1, FC1), jnp.float32),
        w2=(jax.random.normal(k_w2, (FC1, OUT_CLASSES), jnp.float32) * 0.05
            ).astype(jnp.bfloat16),
        b2=jnp.zeros((1, OUT_CLASSES), jnp.float32),
    )

    B, S = 2, 2 * CHUNK    # two 512-token chunks -> cls_hs has 2*768 features
    sent_id = jax.random.randint(k_ids, (B, S), 0, VOCAB, dtype=jnp.int32)
    mask = (jax.random.uniform(k_mask, (B, S)) > 0.1).astype(jnp.int32)

    out = bert_arch_forward(sent_id, mask, params)
    out = jax.block_until_ready(out)

    assert out.shape == (B, OUT_CLASSES)
    assert bool(jnp.all(jnp.isfinite(out)))
    # rows of a log-softmax must exp-sum to 1
    assert bool(jnp.allclose(jnp.sum(jnp.exp(out), axis=-1), 1.0, atol=1e-5))
    # match the pure-JAX reference of the same synthetic forward
    ref = _reference_forward(sent_id, mask, params)
    assert bool(jnp.allclose(out, ref, atol=1e-2)), \
        f"max abs diff {float(jnp.max(jnp.abs(out - ref)))}"
    print("KERNEL_OK")
</pallas_src>

<mosaic_0001>
module attributes {stable_mosaic.version = 11 : i64} {
  func.func @_bert_arch_kernel(%arg0: i32, %arg1: memref<2x1024xi32, #tpu.memory_space<vmem>>, %arg2: memref<2x1024xi32, #tpu.memory_space<vmem>>, %arg3: memref<128x768xf32, #tpu.memory_space<vmem>>, %arg4: memref<768x768xbf16, #tpu.memory_space<vmem>>, %arg5: memref<1x768xf32, #tpu.memory_space<vmem>>, %arg6: memref<1536x512xbf16, #tpu.memory_space<vmem>>, %arg7: memref<1x512xf32, #tpu.memory_space<vmem>>, %arg8: memref<512x128xbf16, #tpu.memory_space<vmem>>, %arg9: memref<1x128xf32, #tpu.memory_space<vmem>>, %arg10: memref<2x128xf32, #tpu.memory_space<vmem>>) attributes {dimension_semantics = [#tpu.dimension_semantics<arbitrary>], iteration_bounds = array<i64: 1>, scalar_prefetch = 0 : i64, scratch_operands = 0 : i64, tpu.core_type = #tpu.core_type<tc>, window_params = [{pipeline_mode = #tpu.pipeline_mode<synchronous>, transform_indices = @transform_0, window_bounds = array<i64: 2, 1024>}, {pipeline_mode = #tpu.pipeline_mode<synchronous>, transform_indices = @transform_1, window_bounds = array<i64: 2, 1024>}, {pipeline_mode = #tpu.pipeline_mode<synchronous>, transform_indices = @transform_2, window_bounds = array<i64: 128, 768>}, {pipeline_mode = #tpu.pipeline_mode<synchronous>, transform_indices = @transform_3, window_bounds = array<i64: 768, 768>}, {pipeline_mode = #tpu.pipeline_mode<synchronous>, transform_indices = @transform_4, window_bounds = array<i64: 1, 768>}, {pipeline_mode = #tpu.pipeline_mode<synchronous>, transform_indices = @transform_5, window_bounds = array<i64: 1536, 512>}, {pipeline_mode = #tpu.pipeline_mode<synchronous>, transform_indices = @transform_6, window_bounds = array<i64: 1, 512>}, {pipeline_mode = #tpu.pipeline_mode<synchronous>, transform_indices = @transform_7, window_bounds = array<i64: 512, 128>}, {pipeline_mode = #tpu.pipeline_mode<synchronous>, transform_indices = @transform_8, window_bounds = array<i64: 1, 128>}, {pipeline_mode = #tpu.pipeline_mode<synchronous>, transform_indices = @transform_9, window_bounds = array<i64: 2, 128>}]} {
    %c0 = arith.constant 0 : index
    %c0_0 = arith.constant 0 : index
    %0 = vector.load %arg1[%c0, %c0_0] : memref<2x1024xi32, #tpu.memory_space<vmem>>, vector<2x512xi32>
    %c0_1 = arith.constant 0 : index
    %c0_2 = arith.constant 0 : index
    %1 = vector.load %arg2[%c0_1, %c0_2] : memref<2x1024xi32, #tpu.memory_space<vmem>>, vector<2x512xi32>
    %2 = arith.sitofp %1 : vector<2x512xi32> to vector<2x512xf32>
    %3 = tpu.iota {dimensions = array<i32: 2>} : vector<2x512x128xi32>
    %4 = vector.shape_cast %0 : vector<2x512xi32> to vector<2x512x1xi32>
    %5 = vector.broadcast %4 : vector<2x512x1xi32> to vector<2x512x128xi32>
    %6 = arith.cmpi eq, %5, %3 : vector<2x512x128xi32>
    %7 = vector.shape_cast %2 : vector<2x512xf32> to vector<2x512x1xf32>
    %cst = arith.constant 0.000000e+00 : f32
    %8 = vector.shape_cast %7 : vector<2x512x1xf32> to vector<2x512x1xf32>
    %9 = vector.broadcast %8 : vector<2x512x1xf32> to vector<2x512x128xf32>
    %10 = vector.broadcast %cst : f32 to vector<2x512x128xf32>
    %11 = arith.select %6, %9, %10 : vector<2x512x128xi1>, vector<2x512x128xf32>
    %cst_3 = arith.constant dense<0.000000e+00> : vector<2x128xf32>
    %12 = vector.multi_reduction <add>, %11, %cst_3 [1] : vector<2x512x128xf32> to vector<2x128xf32>
    %c0_4 = arith.constant 0 : index
    %c512 = arith.constant 512 : index
    %13 = vector.load %arg1[%c0_4, %c512] : memref<2x1024xi32, #tpu.memory_space<vmem>>, vector<2x512xi32>
    %c0_5 = arith.constant 0 : index
    %c512_6 = arith.constant 512 : index
    %14 = vector.load %arg2[%c0_5, %c512_6] : memref<2x1024xi32, #tpu.memory_space<vmem>>, vector<2x512xi32>
    %15 = arith.sitofp %14 : vector<2x512xi32> to vector<2x512xf32>
    %16 = tpu.iota {dimensions = array<i32: 2>} : vector<2x512x128xi32>
    %17 = vector.shape_cast %13 : vector<2x512xi32> to vector<2x512x1xi32>
    %18 = vector.broadcast %17 : vector<2x512x1xi32> to vector<2x512x128xi32>
    %19 = arith.cmpi eq, %18, %16 : vector<2x512x128xi32>
    %20 = vector.shape_cast %15 : vector<2x512xf32> to vector<2x512x1xf32>
    %cst_7 = arith.constant 0.000000e+00 : f32
    %21 = vector.shape_cast %20 : vector<2x512x1xf32> to vector<2x512x1xf32>
    %22 = vector.broadcast %21 : vector<2x512x1xf32> to vector<2x512x128xf32>
    %23 = vector.broadcast %cst_7 : f32 to vector<2x512x128xf32>
    %24 = arith.select %19, %22, %23 : vector<2x512x128xi1>, vector<2x512x128xf32>
    %cst_8 = arith.constant dense<0.000000e+00> : vector<2x128xf32>
    %25 = vector.multi_reduction <add>, %24, %cst_8 [1] : vector<2x512x128xf32> to vector<2x128xf32>
    %26 = tpu.concatenate %12, %25 in 0 : vector<2x128xf32>, vector<2x128xf32> -> vector<4x128xf32>
    %cst_9 = arith.constant dense<0.000000e+00> : vector<4xf32>
    %27 = vector.multi_reduction <add>, %26, %cst_9 [1] : vector<4x128xf32> to vector<4xf32>
    %28 = vector.shape_cast %27 : vector<4xf32> to vector<4x1xf32>
    %cst_10 = arith.constant 1.000000e+00 : f32
    %29 = vector.broadcast %cst_10 : f32 to vector<4x1xf32>
    %30 = arith.maximumf %28, %29 : vector<4x1xf32>
    %cst_11 = arith.constant 1.000000e+00 : f32
    %31 = vector.broadcast %cst_11 : f32 to vector<4x1xf32>
    %32 = arith.divf %31, %30 : vector<4x1xf32>
    %33 = vector.broadcast %32 : vector<4x1xf32> to vector<4x128xf32>
    %34 = arith.mulf %26, %33 : vector<4x128xf32>
    %c0_12 = arith.constant 0 : index
    %c0_13 = arith.constant 0 : index
    %35 = vector.load %arg3[%c0_12, %c0_13] : memref<128x768xf32, #tpu.memory_space<vmem>>, vector<128x768xf32>
    %cst_14 = arith.constant dense<0.000000e+00> : vector<4x768xf32>
    %36 = tpu.matmul %34, %35, %cst_14 {dimension_numbers = #tpu.dot_dimension_numbers<[1], [0], [0], [1], [0, 0, 1, 1], [], []>} : vector<4x128xf32>, vector<128x768xf32>, vector<4x768xf32> -> vector<4x768xf32>
    %37 = arith.truncf %36 : vector<4x768xf32> to vector<4x768xbf16>
    %c0_15 = arith.constant 0 : index
    %c0_16 = arith.constant 0 : index
    %38 = vector.load %arg4[%c0_15, %c0_16] : memref<768x768xbf16, #tpu.memory_space<vmem>>, vector<768x768xbf16>
    %cst_17 = arith.constant dense<0.000000e+00> : vector<4x768xf32>
    %39 = tpu.matmul %37, %38, %cst_17 {dimension_numbers = #tpu.dot_dimension_numbers<[1], [0], [0], [1], [0, 0, 1, 1], [], []>} : vector<4x768xbf16>, vector<768x768xbf16>, vector<4x768xf32> -> vector<4x768xf32>
    %c0_18 = arith.constant 0 : index
    %c0_19 = arith.constant 0 : index
    %40 = vector.load %arg5[%c0_18, %c0_19] : memref<1x768xf32, #tpu.memory_space<vmem>>, vector<1x768xf32>
    %41 = vector.broadcast %40 : vector<1x768xf32> to vector<4x768xf32>
    %42 = arith.addf %39, %41 : vector<4x768xf32>
    %43 = math.tanh %42 : vector<4x768xf32>
    %44 = vector.extract_strided_slice %43 {offsets = [0, 0], sizes = [2, 768], strides = [1, 1]} : vector<4x768xf32> to vector<2x768xf32>
    %45 = vector.extract_strided_slice %43 {offsets = [2, 0], sizes = [2, 768], strides = [1, 1]} : vector<4x768xf32> to vector<2x768xf32>
    %46 = tpu.concatenate %44, %45 in 1 : vector<2x768xf32>, vector<2x768xf32> -> vector<2x1536xf32>
    %47 = arith.truncf %46 : vector<2x1536xf32> to vector<2x1536xbf16>
    %c0_20 = arith.constant 0 : index
    %c0_21 = arith.constant 0 : index
    %48 = vector.load %arg6[%c0_20, %c0_21] : memref<1536x512xbf16, #tpu.memory_space<vmem>>, vector<1536x512xbf16>
    %cst_22 = arith.constant dense<0.000000e+00> : vector<2x512xf32>
    %49 = tpu.matmul %47, %48, %cst_22 {dimension_numbers = #tpu.dot_dimension_numbers<[1], [0], [0], [1], [0, 0, 1, 1], [], []>} : vector<2x1536xbf16>, vector<1536x512xbf16>, vector<2x512xf32> -> vector<2x512xf32>
    %c0_23 = arith.constant 0 : index
    %c0_24 = arith.constant 0 : index
    %50 = vector.load %arg7[%c0_23, %c0_24] : memref<1x512xf32, #tpu.memory_space<vmem>>, vector<1x512xf32>
    %51 = vector.broadcast %50 : vector<1x512xf32> to vector<2x512xf32>
    %52 = arith.addf %49, %51 : vector<2x512xf32>
    %cst_25 = arith.constant 0.000000e+00 : f32
    %53 = vector.broadcast %cst_25 : f32 to vector<2x512xf32>
    %54 = arith.maximumf %52, %53 : vector<2x512xf32>
    %55 = arith.truncf %54 : vector<2x512xf32> to vector<2x512xbf16>
    %c0_26 = arith.constant 0 : index
    %c0_27 = arith.constant 0 : index
    %56 = vector.load %arg8[%c0_26, %c0_27] : memref<512x128xbf16, #tpu.memory_space<vmem>>, vector<512x128xbf16>
    %cst_28 = arith.constant dense<0.000000e+00> : vector<2x128xf32>
    %57 = tpu.matmul %55, %56, %cst_28 {dimension_numbers = #tpu.dot_dimension_numbers<[1], [0], [0], [1], [0, 0, 1, 1], [], []>} : vector<2x512xbf16>, vector<512x128xbf16>, vector<2x128xf32> -> vector<2x128xf32>
    %c0_29 = arith.constant 0 : index
    %c0_30 = arith.constant 0 : index
    %58 = vector.load %arg9[%c0_29, %c0_30] : memref<1x128xf32, #tpu.memory_space<vmem>>, vector<1x128xf32>
    %59 = vector.broadcast %58 : vector<1x128xf32> to vector<2x128xf32>
    %60 = arith.addf %57, %59 : vector<2x128xf32>
    %cst_31 = arith.constant dense<0xFF800000> : vector<2xf32>
    %61 = vector.multi_reduction <maximumf>, %60, %cst_31 [1] : vector<2x128xf32> to vector<2xf32>
    %62 = vector.shape_cast %61 : vector<2xf32> to vector<2x1xf32>
    %63 = vector.broadcast %62 : vector<2x1xf32> to vector<2x128xf32>
    %64 = arith.subf %60, %63 : vector<2x128xf32>
    %65 = math.exp %64 : vector<2x128xf32>
    %cst_32 = arith.constant dense<0.000000e+00> : vector<2xf32>
    %66 = vector.multi_reduction <add>, %65, %cst_32 [1] : vector<2x128xf32> to vector<2xf32>
    %67 = vector.shape_cast %66 : vector<2xf32> to vector<2x1xf32>
    %68 = math.log %67 : vector<2x1xf32>
    %69 = vector.broadcast %68 : vector<2x1xf32> to vector<2x128xf32>
    %70 = arith.subf %64, %69 : vector<2x128xf32>
    %c0_33 = arith.constant 0 : index
    %c0_34 = arith.constant 0 : index
    %71 = vector.load %arg10[%c0_33, %c0_34] : memref<2x128xf32, #tpu.memory_space<vmem>>, vector<2x128xf32>
    tpu.vector_store %arg10[%c0_33, %c0_34], %70 {strides = array<i32>} : memref<2x128xf32, #tpu.memory_space<vmem>>, vector<2x128xf32>,
    return
  }
  func.func @transform_0(%arg0: i32) -> (i32, i32) {
    %c0_i32 = arith.constant 0 : i32
    %c0_i32_0 = arith.constant 0 : i32
    %c0_i32_1 = arith.constant 0 : i32
    return %c0_i32, %c0_i32_0 : i32, i32
  }
  func.func @transform_1(%arg0: i32) -> (i32, i32) {
    %c0_i32 = arith.constant 0 : i32
    %c0_i32_0 = arith.constant 0 : i32
    %c0_i32_1 = arith.constant 0 : i32
    return %c0_i32, %c0_i32_0 : i32, i32
  }
  func.func @transform_2(%arg0: i32) -> (i32, i32) {
    %c0_i32 = arith.constant 0 : i32
    %c0_i32_0 = arith.constant 0 : i32
    %c0_i32_1 = arith.constant 0 : i32
    return %c0_i32, %c0_i32_0 : i32, i32
  }
  func.func @transform_3(%arg0: i32) -> (i32, i32) {
    %c0_i32 = arith.constant 0 : i32
    %c0_i32_0 = arith.constant 0 : i32
    %c0_i32_1 = arith.constant 0 : i32
    return %c0_i32, %c0_i32_0 : i32, i32
  }
  func.func @transform_4(%arg0: i32) -> (i32, i32) {
    %c0_i32 = arith.constant 0 : i32
    %c0_i32_0 = arith.constant 0 : i32
    %c0_i32_1 = arith.constant 0 : i32
    return %c0_i32, %c0_i32_0 : i32, i32
  }
  func.func @transform_5(%arg0: i32) -> (i32, i32) {
    %c0_i32 = arith.constant 0 : i32
    %c0_i32_0 = arith.constant 0 : i32
    %c0_i32_1 = arith.constant 0 : i32
    return %c0_i32, %c0_i32_0 : i32, i32
  }
  func.func @transform_6(%arg0: i32) -> (i32, i32) {
    %c0_i32 = arith.constant 0 : i32
    %c0_i32_0 = arith.constant 0 : i32
    %c0_i32_1 = arith.constant 0 : i32
    return %c0_i32, %c0_i32_0 : i32, i32
  }
  func.func @transform_7(%arg0: i32) -> (i32, i32) {
    %c0_i32 = arith.constant 0 : i32
    %c0_i32_0 = arith.constant 0 : i32
    %c0_i32_1 = arith.constant 0 : i32
    return %c0_i32, %c0_i32_0 : i32, i32
  }
  func.func @transform_8(%arg0: i32) -> (i32, i32) {
    %c0_i32 = arith.constant 0 : i32
    %c0_i32_0 = arith.constant 0 : i32
    %c0_i32_1 = arith.constant 0 : i32
    return %c0_i32, %c0_i32_0 : i32, i32
  }
  func.func @transform_9(%arg0: i32) -> (i32, i32) {
    %c0_i32 = arith.constant 0 : i32
    %c0_i32_0 = arith.constant 0 : i32
    %c0_i32_1 = arith.constant 0 : i32
    return %c0_i32, %c0_i32_0 : i32, i32
  }
}

</mosaic_0001>

<bundles_post_ra>
// kernel: tpu_custom_call.1
= control target key start
LH: loop header
LB: loop body
LE: loop exit
PB: predicated region body
PF: predicated region fallthrough
CT: control target
= control target key end

     0   :  { %14 = vsyncpa [#allocation3], 0  ;;  %s13621_s0 = inlined_call_operand.hbm [shape: s32[2,1024], index: 0, kind: input, shape index: {}]   ;;  %s13622_s1 = inlined_call_operand.hbm [shape: s32[2,1024], index: 1, kind: input, shape index: {}]   ;;  %s13623_s2 = inlined_call_operand.hbm [shape: f32[128,768], index: 2, kind: input, shape index: {}]   ;;  %s13624_s3 = inlined_call_operand.hbm [shape: bf16[768,768], index: 3, kind: input, shape index: {}]   ;;  %s13625_s4 = inlined_call_operand.hbm [shape: f32[1,768], index: 4, kind: input, shape index: {}]   ;;  %s13626_s5 = inlined_call_operand.hbm [shape: bf16[1536,512], index: 5, kind: input, shape index: {}]   ;;  %s13627_s6 = inlined_call_operand.hbm [shape: f32[1,512], index: 6, kind: input, shape index: {}]   ;;  %s13628_s7 = inlined_call_operand.hbm [shape: bf16[512,128], index: 7, kind: input, shape index: {}]   ;;  %s13629_s8 = inlined_call_operand.hbm [shape: f32[1,128], index: 8, kind: input, shape index: {}]   ;;  %s13630_s9 = inlined_call_operand.hbm [shape: f32[2,128], index: 9, kind: output, shape index: {}]  }
   0x1   :  { %15 = vsyncpa [#allocation6], 0 }
   0x2   :  { %16 = vsyncpa [#allocation9], 0 }
   0x3   :  { %17 = vsyncpa [#allocation12], 0 }
   0x4   :  { %18 = vsyncpa [#allocation15], 0 }
   0x5   :  { %19 = vsyncpa [#allocation4], 0  ;;  %s11100_s30 = smov [#allocation5]   ;;  %s11101_s11 = smov [#allocation8]  }
   0x6   :  { %s36_s10 = sshll.u32 %s11100_s30, 4  ;;  %s57_s12 = sshll.u32 %s11101_s11, 4  ;;  %s37_s10 = int_to_ptr.vmem [resolvable:$true] %s36_s10  ;;  %s11170_s12 = int_to_ptr.vmem [resolvable:$true] %s57_s12 }
   0x7   :  { %s10868_s15 = scalar_lea.hbm %s13622_s1, 256 }
   0x8   :  { %p10869_p0 = scmp.ne.s32.totalorder %s13622_s1, %s10868_s15  ;;  %p10872_p1 = scmp.lt.u32.totalorder %s10868_s15, %s13622_s1 }
   0xa   :  { %p10874_p2 = pnand %p10872_p1, %p10869_p0 }
   0xc   :  { %10877 = shalt.err (!%p10874_p2)
}
   0xd   :  { %s10878_s20 = scalar_lea.vmem %s37_s10, 256  ;;  %p10883_p4 = scmp.lt.s32.totalorder %s37_s10, %s37_s10 }
   0xe   :  { %p10879_p3 = scmp.ne.s32.totalorder %s37_s10, %s10878_s20  ;;  %p10884_p5 = scmp.lt.s32.totalorder %s10878_s20, %s10878_s20 }
  0x10   :  { %p10885_p6 = por %p10884_p5, %p10883_p4 }
  0x12   :  { %p10886_p7 = pnand %p10885_p6, %p10879_p3 }
  0x14   :  { %10889 = shalt.err (!%p10886_p7)
}
  0x15   :  { %39 = dma.hbm_to_vmem [thread:$0]  %s13622_s1, 256, %s37_s10, [#allocation6]  }
  0x16   :  { %s10890_s25 = scalar_lea.hbm %s13624_s3, 36864 }
  0x17   :  { %p10891_p8 = scmp.ne.s32.totalorder %s13624_s3, %s10890_s25  ;;  %p10894_p9 = scmp.lt.u32.totalorder %s10890_s25, %s13624_s3 }
  0x19   :  { %p10896_p10 = pnand %p10894_p9, %p10891_p8 }
  0x1b   :  { %10899 = shalt.err (!%p10896_p10)
}
  0x1c   :  { %s10900_s30 = scalar_lea.vmem %s11170_s12, 36864  ;;  %p10905_p12 = scmp.lt.s32.totalorder %s11170_s12, %s11170_s12 }
  0x1d   :  { %p10901_p11 = scmp.ne.s32.totalorder %s11170_s12, %s10900_s30  ;;  %p10906_p13 = scmp.lt.s32.totalorder %s10900_s30, %s10900_s30 }
  0x1f   :  { %p10907_p0 = por %p10906_p13, %p10905_p12 }
  0x21   :  { %p10908_p1 = pnand %p10907_p0, %p10901_p11 }
  0x23   :  { %10911 = shalt.err (!%p10908_p1)
}
  0x24   :  { %s11102_s1 = smov 384   ;;  %s11103_s10 = smov 24  }
  0x25   :  { %63 = dma.hbm_to_vmem [thread:$0]  %s13624_s3, 36864, %s11170_s12, [#allocation9], %s11102_s1, %s11102_s1, %s11103_s10  }
  0x26   :  { %s11104_s14 = smov [#allocation11]   ;;  %s10912_s18 = scalar_lea.hbm %s13626_s5, 49152 }
  0x27   :  { %s79_s15 = sshll.u32 %s11104_s14, 4  ;;  %p10913_p2 = scmp.ne.s32.totalorder %s13626_s5, %s10912_s18  ;;  %s80_s15 = int_to_ptr.vmem [resolvable:$true] %s79_s15 }
  0x28   :  { %p10916_p3 = scmp.lt.u32.totalorder %s10912_s18, %s13626_s5 }
  0x2a   :  { %p10918_p4 = pnand %p10916_p3, %p10913_p2 }
  0x2c   :  { %10921 = shalt.err (!%p10918_p4)
}
  0x2d   :  { %s10922_s23 = scalar_lea.vmem %s80_s15, 49152  ;;  %p10927_p6 = scmp.lt.s32.totalorder %s80_s15, %s80_s15 }
  0x2e   :  { %p10923_p5 = scmp.ne.s32.totalorder %s80_s15, %s10922_s23  ;;  %p10928_p7 = scmp.lt.s32.totalorder %s10922_s23, %s10922_s23 }
  0x30   :  { %p10929_p8 = por %p10928_p7, %p10927_p6 }
  0x32   :  { %p10930_p9 = pnand %p10929_p8, %p10923_p5 }
  0x34   :  { %10933 = shalt.err (!%p10930_p9)
}
  0x35   :  { %s11105_s3 = smov 256   ;;  %s11106_s12 = smov 16  }
  0x36   :  { %85 = dma.hbm_to_vmem [thread:$0]  %s13626_s5, 49152, %s80_s15, [#allocation12], %s11105_s3, %s11105_s3, %s11106_s12  }
  0x37   :  { %s11107_s26 = smov [#allocation14]   ;;  %s10934_s30 = scalar_lea.hbm %s13628_s7, 4096 }
  0x38   :  { %s101_s27 = sshll.u32 %s11107_s26, 4  ;;  %p10935_p10 = scmp.ne.s32.totalorder %s13628_s7, %s10934_s30  ;;  %s102_s27 = int_to_ptr.vmem [resolvable:$true] %s101_s27 }
  0x39   :  { %p10938_p11 = scmp.lt.u32.totalorder %s10934_s30, %s13628_s7 }
  0x3b   :  { %p10940_p12 = pnand %p10938_p11, %p10935_p10 }
  0x3d   :  { %10943 = shalt.err (!%p10940_p12)
}
  0x3e   :  { %s10944_s14 = scalar_lea.vmem %s102_s27, 4096  ;;  %p10949_p0 = scmp.lt.s32.totalorder %s102_s27, %s102_s27 }
  0x3f   :  { %p10945_p13 = scmp.ne.s32.totalorder %s102_s27, %s10944_s14  ;;  %p10950_p1 = scmp.lt.s32.totalorder %s10944_s14, %s10944_s14 }
  0x41   :  { %p10951_p2 = por %p10950_p1, %p10949_p0 }
  0x43   :  { %p10952_p3 = pnand %p10951_p2, %p10945_p13 }
  0x45   :  { %10955 = shalt.err (!%p10952_p3)
}
  0x46   :  { %s11108_s5 = smov 64   ;;  %s11109_s15 = smov 4  }
  0x47   :  { %107 = dma.hbm_to_vmem [thread:$0]  %s13628_s7, 4096, %s102_s27, [#allocation15], %s11108_s5, %s11108_s5, %s11109_s15  }
  0x48   :  { %s11110_s18 = smov [#allocation2]   ;;  %s11111_s20 = smov [#allocation7]  }
  0x49   :  { %s26_s19 = sshll.u32 %s11110_s18, 4  ;;  %s45_s21 = sshll.u32 %s11111_s20, 4  ;;  %s27_s19 = int_to_ptr.vmem [resolvable:$true] %s26_s19  ;;  %s11225_s21 = int_to_ptr.vmem [resolvable:$true] %s45_s21 }
  0x4a   :  { %s10956_s3 = scalar_lea.hbm %s13621_s0, 256 }
  0x4b   :  { %p10957_p4 = scmp.ne.s32.totalorder %s13621_s0, %s10956_s3  ;;  %p10960_p5 = scmp.lt.u32.totalorder %s10956_s3, %s13621_s0 }
  0x4d   :  { %p10962_p6 = pnand %p10960_p5, %p10957_p4 }
  0x4f   :  { %10965 = shalt.err (!%p10962_p6)
}
  0x50   :  { %s10966_s7 = scalar_lea.vmem %s27_s19, 256  ;;  %p10971_p8 = scmp.lt.s32.totalorder %s27_s19, %s27_s19 }
  0x51   :  { %p10967_p7 = scmp.ne.s32.totalorder %s27_s19, %s10966_s7  ;;  %p10972_p9 = scmp.lt.s32.totalorder %s10966_s7, %s10966_s7 }
  0x53   :  { %p10973_p10 = por %p10972_p9, %p10971_p8 }
  0x55   :  { %p10974_p11 = pnand %p10973_p10, %p10967_p7 }
  0x57   :  { %10977 = shalt.err (!%p10974_p11)
}
  0x58   :  { %29 = dma.hbm_to_vmem [thread:$0]  %s13621_s0, 256, %s27_s19, [#allocation3]  }
  0x59   :  { %s10978_s1 = scalar_lea.hbm %s13623_s2, 12288 }
  0x5a   :  { %p10979_p12 = scmp.ne.s32.totalorder %s13623_s2, %s10978_s1  ;;  %p10982_p13 = scmp.lt.u32.totalorder %s10978_s1, %s13623_s2 }
  0x5c   :  { %p10984_p0 = pnand %p10982_p13, %p10979_p12 }
  0x5e   :  { %10987 = shalt.err (!%p10984_p0)
}
  0x5f   :  { %s10988_s5 = scalar_lea.vmem %s11225_s21, 12288  ;;  %p10993_p2 = scmp.lt.s32.totalorder %s11225_s21, %s11225_s21 }
  0x60   :  { %p10989_p1 = scmp.ne.s32.totalorder %s11225_s21, %s10988_s5  ;;  %p10994_p3 = scmp.lt.s32.totalorder %s10988_s5, %s10988_s5 }
  0x62   :  { %p10995_p4 = por %p10994_p3, %p10993_p2 }
  0x64   :  { %p10996_p5 = pnand %p10995_p4, %p10989_p1 }
  0x66   :  { %10999 = shalt.err (!%p10996_p5)
}
  0x67   :  { %s11112_s0 = smov 768   ;;  %s11113_s15 = smov 48  }
  0x68   :  { %51 = dma.hbm_to_vmem [thread:$0]  %s13623_s2, 12288, %s11225_s21, [#allocation6], %s11112_s0, %s11112_s0, %s11113_s15  }
  0x69   :  { %s11114_s18 = smov [#allocation10]   ;;  %s11115_s20 = smov [#allocation13]  }
  0x6a   :  { %s70_s19 = sshll.u32 %s11114_s18, 4  ;;  %s92_s22 = sshll.u32 %s11115_s20, 4  ;;  %s71_s19 = int_to_ptr.vmem [resolvable:$true] %s70_s19  ;;  %s93_s22 = int_to_ptr.vmem [resolvable:$true] %s92_s22 }
  0x6b   :  { %s11000_s12 = scalar_lea.hbm %s13625_s4, 96 }
  0x6c   :  { %p11001_p6 = scmp.ne.s32.totalorder %s13625_s4, %s11000_s12  ;;  %p11004_p7 = scmp.lt.u32.totalorder %s11000_s12, %s13625_s4 }
  0x6e   :  { %p11006_p8 = pnand %p11004_p7, %p11001_p6 }
  0x70   :  { %11009 = shalt.err (!%p11006_p8)
}
  0x71   :  { %s11010_s2 = scalar_lea.vmem %s71_s19, 96  ;;  %p11015_p10 = scmp.lt.s32.totalorder %s71_s19, %s71_s19 }
  0x72   :  { %p11011_p9 = scmp.ne.s32.totalorder %s71_s19, %s11010_s2  ;;  %p11016_p11 = scmp.lt.s32.totalorder %s11010_s2, %s11010_s2 }
  0x74   :  { %p11017_p12 = por %p11016_p11, %p11015_p10 }
  0x76   :  { %p11018_p13 = pnand %p11017_p12, %p11011_p9 }
  0x78   :  { %11021 = shalt.err (!%p11018_p13)
}
  0x79   :  { %73 = dma.hbm_to_vmem [thread:$0]  %s13625_s4, 96, %s71_s19, [#allocation9]  }
  0x7a   :  { %s11022_s30 = scalar_lea.hbm %s13627_s6, 64 }
  0x7b   :  { %p11023_p0 = scmp.ne.s32.totalorder %s13627_s6, %s11022_s30  ;;  %p11026_p1 = scmp.lt.u32.totalorder %s11022_s30, %s13627_s6 }
  0x7d   :  { %p11028_p2 = pnand %p11026_p1, %p11023_p0 }
  0x7f   :  { %11031 = shalt.err (!%p11028_p2)
}
  0x80   :  { %s11032_s14 = scalar_lea.vmem %s93_s22, 64  ;;  %p11037_p4 = scmp.lt.s32.totalorder %s93_s22, %s93_s22 }
  0x81   :  { %p11033_p3 = scmp.ne.s32.totalorder %s93_s22, %s11032_s14  ;;  %p11038_p5 = scmp.lt.s32.totalorder %s11032_s14, %s11032_s14 }
  0x83   :  { %p11039_p6 = por %p11038_p5, %p11037_p4 }
  0x85   :  { %p11040_p7 = pnand %p11039_p6, %p11033_p3 }
  0x87   :  { %11043 = shalt.err (!%p11040_p7)
}
  0x88   :  { %95 = dma.hbm_to_vmem [thread:$0]  %s13627_s6, 64, %s93_s22, [#allocation12]  }
  0x89   :  { %s11116_s0 = smov [#allocation16]   ;;  %s11044_s18 = scalar_lea.hbm %s13629_s8, 16 }
  0x8a   :  { %s114_s15 = sshll.u32 %s11116_s0, 4  ;;  %p11045_p8 = scmp.ne.s32.totalorder %s13629_s8, %s11044_s18  ;;  %s115_s15 = int_to_ptr.vmem [resolvable:$true] %s114_s15 }
  0x8b   :  { %p11048_p9 = scmp.lt.u32.totalorder %s11044_s18, %s13629_s8 }
  0x8d   :  { %p11050_p10 = pnand %p11048_p9, %p11045_p8 }
  0x8f   :  { %11053 = shalt.err (!%p11050_p10)
}
  0x90   :  { %s11054_s12 = scalar_lea.vmem %s115_s15, 16  ;;  %s11058_s6 = scalar_lea.vmem %s115_s15, 32 }
  0x91   :  { %p11055_p11 = scmp.ne.s32.totalorder %s115_s15, %s11054_s12  ;;  %p11059_p12 = scmp.lt.s32.totalorder %s115_s15, %s115_s15 }
  0x92   :  { %p11060_p13 = scmp.lt.s32.totalorder %s11058_s6, %s11054_s12 }
  0x94   :  { %p11061_p0 = por %p11060_p13, %p11059_p12 }
  0x96   :  { %p11062_p1 = pnand %p11061_p0, %p11055_p11 }
  0x98   :  { %11065 = shalt.err (!%p11062_p1)
}
  0x99   :  { %117 = dma.hbm_to_vmem [thread:$0]  %s13629_s8, 16, %s115_s15, [#allocation15]  }
  0x9a   :  { %11088 = dma.done.wait [#allocation3], 256  }
  0x9b   :  { %11089 = vsyncadd [#allocation3], 4294967040 }
  0x9c   :  { %11090 = dma.done.wait [#allocation6], 12544  }
  0x9d   :  { %11091 = vsyncadd [#allocation6], 4294954752 }
  0x9e   :  { %11092 = dma.done.wait [#allocation9], 36960  }
  0x9f   :  { %11093 = vsyncadd [#allocation9], 4294930336 }
  0xa0   :  { %11094 = dma.done.wait [#allocation12], 49216  }
  0xa1   :  { %11095 = vsyncadd [#allocation12], 4294918080 }
  0xa2   :  { %11096 = dma.done.wait [#allocation15], 4112  }
  0xa3   :  { %11097 = vsyncadd [#allocation15], 4294963184  ;;  %v13631_v0 = vlaneseq  ;;  %v11117_v1 = vmov 1983009808   ;;  %v147_v12 = vld [vmem:[#allocation5] sm:$0xff]  ;;  %v1657_v15 = vld [vmem:[#allocation5 + $0x8] sm:$0xff] }
  0xa4   :  { %v153_v2 = vunpack.c.l.s4 %v11117_v1  ;;  %v11304_v8 = vld.sshfl [vmem:[#allocation2] sm:$0xff pattern:$0x76325410]  ;;  %v11306_v9 = vld.sshfl [vmem:[#allocation2 + $0x8] sm:$0xff pattern:$0x76325410]  ;;  %v11324_v14 = vcvt.s32.f32 %v147_v12  ;;  %v11342_v19 = vcvt.s32.f32 %v1657_v15 }
  0xa5   :  { %v11293_v3 = vshrl.u32 %v13631_v0, 7  ;;  %s11119_s8 = smov [#allocation17]  }
  0xa6   :  { %v154_v4 = vunpack.c.0.s8 %v153_v2  ;;  %s8852_s25 = sshll.u32 %s11119_s8, 4  ;;  %s8853_s25 = int_to_ptr.vmem [resolvable:$true] %s8852_s25 }
  0xa7   :  { %13638 = vst [vmem:[#allocation24_spill] sm:$0xff] %v11293_v3  ;;  %v11299_v6 = vsub.s32 0, %v11293_v3  ;;  %v11302_v7 = vsub.s32 1, %v11293_v3  ;;  %s11066_s26 = scalar_lea.vmem %s8853_s25, 32  ;;  %p11071_p3 = scmp.lt.s32.totalorder %s8853_s25, %s8853_s25 }
  0xa8   :  { %v11296_v5 = vsub.s32 %v154_v4, %v11293_v3  ;;  %p11067_p2 = scmp.ne.s32.totalorder %s8853_s25, %s11066_s26  ;;  %p11072_p4 = scmp.lt.s32.totalorder %s11066_s26, %s11066_s26 }
  0xa9   :  { %13639 = vst [vmem:[#allocation25_spill] sm:$0xff] %v11299_v6  ;;  %13640 = vst [vmem:[#allocation26_spill] sm:$0xff] %v11302_v7  ;;  %v11310_v10 = vrot.slane %v11304_v8, %v11302_v7  ;;  %v11314_v11 = vrot.slane %v11304_v8, %v11299_v6  ;;  %v11322_v13 = vrot.slane %v11306_v9, %v11299_v6 }
  0xaa   :  { %v11330_v16 = vrot.slane %v11306_v9, %v11302_v7  ;;  %v11334_v17 = vrot.slane %v11324_v14, %v11296_v5  ;;  %v11352_v21 = vrot.slane %v11342_v19, %v11296_v5  ;;  %p11073_p5 = por %p11072_p4, %p11071_p3 }
  0xab   :  { %441 = vbcast.lane.b32.xlu1 %v11310_v10, 256  ;;  %173 = vbcast.lane.b32.xlu0 %v11314_v11, 256 }
  0xac   :  { %v11340_v18 = vrot.slane %v11334_v17, %v11299_v6  ;;  %v11348_v20 = vrot.slane %v11334_v17, %v11302_v7  ;;  %v11358_v22 = vrot.slane %v11352_v21, %v11299_v6  ;;  %v11364_v23 = vrot.slane %v11352_v21, %v11302_v7  ;;  %p11074_p6 = pnand %p11073_p5, %p11067_p2 }
  0xaf   :  { %445 = vbcast.lane.b32.xlu1 %v11310_v10, 264  ;;  %177 = vbcast.lane.b32.xlu0 %v11314_v11, 264 }
  0xb3   :  { %1685 = vbcast.lane.b32.xlu1 %v11322_v13, 264  ;;  %1681 = vbcast.lane.b32.xlu0 %v11322_v13, 256 }
  0xb7   :  { %1953 = vbcast.lane.b32.xlu1 %v11330_v16, 264  ;;  %1949 = vbcast.lane.b32.xlu0 %v11330_v16, 256 }
  0xbb   :  { %863 = vbcast.lane.b32.xlu1 %v11340_v18, 264  ;;  %859 = vbcast.lane.b32.xlu0 %v11340_v18, 256 }
  0xbf   :  { %1131 = vbcast.lane.b32.xlu1 %v11348_v20, 264  ;;  %1127 = vbcast.lane.b32.xlu0 %v11348_v20, 256 }
  0xc3   :  { %2371 = vbcast.lane.b32.xlu1 %v11358_v22, 264  ;;  %2367 = vbcast.lane.b32.xlu0 %v11358_v22, 256 }
  0xc7   :  { %2639 = vbcast.lane.b32.xlu1 %v11364_v23, 264  ;;  %2635 = vbcast.lane.b32.xlu0 %v11364_v23, 256 }
  0xcb   :  { %449 = vbcast.lane.b32.xlu1 %v11310_v10, 272  ;;  %181 = vbcast.lane.b32.xlu0 %v11314_v11, 272 }
  0xcf   :  { %1957 = vbcast.lane.b32.xlu1 %v11330_v16, 272  ;;  %1689 = vbcast.lane.b32.xlu0 %v11322_v13, 272 }
  0xd3   :  { %1135 = vbcast.lane.b32.xlu1 %v11348_v20, 272  ;;  %867 = vbcast.lane.b32.xlu0 %v11340_v18, 272 }
  0xd7   :  { %2643 = vbcast.lane.b32.xlu1 %v11364_v23, 272  ;;  %2375 = vbcast.lane.b32.xlu0 %v11358_v22, 272 }
  0xdb   :  { %453 = vbcast.lane.b32.xlu1 %v11310_v10, 280  ;;  %185 = vbcast.lane.b32.xlu0 %v11314_v11, 280 }
  0xdf   :  { %1961 = vbcast.lane.b32.xlu1 %v11330_v16, 280  ;;  %1693 = vbcast.lane.b32.xlu0 %v11322_v13, 280 }
  0xe3   :  { %1139 = vbcast.lane.b32.xlu1 %v11348_v20, 280  ;;  %871 = vbcast.lane.b32.xlu0 %v11340_v18, 280 }
  0xe7   :  { %2647 = vbcast.lane.b32.xlu1 %v11364_v23, 280  ;;  %2379 = vbcast.lane.b32.xlu0 %v11358_v22, 280 }
  0xeb   :  { %457 = vbcast.lane.b32.xlu1 %v11310_v10, 288  ;;  %189 = vbcast.lane.b32.xlu0 %v11314_v11, 288 }
  0xef   :  { %1965 = vbcast.lane.b32.xlu1 %v11330_v16, 288  ;;  %1697 = vbcast.lane.b32.xlu0 %v11322_v13, 288 }
  0xf3   :  { %1143 = vbcast.lane.b32.xlu1 %v11348_v20, 288  ;;  %875 = vbcast.lane.b32.xlu0 %v11340_v18, 288 }
  0xf7   :  { %2651 = vbcast.lane.b32.xlu1 %v11364_v23, 288  ;;  %2383 = vbcast.lane.b32.xlu0 %v11358_v22, 288 }
  0xfb   :  { %461 = vbcast.lane.b32.xlu1 %v11310_v10, 296  ;;  %193 = vbcast.lane.b32.xlu0 %v11314_v11, 296 }
  0xff   :  { %1969 = vbcast.lane.b32.xlu1 %v11330_v16, 296  ;;  %1701 = vbcast.lane.b32.xlu0 %v11322_v13, 296 }
 0x103   :  { %1147 = vbcast.lane.b32.xlu1 %v11348_v20, 296  ;;  %879 = vbcast.lane.b32.xlu0 %v11340_v18, 296 }
 0x107   :  { %2655 = vbcast.lane.b32.xlu1 %v11364_v23, 296  ;;  %2387 = vbcast.lane.b32.xlu0 %v11358_v22, 296 }
 0x10b   :  { %465 = vbcast.lane.b32.xlu1 %v11310_v10, 304  ;;  %197 = vbcast.lane.b32.xlu0 %v11314_v11, 304 }
 0x10f   :  { %1973 = vbcast.lane.b32.xlu1 %v11330_v16, 304  ;;  %1705 = vbcast.lane.b32.xlu0 %v11322_v13, 304 }
 0x113   :  { %1151 = vbcast.lane.b32.xlu1 %v11348_v20, 304  ;;  %883 = vbcast.lane.b32.xlu0 %v11340_v18, 304 }
 0x117   :  { %2659 = vbcast.lane.b32.xlu1 %v11364_v23, 304  ;;  %2391 = vbcast.lane.b32.xlu0 %v11358_v22, 304 }
 0x11b   :  { %469 = vbcast.lane.b32.xlu1 %v11310_v10, 312  ;;  %201 = vbcast.lane.b32.xlu0 %v11314_v11, 312 }
 0x11d   :  { %v11410_v24 = vpop.permute.xlu1 %441  ;;  %v11412_v25 = vpop.permute.xlu0 %173 }
 0x11f   :  { %1977 = vbcast.lane.b32.xlu1 %v11330_v16, 312  ;;  %1709 = vbcast.lane.b32.xlu0 %v11322_v13, 312 }
 0x121   :  { %v11416_v26 = vpop.permute.xlu1 %445  ;;  %v11418_v27 = vpop.permute.xlu0 %177 }
 0x123   :  { %1155 = vbcast.lane.b32.xlu1 %v11348_v20, 312  ;;  %887 = vbcast.lane.b32.xlu0 %v11340_v18, 312 }
 0x125   :  { %v11422_v28 = vpop.permute.xlu1 %1685  ;;  %v11424_v29 = vpop.permute.xlu0 %1681 }
 0x127   :  { %2663 = vbcast.lane.b32.xlu1 %v11364_v23, 312  ;;  %2395 = vbcast.lane.b32.xlu0 %v11358_v22, 312 }
 0x129   :  { %v11428_v30 = vpop.permute.xlu1 %1953  ;;  %v11430_v31 = vpop.permute.xlu0 %1949 }
 0x12b   :  { %473 = vbcast.lane.b32.xlu1 %v11310_v10, 320  ;;  %205 = vbcast.lane.b32.xlu0 %v11314_v11, 320 }
 0x12d   :  { %v11434_v32 = vpop.permute.xlu1 %863  ;;  %v11436_v33 = vpop.permute.xlu0 %859 }
 0x12f   :  { %1981 = vbcast.lane.b32.xlu1 %v11330_v16, 320  ;;  %1713 = vbcast.lane.b32.xlu0 %v11322_v13, 320 }
 0x131   :  { %v11440_v34 = vpop.permute.xlu1 %1131  ;;  %v11442_v35 = vpop.permute.xlu0 %1127 }
 0x133   :  { %1159 = vbcast.lane.b32.xlu1 %v11348_v20, 320  ;;  %891 = vbcast.lane.b32.xlu0 %v11340_v18, 320 }
 0x135   :  { %v11446_v36 = vpop.permute.xlu1 %2371  ;;  %v11448_v37 = vpop.permute.xlu0 %2367 }
 0x137   :  { %2667 = vbcast.lane.b32.xlu1 %v11364_v23, 320  ;;  %2399 = vbcast.lane.b32.xlu0 %v11358_v22, 320 }
 0x139   :  { %v11452_v38 = vpop.permute.xlu1 %2639  ;;  %v11454_v39 = vpop.permute.xlu0 %2635 }
 0x13b   :  { %477 = vbcast.lane.b32.xlu1 %v11310_v10, 328  ;;  %209 = vbcast.lane.b32.xlu0 %v11314_v11, 328 }
 0x13d   :  { %v11458_v40 = vpop.permute.xlu1 %449  ;;  %v11460_v41 = vpop.permute.xlu0 %181 }
 0x13f   :  { %1985 = vbcast.lane.b32.xlu1 %v11330_v16, 328  ;;  %1717 = vbcast.lane.b32.xlu0 %v11322_v13, 328 }
 0x141   :  { %v11464_v42 = vpop.permute.xlu1 %1957  ;;  %v11466_v43 = vpop.permute.xlu0 %1689 }
 0x143   :  { %1163 = vbcast.lane.b32.xlu1 %v11348_v20, 328  ;;  %895 = vbcast.lane.b32.xlu0 %v11340_v18, 328 }
 0x145   :  { %v11470_v44 = vpop.permute.xlu1 %1135  ;;  %v11472_v45 = vpop.permute.xlu0 %867 }
 0x147   :  { %2671 = vbcast.lane.b32.xlu1 %v11364_v23, 328  ;;  %2403 = vbcast.lane.b32.xlu0 %v11358_v22, 328 }
 0x149   :  { %v11476_v46 = vpop.permute.xlu1 %2643  ;;  %v11478_v47 = vpop.permute.xlu0 %2375 }
 0x14b   :  { %481 = vbcast.lane.b32.xlu1 %v11310_v10, 336  ;;  %213 = vbcast.lane.b32.xlu0 %v11314_v11, 336 }
 0x14d   :  { %v11482_v48 = vpop.permute.xlu1 %453  ;;  %v11484_v49 = vpop.permute.xlu0 %185 }
 0x14f   :  { %1989 = vbcast.lane.b32.xlu1 %v11330_v16, 336  ;;  %1721 = vbcast.lane.b32.xlu0 %v11322_v13, 336 }
 0x151   :  { %v11488_v50 = vpop.permute.xlu1 %1961  ;;  %v11490_v51 = vpop.permute.xlu0 %1693 }
 0x153   :  { %1167 = vbcast.lane.b32.xlu1 %v11348_v20, 336  ;;  %899 = vbcast.lane.b32.xlu0 %v11340_v18, 336 }
 0x155   :  { %v11494_v52 = vpop.permute.xlu1 %1139  ;;  %v11496_v53 = vpop.permute.xlu0 %871 }
 0x157   :  { %2675 = vbcast.lane.b32.xlu1 %v11364_v23, 336  ;;  %2407 = vbcast.lane.b32.xlu0 %v11358_v22, 336 }
 0x159   :  { %v11500_v54 = vpop.permute.xlu1 %2647  ;;  %v11502_v55 = vpop.permute.xlu0 %2379 }
 0x15b   :  { %485 = vbcast.lane.b32.xlu1 %v11310_v10, 344  ;;  %217 = vbcast.lane.b32.xlu0 %v11314_v11, 344 }
 0x15d   :  { %v11506_v56 = vpop.permute.xlu1 %457  ;;  %v11508_v57 = vpop.permute.xlu0 %189 }
 0x15f   :  { %1993 = vbcast.lane.b32.xlu1 %v11330_v16, 344  ;;  %1725 = vbcast.lane.b32.xlu0 %v11322_v13, 344 }
 0x161   :  { %v11512_v58 = vpop.permute.xlu1 %1965  ;;  %v11514_v59 = vpop.permute.xlu0 %1697 }
 0x163   :  { %1171 = vbcast.lane.b32.xlu1 %v11348_v20, 344  ;;  %903 = vbcast.lane.b32.xlu0 %v11340_v18, 344 }
 0x165   :  { %v11518_v60 = vpop.permute.xlu1 %1143  ;;  %v11520_v61 = vpop.permute.xlu0 %875 }
 0x167   :  { %2679 = vbcast.lane.b32.xlu1 %v11364_v23, 344  ;;  %2411 = vbcast.lane.b32.xlu0 %v11358_v22, 344 }
 0x169   :  { %v11524_v62 = vpop.permute.xlu1 %2651  ;;  %v11526_v63 = vpop.permute.xlu0 %2383 }
 0x16b   :  { %489 = vbcast.lane.b32.xlu1 %v11310_v10, 352  ;;  %221 = vbcast.lane.b32.xlu0 %v11314_v11, 352 }
 0x16d   :  { %v11530_v1 = vpop.permute.xlu1 %461  ;;  %v11532_v2 = vpop.permute.xlu0 %193 }
 0x16e   :  { %13641 = vst [vmem:[#allocation27_spill] sm:$0xff] %v11532_v2 }
 0x16f   :  { %1997 = vbcast.lane.b32.xlu1 %v11330_v16, 352  ;;  %1729 = vbcast.lane.b32.xlu0 %v11322_v13, 352 }
 0x171   :  { %v11536_v4 = vpop.permute.xlu1 %1969  ;;  %v11538_v12 = vpop.permute.xlu0 %1701 }
 0x172   :  { %13642 = vst [vmem:[#allocation28_spill] sm:$0xff] %v11536_v4  ;;  %13643 = vst [vmem:[#allocation29_spill] sm:$0xff] %v11538_v12 }
 0x173   :  { %1175 = vbcast.lane.b32.xlu1 %v11348_v20, 352  ;;  %907 = vbcast.lane.b32.xlu0 %v11340_v18, 352 }
 0x175   :  { %v11542_v15 = vpop.permute.xlu1 %1147  ;;  %v11544_v0 = vpop.permute.xlu0 %879 }
 0x176   :  { %13644 = vst [vmem:[#allocation30_spill] sm:$0xff] %v11542_v15  ;;  %13645 = vst [vmem:[#allocation31_spill] sm:$0xff] %v11544_v0 }
 0x177   :  { %2683 = vbcast.lane.b32.xlu1 %v11364_v23, 352  ;;  %2415 = vbcast.lane.b32.xlu0 %v11358_v22, 352 }
 0x179   :  { %v11548_v3 = vpop.permute.xlu1 %2655  ;;  %v11550_v2 = vpop.permute.xlu0 %2387 }
 0x17a   :  { %13646 = vst [vmem:[#allocation32_spill] sm:$0xff] %v11548_v3  ;;  %13647 = vst [vmem:[#allocation33_spill] sm:$0xff] %v11550_v2 }
 0x17b   :  { %493 = vbcast.lane.b32.xlu1 %v11310_v10, 360  ;;  %225 = vbcast.lane.b32.xlu0 %v11314_v11, 360 }
 0x17d   :  { %v11554_v12 = vpop.permute.xlu1 %465  ;;  %v11556_v4 = vpop.permute.xlu0 %197 }
 0x17e   :  { %13648 = vst [vmem:[#allocation34_spill] sm:$0xff] %v11554_v12  ;;  %13649 = vst [vmem:[#allocation35_spill] sm:$0xff] %v11556_v4 }
 0x17f   :  { %2001 = vbcast.lane.b32.xlu1 %v11330_v16, 360  ;;  %1733 = vbcast.lane.b32.xlu0 %v11322_v13, 360 }
 0x181   :  { %v11560_v0 = vpop.permute.xlu1 %1973  ;;  %v11562_v15 = vpop.permute.xlu0 %1705 }
 0x182   :  { %13650 = vst [vmem:[#allocation36_spill] sm:$0xff] %v11560_v0  ;;  %13651 = vst [vmem:[#allocation37_spill] sm:$0xff] %v11562_v15 }
 0x183   :  { %1179 = vbcast.lane.b32.xlu1 %v11348_v20, 360  ;;  %911 = vbcast.lane.b32.xlu0 %v11340_v18, 360 }
 0x185   :  { %v11566_v2 = vpop.permute.xlu1 %1151  ;;  %v11568_v3 = vpop.permute.xlu0 %883 }
 0x186   :  { %13652 = vst [vmem:[#allocation38_spill] sm:$0xff] %v11566_v2  ;;  %13653 = vst [vmem:[#allocation39_spill] sm:$0xff] %v11568_v3 }
 0x187   :  { %2687 = vbcast.lane.b32.xlu1 %v11364_v23, 360  ;;  %2419 = vbcast.lane.b32.xlu0 %v11358_v22, 360 }
 0x189   :  { %v11572_v4 = vpop.permute.xlu1 %2659  ;;  %v11574_v12 = vpop.permute.xlu0 %2391 }
 0x18a   :  { %13654 = vst [vmem:[#allocation40_spill] sm:$0xff] %v11572_v4  ;;  %13655 = vst [vmem:[#allocation41_spill] sm:$0xff] %v11574_v12 }
 0x18b   :  { %497 = vbcast.lane.b32.xlu1 %v11310_v10, 368  ;;  %229 = vbcast.lane.b32.xlu0 %v11314_v11, 368 }
 0x18d   :  { %v11578_v15 = vpop.permute.xlu1 %469  ;;  %v11580_v0 = vpop.permute.xlu0 %201 }
 0x18e   :  { %13656 = vst [vmem:[#allocation42_spill] sm:$0xff] %v11578_v15  ;;  %13657 = vst [vmem:[#allocation43_spill] sm:$0xff] %v11580_v0 }
 0x18f   :  { %2005 = vbcast.lane.b32.xlu1 %v11330_v16, 368  ;;  %1737 = vbcast.lane.b32.xlu0 %v11322_v13, 368 }
 0x191   :  { %v11584_v3 = vpop.permute.xlu1 %1977  ;;  %v11586_v2 = vpop.permute.xlu0 %1709 }
 0x192   :  { %13658 = vst [vmem:[#allocation44_spill] sm:$0xff] %v11584_v3  ;;  %13659 = vst [vmem:[#allocation45_spill] sm:$0xff] %v11586_v2 }
 0x193   :  { %1183 = vbcast.lane.b32.xlu1 %v11348_v20, 368  ;;  %915 = vbcast.lane.b32.xlu0 %v11340_v18, 368 }
 0x195   :  { %v11590_v12 = vpop.permute.xlu1 %1155  ;;  %v11592_v4 = vpop.permute.xlu0 %887 }
 0x196   :  { %13660 = vst [vmem:[#allocation46_spill] sm:$0xff] %v11590_v12  ;;  %13661 = vst [vmem:[#allocation47_spill] sm:$0xff] %v11592_v4 }
 0x197   :  { %2691 = vbcast.lane.b32.xlu1 %v11364_v23, 368  ;;  %2423 = vbcast.lane.b32.xlu0 %v11358_v22, 368 }
 0x199   :  { %v11596_v0 = vpop.permute.xlu1 %2663  ;;  %v11598_v15 = vpop.permute.xlu0 %2395 }
 0x19b   :  { %501 = vbcast.lane.b32.xlu1 %v11310_v10, 376  ;;  %233 = vbcast.lane.b32.xlu0 %v11314_v11, 376  ;;  %v166_v10 = vcombine.high %v11304_v8, %v11304_v8 }
 0x19d   :  { %v11602_v2 = vpop.permute.xlu1 %473  ;;  %v11604_v3 = vpop.permute.xlu0 %205 }
 0x19e   :  { %13662 = vst [vmem:[#allocation48_spill] sm:$0xff] %v11602_v2  ;;  %13663 = vst [vmem:[#allocation49_spill] sm:$0xff] %v11604_v3 }
 0x19f   :  { %2009 = vbcast.lane.b32.xlu1 %v11330_v16, 376  ;;  %1741 = vbcast.lane.b32.xlu0 %v11322_v13, 376  ;;  %v11623_v13 = vrot.slane %v166_v10, %v11302_v7  ;;  %v11626_v16 = vrot.slane %v166_v10, %v11299_v6  ;;  %v848_v10 = vcombine.high %v11334_v17, %v11334_v17 }
 0x1a1   :  { %v11608_v4 = vpop.permute.xlu1 %1981  ;;  %v11610_v12 = vpop.permute.xlu0 %1713 }
 0x1a2   :  { %13664 = vst [vmem:[#allocation50_spill] sm:$0xff] %v11608_v4  ;;  %13665 = vst [vmem:[#allocation51_spill] sm:$0xff] %v11610_v12 }
 0x1a3   :  { %1187 = vbcast.lane.b32.xlu1 %v11348_v20, 376  ;;  %919 = vbcast.lane.b32.xlu0 %v11340_v18, 376  ;;  %v1674_v18 = vcombine.high %v11306_v9, %v11306_v9 }
 0x1a5   :  { %v11616_v11 = vpop.permute.xlu1 %1159  ;;  %v11618_v2 = vpop.permute.xlu0 %891 }
 0x1a6   :  { %13666 = vst [vmem:[#allocation52_spill] sm:$0xff] %v11616_v11  ;;  %13667 = vst [vmem:[#allocation53_spill] sm:$0xff] %v11618_v2 }
 0x1a7   :  { %2695 = vbcast.lane.b32.xlu1 %v11364_v23, 376  ;;  %2427 = vbcast.lane.b32.xlu0 %v11358_v22, 376  ;;  %v11637_v23 = vrot.slane %v1674_v18, %v11302_v7  ;;  %v11640_v22 = vrot.slane %v1674_v18, %v11299_v6  ;;  %v2356_v18 = vcombine.high %v11352_v21, %v11352_v21 }
 0x1a9   :  { %v11630_v20 = vpop.permute.xlu1 %2667  ;;  %v11632_v8 = vpop.permute.xlu0 %2399 }
 0x1aa   :  { %13668 = vst [vmem:[#allocation54_spill] sm:$0xff] %v11630_v20  ;;  %13669 = vst [vmem:[#allocation55_spill] sm:$0xff] %v11632_v8  ;;  %v11651_v8 = vrot.slane %v848_v10, %v11302_v7  ;;  %v11654_v20 = vrot.slane %v848_v10, %v11299_v6 }
 0x1ab   :  { %508 = vbcast.lane.b32.xlu1 %v11623_v13, 256  ;;  %240 = vbcast.lane.b32.xlu0 %v11626_v16, 256 }
 0x1ad   :  { %v11644_v2 = vpop.permute.xlu1 %477  ;;  %v11646_v9 = vpop.permute.xlu0 %209 }
 0x1ae   :  { %13670 = vst [vmem:[#allocation56_spill] sm:$0xff] %v11644_v2  ;;  %13671 = vst [vmem:[#allocation57_spill] sm:$0xff] %v11646_v9  ;;  %v11665_v9 = vrot.slane %v2356_v18, %v11302_v7  ;;  %v11668_v2 = vrot.slane %v2356_v18, %v11299_v6 }
 0x1af   :  { %2016 = vbcast.lane.b32.xlu1 %v11637_v23, 256  ;;  %1748 = vbcast.lane.b32.xlu0 %v11640_v22, 256 }
 0x1b1   :  { %v11658_v11 = vpop.permute.xlu1 %1985  ;;  %v11660_v17 = vpop.permute.xlu0 %1717 }
 0x1b2   :  { %13672 = vst [vmem:[#allocation58_spill] sm:$0xff] %v11658_v11  ;;  %13673 = vst [vmem:[#allocation59_spill] sm:$0xff] %v11660_v17 }
 0x1b3   :  { %1194 = vbcast.lane.b32.xlu1 %v11651_v8, 256  ;;  %926 = vbcast.lane.b32.xlu0 %v11654_v20, 256 }
 0x1b5   :  { %v11670_v12 = vpop.permute.xlu1 %1163  ;;  %v11672_v10 = vpop.permute.xlu0 %895 }
 0x1b6   :  { %13674 = vst [vmem:[#allocation60_spill] sm:$0xff] %v11670_v12  ;;  %13675 = vst [vmem:[#allocation61_spill] sm:$0xff] %v11672_v10 }
 0x1b7   :  { %2702 = vbcast.lane.b32.xlu1 %v11665_v9, 256  ;;  %2434 = vbcast.lane.b32.xlu0 %v11668_v2, 256 }
 0x1b9   :  { %v11676_v21 = vpop.permute.xlu1 %2671  ;;  %v11678_v17 = vpop.permute.xlu0 %2403 }
 0x1ba   :  { %13676 = vst [vmem:[#allocation62_spill] sm:$0xff] %v11676_v21  ;;  %13677 = vst [vmem:[#allocation63_spill] sm:$0xff] %v11678_v17 }
 0x1bb   :  { %512 = vbcast.lane.b32.xlu1 %v11623_v13, 264  ;;  %244 = vbcast.lane.b32.xlu0 %v11626_v16, 264 }
 0x1bd   :  { %v11682_v11 = vpop.permute.xlu1 %481  ;;  %v11684_v18 = vpop.permute.xlu0 %213 }
 0x1be   :  { %13678 = vst [vmem:[#allocation64_spill] sm:$0xff] %v11682_v11  ;;  %13679 = vst [vmem:[#allocation65_spill] sm:$0xff] %v11684_v18 }
 0x1bf   :  { %2020 = vbcast.lane.b32.xlu1 %v11637_v23, 264  ;;  %1752 = vbcast.lane.b32.xlu0 %v11640_v22, 264 }
 0x1c1   :  { %v11688_v10 = vpop.permute.xlu1 %1989  ;;  %v11690_v12 = vpop.permute.xlu0 %1721 }
 0x1c2   :  { %13680 = vst [vmem:[#allocation66_spill] sm:$0xff] %v11688_v10  ;;  %13681 = vst [vmem:[#allocation67_spill] sm:$0xff] %v11690_v12 }
 0x1c3   :  { %1198 = vbcast.lane.b32.xlu1 %v11651_v8, 264  ;;  %930 = vbcast.lane.b32.xlu0 %v11654_v20, 264 }
 0x1c5   :  { %v11694_v17 = vpop.permute.xlu1 %1167  ;;  %v11696_v21 = vpop.permute.xlu0 %899 }
 0x1c6   :  { %13682 = vst [vmem:[#allocation68_spill] sm:$0xff] %v11694_v17  ;;  %13683 = vst [vmem:[#allocation69_spill] sm:$0xff] %v11696_v21 }
 0x1c7   :  { %2706 = vbcast.lane.b32.xlu1 %v11665_v9, 264  ;;  %2438 = vbcast.lane.b32.xlu0 %v11668_v2, 264 }
 0x1c9   :  { %v11700_v18 = vpop.permute.xlu1 %2675  ;;  %v11702_v11 = vpop.permute.xlu0 %2407 }
 0x1ca   :  { %13684 = vst [vmem:[#allocation70_spill] sm:$0xff] %v11700_v18  ;;  %13685 = vst [vmem:[#allocation71_spill] sm:$0xff] %v11702_v11 }
 0x1cb   :  { %516 = vbcast.lane.b32.xlu1 %v11623_v13, 272  ;;  %248 = vbcast.lane.b32.xlu0 %v11626_v16, 272 }
 0x1cd   :  { %v11706_v12 = vpop.permute.xlu1 %485  ;;  %v11708_v10 = vpop.permute.xlu0 %217 }
 0x1ce   :  { %13686 = vst [vmem:[#allocation72_spill] sm:$0xff] %v11706_v12  ;;  %13687 = vst [vmem:[#allocation73_spill] sm:$0xff] %v11708_v10 }
 0x1cf   :  { %2024 = vbcast.lane.b32.xlu1 %v11637_v23, 272  ;;  %1756 = vbcast.lane.b32.xlu0 %v11640_v22, 272 }
 0x1d1   :  { %v11712_v21 = vpop.permute.xlu1 %1993  ;;  %v11714_v17 = vpop.permute.xlu0 %1725 }
 0x1d2   :  { %13688 = vst [vmem:[#allocation74_spill] sm:$0xff] %v11712_v21  ;;  %13689 = vst [vmem:[#allocation75_spill] sm:$0xff] %v11714_v17 }
 0x1d3   :  { %1202 = vbcast.lane.b32.xlu1 %v11651_v8, 272  ;;  %934 = vbcast.lane.b32.xlu0 %v11654_v20, 272 }
 0x1d5   :  { %v11718_v11 = vpop.permute.xlu1 %1171  ;;  %v11720_v18 = vpop.permute.xlu0 %903 }
 0x1d6   :  { %13690 = vst [vmem:[#allocation76_spill] sm:$0xff] %v11718_v11  ;;  %13691 = vst [vmem:[#allocation77_spill] sm:$0xff] %v11720_v18 }
 0x1d7   :  { %2710 = vbcast.lane.b32.xlu1 %v11665_v9, 272  ;;  %2442 = vbcast.lane.b32.xlu0 %v11668_v2, 272 }
 0x1d9   :  { %v11724_v10 = vpop.permute.xlu1 %2679  ;;  %v11726_v12 = vpop.permute.xlu0 %2411 }
 0x1da   :  { %13692 = vst [vmem:[#allocation78_spill] sm:$0xff] %v11724_v10  ;;  %13693 = vst [vmem:[#allocation79_spill] sm:$0xff] %v11726_v12 }
 0x1db   :  { %520 = vbcast.lane.b32.xlu1 %v11623_v13, 280  ;;  %252 = vbcast.lane.b32.xlu0 %v11626_v16, 280 }
 0x1dd   :  { %v11730_v17 = vpop.permute.xlu1 %489  ;;  %v11732_v21 = vpop.permute.xlu0 %221 }
 0x1de   :  { %13694 = vst [vmem:[#allocation80_spill] sm:$0xff] %v11730_v17  ;;  %13695 = vst [vmem:[#allocation81_spill] sm:$0xff] %v11732_v21 }
 0x1df   :  { %2028 = vbcast.lane.b32.xlu1 %v11637_v23, 280  ;;  %1760 = vbcast.lane.b32.xlu0 %v11640_v22, 280 }
 0x1e1   :  { %v11736_v18 = vpop.permute.xlu1 %1997  ;;  %v11738_v11 = vpop.permute.xlu0 %1729 }
 0x1e2   :  { %13696 = vst [vmem:[#allocation82_spill] sm:$0xff] %v11736_v18  ;;  %13697 = vst [vmem:[#allocation83_spill] sm:$0xff] %v11738_v11 }
 0x1e3   :  { %1206 = vbcast.lane.b32.xlu1 %v11651_v8, 280  ;;  %938 = vbcast.lane.b32.xlu0 %v11654_v20, 280 }
 0x1e5   :  { %v11742_v12 = vpop.permute.xlu1 %1175  ;;  %v11744_v10 = vpop.permute.xlu0 %907 }
 0x1e6   :  { %13698 = vst [vmem:[#allocation84_spill] sm:$0xff] %v11742_v12  ;;  %13699 = vst [vmem:[#allocation85_spill] sm:$0xff] %v11744_v10 }
 0x1e7   :  { %2714 = vbcast.lane.b32.xlu1 %v11665_v9, 280  ;;  %2446 = vbcast.lane.b32.xlu0 %v11668_v2, 280 }
 0x1e9   :  { %v11748_v21 = vpop.permute.xlu1 %2683  ;;  %v11750_v17 = vpop.permute.xlu0 %2415 }
 0x1ea   :  { %13700 = vst [vmem:[#allocation86_spill] sm:$0xff] %v11748_v21  ;;  %13701 = vst [vmem:[#allocation87_spill] sm:$0xff] %v11750_v17 }
 0x1eb   :  { %524 = vbcast.lane.b32.xlu1 %v11623_v13, 288  ;;  %256 = vbcast.lane.b32.xlu0 %v11626_v16, 288 }
 0x1ed   :  { %v11754_v11 = vpop.permute.xlu1 %493  ;;  %v11756_v18 = vpop.permute.xlu0 %225 }
 0x1ee   :  { %13702 = vst [vmem:[#allocation88_spill] sm:$0xff] %v11754_v11  ;;  %13703 = vst [vmem:[#allocation89_spill] sm:$0xff] %v11756_v18 }
 0x1ef   :  { %2032 = vbcast.lane.b32.xlu1 %v11637_v23, 288  ;;  %1764 = vbcast.lane.b32.xlu0 %v11640_v22, 288 }
 0x1f1   :  { %v11760_v10 = vpop.permute.xlu1 %2001  ;;  %v11762_v12 = vpop.permute.xlu0 %1733 }
 0x1f2   :  { %13704 = vst [vmem:[#allocation90_spill] sm:$0xff] %v11760_v10  ;;  %13705 = vst [vmem:[#allocation91_spill] sm:$0xff] %v11762_v12 }
 0x1f3   :  { %1210 = vbcast.lane.b32.xlu1 %v11651_v8, 288  ;;  %942 = vbcast.lane.b32.xlu0 %v11654_v20, 288 }
 0x1f5   :  { %v11766_v17 = vpop.permute.xlu1 %1179  ;;  %v11768_v21 = vpop.permute.xlu0 %911 }
 0x1f6   :  { %13706 = vst [vmem:[#allocation92_spill] sm:$0xff] %v11766_v17  ;;  %13707 = vst [vmem:[#allocation93_spill] sm:$0xff] %v11768_v21 }
 0x1f7   :  { %2718 = vbcast.lane.b32.xlu1 %v11665_v9, 288  ;;  %2450 = vbcast.lane.b32.xlu0 %v11668_v2, 288 }
 0x1f9   :  { %v11772_v18 = vpop.permute.xlu1 %2687  ;;  %v11774_v11 = vpop.permute.xlu0 %2419 }
 0x1fa   :  { %13708 = vst [vmem:[#allocation94_spill] sm:$0xff] %v11772_v18  ;;  %13709 = vst [vmem:[#allocation95_spill] sm:$0xff] %v11774_v11 }
 0x1fb   :  { %528 = vbcast.lane.b32.xlu1 %v11623_v13, 296  ;;  %260 = vbcast.lane.b32.xlu0 %v11626_v16, 296 }
 0x1fd   :  { %v11778_v12 = vpop.permute.xlu1 %497  ;;  %v11780_v10 = vpop.permute.xlu0 %229 }
 0x1fe   :  { %13710 = vst [vmem:[#allocation96_spill] sm:$0xff] %v11778_v12  ;;  %13711 = vst [vmem:[#allocation97_spill] sm:$0xff] %v11780_v10 }
 0x1ff   :  { %2036 = vbcast.lane.b32.xlu1 %v11637_v23, 296  ;;  %1768 = vbcast.lane.b32.xlu0 %v11640_v22, 296 }
 0x201   :  { %v11784_v21 = vpop.permute.xlu1 %2005  ;;  %v11786_v17 = vpop.permute.xlu0 %1737 }
 0x202   :  { %13712 = vst [vmem:[#allocation98_spill] sm:$0xff] %v11784_v21  ;;  %13713 = vst [vmem:[#allocation99_spill] sm:$0xff] %v11786_v17 }
 0x203   :  { %1214 = vbcast.lane.b32.xlu1 %v11651_v8, 296  ;;  %946 = vbcast.lane.b32.xlu0 %v11654_v20, 296 }
 0x205   :  { %v11790_v11 = vpop.permute.xlu1 %1183  ;;  %v11792_v18 = vpop.permute.xlu0 %915 }
 0x206   :  { %13714 = vst [vmem:[#allocation100_spill] sm:$0xff] %v11790_v11  ;;  %13715 = vst [vmem:[#allocation101_spill] sm:$0xff] %v11792_v18 }
 0x207   :  { %2722 = vbcast.lane.b32.xlu1 %v11665_v9, 296  ;;  %2454 = vbcast.lane.b32.xlu0 %v11668_v2, 296 }
 0x209   :  { %v11796_v10 = vpop.permute.xlu1 %2691  ;;  %v11798_v12 = vpop.permute.xlu0 %2423 }
 0x20a   :  { %13716 = vst [vmem:[#allocation102_spill] sm:$0xff] %v11796_v10  ;;  %13717 = vst [vmem:[#allocation103_spill] sm:$0xff] %v11798_v12 }
 0x20b   :  { %532 = vbcast.lane.b32.xlu1 %v11623_v13, 304  ;;  %264 = vbcast.lane.b32.xlu0 %v11626_v16, 304 }
 0x20d   :  { %v11802_v17 = vpop.permute.xlu1 %501  ;;  %v11804_v21 = vpop.permute.xlu0 %233 }
 0x20e   :  { %13718 = vst [vmem:[#allocation104_spill] sm:$0xff] %v11802_v17  ;;  %13719 = vst [vmem:[#allocation105_spill] sm:$0xff] %v11804_v21 }
 0x20f   :  { %2040 = vbcast.lane.b32.xlu1 %v11637_v23, 304  ;;  %1772 = vbcast.lane.b32.xlu0 %v11640_v22, 304 }
 0x211   :  { %v11808_v18 = vpop.permute.xlu1 %2009  ;;  %v11810_v11 = vpop.permute.xlu0 %1741 }
 0x212   :  { %13720 = vst [vmem:[#allocation106_spill] sm:$0xff] %v11808_v18  ;;  %13721 = vst [vmem:[#allocation107_spill] sm:$0xff] %v11810_v11 }
 0x213   :  { %1218 = vbcast.lane.b32.xlu1 %v11651_v8, 304  ;;  %950 = vbcast.lane.b32.xlu0 %v11654_v20, 304 }
 0x215   :  { %v11814_v12 = vpop.permute.xlu1 %1187  ;;  %v11816_v10 = vpop.permute.xlu0 %919 }
 0x216   :  { %13722 = vst [vmem:[#allocation108_spill] sm:$0xff] %v11814_v12  ;;  %13723 = vst [vmem:[#allocation109_spill] sm:$0xff] %v11816_v10 }
 0x217   :  { %2726 = vbcast.lane.b32.xlu1 %v11665_v9, 304  ;;  %2458 = vbcast.lane.b32.xlu0 %v11668_v2, 304 }
 0x219   :  { %v11820_v21 = vpop.permute.xlu1 %2695  ;;  %v11822_v17 = vpop.permute.xlu0 %2427 }
 0x21a   :  { %13724 = vst [vmem:[#allocation110_spill] sm:$0xff] %v11820_v21  ;;  %13725 = vst [vmem:[#allocation111_spill] sm:$0xff] %v11822_v17 }
 0x21b   :  { %536 = vbcast.lane.b32.xlu1 %v11623_v13, 312  ;;  %268 = vbcast.lane.b32.xlu0 %v11626_v16, 312 }
 0x21d   :  { %v11826_v11 = vpop.permute.xlu1 %508  ;;  %v11828_v18 = vpop.permute.xlu0 %240 }
 0x21e   :  { %13726 = vst [vmem:[#allocation112_spill] sm:$0xff] %v11826_v11  ;;  %13727 = vst [vmem:[#allocation113_spill] sm:$0xff] %v11828_v18 }
 0x21f   :  { %2044 = vbcast.lane.b32.xlu1 %v11637_v23, 312  ;;  %1776 = vbcast.lane.b32.xlu0 %v11640_v22, 312 }
 0x221   :  { %v11832_v10 = vpop.permute.xlu1 %2016  ;;  %v11834_v12 = vpop.permute.xlu0 %1748 }
 0x222   :  { %13728 = vst [vmem:[#allocation114_spill] sm:$0xff] %v11832_v10  ;;  %13729 = vst [vmem:[#allocation115_spill] sm:$0xff] %v11834_v12 }
 0x223   :  { %1222 = vbcast.lane.b32.xlu1 %v11651_v8, 312  ;;  %954 = vbcast.lane.b32.xlu0 %v11654_v20, 312 }
 0x225   :  { %v11838_v17 = vpop.permute.xlu1 %1194  ;;  %v11840_v21 = vpop.permute.xlu0 %926 }
 0x226   :  { %13730 = vst [vmem:[#allocation116_spill] sm:$0xff] %v11838_v17  ;;  %13731 = vst [vmem:[#allocation117_spill] sm:$0xff] %v11840_v21 }
 0x227   :  { %2730 = vbcast.lane.b32.xlu1 %v11665_v9, 312  ;;  %2462 = vbcast.lane.b32.xlu0 %v11668_v2, 312 }
 0x229   :  { %v11844_v18 = vpop.permute.xlu1 %2702  ;;  %v11846_v11 = vpop.permute.xlu0 %2434 }
 0x22a   :  { %13732 = vst [vmem:[#allocation118_spill] sm:$0xff] %v11844_v18  ;;  %13733 = vst [vmem:[#allocation119_spill] sm:$0xff] %v11846_v11 }
 0x22b   :  { %540 = vbcast.lane.b32.xlu1 %v11623_v13, 320  ;;  %272 = vbcast.lane.b32.xlu0 %v11626_v16, 320 }
 0x22d   :  { %v11850_v12 = vpop.permute.xlu1 %512  ;;  %v11852_v10 = vpop.permute.xlu0 %244 }
 0x22e   :  { %13734 = vst [vmem:[#allocation120_spill] sm:$0xff] %v11850_v12  ;;  %13735 = vst [vmem:[#allocation121_spill] sm:$0xff] %v11852_v10 }
 0x22f   :  { %2048 = vbcast.lane.b32.xlu1 %v11637_v23, 320  ;;  %1780 = vbcast.lane.b32.xlu0 %v11640_v22, 320 }
 0x231   :  { %v11856_v21 = vpop.permute.xlu1 %2020  ;;  %v11858_v17 = vpop.permute.xlu0 %1752 }
 0x232   :  { %13736 = vst [vmem:[#allocation122_spill] sm:$0xff] %v11856_v21  ;;  %13737 = vst [vmem:[#allocation123_spill] sm:$0xff] %v11858_v17 }
 0x233   :  { %1226 = vbcast.lane.b32.xlu1 %v11651_v8, 320  ;;  %958 = vbcast.lane.b32.xlu0 %v11654_v20, 320 }
 0x235   :  { %v11862_v11 = vpop.permute.xlu1 %1198  ;;  %v11864_v18 = vpop.permute.xlu0 %930 }
 0x236   :  { %13738 = vst [vmem:[#allocation124_spill] sm:$0xff] %v11862_v11  ;;  %13739 = vst [vmem:[#allocation125_spill] sm:$0xff] %v11864_v18 }
 0x237   :  { %2734 = vbcast.lane.b32.xlu1 %v11665_v9, 320  ;;  %2466 = vbcast.lane.b32.xlu0 %v11668_v2, 320 }
 0x239   :  { %v11868_v10 = vpop.permute.xlu1 %2706  ;;  %v11870_v12 = vpop.permute.xlu0 %2438 }
 0x23a   :  { %13740 = vst [vmem:[#allocation126_spill] sm:$0xff] %v11868_v10  ;;  %13741 = vst [vmem:[#allocation127_spill] sm:$0xff] %v11870_v12 }
 0x23b   :  { %544 = vbcast.lane.b32.xlu1 %v11623_v13, 328  ;;  %276 = vbcast.lane.b32.xlu0 %v11626_v16, 328 }
 0x23d   :  { %v11874_v17 = vpop.permute.xlu1 %516  ;;  %v11876_v21 = vpop.permute.xlu0 %248 }
 0x23e   :  { %13742 = vst [vmem:[#allocation128_spill] sm:$0xff] %v11874_v17  ;;  %13743 = vst [vmem:[#allocation129_spill] sm:$0xff] %v11876_v21 }
 0x23f   :  { %2052 = vbcast.lane.b32.xlu1 %v11637_v23, 328  ;;  %1784 = vbcast.lane.b32.xlu0 %v11640_v22, 328 }
 0x241   :  { %v11880_v18 = vpop.permute.xlu1 %2024  ;;  %v11882_v11 = vpop.permute.xlu0 %1756 }
 0x242   :  { %13744 = vst [vmem:[#allocation130_spill] sm:$0xff] %v11880_v18  ;;  %13745 = vst [vmem:[#allocation131_spill] sm:$0xff] %v11882_v11 }
 0x243   :  { %1230 = vbcast.lane.b32.xlu1 %v11651_v8, 328  ;;  %962 = vbcast.lane.b32.xlu0 %v11654_v20, 328 }
 0x245   :  { %v11886_v12 = vpop.permute.xlu1 %1202  ;;  %v11888_v10 = vpop.permute.xlu0 %934 }
 0x246   :  { %13746 = vst [vmem:[#allocation132_spill] sm:$0xff] %v11886_v12  ;;  %13747 = vst [vmem:[#allocation133_spill] sm:$0xff] %v11888_v10 }
 0x247   :  { %2738 = vbcast.lane.b32.xlu1 %v11665_v9, 328  ;;  %2470 = vbcast.lane.b32.xlu0 %v11668_v2, 328 }
 0x249   :  { %v11892_v21 = vpop.permute.xlu1 %2710  ;;  %v11894_v17 = vpop.permute.xlu0 %2442 }
 0x24a   :  { %13748 = vst [vmem:[#allocation134_spill] sm:$0xff] %v11892_v21  ;;  %13749 = vst [vmem:[#allocation135_spill] sm:$0xff] %v11894_v17 }
 0x24b   :  { %548 = vbcast.lane.b32.xlu1 %v11623_v13, 336  ;;  %280 = vbcast.lane.b32.xlu0 %v11626_v16, 336 }
 0x24d   :  { %v11898_v11 = vpop.permute.xlu1 %520  ;;  %v11900_v18 = vpop.permute.xlu0 %252 }
 0x24e   :  { %13750 = vst [vmem:[#allocation136_spill] sm:$0xff] %v11898_v11  ;;  %13751 = vst [vmem:[#allocation137_spill] sm:$0xff] %v11900_v18 }
 0x24f   :  { %2056 = vbcast.lane.b32.xlu1 %v11637_v23, 336  ;;  %1788 = vbcast.lane.b32.xlu0 %v11640_v22, 336 }
 0x251   :  { %v11904_v10 = vpop.permute.xlu1 %2028  ;;  %v11906_v12 = vpop.permute.xlu0 %1760 }
 0x252   :  { %13752 = vst [vmem:[#allocation138_spill] sm:$0xff] %v11904_v10  ;;  %13753 = vst [vmem:[#allocation139_spill] sm:$0xff] %v11906_v12 }
 0x253   :  { %1234 = vbcast.lane.b32.xlu1 %v11651_v8, 336  ;;  %966 = vbcast.lane.b32.xlu0 %v11654_v20, 336 }
 0x255   :  { %v11910_v17 = vpop.permute.xlu1 %1206  ;;  %v11912_v21 = vpop.permute.xlu0 %938 }
 0x256   :  { %13754 = vst [vmem:[#allocation140_spill] sm:$0xff] %v11910_v17  ;;  %13755 = vst [vmem:[#allocation141_spill] sm:$0xff] %v11912_v21 }
 0x257   :  { %2742 = vbcast.lane.b32.xlu1 %v11665_v9, 336  ;;  %2474 = vbcast.lane.b32.xlu0 %v11668_v2, 336 }
 0x259   :  { %v11916_v18 = vpop.permute.xlu1 %2714  ;;  %v11918_v11 = vpop.permute.xlu0 %2446 }
 0x25a   :  { %13756 = vst [vmem:[#allocation142_spill] sm:$0xff] %v11916_v18  ;;  %13757 = vst [vmem:[#allocation143_spill] sm:$0xff] %v11918_v11 }
 0x25b   :  { %552 = vbcast.lane.b32.xlu1 %v11623_v13, 344  ;;  %284 = vbcast.lane.b32.xlu0 %v11626_v16, 344 }
 0x25d   :  { %v11922_v12 = vpop.permute.xlu1 %524  ;;  %v11924_v10 = vpop.permute.xlu0 %256 }
 0x25e   :  { %13758 = vst [vmem:[#allocation144_spill] sm:$0xff] %v11922_v12  ;;  %13759 = vst [vmem:[#allocation145_spill] sm:$0xff] %v11924_v10 }
 0x25f   :  { %2060 = vbcast.lane.b32.xlu1 %v11637_v23, 344  ;;  %1792 = vbcast.lane.b32.xlu0 %v11640_v22, 344 }
 0x261   :  { %v11928_v21 = vpop.permute.xlu1 %2032  ;;  %v11930_v17 = vpop.permute.xlu0 %1764 }
 0x262   :  { %13760 = vst [vmem:[#allocation146_spill] sm:$0xff] %v11928_v21  ;;  %13761 = vst [vmem:[#allocation147_spill] sm:$0xff] %v11930_v17 }
 0x263   :  { %1238 = vbcast.lane.b32.xlu1 %v11651_v8, 344  ;;  %970 = vbcast.lane.b32.xlu0 %v11654_v20, 344 }
 0x265   :  { %v11934_v11 = vpop.permute.xlu1 %1210  ;;  %v11936_v18 = vpop.permute.xlu0 %942 }
 0x266   :  { %13762 = vst [vmem:[#allocation148_spill] sm:$0xff] %v11934_v11  ;;  %13763 = vst [vmem:[#allocation149_spill] sm:$0xff] %v11936_v18 }
 0x267   :  { %2746 = vbcast.lane.b32.xlu1 %v11665_v9, 344  ;;  %2478 = vbcast.lane.b32.xlu0 %v11668_v2, 344 }
 0x269   :  { %v11940_v10 = vpop.permute.xlu1 %2718  ;;  %v11942_v12 = vpop.permute.xlu0 %2450 }
 0x26a   :  { %13764 = vst [vmem:[#allocation150_spill] sm:$0xff] %v11940_v10  ;;  %13765 = vst [vmem:[#allocation151_spill] sm:$0xff] %v11942_v12 }
 0x26b   :  { %556 = vbcast.lane.b32.xlu1 %v11623_v13, 352  ;;  %288 = vbcast.lane.b32.xlu0 %v11626_v16, 352 }
 0x26d   :  { %v11946_v17 = vpop.permute.xlu1 %528  ;;  %v11948_v21 = vpop.permute.xlu0 %260 }
 0x26e   :  { %13766 = vst [vmem:[#allocation152_spill] sm:$0xff] %v11946_v17  ;;  %13767 = vst [vmem:[#allocation153_spill] sm:$0xff] %v11948_v21 }
 0x26f   :  { %2064 = vbcast.lane.b32.xlu1 %v11637_v23, 352  ;;  %1796 = vbcast.lane.b32.xlu0 %v11640_v22, 352 }
 0x271   :  { %v11952_v18 = vpop.permute.xlu1 %2036  ;;  %v11954_v11 = vpop.permute.xlu0 %1768 }
 0x272   :  { %13768 = vst [vmem:[#allocation154_spill] sm:$0xff] %v11952_v18  ;;  %13769 = vst [vmem:[#allocation155_spill] sm:$0xff] %v11954_v11 }
 0x273   :  { %1242 = vbcast.lane.b32.xlu1 %v11651_v8, 352  ;;  %974 = vbcast.lane.b32.xlu0 %v11654_v20, 352 }
 0x275   :  { %v11958_v12 = vpop.permute.xlu1 %1214  ;;  %v11960_v10 = vpop.permute.xlu0 %946 }
 0x276   :  { %13770 = vst [vmem:[#allocation156_spill] sm:$0xff] %v11958_v12  ;;  %13771 = vst [vmem:[#allocation157_spill] sm:$0xff] %v11960_v10 }
 0x277   :  { %2750 = vbcast.lane.b32.xlu1 %v11665_v9, 352  ;;  %2482 = vbcast.lane.b32.xlu0 %v11668_v2, 352 }
 0x279   :  { %v11964_v21 = vpop.permute.xlu1 %2722  ;;  %v11966_v17 = vpop.permute.xlu0 %2454 }
 0x27a   :  { %13772 = vst [vmem:[#allocation158_spill] sm:$0xff] %v11964_v21  ;;  %13773 = vst [vmem:[#allocation159_spill] sm:$0xff] %v11966_v17 }
 0x27b   :  { %560 = vbcast.lane.b32.xlu1 %v11623_v13, 360  ;;  %292 = vbcast.lane.b32.xlu0 %v11626_v16, 360 }
 0x27d   :  { %v11970_v11 = vpop.permute.xlu1 %532  ;;  %v11972_v18 = vpop.permute.xlu0 %264 }
 0x27e   :  { %13774 = vst [vmem:[#allocation160_spill] sm:$0xff] %v11970_v11  ;;  %13775 = vst [vmem:[#allocation161_spill] sm:$0xff] %v11972_v18 }
 0x27f   :  { %2068 = vbcast.lane.b32.xlu1 %v11637_v23, 360  ;;  %1800 = vbcast.lane.b32.xlu0 %v11640_v22, 360 }
 0x281   :  { %v11976_v10 = vpop.permute.xlu1 %2040  ;;  %v11978_v12 = vpop.permute.xlu0 %1772 }
 0x282   :  { %13776 = vst [vmem:[#allocation162_spill] sm:$0xff] %v11976_v10  ;;  %13777 = vst [vmem:[#allocation163_spill] sm:$0xff] %v11978_v12 }
 0x283   :  { %1246 = vbcast.lane.b32.xlu1 %v11651_v8, 360  ;;  %978 = vbcast.lane.b32.xlu0 %v11654_v20, 360 }
 0x285   :  { %v11982_v17 = vpop.permute.xlu1 %1218  ;;  %v11984_v21 = vpop.permute.xlu0 %950 }
 0x286   :  { %13778 = vst [vmem:[#allocation164_spill] sm:$0xff] %v11982_v17  ;;  %13779 = vst [vmem:[#allocation165_spill] sm:$0xff] %v11984_v21 }
 0x287   :  { %2754 = vbcast.lane.b32.xlu1 %v11665_v9, 360  ;;  %2486 = vbcast.lane.b32.xlu0 %v11668_v2, 360 }
 0x289   :  { %v11988_v18 = vpop.permute.xlu1 %2726  ;;  %v11990_v11 = vpop.permute.xlu0 %2458 }
 0x28a   :  { %13780 = vst [vmem:[#allocation166_spill] sm:$0xff] %v11988_v18  ;;  %13781 = vst [vmem:[#allocation167_spill] sm:$0xff] %v11990_v11 }
 0x28b   :  { %564 = vbcast.lane.b32.xlu1 %v11623_v13, 368  ;;  %296 = vbcast.lane.b32.xlu0 %v11626_v16, 368 }
 0x28d   :  { %v11994_v12 = vpop.permute.xlu1 %536  ;;  %v11996_v10 = vpop.permute.xlu0 %268 }
 0x28e   :  { %13782 = vst [vmem:[#allocation168_spill] sm:$0xff] %v11994_v12  ;;  %13783 = vst [vmem:[#allocation169_spill] sm:$0xff] %v11996_v10 }
 0x28f   :  { %2072 = vbcast.lane.b32.xlu1 %v11637_v23, 368  ;;  %1804 = vbcast.lane.b32.xlu0 %v11640_v22, 368 }
 0x291   :  { %v12000_v21 = vpop.permute.xlu1 %2044  ;;  %v12002_v17 = vpop.permute.xlu0 %1776 }
 0x292   :  { %13784 = vst [vmem:[#allocation170_spill] sm:$0xff] %v12000_v21  ;;  %13785 = vst [vmem:[#allocation171_spill] sm:$0xff] %v12002_v17 }
 0x293   :  { %1250 = vbcast.lane.b32.xlu1 %v11651_v8, 368  ;;  %982 = vbcast.lane.b32.xlu0 %v11654_v20, 368 }
 0x295   :  { %v12006_v11 = vpop.permute.xlu1 %1222  ;;  %v12008_v18 = vpop.permute.xlu0 %954 }
 0x296   :  { %13786 = vst [vmem:[#allocation172_spill] sm:$0xff] %v12006_v11  ;;  %13787 = vst [vmem:[#allocation173_spill] sm:$0xff] %v12008_v18  ;;  %v10864_v18 = vld [vmem:[#allocation2] sm:$0xff] }
 0x297   :  { %2758 = vbcast.lane.b32.xlu1 %v11665_v9, 368  ;;  %2490 = vbcast.lane.b32.xlu0 %v11668_v2, 368  ;;  %v151_v11 = vcombine.high %v10864_v18, %v10864_v18 }
 0x299   :  { %v12012_v10 = vpop.permute.xlu1 %2730  ;;  %v12014_v12 = vpop.permute.xlu0 %2462 }
 0x29a   :  { %13788 = vst [vmem:[#allocation174_spill] sm:$0xff] %v12012_v10  ;;  %13789 = vst [vmem:[#allocation175_spill] sm:$0xff] %v12014_v12  ;;  %v10865_v10 = vld [vmem:[#allocation2 + $0x8] sm:$0xff] }
 0x29b   :  { %568 = vbcast.lane.b32.xlu1 %v11623_v13, 376  ;;  %300 = vbcast.lane.b32.xlu0 %v11626_v16, 376  ;;  %v1659_v12 = vcombine.high %v10865_v10, %v10865_v10  ;;  %v12031_v13 = vrot.slane %v151_v11, %v11296_v5  ;;  %v833_v11 = vcombine.high %v11324_v14, %v11324_v14 }
 0x29c   :  { %v2341_v14 = vcombine.high %v11342_v19, %v11342_v19 }
 0x29d   :  { %v12018_v17 = vpop.permute.xlu1 %540  ;;  %v12020_v21 = vpop.permute.xlu0 %272  ;;  %v12044_v10 = vrot.slane %v12031_v13, %v11302_v7 }
 0x29e   :  { %13790 = vst [vmem:[#allocation176_spill] sm:$0xff] %v12020_v21 }
 0x29f   :  { %2076 = vbcast.lane.b32.xlu1 %v11637_v23, 376  ;;  %1808 = vbcast.lane.b32.xlu0 %v11640_v22, 376  ;;  %v12038_v22 = vrot.slane %v1659_v12, %v11296_v5 }
 0x2a1   :  { %v12024_v4 = vpop.permute.xlu1 %2048  ;;  %v12026_v3 = vpop.permute.xlu0 %1780  ;;  %v12058_v12 = vrot.slane %v12038_v22, %v11302_v7 }
 0x2a2   :  { %13791 = vst [vmem:[#allocation177_spill] sm:$0xff] %v12024_v4  ;;  %13792 = vst [vmem:[#allocation178_spill] sm:$0xff] %v12026_v3 }
 0x2a3   :  { %1254 = vbcast.lane.b32.xlu1 %v11651_v8, 376  ;;  %986 = vbcast.lane.b32.xlu0 %v11654_v20, 376  ;;  %v12048_v20 = vrot.slane %v12031_v13, %v11299_v6 }
 0x2a5   :  { %v12033_v16 = vpop.permute.xlu1 %1226  ;;  %v12035_v23 = vpop.permute.xlu0 %958 }
 0x2a6   :  { %13793 = vst [vmem:[#allocation179_spill] sm:$0xff] %v12033_v16  ;;  %13794 = vst [vmem:[#allocation180_spill] sm:$0xff] %v12035_v23 }
 0x2a7   :  { %2762 = vbcast.lane.b32.xlu1 %v11665_v9, 376  ;;  %2494 = vbcast.lane.b32.xlu0 %v11668_v2, 376  ;;  %v12064_v2 = vrot.slane %v12038_v22, %v11299_v6  ;;  %v12067_v9 = vrot.slane %v833_v11, %v11296_v5  ;;  %v12086_v11 = vrot.slane %v2341_v14, %v11296_v5 }
 0x2a9   :  { %v12052_v8 = vpop.permute.xlu1 %2734  ;;  %v12054_v18 = vpop.permute.xlu0 %2466  ;;  %v12079_v23 = vrot.slane %v12067_v9, %v11302_v7  ;;  %v12083_v16 = vrot.slane %v12067_v9, %v11299_v6  ;;  %v12100_v3 = vrot.slane %v12086_v11, %v11299_v6 }
 0x2aa   :  { %13795 = vst [vmem:[#allocation181_spill] sm:$0xff] %v12052_v8  ;;  %13796 = vst [vmem:[#allocation182_spill] sm:$0xff] %v12054_v18 }
 0x2ab   :  { %575 = vbcast.lane.b32.xlu1 %v12044_v10, 256  ;;  %307 = vbcast.lane.b32.xlu0 %v12048_v20, 256 }
 0x2ad   :  { %v12071_v8 = vpop.permute.xlu1 %544  ;;  %v12073_v18 = vpop.permute.xlu0 %276 }
 0x2ae   :  { %13797 = vst [vmem:[#allocation183_spill] sm:$0xff] %v12071_v8  ;;  %13798 = vst [vmem:[#allocation184_spill] sm:$0xff] %v12073_v18  ;;  %v12096_v18 = vrot.slane %v12086_v11, %v11302_v7 }
 0x2af   :  { %2083 = vbcast.lane.b32.xlu1 %v12058_v12, 256  ;;  %1815 = vbcast.lane.b32.xlu0 %v12064_v2, 256 }
 0x2b1   :  { %v12088_v19 = vpop.permute.xlu1 %2052  ;;  %v12090_v8 = vpop.permute.xlu0 %1784 }
 0x2b2   :  { %13799 = vst [vmem:[#allocation185_spill] sm:$0xff] %v12088_v19  ;;  %13800 = vst [vmem:[#allocation186_spill] sm:$0xff] %v12090_v8 }
 0x2b3   :  { %1261 = vbcast.lane.b32.xlu1 %v12079_v23, 256  ;;  %993 = vbcast.lane.b32.xlu0 %v12083_v16, 256 }
 0x2b5   :  { %v12102_v4 = vpop.permute.xlu1 %1230  ;;  %v12104_v5 = vpop.permute.xlu0 %962 }
 0x2b6   :  { %13801 = vst [vmem:[#allocation187_spill] sm:$0xff] %v12102_v4  ;;  %13802 = vst [vmem:[#allocation188_spill] sm:$0xff] %v12104_v5 }
 0x2b7   :  { %2769 = vbcast.lane.b32.xlu1 %v12096_v18, 256  ;;  %2501 = vbcast.lane.b32.xlu0 %v12100_v3, 256 }
 0x2b9   :  { %v12108_v14 = vpop.permute.xlu1 %2738  ;;  %v12110_v8 = vpop.permute.xlu0 %2470 }
 0x2ba   :  { %13803 = vst [vmem:[#allocation189_spill] sm:$0xff] %v12108_v14  ;;  %13804 = vst [vmem:[#allocation190_spill] sm:$0xff] %v12110_v8 }
 0x2bb   :  { %579 = vbcast.lane.b32.xlu1 %v12044_v10, 264  ;;  %311 = vbcast.lane.b32.xlu0 %v12048_v20, 264 }
 0x2bd   :  { %v12114_v19 = vpop.permute.xlu1 %548  ;;  %v12116_v21 = vpop.permute.xlu0 %280 }
 0x2be   :  { %13805 = vst [vmem:[#allocation191_spill] sm:$0xff] %v12114_v19  ;;  %13806 = vst [vmem:[#allocation192_spill] sm:$0xff] %v12116_v21 }
 0x2bf   :  { %2087 = vbcast.lane.b32.xlu1 %v12058_v12, 264  ;;  %1819 = vbcast.lane.b32.xlu0 %v12064_v2, 264 }
 0x2c1   :  { %v12120_v5 = vpop.permute.xlu1 %2056  ;;  %v12122_v4 = vpop.permute.xlu0 %1788 }
 0x2c2   :  { %13807 = vst [vmem:[#allocation193_spill] sm:$0xff] %v12120_v5  ;;  %13808 = vst [vmem:[#allocation194_spill] sm:$0xff] %v12122_v4 }
 0x2c3   :  { %1265 = vbcast.lane.b32.xlu1 %v12079_v23, 264  ;;  %997 = vbcast.lane.b32.xlu0 %v12083_v16, 264 }
 0x2c5   :  { %v12126_v8 = vpop.permute.xlu1 %1234  ;;  %v12128_v14 = vpop.permute.xlu0 %966 }
 0x2c6   :  { %13809 = vst [vmem:[#allocation195_spill] sm:$0xff] %v12126_v8  ;;  %13810 = vst [vmem:[#allocation196_spill] sm:$0xff] %v12128_v14 }
 0x2c7   :  { %2773 = vbcast.lane.b32.xlu1 %v12096_v18, 264  ;;  %2505 = vbcast.lane.b32.xlu0 %v12100_v3, 264 }
 0x2c9   :  { %v12132_v21 = vpop.permute.xlu1 %2742  ;;  %v12134_v19 = vpop.permute.xlu0 %2474 }
 0x2ca   :  { %13811 = vst [vmem:[#allocation197_spill] sm:$0xff] %v12132_v21  ;;  %13812 = vst [vmem:[#allocation198_spill] sm:$0xff] %v12134_v19 }
 0x2cb   :  { %583 = vbcast.lane.b32.xlu1 %v12044_v10, 272  ;;  %315 = vbcast.lane.b32.xlu0 %v12048_v20, 272 }
 0x2cd   :  { %v12138_v4 = vpop.permute.xlu1 %552  ;;  %v12140_v5 = vpop.permute.xlu0 %284 }
 0x2ce   :  { %13813 = vst [vmem:[#allocation199_spill] sm:$0xff] %v12138_v4  ;;  %13814 = vst [vmem:[#allocation200_spill] sm:$0xff] %v12140_v5 }
 0x2cf   :  { %2091 = vbcast.lane.b32.xlu1 %v12058_v12, 272  ;;  %1823 = vbcast.lane.b32.xlu0 %v12064_v2, 272 }
 0x2d1   :  { %v12144_v14 = vpop.permute.xlu1 %2060  ;;  %v12146_v8 = vpop.permute.xlu0 %1792 }
 0x2d2   :  { %13815 = vst [vmem:[#allocation201_spill] sm:$0xff] %v12144_v14  ;;  %13816 = vst [vmem:[#allocation202_spill] sm:$0xff] %v12146_v8 }
 0x2d3   :  { %1269 = vbcast.lane.b32.xlu1 %v12079_v23, 272  ;;  %1001 = vbcast.lane.b32.xlu0 %v12083_v16, 272 }
 0x2d5   :  { %v12150_v19 = vpop.permute.xlu1 %1238  ;;  %v12152_v21 = vpop.permute.xlu0 %970 }
 0x2d6   :  { %13817 = vst [vmem:[#allocation203_spill] sm:$0xff] %v12150_v19  ;;  %13818 = vst [vmem:[#allocation204_spill] sm:$0xff] %v12152_v21 }
 0x2d7   :  { %2777 = vbcast.lane.b32.xlu1 %v12096_v18, 272  ;;  %2509 = vbcast.lane.b32.xlu0 %v12100_v3, 272 }
 0x2d9   :  { %v12156_v5 = vpop.permute.xlu1 %2746  ;;  %v12158_v4 = vpop.permute.xlu0 %2478 }
 0x2da   :  { %13819 = vst [vmem:[#allocation205_spill] sm:$0xff] %v12156_v5  ;;  %13820 = vst [vmem:[#allocation206_spill] sm:$0xff] %v12158_v4 }
 0x2db   :  { %587 = vbcast.lane.b32.xlu1 %v12044_v10, 280  ;;  %319 = vbcast.lane.b32.xlu0 %v12048_v20, 280 }
 0x2dd   :  { %v12162_v8 = vpop.permute.xlu1 %556  ;;  %v12164_v14 = vpop.permute.xlu0 %288 }
 0x2de   :  { %13821 = vst [vmem:[#allocation207_spill] sm:$0xff] %v12162_v8  ;;  %13822 = vst [vmem:[#allocation208_spill] sm:$0xff] %v12164_v14 }
 0x2df   :  { %2095 = vbcast.lane.b32.xlu1 %v12058_v12, 280  ;;  %1827 = vbcast.lane.b32.xlu0 %v12064_v2, 280 }
 0x2e1   :  { %v12168_v21 = vpop.permute.xlu1 %2064  ;;  %v12170_v19 = vpop.permute.xlu0 %1796 }
 0x2e2   :  { %13823 = vst [vmem:[#allocation209_spill] sm:$0xff] %v12168_v21  ;;  %13824 = vst [vmem:[#allocation210_spill] sm:$0xff] %v12170_v19 }
 0x2e3   :  { %1273 = vbcast.lane.b32.xlu1 %v12079_v23, 280  ;;  %1005 = vbcast.lane.b32.xlu0 %v12083_v16, 280 }
 0x2e5   :  { %v12174_v4 = vpop.permute.xlu1 %1242  ;;  %v12176_v5 = vpop.permute.xlu0 %974 }
 0x2e6   :  { %13825 = vst [vmem:[#allocation211_spill] sm:$0xff] %v12174_v4  ;;  %13826 = vst [vmem:[#allocation212_spill] sm:$0xff] %v12176_v5 }
 0x2e7   :  { %2781 = vbcast.lane.b32.xlu1 %v12096_v18, 280  ;;  %2513 = vbcast.lane.b32.xlu0 %v12100_v3, 280 }
 0x2e9   :  { %v12180_v14 = vpop.permute.xlu1 %2750  ;;  %v12182_v8 = vpop.permute.xlu0 %2482 }
 0x2ea   :  { %13827 = vst [vmem:[#allocation213_spill] sm:$0xff] %v12180_v14  ;;  %13828 = vst [vmem:[#allocation214_spill] sm:$0xff] %v12182_v8 }
 0x2eb   :  { %591 = vbcast.lane.b32.xlu1 %v12044_v10, 288  ;;  %323 = vbcast.lane.b32.xlu0 %v12048_v20, 288 }
 0x2ed   :  { %v12186_v19 = vpop.permute.xlu1 %560  ;;  %v12188_v21 = vpop.permute.xlu0 %292 }
 0x2ee   :  { %13829 = vst [vmem:[#allocation215_spill] sm:$0xff] %v12186_v19  ;;  %13830 = vst [vmem:[#allocation216_spill] sm:$0xff] %v12188_v21 }
 0x2ef   :  { %2099 = vbcast.lane.b32.xlu1 %v12058_v12, 288  ;;  %1831 = vbcast.lane.b32.xlu0 %v12064_v2, 288 }
 0x2f1   :  { %v12192_v5 = vpop.permute.xlu1 %2068  ;;  %v12194_v4 = vpop.permute.xlu0 %1800 }
 0x2f2   :  { %13831 = vst [vmem:[#allocation217_spill] sm:$0xff] %v12192_v5  ;;  %13832 = vst [vmem:[#allocation218_spill] sm:$0xff] %v12194_v4 }
 0x2f3   :  { %1277 = vbcast.lane.b32.xlu1 %v12079_v23, 288  ;;  %1009 = vbcast.lane.b32.xlu0 %v12083_v16, 288 }
 0x2f5   :  { %v12198_v8 = vpop.permute.xlu1 %1246  ;;  %v12200_v14 = vpop.permute.xlu0 %978 }
 0x2f6   :  { %13833 = vst [vmem:[#allocation219_spill] sm:$0xff] %v12198_v8  ;;  %13834 = vst [vmem:[#allocation220_spill] sm:$0xff] %v12200_v14 }
 0x2f7   :  { %2785 = vbcast.lane.b32.xlu1 %v12096_v18, 288  ;;  %2517 = vbcast.lane.b32.xlu0 %v12100_v3, 288 }
 0x2f9   :  { %v12204_v21 = vpop.permute.xlu1 %2754  ;;  %v12206_v19 = vpop.permute.xlu0 %2486 }
 0x2fa   :  { %13835 = vst [vmem:[#allocation221_spill] sm:$0xff] %v12204_v21  ;;  %13836 = vst [vmem:[#allocation222_spill] sm:$0xff] %v12206_v19 }
 0x2fb   :  { %595 = vbcast.lane.b32.xlu1 %v12044_v10, 296  ;;  %327 = vbcast.lane.b32.xlu0 %v12048_v20, 296 }
 0x2fd   :  { %v12210_v4 = vpop.permute.xlu1 %564  ;;  %v12212_v5 = vpop.permute.xlu0 %296 }
 0x2fe   :  { %13837 = vst [vmem:[#allocation223_spill] sm:$0xff] %v12210_v4  ;;  %13838 = vst [vmem:[#allocation224_spill] sm:$0xff] %v12212_v5 }
 0x2ff   :  { %2103 = vbcast.lane.b32.xlu1 %v12058_v12, 296  ;;  %1835 = vbcast.lane.b32.xlu0 %v12064_v2, 296 }
 0x301   :  { %v12216_v14 = vpop.permute.xlu1 %2072  ;;  %v12218_v8 = vpop.permute.xlu0 %1804 }
 0x302   :  { %13839 = vst [vmem:[#allocation225_spill] sm:$0xff] %v12216_v14  ;;  %13840 = vst [vmem:[#allocation226_spill] sm:$0xff] %v12218_v8 }
 0x303   :  { %1281 = vbcast.lane.b32.xlu1 %v12079_v23, 296  ;;  %1013 = vbcast.lane.b32.xlu0 %v12083_v16, 296 }
 0x305   :  { %v12222_v19 = vpop.permute.xlu1 %1250  ;;  %v12224_v21 = vpop.permute.xlu0 %982 }
 0x306   :  { %13841 = vst [vmem:[#allocation227_spill] sm:$0xff] %v12222_v19  ;;  %13842 = vst [vmem:[#allocation228_spill] sm:$0xff] %v12224_v21 }
 0x307   :  { %2789 = vbcast.lane.b32.xlu1 %v12096_v18, 296  ;;  %2521 = vbcast.lane.b32.xlu0 %v12100_v3, 296 }
 0x309   :  { %v12228_v5 = vpop.permute.xlu1 %2758  ;;  %v12230_v4 = vpop.permute.xlu0 %2490 }
 0x30a   :  { %13843 = vst [vmem:[#allocation229_spill] sm:$0xff] %v12228_v5  ;;  %13844 = vst [vmem:[#allocation230_spill] sm:$0xff] %v12230_v4 }
 0x30b   :  { %599 = vbcast.lane.b32.xlu1 %v12044_v10, 304  ;;  %331 = vbcast.lane.b32.xlu0 %v12048_v20, 304 }
 0x30d   :  { %v12234_v8 = vpop.permute.xlu1 %568  ;;  %v12236_v14 = vpop.permute.xlu0 %300 }
 0x30e   :  { %13845 = vst [vmem:[#allocation231_spill] sm:$0xff] %v12234_v8  ;;  %13846 = vst [vmem:[#allocation232_spill] sm:$0xff] %v12236_v14 }
 0x30f   :  { %2107 = vbcast.lane.b32.xlu1 %v12058_v12, 304  ;;  %1839 = vbcast.lane.b32.xlu0 %v12064_v2, 304 }
 0x311   :  { %v12240_v21 = vpop.permute.xlu1 %2076  ;;  %v12242_v19 = vpop.permute.xlu0 %1808 }
 0x312   :  { %13847 = vst [vmem:[#allocation233_spill] sm:$0xff] %v12240_v21  ;;  %13848 = vst [vmem:[#allocation234_spill] sm:$0xff] %v12242_v19 }
 0x313   :  { %1285 = vbcast.lane.b32.xlu1 %v12079_v23, 304  ;;  %1017 = vbcast.lane.b32.xlu0 %v12083_v16, 304 }
 0x315   :  { %v12246_v4 = vpop.permute.xlu1 %1254  ;;  %v12248_v5 = vpop.permute.xlu0 %986 }
 0x316   :  { %13849 = vst [vmem:[#allocation235_spill] sm:$0xff] %v12246_v4  ;;  %13850 = vst [vmem:[#allocation236_spill] sm:$0xff] %v12248_v5 }
 0x317   :  { %2793 = vbcast.lane.b32.xlu1 %v12096_v18, 304  ;;  %2525 = vbcast.lane.b32.xlu0 %v12100_v3, 304 }
 0x319   :  { %v12252_v14 = vpop.permute.xlu1 %2762  ;;  %v12254_v8 = vpop.permute.xlu0 %2494 }
 0x31a   :  { %13851 = vst [vmem:[#allocation237_spill] sm:$0xff] %v12252_v14  ;;  %13852 = vst [vmem:[#allocation238_spill] sm:$0xff] %v12254_v8 }
 0x31b   :  { %603 = vbcast.lane.b32.xlu1 %v12044_v10, 312  ;;  %335 = vbcast.lane.b32.xlu0 %v12048_v20, 312 }
 0x31d   :  { %v12258_v19 = vpop.permute.xlu1 %575  ;;  %v12260_v21 = vpop.permute.xlu0 %307 }
 0x31e   :  { %13853 = vst [vmem:[#allocation239_spill] sm:$0xff] %v12258_v19  ;;  %13854 = vst [vmem:[#allocation240_spill] sm:$0xff] %v12260_v21 }
 0x31f   :  { %2111 = vbcast.lane.b32.xlu1 %v12058_v12, 312  ;;  %1843 = vbcast.lane.b32.xlu0 %v12064_v2, 312 }
 0x321   :  { %v12264_v5 = vpop.permute.xlu1 %2083  ;;  %v12266_v4 = vpop.permute.xlu0 %1815 }
 0x322   :  { %13855 = vst [vmem:[#allocation241_spill] sm:$0xff] %v12264_v5  ;;  %13856 = vst [vmem:[#allocation242_spill] sm:$0xff] %v12266_v4 }
 0x323   :  { %1289 = vbcast.lane.b32.xlu1 %v12079_v23, 312  ;;  %1021 = vbcast.lane.b32.xlu0 %v12083_v16, 312 }
 0x325   :  { %v12270_v8 = vpop.permute.xlu1 %1261  ;;  %v12272_v14 = vpop.permute.xlu0 %993 }
 0x326   :  { %13857 = vst [vmem:[#allocation243_spill] sm:$0xff] %v12270_v8  ;;  %13858 = vst [vmem:[#allocation244_spill] sm:$0xff] %v12272_v14 }
 0x327   :  { %2797 = vbcast.lane.b32.xlu1 %v12096_v18, 312  ;;  %2529 = vbcast.lane.b32.xlu0 %v12100_v3, 312 }
 0x329   :  { %v12276_v21 = vpop.permute.xlu1 %2769  ;;  %v12278_v19 = vpop.permute.xlu0 %2501 }
 0x32a   :  { %13859 = vst [vmem:[#allocation245_spill] sm:$0xff] %v12276_v21  ;;  %13860 = vst [vmem:[#allocation246_spill] sm:$0xff] %v12278_v19 }
 0x32b   :  { %607 = vbcast.lane.b32.xlu1 %v12044_v10, 320  ;;  %339 = vbcast.lane.b32.xlu0 %v12048_v20, 320 }
 0x32d   :  { %v12282_v4 = vpop.permute.xlu1 %579  ;;  %v12284_v5 = vpop.permute.xlu0 %311 }
 0x32e   :  { %13861 = vst [vmem:[#allocation247_spill] sm:$0xff] %v12282_v4  ;;  %13862 = vst [vmem:[#allocation248_spill] sm:$0xff] %v12284_v5 }
 0x32f   :  { %2115 = vbcast.lane.b32.xlu1 %v12058_v12, 320  ;;  %1847 = vbcast.lane.b32.xlu0 %v12064_v2, 320 }
 0x331   :  { %v12288_v14 = vpop.permute.xlu1 %2087  ;;  %v12290_v8 = vpop.permute.xlu0 %1819 }
 0x332   :  { %13863 = vst [vmem:[#allocation249_spill] sm:$0xff] %v12288_v14  ;;  %13864 = vst [vmem:[#allocation250_spill] sm:$0xff] %v12290_v8 }
 0x333   :  { %1293 = vbcast.lane.b32.xlu1 %v12079_v23, 320  ;;  %1025 = vbcast.lane.b32.xlu0 %v12083_v16, 320 }
 0x335   :  { %v12294_v19 = vpop.permute.xlu1 %1265  ;;  %v12296_v21 = vpop.permute.xlu0 %997 }
 0x336   :  { %13865 = vst [vmem:[#allocation251_spill] sm:$0xff] %v12294_v19  ;;  %13866 = vst [vmem:[#allocation252_spill] sm:$0xff] %v12296_v21 }
 0x337   :  { %2801 = vbcast.lane.b32.xlu1 %v12096_v18, 320  ;;  %2533 = vbcast.lane.b32.xlu0 %v12100_v3, 320 }
 0x339   :  { %v12300_v5 = vpop.permute.xlu1 %2773  ;;  %v12302_v4 = vpop.permute.xlu0 %2505 }
 0x33a   :  { %13867 = vst [vmem:[#allocation253_spill] sm:$0xff] %v12300_v5  ;;  %13868 = vst [vmem:[#allocation254_spill] sm:$0xff] %v12302_v4 }
 0x33b   :  { %611 = vbcast.lane.b32.xlu1 %v12044_v10, 328  ;;  %343 = vbcast.lane.b32.xlu0 %v12048_v20, 328 }
 0x33d   :  { %v12306_v8 = vpop.permute.xlu1 %583  ;;  %v12308_v14 = vpop.permute.xlu0 %315 }
 0x33e   :  { %13869 = vst [vmem:[#allocation255_spill] sm:$0xff] %v12306_v8  ;;  %13870 = vst [vmem:[#allocation256_spill] sm:$0xff] %v12308_v14 }
 0x33f   :  { %2119 = vbcast.lane.b32.xlu1 %v12058_v12, 328  ;;  %1851 = vbcast.lane.b32.xlu0 %v12064_v2, 328 }
 0x341   :  { %v12312_v21 = vpop.permute.xlu1 %2091  ;;  %v12314_v19 = vpop.permute.xlu0 %1823 }
 0x342   :  { %13871 = vst [vmem:[#allocation257_spill] sm:$0xff] %v12312_v21  ;;  %13872 = vst [vmem:[#allocation258_spill] sm:$0xff] %v12314_v19 }
 0x343   :  { %1297 = vbcast.lane.b32.xlu1 %v12079_v23, 328  ;;  %1029 = vbcast.lane.b32.xlu0 %v12083_v16, 328 }
 0x345   :  { %v12318_v4 = vpop.permute.xlu1 %1269  ;;  %v12320_v5 = vpop.permute.xlu0 %1001 }
 0x346   :  { %13873 = vst [vmem:[#allocation259_spill] sm:$0xff] %v12318_v4  ;;  %13874 = vst [vmem:[#allocation260_spill] sm:$0xff] %v12320_v5 }
 0x347   :  { %2805 = vbcast.lane.b32.xlu1 %v12096_v18, 328  ;;  %2537 = vbcast.lane.b32.xlu0 %v12100_v3, 328 }
 0x349   :  { %v12324_v14 = vpop.permute.xlu1 %2777  ;;  %v12326_v8 = vpop.permute.xlu0 %2509 }
 0x34a   :  { %13875 = vst [vmem:[#allocation261_spill] sm:$0xff] %v12324_v14  ;;  %13876 = vst [vmem:[#allocation262_spill] sm:$0xff] %v12326_v8 }
 0x34b   :  { %615 = vbcast.lane.b32.xlu1 %v12044_v10, 336  ;;  %347 = vbcast.lane.b32.xlu0 %v12048_v20, 336 }
 0x34d   :  { %v12330_v19 = vpop.permute.xlu1 %587  ;;  %v12332_v21 = vpop.permute.xlu0 %319 }
 0x34e   :  { %13877 = vst [vmem:[#allocation263_spill] sm:$0xff] %v12330_v19  ;;  %13878 = vst [vmem:[#allocation264_spill] sm:$0xff] %v12332_v21 }
 0x34f   :  { %2123 = vbcast.lane.b32.xlu1 %v12058_v12, 336  ;;  %1855 = vbcast.lane.b32.xlu0 %v12064_v2, 336 }
 0x351   :  { %v12336_v5 = vpop.permute.xlu1 %2095  ;;  %v12338_v4 = vpop.permute.xlu0 %1827 }
 0x352   :  { %13879 = vst [vmem:[#allocation265_spill] sm:$0xff] %v12336_v5  ;;  %13880 = vst [vmem:[#allocation266_spill] sm:$0xff] %v12338_v4 }
 0x353   :  { %1301 = vbcast.lane.b32.xlu1 %v12079_v23, 336  ;;  %1033 = vbcast.lane.b32.xlu0 %v12083_v16, 336 }
 0x355   :  { %v12342_v8 = vpop.permute.xlu1 %1273  ;;  %v12344_v14 = vpop.permute.xlu0 %1005 }
 0x356   :  { %13881 = vst [vmem:[#allocation267_spill] sm:$0xff] %v12342_v8  ;;  %13882 = vst [vmem:[#allocation268_spill] sm:$0xff] %v12344_v14 }
 0x357   :  { %2809 = vbcast.lane.b32.xlu1 %v12096_v18, 336  ;;  %2541 = vbcast.lane.b32.xlu0 %v12100_v3, 336 }
 0x359   :  { %v12348_v21 = vpop.permute.xlu1 %2781  ;;  %v12350_v19 = vpop.permute.xlu0 %2513 }
 0x35a   :  { %13883 = vst [vmem:[#allocation269_spill] sm:$0xff] %v12348_v21  ;;  %13884 = vst [vmem:[#allocation270_spill] sm:$0xff] %v12350_v19 }
 0x35b   :  { %619 = vbcast.lane.b32.xlu1 %v12044_v10, 344  ;;  %351 = vbcast.lane.b32.xlu0 %v12048_v20, 344 }
 0x35d   :  { %v12354_v4 = vpop.permute.xlu1 %591  ;;  %v12356_v5 = vpop.permute.xlu0 %323 }
 0x35e   :  { %13885 = vst [vmem:[#allocation271_spill] sm:$0xff] %v12354_v4  ;;  %13886 = vst [vmem:[#allocation272_spill] sm:$0xff] %v12356_v5 }
 0x35f   :  { %2127 = vbcast.lane.b32.xlu1 %v12058_v12, 344  ;;  %1859 = vbcast.lane.b32.xlu0 %v12064_v2, 344 }
 0x361   :  { %v12360_v14 = vpop.permute.xlu1 %2099  ;;  %v12362_v8 = vpop.permute.xlu0 %1831 }
 0x362   :  { %13887 = vst [vmem:[#allocation273_spill] sm:$0xff] %v12360_v14  ;;  %13888 = vst [vmem:[#allocation274_spill] sm:$0xff] %v12362_v8 }
 0x363   :  { %1305 = vbcast.lane.b32.xlu1 %v12079_v23, 344  ;;  %1037 = vbcast.lane.b32.xlu0 %v12083_v16, 344 }
 0x365   :  { %v12366_v19 = vpop.permute.xlu1 %1277  ;;  %v12368_v21 = vpop.permute.xlu0 %1009 }
 0x366   :  { %13889 = vst [vmem:[#allocation275_spill] sm:$0xff] %v12366_v19  ;;  %13890 = vst [vmem:[#allocation276_spill] sm:$0xff] %v12368_v21 }
 0x367   :  { %2813 = vbcast.lane.b32.xlu1 %v12096_v18, 344  ;;  %2545 = vbcast.lane.b32.xlu0 %v12100_v3, 344 }
 0x369   :  { %v12372_v5 = vpop.permute.xlu1 %2785  ;;  %v12374_v4 = vpop.permute.xlu0 %2517 }
 0x36a   :  { %13891 = vst [vmem:[#allocation277_spill] sm:$0xff] %v12372_v5  ;;  %13892 = vst [vmem:[#allocation278_spill] sm:$0xff] %v12374_v4 }
 0x36b   :  { %623 = vbcast.lane.b32.xlu1 %v12044_v10, 352  ;;  %355 = vbcast.lane.b32.xlu0 %v12048_v20, 352 }
 0x36d   :  { %v12378_v8 = vpop.permute.xlu1 %595  ;;  %v12380_v14 = vpop.permute.xlu0 %327 }
 0x36e   :  { %13893 = vst [vmem:[#allocation279_spill] sm:$0xff] %v12378_v8  ;;  %13894 = vst [vmem:[#allocation280_spill] sm:$0xff] %v12380_v14 }
 0x36f   :  { %2131 = vbcast.lane.b32.xlu1 %v12058_v12, 352  ;;  %1863 = vbcast.lane.b32.xlu0 %v12064_v2, 352 }
 0x371   :  { %v12384_v21 = vpop.permute.xlu1 %2103  ;;  %v12386_v19 = vpop.permute.xlu0 %1835 }
 0x372   :  { %13895 = vst [vmem:[#allocation281_spill] sm:$0xff] %v12384_v21  ;;  %13896 = vst [vmem:[#allocation282_spill] sm:$0xff] %v12386_v19 }
 0x373   :  { %1309 = vbcast.lane.b32.xlu1 %v12079_v23, 352  ;;  %1041 = vbcast.lane.b32.xlu0 %v12083_v16, 352 }
 0x375   :  { %v12390_v4 = vpop.permute.xlu1 %1281  ;;  %v12392_v5 = vpop.permute.xlu0 %1013 }
 0x376   :  { %13897 = vst [vmem:[#allocation283_spill] sm:$0xff] %v12390_v4  ;;  %13898 = vst [vmem:[#allocation284_spill] sm:$0xff] %v12392_v5 }
 0x377   :  { %2817 = vbcast.lane.b32.xlu1 %v12096_v18, 352  ;;  %2549 = vbcast.lane.b32.xlu0 %v12100_v3, 352 }
 0x379   :  { %v12396_v14 = vpop.permute.xlu1 %2789  ;;  %v12398_v8 = vpop.permute.xlu0 %2521 }
 0x37a   :  { %13899 = vst [vmem:[#allocation285_spill] sm:$0xff] %v12396_v14  ;;  %13900 = vst [vmem:[#allocation286_spill] sm:$0xff] %v12398_v8 }
 0x37b   :  { %627 = vbcast.lane.b32.xlu1 %v12044_v10, 360  ;;  %359 = vbcast.lane.b32.xlu0 %v12048_v20, 360 }
 0x37d   :  { %v12402_v19 = vpop.permute.xlu1 %599  ;;  %v12404_v21 = vpop.permute.xlu0 %331 }
 0x37e   :  { %13901 = vst [vmem:[#allocation287_spill] sm:$0xff] %v12402_v19  ;;  %13902 = vst [vmem:[#allocation288_spill] sm:$0xff] %v12404_v21 }
 0x37f   :  { %2135 = vbcast.lane.b32.xlu1 %v12058_v12, 360  ;;  %1867 = vbcast.lane.b32.xlu0 %v12064_v2, 360 }
 0x381   :  { %v12408_v5 = vpop.permute.xlu1 %2107  ;;  %v12410_v4 = vpop.permute.xlu0 %1839 }
 0x382   :  { %13903 = vst [vmem:[#allocation289_spill] sm:$0xff] %v12408_v5  ;;  %13904 = vst [vmem:[#allocation290_spill] sm:$0xff] %v12410_v4 }
 0x383   :  { %1313 = vbcast.lane.b32.xlu1 %v12079_v23, 360  ;;  %1045 = vbcast.lane.b32.xlu0 %v12083_v16, 360 }
 0x385   :  { %v12414_v8 = vpop.permute.xlu1 %1285  ;;  %v12416_v14 = vpop.permute.xlu0 %1017 }
 0x386   :  { %13905 = vst [vmem:[#allocation291_spill] sm:$0xff] %v12414_v8  ;;  %13906 = vst [vmem:[#allocation292_spill] sm:$0xff] %v12416_v14 }
 0x387   :  { %2821 = vbcast.lane.b32.xlu1 %v12096_v18, 360  ;;  %2553 = vbcast.lane.b32.xlu0 %v12100_v3, 360 }
 0x389   :  { %v12420_v21 = vpop.permute.xlu1 %2793  ;;  %v12422_v19 = vpop.permute.xlu0 %2525 }
 0x38a   :  { %13907 = vst [vmem:[#allocation293_spill] sm:$0xff] %v12420_v21  ;;  %13908 = vst [vmem:[#allocation294_spill] sm:$0xff] %v12422_v19 }
 0x38b   :  { %631 = vbcast.lane.b32.xlu1 %v12044_v10, 368  ;;  %363 = vbcast.lane.b32.xlu0 %v12048_v20, 368 }
 0x38d   :  { %v12426_v4 = vpop.permute.xlu1 %603  ;;  %v12428_v5 = vpop.permute.xlu0 %335 }
 0x38e   :  { %13909 = vst [vmem:[#allocation295_spill] sm:$0xff] %v12426_v4  ;;  %13910 = vst [vmem:[#allocation296_spill] sm:$0xff] %v12428_v5 }
 0x38f   :  { %2139 = vbcast.lane.b32.xlu1 %v12058_v12, 368  ;;  %1871 = vbcast.lane.b32.xlu0 %v12064_v2, 368 }
 0x391   :  { %v12432_v14 = vpop.permute.xlu1 %2111  ;;  %v12434_v8 = vpop.permute.xlu0 %1843 }
 0x392   :  { %13911 = vst [vmem:[#allocation297_spill] sm:$0xff] %v12432_v14  ;;  %13912 = vst [vmem:[#allocation298_spill] sm:$0xff] %v12434_v8 }
 0x393   :  { %1317 = vbcast.lane.b32.xlu1 %v12079_v23, 368  ;;  %1049 = vbcast.lane.b32.xlu0 %v12083_v16, 368 }
 0x395   :  { %v12438_v19 = vpop.permute.xlu1 %1289  ;;  %v12440_v21 = vpop.permute.xlu0 %1021 }
 0x396   :  { %13913 = vst [vmem:[#allocation299_spill] sm:$0xff] %v12438_v19  ;;  %13914 = vst [vmem:[#allocation300_spill] sm:$0xff] %v12440_v21 }
 0x397   :  { %2825 = vbcast.lane.b32.xlu1 %v12096_v18, 368  ;;  %2557 = vbcast.lane.b32.xlu0 %v12100_v3, 368 }
 0x399   :  { %v12444_v5 = vpop.permute.xlu1 %2797  ;;  %v12446_v4 = vpop.permute.xlu0 %2529 }
 0x39b   :  { %635 = vbcast.lane.b32.xlu1 %v12044_v10, 376  ;;  %367 = vbcast.lane.b32.xlu0 %v12048_v20, 376  ;;  %v167_v10 = vcombine.high %v12031_v13, %v12031_v13 }
 0x39d   :  { %v12450_v8 = vpop.permute.xlu1 %607  ;;  %v12452_v14 = vpop.permute.xlu0 %339 }
 0x39e   :  { %13915 = vst [vmem:[#allocation301_spill] sm:$0xff] %v12450_v8 }
 0x39f   :  { %2143 = vbcast.lane.b32.xlu1 %v12058_v12, 376  ;;  %1875 = vbcast.lane.b32.xlu0 %v12064_v2, 376  ;;  %v12471_v12 = vrot.slane %v167_v10, %v11302_v7  ;;  %v12474_v2 = vrot.slane %v167_v10, %v11299_v6  ;;  %v849_v10 = vcombine.high %v12067_v9, %v12067_v9 }
 0x3a1   :  { %v12456_v21 = vpop.permute.xlu1 %2115  ;;  %v12458_v19 = vpop.permute.xlu0 %1847 }
 0x3a2   :  { %13916 = vst [vmem:[#allocation302_spill] sm:$0xff] %v12456_v21  ;;  %13917 = vst [vmem:[#allocation303_spill] sm:$0xff] %v12458_v19 }
 0x3a3   :  { %1321 = vbcast.lane.b32.xlu1 %v12079_v23, 376  ;;  %1053 = vbcast.lane.b32.xlu0 %v12083_v16, 376  ;;  %v1675_v16 = vcombine.high %v12038_v22, %v12038_v22 }
 0x3a5   :  { %v12464_v20 = vpop.permute.xlu1 %1293  ;;  %v12466_v8 = vpop.permute.xlu0 %1025 }
 0x3a6   :  { %13918 = vst [vmem:[#allocation304_spill] sm:$0xff] %v12464_v20  ;;  %13919 = vst [vmem:[#allocation305_spill] sm:$0xff] %v12466_v8 }
 0x3a7   :  { %2829 = vbcast.lane.b32.xlu1 %v12096_v18, 376  ;;  %2561 = vbcast.lane.b32.xlu0 %v12100_v3, 376  ;;  %v12485_v18 = vrot.slane %v1675_v16, %v11302_v7  ;;  %v12488_v3 = vrot.slane %v1675_v16, %v11299_v6  ;;  %v2357_v16 = vcombine.high %v12086_v11, %v12086_v11  ;;  %v13926_v11 = vlaneseq }
 0x3a9   :  { %v12478_v23 = vpop.permute.xlu1 %2801  ;;  %v12480_v13 = vpop.permute.xlu0 %2533 }
 0x3aa   :  { %13920 = vst [vmem:[#allocation306_spill] sm:$0xff] %v12478_v23  ;;  %13921 = vst [vmem:[#allocation307_spill] sm:$0xff] %v12480_v13  ;;  %v12499_v13 = vrot.slane %v849_v10, %v11302_v7  ;;  %v12502_v23 = vrot.slane %v849_v10, %v11299_v6 }
 0x3ab   :  { %642 = vbcast.lane.b32.xlu1 %v12471_v12, 256  ;;  %374 = vbcast.lane.b32.xlu0 %v12474_v2, 256 }
 0x3ad   :  { %v12492_v8 = vpop.permute.xlu1 %611  ;;  %v12494_v22 = vpop.permute.xlu0 %343 }
 0x3ae   :  { %13922 = vst [vmem:[#allocation308_spill] sm:$0xff] %v12492_v8  ;;  %13923 = vst [vmem:[#allocation309_spill] sm:$0xff] %v12494_v22  ;;  %v12513_v22 = vrot.slane %v2357_v16, %v11302_v7  ;;  %v12516_v8 = vrot.slane %v2357_v16, %v11299_v6 }
 0x3af   :  { %2150 = vbcast.lane.b32.xlu1 %v12485_v18, 256  ;;  %1882 = vbcast.lane.b32.xlu0 %v12488_v3, 256 }
 0x3b1   :  { %v12506_v20 = vpop.permute.xlu1 %2119  ;;  %v12508_v9 = vpop.permute.xlu0 %1851 }
 0x3b2   :  { %13924 = vst [vmem:[#allocation310_spill] sm:$0xff] %v12506_v20  ;;  %13925 = vst [vmem:[#allocation311_spill] sm:$0xff] %v12508_v9  ;;  %v12525_v9 = vand.u32 127, %v13926_v11 }
 0x3b3   :  { %1328 = vbcast.lane.b32.xlu1 %v12499_v13, 256  ;;  %1060 = vbcast.lane.b32.xlu0 %v12502_v23, 256 }
 0x3b4   :  { %vm768_vm0 = vcmp.eq.s32.totalorder %v11410_v24, %v12525_v9  ;;  %vm704_vm1 = vcmp.eq.s32.totalorder %v11412_v25, %v12525_v9  ;;  %vm769_vm2 = vcmp.eq.s32.totalorder %v11416_v26, %v12525_v9  ;;  %vm705_vm3 = vcmp.eq.s32.totalorder %v11418_v27, %v12525_v9 }
 0x3b5   :  { %v12518_v19 = vpop.permute.xlu1 %1297  ;;  %v12520_v10 = vpop.permute.xlu0 %1029  ;;  %vm2213_vm4 = vcmp.eq.s32.totalorder %v11422_v28, %v12525_v9  ;;  %vm2212_vm5 = vcmp.eq.s32.totalorder %v11424_v29, %v12525_v9  ;;  %vm2277_vm6 = vcmp.eq.s32.totalorder %v11428_v30, %v12525_v9  ;;  %vm2276_vm7 = vcmp.eq.s32.totalorder %v11430_v31, %v12525_v9 }
 0x3b6   :  { %v1391_v24 = vsel %vm705_vm3, %v11434_v32, 0.0  ;;  %v1390_v25 = vsel %vm704_vm1, %v11436_v33, 0.0  ;;  %v1455_v26 = vsel %vm769_vm2, %v11440_v34, 0.0  ;;  %v1454_v27 = vsel %vm768_vm0, %v11442_v35, 0.0 }
 0x3b7   :  { %2836 = vbcast.lane.b32.xlu1 %v12513_v22, 256  ;;  %2568 = vbcast.lane.b32.xlu0 %v12516_v8, 256  ;;  %v2899_v28 = vsel %vm2213_vm4, %v11446_v36, 0.0  ;;  %v2898_v29 = vsel %vm2212_vm5, %v11448_v37, 0.0  ;;  %v2963_v30 = vsel %vm2277_vm6, %v11452_v38, 0.0  ;;  %v2962_v31 = vsel %vm2276_vm7, %v11454_v39, 0.0 }
 0x3b8   :  { %v1587_v32 = vadd.f32 %v1455_v26, %v1454_v27  ;;  %v3026_v33 = vadd.f32 %v2899_v28, %v2898_v29  ;;  %v3095_v34 = vadd.f32 %v2963_v30, %v2962_v31  ;;  %vm770_vm8 = vcmp.eq.s32.totalorder %v11458_v40, %v12525_v9  ;;  %v13933_v28 = vld [vmem:[#allocation32_spill] sm:$0xff]  ;;  %v13934_v29 = vld [vmem:[#allocation33_spill] sm:$0xff] }
 0x3b9   :  { %v12527_v20 = vpop.permute.xlu1 %2805  ;;  %v12529_v21 = vpop.permute.xlu0 %2537  ;;  %vm706_vm9 = vcmp.eq.s32.totalorder %v11460_v41, %v12525_v9  ;;  %vm2278_vm10 = vcmp.eq.s32.totalorder %v11464_v42, %v12525_v9  ;;  %vm2214_vm11 = vcmp.eq.s32.totalorder %v11466_v43, %v12525_v9  ;;  %v1456_v35 = vsel %vm770_vm8, %v11470_v44, 0.0 }
 0x3ba   :  { %v1392_v36 = vsel %vm706_vm9, %v11472_v45, 0.0  ;;  %v2964_v39 = vsel %vm2278_vm10, %v11476_v46, 0.0  ;;  %v2900_v40 = vsel %vm2214_vm11, %v11478_v47, 0.0  ;;  %vm771_vm12 = vcmp.eq.s32.totalorder %v11482_v48, %v12525_v9 }
 0x3bb   :  { %646 = vbcast.lane.b32.xlu1 %v12471_v12, 264  ;;  %378 = vbcast.lane.b32.xlu0 %v12474_v2, 264  ;;  %vm707_vm13 = vcmp.eq.s32.totalorder %v11484_v49, %v12525_v9  ;;  %vm2279_vm14 = vcmp.eq.s32.totalorder %v11488_v50, %v12525_v9  ;;  %vm2215_vm15 = vcmp.eq.s32.totalorder %v11490_v51, %v12525_v9  ;;  %v1457_v41 = vsel %vm771_vm12, %v11494_v52, 0.0 }
 0x3bc   :  { %v1393_v42 = vsel %vm707_vm13, %v11496_v53, 0.0  ;;  %v1588_v43 = vadd.f32 %v1587_v32, %v1456_v35  ;;  %v2965_v45 = vsel %vm2279_vm14, %v11500_v54, 0.0  ;;  %v2901_v46 = vsel %vm2215_vm15, %v11502_v55, 0.0 }
 0x3bd   :  { %v12535_v16 = vpop.permute.xlu1 %615  ;;  %v12537_v7 = vpop.permute.xlu0 %347  ;;  %v3096_v47 = vadd.f32 %v3095_v34, %v2964_v39  ;;  %v3027_v48 = vadd.f32 %v3026_v33, %v2900_v40  ;;  %vm772_vm0 = vcmp.eq.s32.totalorder %v11506_v56, %v12525_v9  ;;  %vm708_vm1 = vcmp.eq.s32.totalorder %v11508_v57, %v12525_v9 }
 0x3be   :  { %13927 = vst [vmem:[#allocation312_spill] sm:$0xff] %v12537_v7  ;;  %v1518_v7 = vadd.f32 %v1391_v24, %v1390_v25  ;;  %v1589_v51 = vadd.f32 %v1588_v43, %v1457_v41  ;;  %vm2280_vm2 = vcmp.eq.s32.totalorder %v11512_v58, %v12525_v9  ;;  %vm2216_vm3 = vcmp.eq.s32.totalorder %v11514_v59, %v12525_v9  ;;  %v13928_v58 = vld [vmem:[#allocation27_spill] sm:$0xff]  ;;  %v13929_v59 = vld [vmem:[#allocation28_spill] sm:$0xff] }
 0x3bf   :  { %2154 = vbcast.lane.b32.xlu1 %v12485_v18, 264  ;;  %1886 = vbcast.lane.b32.xlu0 %v12488_v3, 264  ;;  %v3097_v24 = vadd.f32 %v3096_v47, %v2965_v45  ;;  %v3028_v53 = vadd.f32 %v3027_v48, %v2901_v46  ;;  %v1394_v54 = vsel %vm708_vm1, %v11520_v61, 0.0  ;;  %v2966_v55 = vsel %vm2280_vm2, %v11524_v62, 0.0  ;;  %v13931_v61 = vld [vmem:[#allocation30_spill] sm:$0xff]  ;;  %v13936_v43 = vld [vmem:[#allocation35_spill] sm:$0xff] }
 0x3c0   :  { %v1519_v44 = vadd.f32 %v1518_v7, %v1392_v36  ;;  %v1458_v7 = vsel %vm772_vm0, %v11518_v60, 0.0  ;;  %v2902_v56 = vsel %vm2216_vm3, %v11526_v63, 0.0  ;;  %vm773_vm4 = vcmp.eq.s32.totalorder %v11530_v1, %v12525_v9  ;;  %v13930_v60 = vld [vmem:[#allocation29_spill] sm:$0xff]  ;;  %v13932_v63 = vld [vmem:[#allocation31_spill] sm:$0xff]  ;;  %v13939_v46 = vld [vmem:[#allocation38_spill] sm:$0xff] }
 0x3c1   :  { %v12563_v11 = vpop.permute.xlu1 %2123  ;;  %v12565_v6 = vpop.permute.xlu0 %1855  ;;  %vm709_vm5 = vcmp.eq.s32.totalorder %v13928_v58, %v12525_v9  ;;  %vm2281_vm6 = vcmp.eq.s32.totalorder %v13929_v59, %v12525_v9  ;;  %vm2217_vm7 = vcmp.eq.s32.totalorder %v13930_v60, %v12525_v9  ;;  %v1459_v62 = vsel %vm773_vm4, %v13931_v61, 0.0  ;;  %v13938_v45 = vld [vmem:[#allocation37_spill] sm:$0xff]  ;;  %v13940_v48 = vld [vmem:[#allocation39_spill] sm:$0xff]  ;;  %v13947_v59 = vld [vmem:[#allocation46_spill] sm:$0xff] }
 0x3c2   :  { %v1520_v52 = vadd.f32 %v1519_v44, %v1393_v42  ;;  %v1590_v26 = vadd.f32 %v1589_v51, %v1458_v7  ;;  %v1395_v27 = vsel %vm709_vm5, %v13932_v63, 0.0  ;;  %v2967_v1 = vsel %vm2281_vm6, %v13933_v28, 0.0  ;;  %v13935_v42 = vld [vmem:[#allocation34_spill] sm:$0xff]  ;;  %v13937_v44 = vld [vmem:[#allocation36_spill] sm:$0xff]  ;;  %v13946_v58 = vld [vmem:[#allocation45_spill] sm:$0xff] }
 0x3c3   :  { %1332 = vbcast.lane.b32.xlu1 %v12499_v13, 264  ;;  %1064 = vbcast.lane.b32.xlu0 %v12502_v23, 264  ;;  %v2903_v30 = vsel %vm2217_vm7, %v13934_v29, 0.0  ;;  %v3098_v32 = vadd.f32 %v3097_v24, %v2966_v55  ;;  %v3029_v33 = vadd.f32 %v3028_v53, %v2902_v56  ;;  %vm774_vm8 = vcmp.eq.s32.totalorder %v13935_v42, %v12525_v9  ;;  %v13942_v53 = vld [vmem:[#allocation41_spill] sm:$0xff]  ;;  %v13944_v55 = vld [vmem:[#allocation43_spill] sm:$0xff]  ;;  %v13945_v56 = vld [vmem:[#allocation44_spill] sm:$0xff] }
 0x3c4   :  { %v1521_v31 = vadd.f32 %v1520_v52, %v1394_v54  ;;  %v1591_v34 = vadd.f32 %v1590_v26, %v1459_v62  ;;  %vm710_vm9 = vcmp.eq.s32.totalorder %v13936_v43, %v12525_v9  ;;  %vm2282_vm10 = vcmp.eq.s32.totalorder %v13937_v44, %v12525_v9  ;;  %v13941_v52 = vld [vmem:[#allocation40_spill] sm:$0xff]  ;;  %v13943_v54 = vld [vmem:[#allocation42_spill] sm:$0xff]  ;;  %v13948_v63 = vld [vmem:[#allocation47_spill] sm:$0xff] }
 0x3c5   :  { %v12579_v37 = vpop.permute.xlu1 %1301  ;;  %v12581_v38 = vpop.permute.xlu0 %1033  ;;  %v3099_v40 = vadd.f32 %v3098_v32, %v2967_v1  ;;  %v3030_v41 = vadd.f32 %v3029_v33, %v2903_v30  ;;  %vm2218_vm11 = vcmp.eq.s32.totalorder %v13938_v45, %v12525_v9  ;;  %v1460_v47 = vsel %vm774_vm8, %v13939_v46, 0.0  ;;  %v13949_v44 = vld [vmem:[#allocation48_spill] sm:$0xff]  ;;  %v13954_v46 = vld [vmem:[#allocation53_spill] sm:$0xff] }
 0x3c6   :  { %v1522_v39 = vadd.f32 %v1521_v31, %v1395_v27  ;;  %v1396_v51 = vsel %vm710_vm9, %v13940_v48, 0.0  ;;  %v2968_v24 = vsel %vm2282_vm10, %v13941_v52, 0.0  ;;  %v2904_v7 = vsel %vm2218_vm11, %v13942_v53, 0.0  ;;  %v13955_v48 = vld [vmem:[#allocation54_spill] sm:$0xff]  ;;  %v13956_v52 = vld [vmem:[#allocation55_spill] sm:$0xff]  ;;  %v13957_v53 = vld [vmem:[#allocation56_spill] sm:$0xff] }
 0x3c7   :  { %2840 = vbcast.lane.b32.xlu1 %v12513_v22, 264  ;;  %2572 = vbcast.lane.b32.xlu0 %v12516_v8, 264  ;;  %vm775_vm12 = vcmp.eq.s32.totalorder %v13943_v54, %v12525_v9  ;;  %vm711_vm13 = vcmp.eq.s32.totalorder %v13944_v55, %v12525_v9  ;;  %vm2283_vm14 = vcmp.eq.s32.totalorder %v13945_v56, %v12525_v9  ;;  %v13959_v54 = vld [vmem:[#allocation58_spill] sm:$0xff]  ;;  %v13960_v55 = vld [vmem:[#allocation59_spill] sm:$0xff]  ;;  %v13961_v56 = vld [vmem:[#allocation60_spill] sm:$0xff] }
 0x3c8   :  { %vm2219_vm15 = vcmp.eq.s32.totalorder %v13946_v58, %v12525_v9  ;;  %v1461_v60 = vsel %vm775_vm12, %v13947_v59, 0.0  ;;  %v1592_v26 = vadd.f32 %v1591_v34, %v1460_v47  ;;  %v1397_v27 = vsel %vm711_vm13, %v13948_v63, 0.0  ;;  %v13963_v63 = vld [vmem:[#allocation62_spill] sm:$0xff] }
 0x3c9   :  { %v12599_v49 = vpop.permute.xlu1 %2809  ;;  %v12601_v50 = vpop.permute.xlu0 %2541  ;;  %v2969_v28 = vsel %vm2283_vm14, %v11596_v0, 0.0  ;;  %v2905_v1 = vsel %vm2219_vm15, %v11598_v15, 0.0  ;;  %v1523_v29 = vadd.f32 %v1522_v39, %v1396_v51  ;;  %v3100_v30 = vadd.f32 %v3099_v40, %v2968_v24  ;;  %v13950_v0 = vld [vmem:[#allocation49_spill] sm:$0xff]  ;;  %v13951_v15 = vld [vmem:[#allocation50_spill] sm:$0xff]  ;;  %v13952_v39 = vld [vmem:[#allocation51_spill] sm:$0xff] }
 0x3ca   :  { %v3031_v31 = vadd.f32 %v3030_v41, %v2904_v7  ;;  %v1593_v32 = vadd.f32 %v1592_v26, %v1461_v60  ;;  %vm776_vm0 = vcmp.eq.s32.totalorder %v13949_v44, %v12525_v9  ;;  %vm712_vm1 = vcmp.eq.s32.totalorder %v13950_v0, %v12525_v9  ;;  %v13953_v40 = vld [vmem:[#allocation52_spill] sm:$0xff]  ;;  %v13958_v7 = vld [vmem:[#allocation57_spill] sm:$0xff] }
 0x3cb   :  { %650 = vbcast.lane.b32.xlu1 %v12471_v12, 272  ;;  %382 = vbcast.lane.b32.xlu0 %v12474_v2, 272  ;;  %v1524_v33 = vadd.f32 %v1523_v29, %v1397_v27  ;;  %v3101_v42 = vadd.f32 %v3100_v30, %v2969_v28  ;;  %vm2284_vm2 = vcmp.eq.s32.totalorder %v13951_v15, %v12525_v9  ;;  %v1462_v41 = vsel %vm776_vm0, %v13953_v40, 0.0  ;;  %v13962_v60 = vld [vmem:[#allocation61_spill] sm:$0xff]  ;;  %v13964_v28 = vld [vmem:[#allocation63_spill] sm:$0xff] }
 0x3cc   :  { %v3032_v43 = vadd.f32 %v3031_v31, %v2905_v1  ;;  %vm2220_vm3 = vcmp.eq.s32.totalorder %v13952_v39, %v12525_v9  ;;  %v1398_v47 = vsel %vm712_vm1, %v13954_v46, 0.0  ;;  %v2970_v51 = vsel %vm2284_vm2, %v13955_v48, 0.0  ;;  %v13966_v46 = vld [vmem:[#allocation65_spill] sm:$0xff]  ;;  %v13967_v48 = vld [vmem:[#allocation66_spill] sm:$0xff] }
 0x3cd   :  { %v12619_v25 = vpop.permute.xlu1 %619  ;;  %v12621_v57 = vpop.permute.xlu0 %351  ;;  %v2906_v24 = vsel %vm2220_vm3, %v13956_v52, 0.0  ;;  %vm777_vm4 = vcmp.eq.s32.totalorder %v13957_v53, %v12525_v9  ;;  %vm713_vm5 = vcmp.eq.s32.totalorder %v13958_v7, %v12525_v9  ;;  %vm2285_vm6 = vcmp.eq.s32.totalorder %v13959_v54, %v12525_v9  ;;  %v13970_v52 = vld [vmem:[#allocation69_spill] sm:$0xff]  ;;  %v13971_v53 = vld [vmem:[#allocation70_spill] sm:$0xff]  ;;  %v13972_v54 = vld [vmem:[#allocation71_spill] sm:$0xff] }
 0x3ce   :  { %vm2221_vm7 = vcmp.eq.s32.totalorder %v13960_v55, %v12525_v9  ;;  %v1463_v58 = vsel %vm777_vm4, %v13961_v56, 0.0  ;;  %v1594_v59 = vadd.f32 %v1593_v32, %v1462_v41  ;;  %v1399_v26 = vsel %vm713_vm5, %v13962_v60, 0.0  ;;  %v13965_v41 = vld [vmem:[#allocation64_spill] sm:$0xff]  ;;  %v13976_v60 = vld [vmem:[#allocation75_spill] sm:$0xff] }
 0x3cf   :  { %2158 = vbcast.lane.b32.xlu1 %v12485_v18, 272  ;;  %1890 = vbcast.lane.b32.xlu0 %v12488_v3, 272  ;;  %v2971_v27 = vsel %vm2285_vm6, %v13963_v63, 0.0  ;;  %v2907_v1 = vsel %vm2221_vm7, %v13964_v28, 0.0  ;;  %v1525_v31 = vadd.f32 %v1524_v33, %v1398_v47  ;;  %v3102_v44 = vadd.f32 %v3101_v42, %v2970_v51  ;;  %v13968_v33 = vld [vmem:[#allocation67_spill] sm:$0xff]  ;;  %v13969_v42 = vld [vmem:[#allocation68_spill] sm:$0xff] }
 0x3d0   :  { %v3033_v0 = vadd.f32 %v3032_v43, %v2906_v24  ;;  %v1595_v15 = vadd.f32 %v1594_v59, %v1463_v58  ;;  %vm778_vm8 = vcmp.eq.s32.totalorder %v13965_v41, %v12525_v9  ;;  %vm714_vm9 = vcmp.eq.s32.totalorder %v13966_v46, %v12525_v9  ;;  %v13973_v56 = vld [vmem:[#allocation72_spill] sm:$0xff]  ;;  %v13974_v58 = vld [vmem:[#allocation73_spill] sm:$0xff]  ;;  %v13975_v59 = vld [vmem:[#allocation74_spill] sm:$0xff] }
 0x3d1   :  { %v12635_v35 = vpop.permute.xlu1 %2127  ;;  %v12637_v36 = vpop.permute.xlu0 %1859  ;;  %v1526_v39 = vadd.f32 %v1525_v31, %v1399_v26  ;;  %v3103_v32 = vadd.f32 %v3102_v44, %v2971_v27  ;;  %vm2286_vm10 = vcmp.eq.s32.totalorder %v13967_v48, %v12525_v9  ;;  %vm2222_vm11 = vcmp.eq.s32.totalorder %v13968_v33, %v12525_v9  ;;  %v13977_v26 = vld [vmem:[#allocation76_spill] sm:$0xff]  ;;  %v13978_v28 = vld [vmem:[#allocation77_spill] sm:$0xff]  ;;  %v13979_v31 = vld [vmem:[#allocation78_spill] sm:$0xff] }
 0x3d2   :  { %v3034_v40 = vadd.f32 %v3033_v0, %v2907_v1  ;;  %v1464_v43 = vsel %vm778_vm8, %v13969_v42, 0.0  ;;  %v1400_v24 = vsel %vm714_vm9, %v13970_v52, 0.0  ;;  %v2972_v7 = vsel %vm2286_vm10, %v13971_v53, 0.0  ;;  %v13980_v0 = vld [vmem:[#allocation79_spill] sm:$0xff] }
 0x3d3   :  { %1336 = vbcast.lane.b32.xlu1 %v12499_v13, 272  ;;  %1068 = vbcast.lane.b32.xlu0 %v12502_v23, 272  ;;  %v2908_v55 = vsel %vm2222_vm11, %v13972_v54, 0.0  ;;  %vm779_vm12 = vcmp.eq.s32.totalorder %v13973_v56, %v12525_v9  ;;  %vm715_vm13 = vcmp.eq.s32.totalorder %v13974_v58, %v12525_v9  ;;  %vm2287_vm14 = vcmp.eq.s32.totalorder %v13975_v59, %v12525_v9  ;;  %v13987_v59 = vld [vmem:[#allocation86_spill] sm:$0xff] }
 0x3d4   :  { %vm2223_vm15 = vcmp.eq.s32.totalorder %v13976_v60, %v12525_v9  ;;  %v1465_v63 = vsel %vm779_vm12, %v13977_v26, 0.0  ;;  %v1596_v27 = vadd.f32 %v1595_v15, %v1464_v43  ;;  %v1401_v1 = vsel %vm715_vm13, %v13978_v28, 0.0  ;;  %v13981_v15 = vld [vmem:[#allocation80_spill] sm:$0xff]  ;;  %v13982_v43 = vld [vmem:[#allocation81_spill] sm:$0xff]  ;;  %v13988_v26 = vld [vmem:[#allocation87_spill] sm:$0xff] }
 0x3d5   :  { %v12662_v61 = vpop.permute.xlu1 %1305  ;;  %v12664_v62 = vpop.permute.xlu0 %1037  ;;  %v2973_v44 = vsel %vm2287_vm14, %v13979_v31, 0.0  ;;  %v2909_v41 = vsel %vm2223_vm15, %v13980_v0, 0.0  ;;  %v1527_v46 = vadd.f32 %v1526_v39, %v1400_v24  ;;  %v3104_v48 = vadd.f32 %v3103_v32, %v2972_v7  ;;  %v13983_v39 = vld [vmem:[#allocation82_spill] sm:$0xff]  ;;  %v13984_v32 = vld [vmem:[#allocation83_spill] sm:$0xff]  ;;  %v13986_v7 = vld [vmem:[#allocation85_spill] sm:$0xff] }
 0x3d6   :  { %v3035_v33 = vadd.f32 %v3034_v40, %v2908_v55  ;;  %v1597_v53 = vadd.f32 %v1596_v27, %v1465_v63  ;;  %vm780_vm0 = vcmp.eq.s32.totalorder %v13981_v15, %v12525_v9  ;;  %vm716_vm1 = vcmp.eq.s32.totalorder %v13982_v43, %v12525_v9  ;;  %v13985_v40 = vld [vmem:[#allocation84_spill] sm:$0xff]  ;;  %v13992_v31 = vld [vmem:[#allocation89_spill] sm:$0xff]  ;;  %v13994_v0 = vld [vmem:[#allocation91_spill] sm:$0xff] }
 0x3d7   :  { %2844 = vbcast.lane.b32.xlu1 %v12513_v22, 272  ;;  %2576 = vbcast.lane.b32.xlu0 %v12516_v8, 272  ;;  %v1528_v54 = vadd.f32 %v1527_v46, %v1401_v1  ;;  %v3105_v56 = vadd.f32 %v3104_v48, %v2973_v44  ;;  %vm2288_vm2 = vcmp.eq.s32.totalorder %v13983_v39, %v12525_v9  ;;  %v1466_v24 = vsel %vm780_vm0, %v13985_v40, 0.0  ;;  %v13991_v1 = vld [vmem:[#allocation88_spill] sm:$0xff]  ;;  %v13993_v44 = vld [vmem:[#allocation90_spill] sm:$0xff]  ;;  %v13996_v48 = vld [vmem:[#allocation93_spill] sm:$0xff] }
 0x3d8   :  { %v3036_v58 = vadd.f32 %v3035_v33, %v2909_v41  ;;  %vm2224_vm3 = vcmp.eq.s32.totalorder %v13984_v32, %v12525_v9  ;;  %v1402_v55 = vsel %vm716_vm1, %v13986_v7, 0.0  ;;  %v2974_v60 = vsel %vm2288_vm2, %v13987_v59, 0.0  ;;  %v13995_v41 = vld [vmem:[#allocation92_spill] sm:$0xff]  ;;  %v13997_v15 = vld [vmem:[#allocation94_spill] sm:$0xff]  ;;  %v13998_v39 = vld [vmem:[#allocation95_spill] sm:$0xff] }
 0x3d9   :  { %v12673_v34 = vpop.permute.xlu1 %2813  ;;  %v12675_v45 = vpop.permute.xlu0 %2545  ;;  %v2910_v63 = vsel %vm2224_vm3, %v13988_v26, 0.0  ;;  %vm781_vm4 = vcmp.eq.s32.totalorder %v13991_v1, %v12525_v9  ;;  %vm717_vm5 = vcmp.eq.s32.totalorder %v13992_v31, %v12525_v9  ;;  %vm2289_vm6 = vcmp.eq.s32.totalorder %v13993_v44, %v12525_v9 }
 0x3da   :  { %vm2225_vm7 = vcmp.eq.s32.totalorder %v13994_v0, %v12525_v9  ;;  %v1467_v46 = vsel %vm781_vm4, %v13995_v41, 0.0  ;;  %v1403_v33 = vsel %vm717_vm5, %v13996_v48, 0.0  ;;  %v2975_v43 = vsel %vm2289_vm6, %v13997_v15, 0.0  ;;  %v14001_v15 = vld [vmem:[#allocation96_spill] sm:$0xff] }
 0x3db   :  { %654 = vbcast.lane.b32.xlu1 %v12471_v12, 280  ;;  %386 = vbcast.lane.b32.xlu0 %v12474_v2, 280  ;;  %v2911_v32 = vsel %vm2225_vm7, %v13998_v39, 0.0  ;;  %v1598_v40 = vadd.f32 %v1597_v53, %v1466_v24  ;;  %v1529_v7 = vadd.f32 %v1528_v54, %v1402_v55  ;;  %v3106_v59 = vadd.f32 %v3105_v56, %v2974_v60  ;;  %v14002_v39 = vld [vmem:[#allocation97_spill] sm:$0xff]  ;;  %v14004_v53 = vld [vmem:[#allocation99_spill] sm:$0xff]  ;;  %v14005_v54 = vld [vmem:[#allocation100_spill] sm:$0xff] }
 0x3dc   :  { %v3037_v26 = vadd.f32 %v3036_v58, %v2910_v63  ;;  %vm782_vm8 = vcmp.eq.s32.totalorder %v14001_v15, %v12525_v9  ;;  %vm718_vm9 = vcmp.eq.s32.totalorder %v14002_v39, %v12525_v9  ;;  %vm2226_vm11 = vcmp.eq.s32.totalorder %v14004_v53, %v12525_v9  ;;  %v14006_v58 = vld [vmem:[#allocation101_spill] sm:$0xff]  ;;  %v14007_v55 = vld [vmem:[#allocation102_spill] sm:$0xff]  ;;  %v14008_v63 = vld [vmem:[#allocation103_spill] sm:$0xff] }
 0x3dd   :  { %v12701_v29 = vpop.permute.xlu1 %623  ;;  %v12703_v30 = vpop.permute.xlu0 %355  ;;  %v1599_v44 = vadd.f32 %v1598_v40, %v1467_v46  ;;  %v1530_v0 = vadd.f32 %v1529_v7, %v1403_v33  ;;  %v3107_v41 = vadd.f32 %v3106_v59, %v2975_v43  ;;  %v1468_v56 = vsel %vm782_vm8, %v14005_v54, 0.0  ;;  %v14009_v33 = vld [vmem:[#allocation104_spill] sm:$0xff]  ;;  %v14011_v43 = vld [vmem:[#allocation106_spill] sm:$0xff]  ;;  %v14014_v7 = vld [vmem:[#allocation107_spill] sm:$0xff] }
 0x3de   :  { %v3038_v48 = vadd.f32 %v3037_v26, %v2911_v32  ;;  %v1404_v24 = vsel %vm718_vm9, %v14006_v58, 0.0  ;;  %v2912_v46 = vsel %vm2226_vm11, %v14008_v63, 0.0  ;;  %vm783_vm12 = vcmp.eq.s32.totalorder %v14009_v33, %v12525_v9  ;;  %v14015_v59 = vld [vmem:[#allocation108_spill] sm:$0xff]  ;;  %v14016_v15 = vld [vmem:[#allocation109_spill] sm:$0xff]  ;;  %v14017_v53 = vld [vmem:[#allocation110_spill] sm:$0xff] }
 0x3df   :  { %2162 = vbcast.lane.b32.xlu1 %v12485_v18, 280  ;;  %1894 = vbcast.lane.b32.xlu0 %v12488_v3, 280  ;;  %vm2291_vm14 = vcmp.eq.s32.totalorder %v14011_v43, %v12525_v9  ;;  %vm2227_vm15 = vcmp.eq.s32.totalorder %v14014_v7, %v12525_v9  ;;  %v1469_v26 = vsel %vm783_vm12, %v14015_v59, 0.0  ;;  %v1600_v58 = vadd.f32 %v1599_v44, %v1468_v56  ;;  %v14018_v33 = vld [vmem:[#allocation111_spill] sm:$0xff]  ;;  %v14022_v44 = vld [vmem:[#allocation113_spill] sm:$0xff] }
 0x3e0   :  { %v2977_v54 = vsel %vm2291_vm14, %v14017_v53, 0.0  ;;  %v3039_v43 = vadd.f32 %v3038_v48, %v2912_v46  ;;  %v14021_v53 = vld [vmem:[#allocation112_spill] sm:$0xff]  ;;  %vm720_vm1 = vcmp.eq.s32.totalorder %v14022_v44, %v12525_v9  ;;  %v14027_v46 = vld [vmem:[#allocation118_spill] sm:$0xff] }
 0x3e1   :  { %v12716_v47 = vpop.permute.xlu1 %2131  ;;  %v12718_v51 = vpop.permute.xlu0 %1863  ;;  %vm784_vm0 = vcmp.eq.s32.totalorder %v14021_v53, %v12525_v9  ;;  %v14025_v48 = vld [vmem:[#allocation116_spill] sm:$0xff]  ;;  %v14034_v53 = vld [vmem:[#allocation125_spill] sm:$0xff] }
 0x3e2   :  { %v1470_v56 = vsel %vm784_vm0, %v14025_v48, 0.0 }
 0x3e3   :  { %1340 = vbcast.lane.b32.xlu1 %v12499_v13, 280  ;;  %1072 = vbcast.lane.b32.xlu0 %v12502_v23, 280 }
 0x3e5   :  { %v12737_v42 = vpop.permute.xlu1 %1309  ;;  %v12739_v52 = vpop.permute.xlu0 %1041 }
 0x3e7   :  { %2848 = vbcast.lane.b32.xlu1 %v12513_v22, 280  ;;  %2580 = vbcast.lane.b32.xlu0 %v12516_v8, 280 }
 0x3e9   :  { %v12755_v27 = vpop.permute.xlu1 %2817  ;;  %v12757_v28 = vpop.permute.xlu0 %2549 }
 0x3ea   :  { %13989 = vst [vmem:[#allocation27_spill] sm:$0xff] %v12755_v27  ;;  %13990 = vst [vmem:[#allocation28_spill] sm:$0xff] %v12757_v28  ;;  %v14003_v28 = vld [vmem:[#allocation98_spill] sm:$0xff] }
 0x3eb   :  { %658 = vbcast.lane.b32.xlu1 %v12471_v12, 288  ;;  %390 = vbcast.lane.b32.xlu0 %v12474_v2, 288  ;;  %vm2290_vm10 = vcmp.eq.s32.totalorder %v14003_v28, %v12525_v9  ;;  %v14010_v28 = vld [vmem:[#allocation105_spill] sm:$0xff] }
 0x3ec   :  { %v2976_v60 = vsel %vm2290_vm10, %v14007_v55, 0.0  ;;  %vm719_vm13 = vcmp.eq.s32.totalorder %v14010_v28, %v12525_v9  ;;  %v1531_v55 = vadd.f32 %v1530_v0, %v1404_v24  ;;  %v2913_v28 = vsel %vm2227_vm15, %v14018_v33, 0.0  ;;  %v14023_v0 = vld [vmem:[#allocation114_spill] sm:$0xff]  ;;  %v14026_v24 = vld [vmem:[#allocation117_spill] sm:$0xff]  ;;  %v14032_v33 = vld [vmem:[#allocation123_spill] sm:$0xff] }
 0x3ed   :  { %v12773_v1 = vpop.permute.xlu1 %627  ;;  %v12775_v31 = vpop.permute.xlu0 %359  ;;  %v1405_v39 = vsel %vm719_vm13, %v14016_v15, 0.0  ;;  %v3108_v63 = vadd.f32 %v3107_v41, %v2976_v60  ;;  %v3040_v15 = vadd.f32 %v3039_v43, %v2913_v28  ;;  %vm2292_vm2 = vcmp.eq.s32.totalorder %v14023_v0, %v12525_v9  ;;  %v14024_v41 = vld [vmem:[#allocation115_spill] sm:$0xff]  ;;  %v14033_v28 = vld [vmem:[#allocation124_spill] sm:$0xff]  ;;  %v14035_v0 = vld [vmem:[#allocation126_spill] sm:$0xff] }
 0x3ee   :  { %13999 = vst [vmem:[#allocation29_spill] sm:$0xff] %v12773_v1  ;;  %14000 = vst [vmem:[#allocation30_spill] sm:$0xff] %v12775_v31  ;;  %vm2228_vm3 = vcmp.eq.s32.totalorder %v14024_v41, %v12525_v9  ;;  %v1406_v60 = vsel %vm720_vm1, %v14026_v24, 0.0  ;;  %vm2229_vm7 = vcmp.eq.s32.totalorder %v14032_v33, %v12525_v9 }
 0x3ef   :  { %2166 = vbcast.lane.b32.xlu1 %v12485_v18, 288  ;;  %1898 = vbcast.lane.b32.xlu0 %v12488_v3, 288  ;;  %v3109_v31 = vadd.f32 %v3108_v63, %v2977_v54  ;;  %v14031_v63 = vld [vmem:[#allocation122_spill] sm:$0xff] }
 0x3f0   :  { %vm2293_vm6 = vcmp.eq.s32.totalorder %v14031_v63, %v12525_v9 }
 0x3f1   :  { %v12797_v32 = vpop.permute.xlu1 %2135  ;;  %v12799_v40 = vpop.permute.xlu0 %1867  ;;  %v2979_v41 = vsel %vm2293_vm6, %v14035_v0, 0.0  ;;  %v14039_v0 = vld [vmem:[#allocation128_spill] sm:$0xff] }
 0x3f2   :  { %14012 = vst [vmem:[#allocation31_spill] sm:$0xff] %v12797_v32  ;;  %14013 = vst [vmem:[#allocation32_spill] sm:$0xff] %v12799_v40  ;;  %v1601_v40 = vadd.f32 %v1600_v58, %v1469_v26  ;;  %v1532_v32 = vadd.f32 %v1531_v55, %v1405_v39  ;;  %v2978_v26 = vsel %vm2292_vm2, %v14027_v46, 0.0  ;;  %v14028_v39 = vld [vmem:[#allocation119_spill] sm:$0xff]  ;;  %v14029_v58 = vld [vmem:[#allocation120_spill] sm:$0xff]  ;;  %vm786_vm8 = vcmp.eq.s32.totalorder %v14039_v0, %v12525_v9 }
 0x3f3   :  { %1344 = vbcast.lane.b32.xlu1 %v12499_v13, 288  ;;  %1076 = vbcast.lane.b32.xlu0 %v12502_v23, 288  ;;  %v2914_v54 = vsel %vm2228_vm3, %v14028_v39, 0.0  ;;  %vm785_vm4 = vcmp.eq.s32.totalorder %v14029_v58, %v12525_v9  ;;  %v14030_v55 = vld [vmem:[#allocation121_spill] sm:$0xff]  ;;  %v3110_v58 = vadd.f32 %v3109_v31, %v2978_v26 }
 0x3f4   :  { %vm721_vm5 = vcmp.eq.s32.totalorder %v14030_v55, %v12525_v9  ;;  %v1471_v43 = vsel %vm785_vm4, %v14033_v28, 0.0  ;;  %v1602_v46 = vadd.f32 %v1601_v40, %v1470_v56  ;;  %v1533_v39 = vadd.f32 %v1532_v32, %v1406_v60  ;;  %v14038_v55 = vld [vmem:[#allocation127_spill] sm:$0xff]  ;;  %v14041_v32 = vld [vmem:[#allocation130_spill] sm:$0xff]  ;;  %v14045_v56 = vld [vmem:[#allocation132_spill] sm:$0xff] }
 0x3f5   :  { %v12809_v7 = vpop.permute.xlu1 %1313  ;;  %v12811_v59 = vpop.permute.xlu0 %1045  ;;  %v1407_v44 = vsel %vm721_vm5, %v14034_v53, 0.0  ;;  %v3111_v28 = vadd.f32 %v3110_v58, %v2979_v41  ;;  %vm2294_vm10 = vcmp.eq.s32.totalorder %v14041_v32, %v12525_v9  ;;  %v1472_v60 = vsel %vm786_vm8, %v14045_v56, 0.0  ;;  %v14046_v26 = vld [vmem:[#allocation133_spill] sm:$0xff]  ;;  %v14049_v41 = vld [vmem:[#allocation136_spill] sm:$0xff] }
 0x3f6   :  { %14019 = vst [vmem:[#allocation33_spill] sm:$0xff] %v12809_v7  ;;  %14020 = vst [vmem:[#allocation34_spill] sm:$0xff] %v12811_v59  ;;  %v2915_v59 = vsel %vm2229_vm7, %v14038_v55, 0.0  ;;  %v3041_v7 = vadd.f32 %v3040_v15, %v2914_v54  ;;  %v1603_v63 = vadd.f32 %v1602_v46, %v1471_v43  ;;  %v1534_v33 = vadd.f32 %v1533_v39, %v1407_v44  ;;  %v14044_v15 = vld [vmem:[#allocation131_spill] sm:$0xff]  ;;  %v14051_v46 = vld [vmem:[#allocation138_spill] sm:$0xff] }
 0x3f7   :  { %2852 = vbcast.lane.b32.xlu1 %v12513_v22, 288  ;;  %2584 = vbcast.lane.b32.xlu0 %v12516_v8, 288  ;;  %vm2230_vm11 = vcmp.eq.s32.totalorder %v14044_v15, %v12525_v9  ;;  %v14048_v43 = vld [vmem:[#allocation135_spill] sm:$0xff]  ;;  %vm787_vm12 = vcmp.eq.s32.totalorder %v14049_v41, %v12525_v9  ;;  %vm2295_vm14 = vcmp.eq.s32.totalorder %v14051_v46, %v12525_v9  ;;  %v14053_v58 = vld [vmem:[#allocation140_spill] sm:$0xff]  ;;  %v14054_v0 = vld [vmem:[#allocation141_spill] sm:$0xff] }
 0x3f8   :  { %v3042_v53 = vadd.f32 %v3041_v7, %v2915_v59  ;;  %v14047_v59 = vld [vmem:[#allocation134_spill] sm:$0xff]  ;;  %v2916_v44 = vsel %vm2230_vm11, %v14048_v43, 0.0  ;;  %v14052_v39 = vld [vmem:[#allocation139_spill] sm:$0xff]  ;;  %v1473_v55 = vsel %vm787_vm12, %v14053_v58, 0.0  ;;  %v14058_v58 = vld [vmem:[#allocation144_spill] sm:$0xff] }
 0x3f9   :  { %v12838_v48 = vpop.permute.xlu1 %2821  ;;  %v12840_v24 = vpop.permute.xlu0 %2553  ;;  %v2980_v54 = vsel %vm2294_vm10, %v14047_v59, 0.0  ;;  %vm2231_vm15 = vcmp.eq.s32.totalorder %v14052_v39, %v12525_v9  ;;  %v14055_v15 = vld [vmem:[#allocation142_spill] sm:$0xff]  ;;  %v14056_v41 = vld [vmem:[#allocation143_spill] sm:$0xff]  ;;  %vm788_vm0 = vcmp.eq.s32.totalorder %v14058_v58, %v12525_v9  ;;  %v14073_v58 = vld [vmem:[#allocation157_spill] sm:$0xff] }
 0x3fa   :  { %14036 = vst [vmem:[#allocation35_spill] sm:$0xff] %v12838_v48  ;;  %14037 = vst [vmem:[#allocation36_spill] sm:$0xff] %v12840_v24  ;;  %v14040_v48 = vld [vmem:[#allocation129_spill] sm:$0xff]  ;;  %v2981_v56 = vsel %vm2295_vm14, %v14055_v15, 0.0  ;;  %v3112_v43 = vadd.f32 %v3111_v28, %v2980_v54  ;;  %v14061_v28 = vld [vmem:[#allocation147_spill] sm:$0xff] }
 0x3fb   :  { %662 = vbcast.lane.b32.xlu1 %v12471_v12, 296  ;;  %394 = vbcast.lane.b32.xlu0 %v12474_v2, 296  ;;  %vm722_vm9 = vcmp.eq.s32.totalorder %v14040_v48, %v12525_v9  ;;  %v14050_v48 = vld [vmem:[#allocation137_spill] sm:$0xff]  ;;  %vm2232_vm3 = vcmp.eq.s32.totalorder %v14061_v28, %v12525_v9 }
 0x3fc   :  { %v1408_v7 = vsel %vm722_vm9, %v14046_v26, 0.0  ;;  %vm723_vm13 = vcmp.eq.s32.totalorder %v14050_v48, %v12525_v9  ;;  %v1604_v26 = vadd.f32 %v1603_v63, %v1472_v60  ;;  %v2917_v48 = vsel %vm2231_vm15, %v14056_v41, 0.0  ;;  %v14059_v63 = vld [vmem:[#allocation145_spill] sm:$0xff]  ;;  %v14072_v41 = vld [vmem:[#allocation156_spill] sm:$0xff] }
 0x3fd   :  { %v12851_v31 = vpop.permute.xlu1 %631  ;;  %v12853_v40 = vpop.permute.xlu0 %363  ;;  %v1409_v32 = vsel %vm723_vm13, %v14054_v0, 0.0  ;;  %v1535_v59 = vadd.f32 %v1534_v33, %v1408_v7  ;;  %v3113_v27 = vadd.f32 %v3112_v43, %v2981_v56  ;;  %vm724_vm1 = vcmp.eq.s32.totalorder %v14059_v63, %v12525_v9  ;;  %v14060_v33 = vld [vmem:[#allocation146_spill] sm:$0xff]  ;;  %v14063_v7 = vld [vmem:[#allocation149_spill] sm:$0xff]  ;;  %v14068_v56 = vld [vmem:[#allocation152_spill] sm:$0xff] }
 0x3fe   :  { %14042 = vst [vmem:[#allocation37_spill] sm:$0xff] %v12851_v31  ;;  %14043 = vst [vmem:[#allocation38_spill] sm:$0xff] %v12853_v40  ;;  %v3043_v31 = vadd.f32 %v3042_v53, %v2916_v44  ;;  %v1605_v24 = vadd.f32 %v1604_v26, %v1473_v55  ;;  %vm2296_vm2 = vcmp.eq.s32.totalorder %v14060_v33, %v12525_v9  ;;  %v14062_v53 = vld [vmem:[#allocation148_spill] sm:$0xff]  ;;  %v1410_v54 = vsel %vm724_vm1, %v14063_v7, 0.0  ;;  %v14064_v44 = vld [vmem:[#allocation150_spill] sm:$0xff] }
 0x3ff   :  { %2170 = vbcast.lane.b32.xlu1 %v12485_v18, 296  ;;  %1902 = vbcast.lane.b32.xlu0 %v12488_v3, 296  ;;  %v1536_v1 = vadd.f32 %v1535_v59, %v1409_v32  ;;  %v1474_v60 = vsel %vm788_vm0, %v14062_v53, 0.0  ;;  %v2982_v55 = vsel %vm2296_vm2, %v14064_v44, 0.0  ;;  %v14067_v32 = vld [vmem:[#allocation151_spill] sm:$0xff]  ;;  %vm789_vm4 = vcmp.eq.s32.totalorder %v14068_v56, %v12525_v9  ;;  %v14069_v26 = vld [vmem:[#allocation153_spill] sm:$0xff] }
 0x400   :  { %v3044_v39 = vadd.f32 %v3043_v31, %v2917_v48  ;;  %v2918_v15 = vsel %vm2232_vm3, %v14067_v32, 0.0  ;;  %vm725_vm5 = vcmp.eq.s32.totalorder %v14069_v26, %v12525_v9  ;;  %v14070_v59 = vld [vmem:[#allocation154_spill] sm:$0xff]  ;;  %v14071_v43 = vld [vmem:[#allocation155_spill] sm:$0xff]  ;;  %v1475_v48 = vsel %vm789_vm4, %v14072_v41, 0.0 }
 0x401   :  { %v12875_v40 = vpop.permute.xlu1 %2139  ;;  %v12877_v46 = vpop.permute.xlu0 %1871  ;;  %vm2297_vm6 = vcmp.eq.s32.totalorder %v14070_v59, %v12525_v9  ;;  %vm2233_vm7 = vcmp.eq.s32.totalorder %v14071_v43, %v12525_v9  ;;  %v1411_v63 = vsel %vm725_vm5, %v14073_v58, 0.0  ;;  %v14074_v33 = vld [vmem:[#allocation158_spill] sm:$0xff]  ;;  %v1606_v53 = vadd.f32 %v1605_v24, %v1474_v60  ;;  %v14075_v32 = vld [vmem:[#allocation159_spill] sm:$0xff]  ;;  %v14081_v24 = vld [vmem:[#allocation164_spill] sm:$0xff] }
 0x402   :  { %14057 = vst [vmem:[#allocation39_spill] sm:$0xff] %v12877_v46  ;;  %v2983_v28 = vsel %vm2297_vm6, %v14074_v33, 0.0  ;;  %v1537_v7 = vadd.f32 %v1536_v1, %v1410_v54  ;;  %v3114_v44 = vadd.f32 %v3113_v27, %v2982_v55  ;;  %v2919_v56 = vsel %vm2233_vm7, %v14075_v32, 0.0  ;;  %v14077_v33 = vld [vmem:[#allocation160_spill] sm:$0xff]  ;;  %v14078_v46 = vld [vmem:[#allocation161_spill] sm:$0xff]  ;;  %v14079_v27 = vld [vmem:[#allocation162_spill] sm:$0xff] }
 0x403   :  { %1348 = vbcast.lane.b32.xlu1 %v12499_v13, 296  ;;  %1080 = vbcast.lane.b32.xlu0 %v12502_v23, 296  ;;  %v3045_v26 = vadd.f32 %v3044_v39, %v2918_v15  ;;  %v1607_v43 = vadd.f32 %v1606_v53, %v1475_v48  ;;  %vm790_vm8 = vcmp.eq.s32.totalorder %v14077_v33, %v12525_v9  ;;  %v14080_v1 = vld [vmem:[#allocation163_spill] sm:$0xff]  ;;  %v14082_v60 = vld [vmem:[#allocation165_spill] sm:$0xff]  ;;  %v14083_v55 = vld [vmem:[#allocation166_spill] sm:$0xff] }
 0x404   :  { %v1538_v41 = vadd.f32 %v1537_v7, %v1411_v63  ;;  %vm726_vm9 = vcmp.eq.s32.totalorder %v14078_v46, %v12525_v9  ;;  %vm2298_vm10 = vcmp.eq.s32.totalorder %v14079_v27, %v12525_v9  ;;  %vm2234_vm11 = vcmp.eq.s32.totalorder %v14080_v1, %v12525_v9  ;;  %v14084_v48 = vld [vmem:[#allocation167_spill] sm:$0xff]  ;;  %v14085_v46 = vld [vmem:[#allocation168_spill] sm:$0xff]  ;;  %v14092_v33 = vld [vmem:[#allocation173_spill] sm:$0xff] }
 0x405   :  { %v12892_v0 = vpop.permute.xlu1 %1317  ;;  %v12894_v31 = vpop.permute.xlu0 %1049  ;;  %v3046_v58 = vadd.f32 %v3045_v26, %v2919_v56  ;;  %v1476_v39 = vsel %vm790_vm8, %v14081_v24, 0.0  ;;  %v1412_v54 = vsel %vm726_vm9, %v14082_v60, 0.0  ;;  %v2984_v15 = vsel %vm2298_vm10, %v14083_v55, 0.0  ;;  %v14090_v32 = vld [vmem:[#allocation171_spill] sm:$0xff]  ;;  %v14091_v56 = vld [vmem:[#allocation172_spill] sm:$0xff]  ;;  %v14093_v60 = vld [vmem:[#allocation174_spill] sm:$0xff] }
 0x406   :  { %14065 = vst [vmem:[#allocation40_spill] sm:$0xff] %v12892_v0  ;;  %14066 = vst [vmem:[#allocation41_spill] sm:$0xff] %v12894_v31  ;;  %v3115_v0 = vadd.f32 %v3114_v44, %v2983_v28  ;;  %v2920_v63 = vsel %vm2234_vm11, %v14084_v48, 0.0  ;;  %vm791_vm12 = vcmp.eq.s32.totalorder %v14085_v46, %v12525_v9  ;;  %v14086_v28 = vld [vmem:[#allocation169_spill] sm:$0xff]  ;;  %v14089_v44 = vld [vmem:[#allocation170_spill] sm:$0xff]  ;;  %vm2235_vm15 = vcmp.eq.s32.totalorder %v14090_v32, %v12525_v9 }
 0x407   :  { %2856 = vbcast.lane.b32.xlu1 %v12513_v22, 296  ;;  %2588 = vbcast.lane.b32.xlu0 %v12516_v8, 296  ;;  %vm727_vm13 = vcmp.eq.s32.totalorder %v14086_v28, %v12525_v9  ;;  %vm2299_vm14 = vcmp.eq.s32.totalorder %v14089_v44, %v12525_v9  ;;  %v1477_v26 = vsel %vm791_vm12, %v14091_v56, 0.0  ;;  %v1608_v1 = vadd.f32 %v1607_v43, %v1476_v39  ;;  %v14094_v48 = vld [vmem:[#allocation175_spill] sm:$0xff]  ;;  %v14097_v43 = vld [vmem:[#allocation176_spill] sm:$0xff] }
 0x408   :  { %v1413_v27 = vsel %vm727_vm13, %v14092_v33, 0.0  ;;  %v1539_v24 = vadd.f32 %v1538_v41, %v1412_v54  ;;  %v2985_v55 = vsel %vm2299_vm14, %v14093_v60, 0.0  ;;  %v2921_v46 = vsel %vm2235_vm15, %v14094_v48, 0.0  ;;  %v14098_v41 = vld [vmem:[#allocation177_spill] sm:$0xff]  ;;  %v14101_v54 = vld [vmem:[#allocation180_spill] sm:$0xff]  ;;  %v14107_v60 = vld [vmem:[#allocation186_spill] sm:$0xff] }
 0x409   :  { %v12911_v59 = vpop.permute.xlu1 %2825  ;;  %v12913_v31 = vpop.permute.xlu0 %2557  ;;  %v3116_v28 = vadd.f32 %v3115_v0, %v2984_v15  ;;  %v1609_v44 = vadd.f32 %v1608_v1, %v1477_v26  ;;  %vm792_vm0 = vcmp.eq.s32.totalorder %v12018_v17, %v12525_v9  ;;  %vm728_vm1 = vcmp.eq.s32.totalorder %v14097_v43, %v12525_v9  ;;  %v14099_v0 = vld [vmem:[#allocation178_spill] sm:$0xff]  ;;  %v14105_v1 = vld [vmem:[#allocation184_spill] sm:$0xff] }
 0x40a   :  { %14076 = vst [vmem:[#allocation42_spill] sm:$0xff] %v12913_v31  ;;  %vm2300_vm2 = vcmp.eq.s32.totalorder %v14098_v41, %v12525_v9  ;;  %vm2236_vm3 = vcmp.eq.s32.totalorder %v14099_v0, %v12525_v9  ;;  %v1414_v15 = vsel %vm728_vm1, %v14101_v54, 0.0  ;;  %v14103_v17 = vld [vmem:[#allocation182_spill] sm:$0xff]  ;;  %vm729_vm5 = vcmp.eq.s32.totalorder %v14105_v1, %v12525_v9  ;;  %v14112_v54 = vld [vmem:[#allocation189_spill] sm:$0xff] }
 0x40b   :  { %666 = vbcast.lane.b32.xlu1 %v12471_v12, 304  ;;  %398 = vbcast.lane.b32.xlu0 %v12474_v2, 304  ;;  %v3117_v56 = vadd.f32 %v3116_v28, %v2985_v55  ;;  %v2922_v26 = vsel %vm2236_vm3, %v14103_v17, 0.0  ;;  %vm2237_vm7 = vcmp.eq.s32.totalorder %v14107_v60, %v12525_v9  ;;  %v14108_v55 = vld [vmem:[#allocation187_spill] sm:$0xff]  ;;  %v14113_v17 = vld [vmem:[#allocation190_spill] sm:$0xff] }
 0x40d   :  { %v12933_v53 = vpop.permute.xlu1 %635  ;;  %v12935_v7 = vpop.permute.xlu0 %367 }
 0x40e   :  { %14087 = vst [vmem:[#allocation43_spill] sm:$0xff] %v12933_v53  ;;  %14088 = vst [vmem:[#allocation44_spill] sm:$0xff] %v12935_v7  ;;  %v3047_v7 = vadd.f32 %v3046_v58, %v2920_v63  ;;  %v1540_v53 = vadd.f32 %v1539_v24, %v1413_v27  ;;  %v14100_v58 = vld [vmem:[#allocation179_spill] sm:$0xff]  ;;  %v14102_v63 = vld [vmem:[#allocation181_spill] sm:$0xff] }
 0x40f   :  { %2174 = vbcast.lane.b32.xlu1 %v12485_v18, 304  ;;  %1906 = vbcast.lane.b32.xlu0 %v12488_v3, 304  ;;  %v1478_v39 = vsel %vm792_vm0, %v14100_v58, 0.0  ;;  %v14104_v27 = vld [vmem:[#allocation183_spill] sm:$0xff]  ;;  %v14106_v24 = vld [vmem:[#allocation185_spill] sm:$0xff] }
 0x410   :  { %v3048_v33 = vadd.f32 %v3047_v7, %v2921_v46  ;;  %v2986_v7 = vsel %vm2300_vm2, %v14102_v63, 0.0  ;;  %vm793_vm4 = vcmp.eq.s32.totalorder %v14104_v27, %v12525_v9  ;;  %vm2301_vm6 = vcmp.eq.s32.totalorder %v14106_v24, %v12525_v9  ;;  %v14109_v46 = vld [vmem:[#allocation188_spill] sm:$0xff] }
 0x411   :  { %v12947_v31 = vpop.permute.xlu1 %2143  ;;  %v12949_v32 = vpop.permute.xlu0 %1875  ;;  %v1479_v48 = vsel %vm793_vm4, %v14108_v55, 0.0  ;;  %v1415_v28 = vsel %vm729_vm5, %v14109_v46, 0.0  ;;  %v1610_v0 = vadd.f32 %v1609_v44, %v1478_v39  ;;  %v1541_v58 = vadd.f32 %v1540_v53, %v1414_v15  ;;  %v14115_v44 = vld [vmem:[#allocation192_spill] sm:$0xff]  ;;  %v14120_v15 = vld [vmem:[#allocation195_spill] sm:$0xff] }
 0x412   :  { %14095 = vst [vmem:[#allocation45_spill] sm:$0xff] %v12947_v31  ;;  %14096 = vst [vmem:[#allocation46_spill] sm:$0xff] %v12949_v32  ;;  %v2987_v63 = vsel %vm2301_vm6, %v14112_v54, 0.0  ;;  %v2923_v27 = vsel %vm2237_vm7, %v14113_v17, 0.0  ;;  %v3118_v1 = vadd.f32 %v3117_v56, %v2986_v7  ;;  %v3049_v32 = vadd.f32 %v3048_v33, %v2922_v26  ;;  %v14118_v56 = vld [vmem:[#allocation193_spill] sm:$0xff]  ;;  %v14119_v33 = vld [vmem:[#allocation194_spill] sm:$0xff] }
 0x413   :  { %1352 = vbcast.lane.b32.xlu1 %v12499_v13, 304  ;;  %1084 = vbcast.lane.b32.xlu0 %v12502_v23, 304  ;;  %v1611_v24 = vadd.f32 %v1610_v0, %v1479_v48  ;;  %v1542_v60 = vadd.f32 %v1541_v58, %v1415_v28  ;;  %vm730_vm9 = vcmp.eq.s32.totalorder %v14115_v44, %v12525_v9  ;;  %v14121_v26 = vld [vmem:[#allocation196_spill] sm:$0xff]  ;;  %v14122_v48 = vld [vmem:[#allocation197_spill] sm:$0xff]  ;;  %v14124_v58 = vld [vmem:[#allocation199_spill] sm:$0xff] }
 0x414   :  { %v3119_v55 = vadd.f32 %v3118_v1, %v2987_v63  ;;  %v3050_v46 = vadd.f32 %v3049_v32, %v2923_v27  ;;  %vm2302_vm10 = vcmp.eq.s32.totalorder %v14118_v56, %v12525_v9  ;;  %vm2238_vm11 = vcmp.eq.s32.totalorder %v14119_v33, %v12525_v9  ;;  %v14125_v54 = vld [vmem:[#allocation200_spill] sm:$0xff]  ;;  %v14126_v63 = vld [vmem:[#allocation201_spill] sm:$0xff]  ;;  %v14127_v17 = vld [vmem:[#allocation202_spill] sm:$0xff] }
 0x415   :  { %v12975_v43 = vpop.permute.xlu1 %1321  ;;  %v12977_v41 = vpop.permute.xlu0 %1053  ;;  %v1416_v32 = vsel %vm730_vm9, %v14121_v26, 0.0  ;;  %v2988_v28 = vsel %vm2302_vm10, %v14122_v48, 0.0  ;;  %vm795_vm12 = vcmp.eq.s32.totalorder %v14124_v58, %v12525_v9  ;;  %vm731_vm13 = vcmp.eq.s32.totalorder %v14125_v54, %v12525_v9  ;;  %v14128_v27 = vld [vmem:[#allocation203_spill] sm:$0xff]  ;;  %v14129_v44 = vld [vmem:[#allocation204_spill] sm:$0xff]  ;;  %v14130_v26 = vld [vmem:[#allocation205_spill] sm:$0xff] }
 0x416   :  { %14110 = vst [vmem:[#allocation47_spill] sm:$0xff] %v12975_v43  ;;  %14111 = vst [vmem:[#allocation48_spill] sm:$0xff] %v12977_v41  ;;  %v14114_v43 = vld [vmem:[#allocation191_spill] sm:$0xff]  ;;  %vm2303_vm14 = vcmp.eq.s32.totalorder %v14126_v63, %v12525_v9  ;;  %vm2239_vm15 = vcmp.eq.s32.totalorder %v14127_v17, %v12525_v9  ;;  %v1481_v1 = vsel %vm795_vm12, %v14128_v27, 0.0  ;;  %v1417_v56 = vsel %vm731_vm13, %v14129_v44, 0.0 }
 0x417   :  { %2860 = vbcast.lane.b32.xlu1 %v12513_v22, 304  ;;  %2592 = vbcast.lane.b32.xlu0 %v12516_v8, 304  ;;  %vm794_vm8 = vcmp.eq.s32.totalorder %v14114_v43, %v12525_v9  ;;  %v14123_v43 = vld [vmem:[#allocation198_spill] sm:$0xff]  ;;  %v2989_v48 = vsel %vm2303_vm14, %v14130_v26, 0.0  ;;  %v14145_v26 = vld [vmem:[#allocation216_spill] sm:$0xff] }
 0x418   :  { %v1480_v7 = vsel %vm794_vm8, %v14120_v15, 0.0  ;;  %v2924_v0 = vsel %vm2238_vm11, %v14123_v43, 0.0  ;;  %v1543_v15 = vadd.f32 %v1542_v60, %v1416_v32  ;;  %v14131_v43 = vld [vmem:[#allocation206_spill] sm:$0xff]  ;;  %v14135_v60 = vld [vmem:[#allocation208_spill] sm:$0xff]  ;;  %vm733_vm5 = vcmp.eq.s32.totalorder %v14145_v26, %v12525_v9 }
 0x419   :  { %v12987_v53 = vpop.permute.xlu1 %2829  ;;  %v12989_v39 = vpop.permute.xlu0 %2561  ;;  %v1612_v33 = vadd.f32 %v1611_v24, %v1480_v7  ;;  %v2925_v58 = vsel %vm2239_vm15, %v14131_v43, 0.0  ;;  %v3051_v41 = vadd.f32 %v3050_v46, %v2924_v0  ;;  %v14134_v24 = vld [vmem:[#allocation207_spill] sm:$0xff]  ;;  %vm732_vm1 = vcmp.eq.s32.totalorder %v14135_v60, %v12525_v9  ;;  %v14136_v7 = vld [vmem:[#allocation209_spill] sm:$0xff]  ;;  %v14147_v43 = vld [vmem:[#allocation218_spill] sm:$0xff] }
 0x41a   :  { %14116 = vst [vmem:[#allocation49_spill] sm:$0xff] %v12987_v53  ;;  %14117 = vst [vmem:[#allocation50_spill] sm:$0xff] %v12989_v39  ;;  %v3120_v53 = vadd.f32 %v3119_v55, %v2988_v28  ;;  %v1544_v31 = vadd.f32 %v1543_v15, %v1417_v56  ;;  %vm796_vm0 = vcmp.eq.s32.totalorder %v14134_v24, %v12525_v9  ;;  %v14137_v55 = vld [vmem:[#allocation210_spill] sm:$0xff]  ;;  %v14138_v46 = vld [vmem:[#allocation211_spill] sm:$0xff] }
 0x41b   :  { %670 = vbcast.lane.b32.xlu1 %v12471_v12, 312  ;;  %402 = vbcast.lane.b32.xlu0 %v12474_v2, 312  ;;  %v1613_v63 = vadd.f32 %v1612_v33, %v1481_v1  ;;  %v3052_v27 = vadd.f32 %v3051_v41, %v2925_v58  ;;  %vm2304_vm2 = vcmp.eq.s32.totalorder %v14136_v7, %v12525_v9  ;;  %v1482_v32 = vsel %vm796_vm0, %v14138_v46, 0.0  ;;  %v14139_v28 = vld [vmem:[#allocation212_spill] sm:$0xff]  ;;  %v14142_v41 = vld [vmem:[#allocation213_spill] sm:$0xff]  ;;  %v14143_v56 = vld [vmem:[#allocation214_spill] sm:$0xff] }
 0x41c   :  { %v3121_v17 = vadd.f32 %v3120_v53, %v2989_v48  ;;  %vm2240_vm3 = vcmp.eq.s32.totalorder %v14137_v55, %v12525_v9  ;;  %v1418_v0 = vsel %vm732_vm1, %v14139_v28, 0.0  ;;  %v2990_v44 = vsel %vm2304_vm2, %v14142_v41, 0.0  ;;  %v14144_v15 = vld [vmem:[#allocation215_spill] sm:$0xff]  ;;  %v14146_v48 = vld [vmem:[#allocation217_spill] sm:$0xff]  ;;  %v14149_v60 = vld [vmem:[#allocation220_spill] sm:$0xff] }
 0x41d   :  { %v13013_v54 = vpop.permute.xlu1 %642  ;;  %v13015_v39 = vpop.permute.xlu0 %374  ;;  %v2926_v33 = vsel %vm2240_vm3, %v14143_v56, 0.0  ;;  %vm797_vm4 = vcmp.eq.s32.totalorder %v14144_v15, %v12525_v9  ;;  %vm2305_vm6 = vcmp.eq.s32.totalorder %v14146_v48, %v12525_v9  ;;  %vm2241_vm7 = vcmp.eq.s32.totalorder %v14147_v43, %v12525_v9  ;;  %v14148_v58 = vld [vmem:[#allocation219_spill] sm:$0xff]  ;;  %v14150_v28 = vld [vmem:[#allocation221_spill] sm:$0xff]  ;;  %v14151_v56 = vld [vmem:[#allocation222_spill] sm:$0xff] }
 0x41e   :  { %14132 = vst [vmem:[#allocation51_spill] sm:$0xff] %v13013_v54  ;;  %14133 = vst [vmem:[#allocation52_spill] sm:$0xff] %v13015_v39  ;;  %v1483_v24 = vsel %vm797_vm4, %v14148_v58, 0.0  ;;  %v1419_v7 = vsel %vm733_vm5, %v14149_v60, 0.0  ;;  %v1614_v55 = vadd.f32 %v1613_v63, %v1482_v32  ;;  %v1545_v46 = vadd.f32 %v1544_v31, %v1418_v0  ;;  %v14154_v54 = vld [vmem:[#allocation223_spill] sm:$0xff]  ;;  %v14155_v31 = vld [vmem:[#allocation224_spill] sm:$0xff] }
 0x41f   :  { %2178 = vbcast.lane.b32.xlu1 %v12485_v18, 312  ;;  %1910 = vbcast.lane.b32.xlu0 %v12488_v3, 312  ;;  %v2991_v41 = vsel %vm2305_vm6, %v14150_v28, 0.0  ;;  %v2927_v15 = vsel %vm2241_vm7, %v14151_v56, 0.0  ;;  %v3122_v26 = vadd.f32 %v3121_v17, %v2990_v44  ;;  %vm798_vm8 = vcmp.eq.s32.totalorder %v14154_v54, %v12525_v9  ;;  %v14156_v63 = vld [vmem:[#allocation225_spill] sm:$0xff]  ;;  %v14157_v17 = vld [vmem:[#allocation226_spill] sm:$0xff] }
 0x420   :  { %v1615_v43 = vadd.f32 %v1614_v55, %v1483_v24  ;;  %v1546_v58 = vadd.f32 %v1545_v46, %v1419_v7  ;;  %vm734_vm9 = vcmp.eq.s32.totalorder %v14155_v31, %v12525_v9  ;;  %vm2306_vm10 = vcmp.eq.s32.totalorder %v14156_v63, %v12525_v9  ;;  %v14159_v0 = vld [vmem:[#allocation228_spill] sm:$0xff]  ;;  %v14160_v44 = vld [vmem:[#allocation229_spill] sm:$0xff]  ;;  %v14161_v54 = vld [vmem:[#allocation230_spill] sm:$0xff] }
 0x421   :  { %v13029_v1 = vpop.permute.xlu1 %2150  ;;  %v13031_v53 = vpop.permute.xlu0 %1882  ;;  %v3123_v39 = vadd.f32 %v3122_v26, %v2991_v41  ;;  %vm2242_vm11 = vcmp.eq.s32.totalorder %v14157_v17, %v12525_v9  ;;  %v14162_v7 = vld [vmem:[#allocation231_spill] sm:$0xff]  ;;  %v14165_v28 = vld [vmem:[#allocation232_spill] sm:$0xff]  ;;  %v14166_v41 = vld [vmem:[#allocation233_spill] sm:$0xff] }
 0x422   :  { %14140 = vst [vmem:[#allocation53_spill] sm:$0xff] %v13029_v1  ;;  %14141 = vst [vmem:[#allocation54_spill] sm:$0xff] %v13031_v53  ;;  %v3053_v53 = vadd.f32 %v3052_v27, %v2926_v33  ;;  %v14158_v27 = vld [vmem:[#allocation227_spill] sm:$0xff]  ;;  %v2992_v33 = vsel %vm2306_vm10, %v14160_v44, 0.0  ;;  %v2928_v24 = vsel %vm2242_vm11, %v14161_v54, 0.0  ;;  %vm799_vm12 = vcmp.eq.s32.totalorder %v14162_v7, %v12525_v9  ;;  %v14167_v56 = vld [vmem:[#allocation234_spill] sm:$0xff] }
 0x423   :  { %1356 = vbcast.lane.b32.xlu1 %v12499_v13, 312  ;;  %1088 = vbcast.lane.b32.xlu0 %v12502_v23, 312  ;;  %v1484_v32 = vsel %vm798_vm8, %v14158_v27, 0.0  ;;  %vm735_vm13 = vcmp.eq.s32.totalorder %v14165_v28, %v12525_v9  ;;  %vm2307_vm14 = vcmp.eq.s32.totalorder %v14166_v41, %v12525_v9  ;;  %vm2243_vm15 = vcmp.eq.s32.totalorder %v14167_v56, %v12525_v9  ;;  %v14169_v63 = vld [vmem:[#allocation236_spill] sm:$0xff]  ;;  %v14170_v27 = vld [vmem:[#allocation237_spill] sm:$0xff]  ;;  %v14171_v44 = vld [vmem:[#allocation238_spill] sm:$0xff] }
 0x424   :  { %v3054_v60 = vadd.f32 %v3053_v53, %v2927_v15  ;;  %v1420_v53 = vsel %vm734_vm9, %v14159_v0, 0.0  ;;  %v14168_v15 = vld [vmem:[#allocation235_spill] sm:$0xff]  ;;  %v1616_v31 = vadd.f32 %v1615_v43, %v1484_v32  ;;  %v1421_v17 = vsel %vm735_vm13, %v14169_v63, 0.0 }
 0x425   :  { %v13049_v48 = vpop.permute.xlu1 %1328  ;;  %v13051_v1 = vpop.permute.xlu0 %1060  ;;  %v1485_v26 = vsel %vm799_vm12, %v14168_v15, 0.0  ;;  %v2993_v0 = vsel %vm2307_vm14, %v14170_v27, 0.0  ;;  %v2929_v54 = vsel %vm2243_vm15, %v14171_v44, 0.0  ;;  %v1547_v7 = vadd.f32 %v1546_v58, %v1420_v53  ;;  %v14174_v63 = vld [vmem:[#allocation239_spill] sm:$0xff]  ;;  %v14175_v27 = vld [vmem:[#allocation240_spill] sm:$0xff]  ;;  %v14176_v44 = vld [vmem:[#allocation241_spill] sm:$0xff] }
 0x426   :  { %14152 = vst [vmem:[#allocation55_spill] sm:$0xff] %v13049_v48  ;;  %14153 = vst [vmem:[#allocation56_spill] sm:$0xff] %v13051_v1  ;;  %v3124_v28 = vadd.f32 %v3123_v39, %v2992_v33  ;;  %v1617_v41 = vadd.f32 %v1616_v31, %v1485_v26  ;;  %vm800_vm0 = vcmp.eq.s32.totalorder %v14174_v63, %v12525_v9  ;;  %v14177_v39 = vld [vmem:[#allocation242_spill] sm:$0xff]  ;;  %v14178_v58 = vld [vmem:[#allocation243_spill] sm:$0xff] }
 0x427   :  { %2864 = vbcast.lane.b32.xlu1 %v12513_v22, 312  ;;  %2596 = vbcast.lane.b32.xlu0 %v12516_v8, 312  ;;  %v1548_v15 = vadd.f32 %v1547_v7, %v1421_v17  ;;  %vm736_vm1 = vcmp.eq.s32.totalorder %v14175_v27, %v12525_v9  ;;  %vm2308_vm2 = vcmp.eq.s32.totalorder %v14176_v44, %v12525_v9  ;;  %v14179_v53 = vld [vmem:[#allocation244_spill] sm:$0xff]  ;;  %v14181_v26 = vld [vmem:[#allocation246_spill] sm:$0xff]  ;;  %v14182_v17 = vld [vmem:[#allocation247_spill] sm:$0xff] }
 0x428   :  { %v3125_v43 = vadd.f32 %v3124_v28, %v2993_v0  ;;  %vm2244_vm3 = vcmp.eq.s32.totalorder %v14177_v39, %v12525_v9  ;;  %v1422_v33 = vsel %vm736_vm1, %v14179_v53, 0.0  ;;  %vm801_vm4 = vcmp.eq.s32.totalorder %v14182_v17, %v12525_v9  ;;  %v14183_v0 = vld [vmem:[#allocation248_spill] sm:$0xff]  ;;  %v14185_v7 = vld [vmem:[#allocation250_spill] sm:$0xff]  ;;  %v14186_v28 = vld [vmem:[#allocation251_spill] sm:$0xff] }
 0x429   :  { %v13069_v55 = vpop.permute.xlu1 %2836  ;;  %v13071_v46 = vpop.permute.xlu0 %2568  ;;  %v2930_v31 = vsel %vm2244_vm3, %v14181_v26, 0.0  ;;  %vm737_vm5 = vcmp.eq.s32.totalorder %v14183_v0, %v12525_v9  ;;  %vm2245_vm7 = vcmp.eq.s32.totalorder %v14185_v7, %v12525_v9  ;;  %v1487_v63 = vsel %vm801_vm4, %v14186_v28, 0.0  ;;  %v14191_v17 = vld [vmem:[#allocation254_spill] sm:$0xff] }
 0x42a   :  { %14163 = vst [vmem:[#allocation57_spill] sm:$0xff] %v13069_v55  ;;  %14164 = vst [vmem:[#allocation58_spill] sm:$0xff] %v13071_v46  ;;  %v3055_v46 = vadd.f32 %v3054_v60, %v2928_v24  ;;  %v1486_v60 = vsel %vm800_vm0, %v14178_v58, 0.0  ;;  %v14180_v24 = vld [vmem:[#allocation245_spill] sm:$0xff]  ;;  %v14189_v58 = vld [vmem:[#allocation252_spill] sm:$0xff]  ;;  %v1549_v0 = vadd.f32 %v1548_v15, %v1422_v33 }
 0x42b   :  { %674 = vbcast.lane.b32.xlu1 %v12471_v12, 320  ;;  %406 = vbcast.lane.b32.xlu0 %v12474_v2, 320  ;;  %v1618_v39 = vadd.f32 %v1617_v41, %v1486_v60  ;;  %v1423_v53 = vsel %vm737_vm5, %v14189_v58, 0.0  ;;  %v14195_v58 = vld [vmem:[#allocation256_spill] sm:$0xff]  ;;  %v14196_v15 = vld [vmem:[#allocation257_spill] sm:$0xff] }
 0x42c   :  { %v3056_v32 = vadd.f32 %v3055_v46, %v2929_v54  ;;  %v2994_v46 = vsel %vm2308_vm2, %v14180_v24, 0.0  ;;  %v14184_v54 = vld [vmem:[#allocation249_spill] sm:$0xff]  ;;  %v1550_v7 = vadd.f32 %v1549_v0, %v1423_v53  ;;  %vm738_vm9 = vcmp.eq.s32.totalorder %v14195_v58, %v12525_v9  ;;  %v14207_v58 = vld [vmem:[#allocation268_spill] sm:$0xff] }
 0x42d   :  { %v13085_v55 = vpop.permute.xlu1 %646  ;;  %v13087_v56 = vpop.permute.xlu0 %378  ;;  %vm2309_vm6 = vcmp.eq.s32.totalorder %v14184_v54, %v12525_v9  ;;  %v14190_v24 = vld [vmem:[#allocation253_spill] sm:$0xff]  ;;  %v1619_v54 = vadd.f32 %v1618_v39, %v1487_v63  ;;  %vm2310_vm10 = vcmp.eq.s32.totalorder %v14196_v15, %v12525_v9  ;;  %v14203_v39 = vld [vmem:[#allocation264_spill] sm:$0xff] }
 0x42e   :  { %14172 = vst [vmem:[#allocation59_spill] sm:$0xff] %v13085_v55  ;;  %14173 = vst [vmem:[#allocation60_spill] sm:$0xff] %v13087_v56  ;;  %v2995_v26 = vsel %vm2309_vm6, %v14190_v24, 0.0  ;;  %v2931_v56 = vsel %vm2245_vm7, %v14191_v17, 0.0  ;;  %v3126_v55 = vadd.f32 %v3125_v43, %v2994_v46  ;;  %v3057_v1 = vadd.f32 %v3056_v32, %v2930_v31  ;;  %v14197_v43 = vld [vmem:[#allocation258_spill] sm:$0xff]  ;;  %v14198_v32 = vld [vmem:[#allocation259_spill] sm:$0xff] }
 0x42f   :  { %2182 = vbcast.lane.b32.xlu1 %v12485_v18, 320  ;;  %1914 = vbcast.lane.b32.xlu0 %v12488_v3, 320  ;;  %vm2246_vm11 = vcmp.eq.s32.totalorder %v14197_v43, %v12525_v9  ;;  %v14201_v31 = vld [vmem:[#allocation262_spill] sm:$0xff]  ;;  %vm739_vm13 = vcmp.eq.s32.totalorder %v14203_v39, %v12525_v9  ;;  %v14204_v53 = vld [vmem:[#allocation265_spill] sm:$0xff] }
 0x430   :  { %v3127_v28 = vadd.f32 %v3126_v55, %v2995_v26  ;;  %v14199_v55 = vld [vmem:[#allocation260_spill] sm:$0xff]  ;;  %v2932_v63 = vsel %vm2246_vm11, %v14201_v31, 0.0  ;;  %vm2311_vm14 = vcmp.eq.s32.totalorder %v14204_v53, %v12525_v9  ;;  %v14205_v24 = vld [vmem:[#allocation266_spill] sm:$0xff]  ;;  %v14206_v26 = vld [vmem:[#allocation267_spill] sm:$0xff]  ;;  %v1425_v15 = vsel %vm739_vm13, %v14207_v58, 0.0 }
 0x431   :  { %v13112_v27 = vpop.permute.xlu1 %2154  ;;  %v13114_v44 = vpop.permute.xlu0 %1886  ;;  %vm2247_vm15 = vcmp.eq.s32.totalorder %v14205_v24, %v12525_v9  ;;  %v14208_v43 = vld [vmem:[#allocation269_spill] sm:$0xff]  ;;  %v14213_v58 = vld [vmem:[#allocation272_spill] sm:$0xff] }
 0x432   :  { %14187 = vst [vmem:[#allocation61_spill] sm:$0xff] %v13112_v27  ;;  %14188 = vst [vmem:[#allocation62_spill] sm:$0xff] %v13114_v44  ;;  %v3058_v27 = vadd.f32 %v3057_v1, %v2931_v56  ;;  %v14192_v44 = vld [vmem:[#allocation255_spill] sm:$0xff]  ;;  %v1424_v1 = vsel %vm738_vm9, %v14199_v55, 0.0  ;;  %v14200_v56 = vld [vmem:[#allocation261_spill] sm:$0xff]  ;;  %vm740_vm1 = vcmp.eq.s32.totalorder %v14213_v58, %v12525_v9 }
 0x433   :  { %1360 = vbcast.lane.b32.xlu1 %v12499_v13, 320  ;;  %1092 = vbcast.lane.b32.xlu0 %v12502_v23, 320  ;;  %vm802_vm8 = vcmp.eq.s32.totalorder %v14192_v44, %v12525_v9  ;;  %v2996_v46 = vsel %vm2310_vm10, %v14200_v56, 0.0  ;;  %v14202_v44 = vld [vmem:[#allocation263_spill] sm:$0xff]  ;;  %v14209_v55 = vld [vmem:[#allocation270_spill] sm:$0xff]  ;;  %v1551_v39 = vadd.f32 %v1550_v7, %v1424_v1 }
 0x434   :  { %v1488_v33 = vsel %vm802_vm8, %v14198_v32, 0.0  ;;  %vm803_vm12 = vcmp.eq.s32.totalorder %v14202_v44, %v12525_v9  ;;  %v2997_v32 = vsel %vm2311_vm14, %v14208_v43, 0.0  ;;  %v2933_v56 = vsel %vm2247_vm15, %v14209_v55, 0.0  ;;  %v14214_v43 = vld [vmem:[#allocation273_spill] sm:$0xff]  ;;  %v14215_v7 = vld [vmem:[#allocation274_spill] sm:$0xff]  ;;  %v14223_v55 = vld [vmem:[#allocation280_spill] sm:$0xff] }
 0x435   :  { %v13123_v41 = vpop.permute.xlu1 %1332  ;;  %v13125_v60 = vpop.permute.xlu0 %1064  ;;  %v1489_v17 = vsel %vm803_vm12, %v14206_v26, 0.0  ;;  %v1620_v0 = vadd.f32 %v1619_v54, %v1488_v33  ;;  %v1552_v24 = vadd.f32 %v1551_v39, %v1425_v15  ;;  %v14212_v26 = vld [vmem:[#allocation271_spill] sm:$0xff]  ;;  %vm2312_vm2 = vcmp.eq.s32.totalorder %v14214_v43, %v12525_v9  ;;  %v14225_v39 = vld [vmem:[#allocation282_spill] sm:$0xff] }
 0x436   :  { %14193 = vst [vmem:[#allocation63_spill] sm:$0xff] %v13123_v41  ;;  %14194 = vst [vmem:[#allocation64_spill] sm:$0xff] %v13125_v60  ;;  %v3128_v60 = vadd.f32 %v3127_v28, %v2996_v46  ;;  %v3059_v41 = vadd.f32 %v3058_v27, %v2932_v63  ;;  %vm804_vm0 = vcmp.eq.s32.totalorder %v14212_v26, %v12525_v9  ;;  %v14216_v27 = vld [vmem:[#allocation275_spill] sm:$0xff]  ;;  %v14220_v63 = vld [vmem:[#allocation277_spill] sm:$0xff] }
 0x437   :  { %2868 = vbcast.lane.b32.xlu1 %v12513_v22, 320  ;;  %2600 = vbcast.lane.b32.xlu0 %v12516_v8, 320  ;;  %v1621_v53 = vadd.f32 %v1620_v0, %v1489_v17  ;;  %vm2248_vm3 = vcmp.eq.s32.totalorder %v14215_v7, %v12525_v9  ;;  %v1490_v28 = vsel %vm804_vm0, %v14216_v27, 0.0  ;;  %v2998_v17 = vsel %vm2312_vm2, %v14220_v63, 0.0  ;;  %v14221_v0 = vld [vmem:[#allocation278_spill] sm:$0xff]  ;;  %v14226_v26 = vld [vmem:[#allocation283_spill] sm:$0xff] }
 0x438   :  { %v3129_v54 = vadd.f32 %v3128_v60, %v2997_v32  ;;  %v3060_v33 = vadd.f32 %v3059_v41, %v2933_v56  ;;  %v14219_v60 = vld [vmem:[#allocation276_spill] sm:$0xff]  ;;  %v2934_v15 = vsel %vm2248_vm3, %v14221_v0, 0.0  ;;  %v14222_v32 = vld [vmem:[#allocation279_spill] sm:$0xff]  ;;  %vm741_vm5 = vcmp.eq.s32.totalorder %v14223_v55, %v12525_v9  ;;  %v14224_v56 = vld [vmem:[#allocation281_spill] sm:$0xff] }
 0x439   :  { %v13151_v31 = vpop.permute.xlu1 %2840  ;;  %v13153_v44 = vpop.permute.xlu0 %2572  ;;  %v1426_v41 = vsel %vm740_vm1, %v14219_v60, 0.0  ;;  %vm805_vm4 = vcmp.eq.s32.totalorder %v14222_v32, %v12525_v9  ;;  %vm2313_vm6 = vcmp.eq.s32.totalorder %v14224_v56, %v12525_v9  ;;  %vm2249_vm7 = vcmp.eq.s32.totalorder %v14225_v39, %v12525_v9  ;;  %v14227_v7 = vld [vmem:[#allocation284_spill] sm:$0xff]  ;;  %v14228_v60 = vld [vmem:[#allocation285_spill] sm:$0xff]  ;;  %v14229_v0 = vld [vmem:[#allocation286_spill] sm:$0xff] }
 0x43a   :  { %14210 = vst [vmem:[#allocation65_spill] sm:$0xff] %v13151_v31  ;;  %14211 = vst [vmem:[#allocation66_spill] sm:$0xff] %v13153_v44  ;;  %v1491_v58 = vsel %vm805_vm4, %v14226_v26, 0.0  ;;  %v1622_v43 = vadd.f32 %v1621_v53, %v1490_v28  ;;  %v1427_v27 = vsel %vm741_vm5, %v14227_v7, 0.0  ;;  %v2999_v63 = vsel %vm2313_vm6, %v14228_v60, 0.0  ;;  %v14231_v53 = vld [vmem:[#allocation287_spill] sm:$0xff] }
 0x43b   :  { %678 = vbcast.lane.b32.xlu1 %v12471_v12, 328  ;;  %410 = vbcast.lane.b32.xlu0 %v12474_v2, 328  ;;  %v2935_v32 = vsel %vm2249_vm7, %v14229_v0, 0.0  ;;  %v1553_v55 = vadd.f32 %v1552_v24, %v1426_v41  ;;  %v3130_v44 = vadd.f32 %v3129_v54, %v2998_v17  ;;  %v3061_v31 = vadd.f32 %v3060_v33, %v2934_v15  ;;  %v14232_v28 = vld [vmem:[#allocation288_spill] sm:$0xff]  ;;  %v14233_v24 = vld [vmem:[#allocation289_spill] sm:$0xff]  ;;  %v14234_v54 = vld [vmem:[#allocation290_spill] sm:$0xff] }
 0x43c   :  { %v1623_v39 = vadd.f32 %v1622_v43, %v1491_v58  ;;  %vm806_vm8 = vcmp.eq.s32.totalorder %v14231_v53, %v12525_v9  ;;  %vm742_vm9 = vcmp.eq.s32.totalorder %v14232_v28, %v12525_v9  ;;  %vm2314_vm10 = vcmp.eq.s32.totalorder %v14233_v24, %v12525_v9  ;;  %v14235_v33 = vld [vmem:[#allocation291_spill] sm:$0xff]  ;;  %v14237_v17 = vld [vmem:[#allocation293_spill] sm:$0xff]  ;;  %v14238_v58 = vld [vmem:[#allocation294_spill] sm:$0xff] }
 0x43d   :  { %v13166_v1 = vpop.permute.xlu1 %650  ;;  %v13168_v46 = vpop.permute.xlu0 %382  ;;  %v1554_v26 = vadd.f32 %v1553_v55, %v1427_v27  ;;  %v3062_v48 = vadd.f32 %v3061_v31, %v2935_v32  ;;  %vm2250_vm11 = vcmp.eq.s32.totalorder %v14234_v54, %v12525_v9  ;;  %v1492_v41 = vsel %vm806_vm8, %v14235_v33, 0.0  ;;  %v14239_v60 = vld [vmem:[#allocation295_spill] sm:$0xff]  ;;  %v14241_v0 = vld [vmem:[#allocation297_spill] sm:$0xff]  ;;  %v14242_v32 = vld [vmem:[#allocation298_spill] sm:$0xff] }
 0x43e   :  { %14217 = vst [vmem:[#allocation67_spill] sm:$0xff] %v13166_v1  ;;  %14218 = vst [vmem:[#allocation68_spill] sm:$0xff] %v13168_v46  ;;  %v3131_v1 = vadd.f32 %v3130_v44, %v2999_v63  ;;  %v14236_v44 = vld [vmem:[#allocation292_spill] sm:$0xff]  ;;  %v3000_v15 = vsel %vm2314_vm10, %v14237_v17, 0.0  ;;  %v2936_v43 = vsel %vm2250_vm11, %v14238_v58, 0.0  ;;  %vm807_vm12 = vcmp.eq.s32.totalorder %v14239_v60, %v12525_v9  ;;  %v14243_v55 = vld [vmem:[#allocation299_spill] sm:$0xff] }
 0x43f   :  { %2186 = vbcast.lane.b32.xlu1 %v12485_v18, 328  ;;  %1918 = vbcast.lane.b32.xlu0 %v12488_v3, 328  ;;  %v1428_v31 = vsel %vm742_vm9, %v14236_v44, 0.0  ;;  %v14240_v63 = vld [vmem:[#allocation296_spill] sm:$0xff]  ;;  %vm2315_vm14 = vcmp.eq.s32.totalorder %v14241_v0, %v12525_v9  ;;  %vm2251_vm15 = vcmp.eq.s32.totalorder %v14242_v32, %v12525_v9  ;;  %v1493_v53 = vsel %vm807_vm12, %v14243_v55, 0.0 }
 0x440   :  { %vm743_vm13 = vcmp.eq.s32.totalorder %v14240_v63, %v12525_v9  ;;  %v14244_v28 = vld [vmem:[#allocation300_spill] sm:$0xff]  ;;  %v3001_v54 = vsel %vm2315_vm14, %v12444_v5, 0.0  ;;  %v2937_v33 = vsel %vm2251_vm15, %v12446_v4, 0.0  ;;  %v1624_v44 = vadd.f32 %v1623_v39, %v1492_v41  ;;  %v14245_v5 = vld [vmem:[#allocation301_spill] sm:$0xff]  ;;  %v14246_v4 = vld [vmem:[#allocation302_spill] sm:$0xff] }
 0x441   :  { %v13187_v56 = vpop.permute.xlu1 %2158  ;;  %v13189_v46 = vpop.permute.xlu0 %1890  ;;  %v1429_v24 = vsel %vm743_vm13, %v14244_v28, 0.0  ;;  %v1555_v17 = vadd.f32 %v1554_v26, %v1428_v31  ;;  %v3132_v58 = vadd.f32 %v3131_v1, %v3000_v15  ;;  %v3063_v60 = vadd.f32 %v3062_v48, %v2936_v43  ;;  %v14247_v48 = vld [vmem:[#allocation303_spill] sm:$0xff]  ;;  %v14248_v1 = vld [vmem:[#allocation304_spill] sm:$0xff]  ;;  %v14249_v26 = vld [vmem:[#allocation305_spill] sm:$0xff] }
 0x442   :  { %14230 = vst [vmem:[#allocation69_spill] sm:$0xff] %v13189_v46  ;;  %v1625_v32 = vadd.f32 %v1624_v44, %v1493_v53  ;;  %vm808_vm0 = vcmp.eq.s32.totalorder %v14245_v5, %v12525_v9  ;;  %vm744_vm1 = vcmp.eq.s32.totalorder %v12452_v14, %v12525_v9  ;;  %vm2316_vm2 = vcmp.eq.s32.totalorder %v14246_v4, %v12525_v9  ;;  %v14250_v31 = vld [vmem:[#allocation306_spill] sm:$0xff]  ;;  %v14251_v43 = vld [vmem:[#allocation307_spill] sm:$0xff]  ;;  %v14252_v14 = vld [vmem:[#allocation308_spill] sm:$0xff] }
 0x443   :  { %1364 = vbcast.lane.b32.xlu1 %v12499_v13, 328  ;;  %1096 = vbcast.lane.b32.xlu0 %v12502_v23, 328  ;;  %v1556_v55 = vadd.f32 %v1555_v17, %v1429_v24  ;;  %v3133_v46 = vadd.f32 %v3132_v58, %v3001_v54  ;;  %v3064_v28 = vadd.f32 %v3063_v60, %v2937_v33  ;;  %v1494_v39 = vsel %vm808_vm0, %v14248_v1, 0.0  ;;  %v14253_v24 = vld [vmem:[#allocation309_spill] sm:$0xff]  ;;  %v14254_v54 = vld [vmem:[#allocation310_spill] sm:$0xff]  ;;  %v14255_v17 = vld [vmem:[#allocation311_spill] sm:$0xff] }
 0x444   :  { %vm2252_vm3 = vcmp.eq.s32.totalorder %v14247_v48, %v12525_v9  ;;  %v1430_v41 = vsel %vm744_vm1, %v14249_v26, 0.0  ;;  %v3002_v15 = vsel %vm2316_vm2, %v14250_v31, 0.0  ;;  %vm809_vm4 = vcmp.eq.s32.totalorder %v14252_v14, %v12525_v9 }
 0x445   :  { %v13205_v7 = vpop.permute.xlu1 %1336  ;;  %v13207_v27 = vpop.permute.xlu0 %1068  ;;  %v2938_v53 = vsel %vm2252_vm3, %v14251_v43, 0.0  ;;  %vm745_vm5 = vcmp.eq.s32.totalorder %v14253_v24, %v12525_v9  ;;  %vm2317_vm6 = vcmp.eq.s32.totalorder %v14254_v54, %v12525_v9  ;;  %vm2253_vm7 = vcmp.eq.s32.totalorder %v14255_v17, %v12525_v9 }
 0x446   :  { %v1495_v58 = vsel %vm809_vm4, %v12518_v19, 0.0  ;;  %v1431_v60 = vsel %vm745_vm5, %v12520_v10, 0.0  ;;  %v3003_v5 = vsel %vm2317_vm6, %v12527_v20, 0.0  ;;  %v1626_v4 = vadd.f32 %v1625_v32, %v1494_v39  ;;  %v14256_v20 = vld [vmem:[#allocation312_spill] sm:$0xff] }
 0x447   :  { %2872 = vbcast.lane.b32.xlu1 %v12513_v22, 328  ;;  %2604 = vbcast.lane.b32.xlu0 %v12516_v8, 328  ;;  %v1557_v48 = vadd.f32 %v1556_v55, %v1430_v41  ;;  %v3134_v1 = vadd.f32 %v3133_v46, %v3002_v15  ;;  %v2939_v26 = vsel %vm2253_vm7, %v12529_v21, 0.0  ;;  %v3065_v31 = vadd.f32 %v3064_v28, %v2938_v53  ;;  %v14257_v15 = vld [vmem:[#allocation27_spill] sm:$0xff] }
 0x448   :  { %v1627_v43 = vadd.f32 %v1626_v4, %v1495_v58  ;;  %vm810_vm8 = vcmp.eq.s32.totalorder %v12535_v16, %v12525_v9  ;;  %vm746_vm9 = vcmp.eq.s32.totalorder %v14256_v20, %v12525_v9  ;;  %vm2318_vm10 = vcmp.eq.s32.totalorder %v12563_v11, %v12525_v9  ;;  %v14261_v58 = vld [vmem:[#allocation31_spill] sm:$0xff] }
 0x449   :  { %v13223_v63 = vpop.permute.xlu1 %2844  ;;  %v13225_v0 = vpop.permute.xlu0 %2576  ;;  %v1558_v14 = vadd.f32 %v1557_v48, %v1431_v60  ;;  %v3135_v24 = vadd.f32 %v3134_v1, %v3003_v5  ;;  %v3066_v10 = vadd.f32 %v3065_v31, %v2939_v26  ;;  %vm2254_vm11 = vcmp.eq.s32.totalorder %v12565_v6, %v12525_v9  ;;  %v14264_v60 = vld [vmem:[#allocation34_spill] sm:$0xff]  ;;  %v14265_v4 = vld [vmem:[#allocation35_spill] sm:$0xff] }
 0x44a   :  { %v1496_v21 = vsel %vm810_vm8, %v12579_v37, 0.0  ;;  %v1432_v46 = vsel %vm746_vm9, %v12581_v38, 0.0  ;;  %v3004_v32 = vsel %vm2318_vm10, %v12599_v49, 0.0  ;;  %v2940_v16 = vsel %vm2254_vm11, %v12601_v50, 0.0 }
 0x44b   :  { %682 = vbcast.lane.b32.xlu1 %v12471_v12, 336  ;;  %414 = vbcast.lane.b32.xlu0 %v12474_v2, 336  ;;  %vm811_vm12 = vcmp.eq.s32.totalorder %v12619_v25, %v12525_v9  ;;  %vm747_vm13 = vcmp.eq.s32.totalorder %v12621_v57, %v12525_v9  ;;  %vm2319_vm14 = vcmp.eq.s32.totalorder %v12635_v35, %v12525_v9 }
 0x44c   :  { %vm2255_vm15 = vcmp.eq.s32.totalorder %v12637_v36, %v12525_v9  ;;  %v1497_v6 = vsel %vm811_vm12, %v12662_v61, 0.0  ;;  %v1433_v11 = vsel %vm747_vm13, %v12664_v62, 0.0  ;;  %v3005_v37 = vsel %vm2319_vm14, %v12673_v34, 0.0 }
 0x44d   :  { %v13247_v33 = vpop.permute.xlu1 %654  ;;  %v13249_v44 = vpop.permute.xlu0 %386  ;;  %v1628_v50 = vadd.f32 %v1627_v43, %v1496_v21  ;;  %v1559_v25 = vadd.f32 %v1558_v14, %v1432_v46  ;;  %v3136_v55 = vadd.f32 %v3135_v24, %v3004_v32  ;;  %v2941_v57 = vsel %vm2255_vm15, %v12675_v45, 0.0  ;;  %v14266_v43 = vld [vmem:[#allocation36_spill] sm:$0xff] }
 0x44e   :  { %v3067_v28 = vadd.f32 %v3066_v10, %v2940_v16  ;;  %vm812_vm0 = vcmp.eq.s32.totalorder %v12701_v29, %v12525_v9  ;;  %vm748_vm1 = vcmp.eq.s32.totalorder %v12703_v30, %v12525_v9  ;;  %vm2320_vm2 = vcmp.eq.s32.totalorder %v12716_v47, %v12525_v9  ;;  %v14258_v29 = vld [vmem:[#allocation28_spill] sm:$0xff]  ;;  %v14259_v30 = vld [vmem:[#allocation29_spill] sm:$0xff]  ;;  %v14260_v47 = vld [vmem:[#allocation30_spill] sm:$0xff] }
 0x44f   :  { %2190 = vbcast.lane.b32.xlu1 %v12485_v18, 336  ;;  %1922 = vbcast.lane.b32.xlu0 %v12488_v3, 336  ;;  %v1629_v35 = vadd.f32 %v1628_v50, %v1497_v6  ;;  %v1560_v36 = vadd.f32 %v1559_v25, %v1433_v11  ;;  %v3137_v61 = vadd.f32 %v3136_v55, %v3005_v37  ;;  %v1498_v39 = vsel %vm812_vm0, %v12737_v42, 0.0  ;;  %v14263_v42 = vld [vmem:[#allocation33_spill] sm:$0xff]  ;;  %v14268_v11 = vld [vmem:[#allocation38_spill] sm:$0xff]  ;;  %v14269_v37 = vld [vmem:[#allocation39_spill] sm:$0xff] }
 0x450   :  { %v3068_v62 = vadd.f32 %v3067_v28, %v2941_v57  ;;  %vm2256_vm3 = vcmp.eq.s32.totalorder %v12718_v51, %v12525_v9  ;;  %v1434_v41 = vsel %vm748_vm1, %v12739_v52, 0.0  ;;  %v3006_v53 = vsel %vm2320_vm2, %v14257_v15, 0.0  ;;  %v14262_v51 = vld [vmem:[#allocation32_spill] sm:$0xff]  ;;  %v14267_v6 = vld [vmem:[#allocation37_spill] sm:$0xff]  ;;  %v14276_v15 = vld [vmem:[#allocation46_spill] sm:$0xff] }
 0x451   :  { %v13259_v54 = vpop.permute.xlu1 %2162  ;;  %v13261_v19 = vpop.permute.xlu0 %1894  ;;  %v2942_v17 = vsel %vm2256_vm3, %v14258_v29, 0.0  ;;  %vm813_vm4 = vcmp.eq.s32.totalorder %v14259_v30, %v12525_v9  ;;  %vm749_vm5 = vcmp.eq.s32.totalorder %v14260_v47, %v12525_v9  ;;  %vm2321_vm6 = vcmp.eq.s32.totalorder %v14261_v58, %v12525_v9  ;;  %v14270_v50 = vld [vmem:[#allocation40_spill] sm:$0xff]  ;;  %v14271_v55 = vld [vmem:[#allocation41_spill] sm:$0xff] }
 0x452   :  { %vm2257_vm7 = vcmp.eq.s32.totalorder %v14262_v51, %v12525_v9  ;;  %v1499_v52 = vsel %vm813_vm4, %v14263_v42, 0.0  ;;  %v1435_v5 = vsel %vm749_vm5, %v14264_v60, 0.0  ;;  %v3007_v48 = vsel %vm2321_vm6, %v14265_v4, 0.0  ;;  %v14279_v30 = vld [vmem:[#allocation49_spill] sm:$0xff] }
 0x453   :  { %1368 = vbcast.lane.b32.xlu1 %v12499_v13, 336  ;;  %1100 = vbcast.lane.b32.xlu0 %v12502_v23, 336  ;;  %v1630_v1 = vadd.f32 %v1629_v35, %v1498_v39  ;;  %v1561_v26 = vadd.f32 %v1560_v36, %v1434_v41  ;;  %v3138_v31 = vadd.f32 %v3137_v61, %v3006_v53  ;;  %v2943_v14 = vsel %vm2257_vm7, %v14266_v43, 0.0  ;;  %v14272_v61 = vld [vmem:[#allocation42_spill] sm:$0xff]  ;;  %v14273_v39 = vld [vmem:[#allocation43_spill] sm:$0xff]  ;;  %v14274_v41 = vld [vmem:[#allocation44_spill] sm:$0xff] }
 0x454   :  { %v3069_v20 = vadd.f32 %v3068_v62, %v2942_v17  ;;  %vm814_vm8 = vcmp.eq.s32.totalorder %v14267_v6, %v12525_v9  ;;  %vm750_vm9 = vcmp.eq.s32.totalorder %v14268_v11, %v12525_v9  ;;  %vm2322_vm10 = vcmp.eq.s32.totalorder %v12875_v40, %v12525_v9  ;;  %v14275_v40 = vld [vmem:[#allocation45_spill] sm:$0xff]  ;;  %v14277_v53 = vld [vmem:[#allocation47_spill] sm:$0xff]  ;;  %v14278_v17 = vld [vmem:[#allocation48_spill] sm:$0xff] }
 0x455   :  { %v13288_v38 = vpop.permute.xlu1 %1340  ;;  %v13290_v49 = vpop.permute.xlu0 %1072  ;;  %v1631_v21 = vadd.f32 %v1630_v1, %v1499_v52  ;;  %v1562_v46 = vadd.f32 %v1561_v26, %v1435_v5  ;;  %v3139_v32 = vadd.f32 %v3138_v31, %v3007_v48  ;;  %vm2258_vm11 = vcmp.eq.s32.totalorder %v14269_v37, %v12525_v9  ;;  %v14280_v52 = vld [vmem:[#allocation50_spill] sm:$0xff]  ;;  %v14286_v6 = vld [vmem:[#allocation56_spill] sm:$0xff]  ;;  %v14287_v37 = vld [vmem:[#allocation57_spill] sm:$0xff] }
 0x456   :  { %v3070_v16 = vadd.f32 %v3069_v20, %v2943_v14  ;;  %v1500_v25 = vsel %vm814_vm8, %v14270_v50, 0.0  ;;  %v1436_v57 = vsel %vm750_vm9, %v14271_v55, 0.0  ;;  %v3008_v28 = vsel %vm2322_vm10, %v12911_v59, 0.0  ;;  %v14281_v20 = vld [vmem:[#allocation51_spill] sm:$0xff] }
 0x457   :  { %2876 = vbcast.lane.b32.xlu1 %v12513_v22, 336  ;;  %2608 = vbcast.lane.b32.xlu0 %v12516_v8, 336  ;;  %v2944_v62 = vsel %vm2258_vm11, %v14272_v61, 0.0  ;;  %vm815_vm12 = vcmp.eq.s32.totalorder %v14273_v39, %v12525_v9  ;;  %vm751_vm13 = vcmp.eq.s32.totalorder %v14274_v41, %v12525_v9  ;;  %vm2323_vm14 = vcmp.eq.s32.totalorder %v14275_v40, %v12525_v9  ;;  %v14289_v61 = vld [vmem:[#allocation59_spill] sm:$0xff] }
 0x458   :  { %vm2259_vm15 = vcmp.eq.s32.totalorder %v14276_v15, %v12525_v9  ;;  %v1501_v29 = vsel %vm815_vm12, %v14277_v53, 0.0  ;;  %v1437_v59 = vsel %vm751_vm13, %v14278_v17, 0.0  ;;  %v3009_v47 = vsel %vm2323_vm14, %v14279_v30, 0.0  ;;  %v14291_v15 = vld [vmem:[#allocation63_spill] sm:$0xff] }
 0x459   :  { %v13301_v34 = vpop.permute.xlu1 %2848  ;;  %v13303_v45 = vpop.permute.xlu0 %2580  ;;  %v1632_v58 = vadd.f32 %v1631_v21, %v1500_v25  ;;  %v1563_v51 = vadd.f32 %v1562_v46, %v1436_v57  ;;  %v3140_v42 = vadd.f32 %v3139_v32, %v3008_v28  ;;  %v2945_v60 = vsel %vm2259_vm15, %v14280_v52, 0.0  ;;  %v14282_v21 = vld [vmem:[#allocation52_spill] sm:$0xff]  ;;  %v14284_v46 = vld [vmem:[#allocation54_spill] sm:$0xff]  ;;  %v14285_v32 = vld [vmem:[#allocation55_spill] sm:$0xff] }
 0x45a   :  { %v3071_v5 = vadd.f32 %v3070_v16, %v2944_v62  ;;  %vm816_vm1 = vcmp.eq.s32.totalorder %v14281_v20, %v12525_v9  ;;  %vm752_vm2 = vcmp.eq.s32.totalorder %v14282_v21, %v12525_v9  ;;  %vm2260_vm4 = vcmp.eq.s32.totalorder %v14284_v46, %v12525_v9  ;;  %v14288_v25 = vld [vmem:[#allocation58_spill] sm:$0xff]  ;;  %v14290_v62 = vld [vmem:[#allocation60_spill] sm:$0xff]  ;;  %v14293_v30 = vld [vmem:[#allocation67_spill] sm:$0xff] }
 0x45b   :  { %686 = vbcast.lane.b32.xlu1 %v12471_v12, 344  ;;  %418 = vbcast.lane.b32.xlu0 %v12474_v2, 344  ;;  %v1633_v1 = vadd.f32 %v1632_v58, %v1501_v29  ;;  %v1564_v26 = vadd.f32 %v1563_v51, %v1437_v59  ;;  %v3141_v31 = vadd.f32 %v3140_v42, %v3009_v47  ;;  %v1502_v16 = vsel %vm816_vm1, %v14285_v32, 0.0  ;;  %v14292_v29 = vld [vmem:[#allocation64_spill] sm:$0xff]  ;;  %v14294_v47 = vld [vmem:[#allocation61_spill] sm:$0xff]  ;;  %v14295_v58 = vld [vmem:[#allocation62_spill] sm:$0xff] }
 0x45c   :  { %v3072_v14 = vadd.f32 %v3071_v5, %v2945_v60  ;;  %v1438_v11 = vsel %vm752_vm2, %v14286_v6, 0.0  ;;  %v2946_v55 = vsel %vm2260_vm4, %v14288_v25, 0.0  ;;  %vm817_vm7 = vcmp.eq.s32.totalorder %v14289_v61, %v12525_v9  ;;  %v14296_v51 = vld [vmem:[#allocation68_spill] sm:$0xff] }
 0x45d   :  { %v659_v24 = vpop.permute.xlu1 %658  ;;  %v13325_v10 = vpop.permute.xlu0 %390  ;;  %vm753_vm8 = vcmp.eq.s32.totalorder %v14290_v62, %v12525_v9  ;;  %v1634_v40 = vadd.f32 %v1633_v1, %v1502_v16  ;;  %v1503_v53 = vsel %vm817_vm7, %v14291_v15, 0.0  ;;  %vm818_vm9 = vcmp.eq.s32.totalorder %v14293_v30, %v12525_v9  ;;  %v14297_v1 = vld [vmem:[#allocation65_spill] sm:$0xff] }
 0x45e   :  { %vm820_vm0 = vcmp.eq.s32.totalorder %v659_v24, %v12525_v9  ;;  %v14283_v24 = vld [vmem:[#allocation53_spill] sm:$0xff]  ;;  %v1439_v17 = vsel %vm753_vm8, %v14292_v29, 0.0  ;;  %v3073_v59 = vadd.f32 %v3072_v14, %v2946_v55  ;;  %vm2325_vm10 = vcmp.eq.s32.totalorder %v14294_v47, %v12525_v9  ;;  %v14298_v14 = vld [vmem:[#allocation66_spill] sm:$0xff] }
 0x45f   :  { %2194 = vbcast.lane.b32.xlu1 %v12485_v18, 344  ;;  %1926 = vbcast.lane.b32.xlu0 %v12488_v3, 344  ;;  %vm2324_vm3 = vcmp.eq.s32.totalorder %v14283_v24, %v12525_v9  ;;  %vm2261_vm11 = vcmp.eq.s32.totalorder %v14295_v58, %v12525_v9  ;;  %vm754_vm12 = vcmp.eq.s32.totalorder %v14296_v51, %v12525_v9  ;;  %v1504_v42 = vsel %vm818_vm9, %v13205_v7, 0.0  ;;  %v14299_v7 = vld [vmem:[#allocation69_spill] sm:$0xff] }
 0x460   :  { %v3010_v50 = vsel %vm2324_vm3, %v14287_v37, 0.0  ;;  %v1635_v5 = vadd.f32 %v1634_v40, %v1503_v53  ;;  %v2947_v20 = vsel %vm2261_vm11, %v14298_v14, 0.0  ;;  %vm2326_vm13 = vcmp.eq.s32.totalorder %v13187_v56, %v12525_v9 }
 0x461   :  { %v2167_v35 = vpop.permute.xlu1 %2166  ;;  %v1899_v36 = vpop.permute.xlu0 %1898  ;;  %vm819_vm14 = vcmp.eq.s32.totalorder %v13247_v33, %v12525_v9  ;;  %vm755_vm15 = vcmp.eq.s32.totalorder %v13249_v44, %v12525_v9  ;;  %v3012_v56 = vsel %vm2326_vm13, %v13223_v63, 0.0  ;;  %vm756_vm1 = vcmp.eq.s32.totalorder %v13325_v10, %v12525_v9 }
 0x462   :  { %vm2328_vm5 = vcmp.eq.s32.totalorder %v2167_v35, %v12525_v9  ;;  %vm2264_vm6 = vcmp.eq.s32.totalorder %v1899_v36, %v12525_v9  ;;  %v1565_v35 = vadd.f32 %v1564_v26, %v1438_v11  ;;  %v3142_v36 = vadd.f32 %v3141_v31, %v3010_v50 }
 0x463   :  { %1372 = vbcast.lane.b32.xlu1 %v12499_v13, 344  ;;  %1104 = vbcast.lane.b32.xlu0 %v12502_v23, 344  ;;  %v3011_v26 = vsel %vm2325_vm10, %v14297_v1, 0.0  ;;  %v1440_v31 = vsel %vm754_vm12, %v13207_v27, 0.0  ;;  %v1636_v21 = vadd.f32 %v1635_v5, %v1504_v42  ;;  %v1505_v27 = vsel %vm819_vm14, %v13288_v38, 0.0 }
 0x464   :  { %v1441_v24 = vsel %vm755_vm15, %v13290_v49, 0.0  ;;  %v3143_v16 = vadd.f32 %v3142_v36, %v3011_v26  ;;  %v3074_v6 = vadd.f32 %v3073_v59, %v2947_v20  ;;  %vm2327_vm2 = vcmp.eq.s32.totalorder %v13259_v54, %v12525_v9 }
 0x465   :  { %v1345_v4 = vpop.permute.xlu1 %1344  ;;  %v1077_v48 = vpop.permute.xlu0 %1076  ;;  %vm2263_vm3 = vcmp.eq.s32.totalorder %v13261_v19, %v12525_v9  ;;  %v1637_v38 = vadd.f32 %v1636_v21, %v1505_v27  ;;  %v3013_v63 = vsel %vm2327_vm2, %v13301_v34, 0.0 }
 0x466   :  { %v13356_v43 = vsel %vm820_vm0, %v1345_v4, 0.0  ;;  %v1566_v4 = vadd.f32 %v1565_v35, %v1439_v17  ;;  %vm2262_vm0 = vcmp.eq.s32.totalorder %v14299_v7, %v12525_v9  ;;  %v1442_v11 = vsel %vm756_vm1, %v1077_v48, 0.0 }
 0x467   :  { %2880 = vbcast.lane.b32.xlu1 %v12513_v22, 344  ;;  %2612 = vbcast.lane.b32.xlu0 %v12516_v8, 344  ;;  %v2948_v33 = vsel %vm2262_vm0, %v13225_v0, 0.0  ;;  %v3144_v0 = vadd.f32 %v3143_v16, %v3012_v56  ;;  %v2949_v37 = vsel %vm2263_vm3, %v13303_v45, 0.0  ;;  %v1638_v50 = vadd.f32 %v1637_v38, %v13356_v43 }
 0x468   :  { %v1567_v46 = vadd.f32 %v1566_v4, %v1440_v31  ;;  %v3075_v10 = vadd.f32 %v3074_v6, %v2948_v33 }
 0x469   :  { %v2853_v57 = vpop.permute.xlu1 %2852  ;;  %v2585_v28 = vpop.permute.xlu0 %2584  ;;  %v3145_v48 = vadd.f32 %v3144_v0, %v3013_v63 }
 0x46a   :  { %v13378_v39 = vsel %vm2328_vm5, %v2853_v57, 0.0  ;;  %v13380_v41 = vsel %vm2264_vm6, %v2585_v28, 0.0  ;;  %v1568_v49 = vadd.f32 %v1567_v46, %v1441_v24  ;;  %v3076_v57 = vadd.f32 %v3075_v10, %v2949_v37 }
 0x46b   :  { %690 = vbcast.lane.b32.xlu1 %v12471_v12, 352  ;;  %422 = vbcast.lane.b32.xlu0 %v12474_v2, 352  ;;  %v3146_v45 = vadd.f32 %v3145_v48, %v13378_v39 }
 0x46c   :  { %v1569_v25 = vadd.f32 %v1568_v49, %v1442_v11  ;;  %v3077_v43 = vadd.f32 %v3076_v57, %v13380_v41  ;;  %v3184_v57 = vld [vmem:[#allocation7] sm:$0xff] }
 0x46d   :  { %v663_v52 = vpop.permute.xlu1 %662  ;;  %v395_v60 = vpop.permute.xlu0 %394 }
 0x46e   :  { %vm821_vm4 = vcmp.eq.s32.totalorder %v663_v52, %v12525_v9  ;;  %vm757_vm5 = vcmp.eq.s32.totalorder %v395_v60, %v12525_v9 }
 0x46f   :  { %2198 = vbcast.lane.b32.xlu1 %v12485_v18, 352  ;;  %1930 = vbcast.lane.b32.xlu0 %v12488_v3, 352 }
 0x471   :  { %v2171_v44 = vpop.permute.xlu1 %2170  ;;  %v1903_v32 = vpop.permute.xlu0 %1902 }
 0x472   :  { %vm2329_vm6 = vcmp.eq.s32.totalorder %v2171_v44, %v12525_v9  ;;  %vm2265_vm7 = vcmp.eq.s32.totalorder %v1903_v32, %v12525_v9 }
 0x473   :  { %1376 = vbcast.lane.b32.xlu1 %v12499_v13, 352  ;;  %1108 = vbcast.lane.b32.xlu0 %v12502_v23, 352 }
 0x475   :  { %v1349_v54 = vpop.permute.xlu1 %1348  ;;  %v1081_v19 = vpop.permute.xlu0 %1080 }
 0x476   :  { %v1507_v55 = vsel %vm821_vm4, %v1349_v54, 0.0  ;;  %v1443_v34 = vsel %vm757_vm5, %v1081_v19, 0.0 }
 0x477   :  { %v1639_v28 = vadd.f32 %v1638_v50, %v1507_v55  ;;  %v1570_v61 = vadd.f32 %v1569_v25, %v1443_v34  ;;  %2884 = vbcast.lane.b32.xlu1 %v12513_v22, 352  ;;  %2616 = vbcast.lane.b32.xlu0 %v12516_v8, 352  ;;  %v3185_v55 = vld [vmem:[#allocation7 + $0x8] sm:$0xff]  ;;  %v3191_v34 = vld [vmem:[#allocation7 + $0x38] sm:$0xff] }
 0x479   :  { %v2857_v62 = vpop.permute.xlu1 %2856  ;;  %v2589_v40 = vpop.permute.xlu0 %2588 }
 0x47a   :  { %v3015_v15 = vsel %vm2329_vm6, %v2857_v62, 0.0  ;;  %v2951_v53 = vsel %vm2265_vm7, %v2589_v40, 0.0  ;;  %v3203_v62 = vld [vmem:[#allocation7 + $0x98] sm:$0xff] }
 0x47b   :  { %v3147_v29 = vadd.f32 %v3146_v45, %v3015_v15  ;;  %v3078_v17 = vadd.f32 %v3077_v43, %v2951_v53  ;;  %694 = vbcast.lane.b32.xlu1 %v12471_v12, 360  ;;  %426 = vbcast.lane.b32.xlu0 %v12474_v2, 360  ;;  %v9614_v45 = vpack.c.bf16 %v3191_v34, %v3185_v55  ;;  %v3190_v43 = vld [vmem:[#allocation7 + $0x30] sm:$0xff]  ;;  %v3196_v15 = vld [vmem:[#allocation7 + $0x60] sm:$0xff] }
 0x47c   :  { %v3202_v53 = vld [vmem:[#allocation7 + $0x90] sm:$0xff] }
 0x47d   :  { %v667_v35 = vpop.permute.xlu1 %666  ;;  %v399_v36 = vpop.permute.xlu0 %398  ;;  %9615 = vmatprep.subr.bf16.mxu0 %v9614_v45 }
 0x47e   :  { %vm822_vm8 = vcmp.eq.s32.totalorder %v667_v35, %v12525_v9  ;;  %vm758_vm9 = vcmp.eq.s32.totalorder %v399_v36, %v12525_v9  ;;  %v9620_v35 = vpack.c.bf16 %v3202_v53, %v3196_v15 }
 0x47f   :  { %2202 = vbcast.lane.b32.xlu1 %v12485_v18, 360  ;;  %1934 = vbcast.lane.b32.xlu0 %v12488_v3, 360 }
 0x481   :  { %v2175_v39 = vpop.permute.xlu1 %2174  ;;  %v1907_v41 = vpop.permute.xlu0 %1906 }
 0x482   :  { %vm2330_vm10 = vcmp.eq.s32.totalorder %v2175_v39, %v12525_v9  ;;  %vm2266_vm11 = vcmp.eq.s32.totalorder %v1907_v41, %v12525_v9 }
 0x483   :  { %1380 = vbcast.lane.b32.xlu1 %v12499_v13, 360  ;;  %1112 = vbcast.lane.b32.xlu0 %v12502_v23, 360 }
 0x485   :  { %v1353_v59 = vpop.permute.xlu1 %1352  ;;  %v1085_v30 = vpop.permute.xlu0 %1084 }
 0x486   :  { %v1508_v47 = vsel %vm822_vm8, %v1353_v59, 0.0  ;;  %v1444_v58 = vsel %vm758_vm9, %v1085_v30, 0.0  ;;  %v3208_v59 = vld [vmem:[#allocation7 + $0xc0] sm:$0xff]  ;;  %v3214_v30 = vld [vmem:[#allocation7 + $0xf0] sm:$0xff] }
 0x487   :  { %v1640_v51 = vadd.f32 %v1639_v28, %v1508_v47  ;;  %v1571_v42 = vadd.f32 %v1570_v61, %v1444_v58  ;;  %2888 = vbcast.lane.b32.xlu1 %v12513_v22, 360  ;;  %2620 = vbcast.lane.b32.xlu0 %v12516_v8, 360  ;;  %v3221_v47 = vld [vmem:[#allocation7 + $0x128] sm:$0xff]  ;;  %v3227_v58 = vld [vmem:[#allocation7 + $0x158] sm:$0xff] }
 0x489   :  { %v2861_v52 = vpop.permute.xlu1 %2860  ;;  %v2593_v60 = vpop.permute.xlu0 %2592 }
 0x48a   :  { %v3016_v5 = vsel %vm2330_vm10, %v2861_v52, 0.0  ;;  %v2952_v4 = vsel %vm2266_vm11, %v2593_v60, 0.0  ;;  %v9626_v60 = vpack.c.bf16 %v3227_v58, %v3221_v47 }
 0x48b   :  { %v3148_v1 = vadd.f32 %v3147_v29, %v3016_v5  ;;  %v3079_v26 = vadd.f32 %v3078_v17, %v2952_v4  ;;  %698 = vbcast.lane.b32.xlu1 %v12471_v12, 368  ;;  %430 = vbcast.lane.b32.xlu0 %v12474_v2, 368  ;;  %v3209_v29 = vld [vmem:[#allocation7 + $0xc8] sm:$0xff]  ;;  %v3215_v17 = vld [vmem:[#allocation7 + $0xf8] sm:$0xff]  ;;  %v3220_v5 = vld [vmem:[#allocation7 + $0x120] sm:$0xff] }
 0x48c   :  { %v9622_v41 = vpack.c.bf16 %v3215_v17, %v3209_v29  ;;  %v3226_v4 = vld [vmem:[#allocation7 + $0x150] sm:$0xff] }
 0x48d   :  { %v671_v31 = vpop.permute.xlu1 %670  ;;  %v403_v14 = vpop.permute.xlu0 %402 }
 0x48e   :  { %vm823_vm12 = vcmp.eq.s32.totalorder %v671_v31, %v12525_v9  ;;  %vm759_vm13 = vcmp.eq.s32.totalorder %v403_v14, %v12525_v9  ;;  %v3233_v31 = vld [vmem:[#allocation7 + $0x188] sm:$0xff]  ;;  %v3239_v14 = vld [vmem:[#allocation7 + $0x1b8] sm:$0xff] }
 0x48f   :  { %2206 = vbcast.lane.b32.xlu1 %v12485_v18, 368  ;;  %1938 = vbcast.lane.b32.xlu0 %v12488_v3, 368 }
 0x491   :  { %v2179_v20 = vpop.permute.xlu1 %2178  ;;  %v1911_v7 = vpop.permute.xlu0 %1910 }
 0x492   :  { %vm2331_vm14 = vcmp.eq.s32.totalorder %v2179_v20, %v12525_v9  ;;  %vm2267_vm15 = vcmp.eq.s32.totalorder %v1911_v7, %v12525_v9 }
 0x493   :  { %1384 = vbcast.lane.b32.xlu1 %v12499_v13, 368  ;;  %1116 = vbcast.lane.b32.xlu0 %v12502_v23, 368 }
 0x495   :  { %v1357_v21 = vpop.permute.xlu1 %1356  ;;  %v1089_v27 = vpop.permute.xlu0 %1088 }
 0x496   :  { %v1509_v24 = vsel %vm823_vm12, %v1357_v21, 0.0  ;;  %v1445_v46 = vsel %vm759_vm13, %v1089_v27, 0.0  ;;  %v9628_v21 = vpack.c.bf16 %v3226_v4, %v3220_v5 }
 0x497   :  { %v1641_v56 = vadd.f32 %v1640_v51, %v1509_v24  ;;  %v1572_v33 = vadd.f32 %v1571_v42, %v1445_v46  ;;  %2892 = vbcast.lane.b32.xlu1 %v12513_v22, 368  ;;  %2624 = vbcast.lane.b32.xlu0 %v12516_v8, 368  ;;  %v9624_v51 = vpack.c.bf16 %v3214_v30, %v3208_v59 }
 0x498   :  { %v9630_v46 = vpack.c.bf16 %v3239_v14, %v3233_v31 }
 0x499   :  { %v2865_v44 = vpop.permute.xlu1 %2864  ;;  %v2597_v32 = vpop.permute.xlu0 %2596 }
 0x49a   :  { %v3017_v16 = vsel %vm2331_vm14, %v2865_v44, 0.0  ;;  %v2953_v6 = vsel %vm2267_vm15, %v2597_v32, 0.0 }
 0x49b   :  { %v3149_v11 = vadd.f32 %v3148_v1, %v3017_v16  ;;  %v3080_v38 = vadd.f32 %v3079_v26, %v2953_v6  ;;  %702 = vbcast.lane.b32.xlu1 %v12471_v12, 376  ;;  %434 = vbcast.lane.b32.xlu0 %v12474_v2, 376 }
 0x49d   :  { %v675_v49 = vpop.permute.xlu1 %674  ;;  %v407_v63 = vpop.permute.xlu0 %406 }
 0x49e   :  { %vm824_vm0 = vcmp.eq.s32.totalorder %v675_v49, %v12525_v9  ;;  %vm760_vm1 = vcmp.eq.s32.totalorder %v407_v63, %v12525_v9 }
 0x49f   :  { %2210 = vbcast.lane.b32.xlu1 %v12485_v18, 376  ;;  %1942 = vbcast.lane.b32.xlu0 %v12488_v3, 376 }
 0x4a1   :  { %v2183_v0 = vpop.permute.xlu1 %2182  ;;  %v1915_v10 = vpop.permute.xlu0 %1914 }
 0x4a2   :  { %vm2332_vm2 = vcmp.eq.s32.totalorder %v2183_v0, %v12525_v9  ;;  %vm2268_vm3 = vcmp.eq.s32.totalorder %v1915_v10, %v12525_v9 }
 0x4a3   :  { %1388 = vbcast.lane.b32.xlu1 %v12499_v13, 376  ;;  %1120 = vbcast.lane.b32.xlu0 %v12502_v23, 376 }
 0x4a5   :  { %v1361_v37 = vpop.permute.xlu1 %1360  ;;  %v1093_v12 = vpop.permute.xlu0 %1092 }
 0x4a6   :  { %v1510_v50 = vsel %vm824_vm0, %v1361_v37, 0.0  ;;  %v1446_v2 = vsel %vm760_vm1, %v1093_v12, 0.0 }
 0x4a7   :  { %v1642_v25 = vadd.f32 %v1641_v56, %v1510_v50  ;;  %v1573_v54 = vadd.f32 %v1572_v33, %v1446_v2  ;;  %2896 = vbcast.lane.b32.xlu1 %v12513_v22, 376  ;;  %2628 = vbcast.lane.b32.xlu0 %v12516_v8, 376  ;;  %v3197_v22 = vld [vmem:[#allocation7 + $0x68] sm:$0xff]  ;;  %v9616_v8 = vpack.c.bf16 %v3190_v43, %v3184_v57  ;;  %v3232_v56 = vld [vmem:[#allocation7 + $0x180] sm:$0xff]  ;;  %v3238_v33 = vld [vmem:[#allocation7 + $0x1b0] sm:$0xff] }
 0x4a8   :  { %v9618_v40 = vpack.c.bf16 %v3203_v62, %v3197_v22 }
 0x4a9   :  { %v2869_v13 = vpop.permute.xlu1 %2868  ;;  %v2601_v23 = vpop.permute.xlu0 %2600  ;;  %9617 = vmatpush1.bf16.msra.mxu0 %v9616_v8 }
 0x4aa   :  { %v3018_v18 = vsel %vm2332_vm2, %v2869_v13, 0.0  ;;  %v2954_v3 = vsel %vm2268_vm3, %v2601_v23, 0.0  ;;  %9619 = vmatprep.subr.bf16.mxu0 %v9618_v40 }
 0x4ab   :  { %v3150_v19 = vadd.f32 %v3149_v11, %v3018_v18  ;;  %v3081_v48 = vadd.f32 %v3080_v38, %v2954_v3  ;;  %v9632_v11 = vpack.c.bf16 %v3238_v33, %v3232_v56 }
 0x4ad   :  { %v679_v28 = vpop.permute.xlu1 %678  ;;  %v411_v61 = vpop.permute.xlu0 %410  ;;  %9621 = vmatpush1.bf16.msra.mxu0 %v9620_v35 }
 0x4ae   :  { %vm825_vm4 = vcmp.eq.s32.totalorder %v679_v28, %v12525_v9  ;;  %vm761_vm5 = vcmp.eq.s32.totalorder %v411_v61, %v12525_v9  ;;  %9623 = vmatprep.subr.bf16.mxu0 %v9622_v41 }
 0x4b1   :  { %v2187_v36 = vpop.permute.xlu1 %2186  ;;  %v1919_v39 = vpop.permute.xlu0 %1918  ;;  %9625 = vmatpush1.bf16.msra.mxu0 %v9624_v51 }
 0x4b2   :  { %vm2333_vm6 = vcmp.eq.s32.totalorder %v2187_v36, %v12525_v9  ;;  %vm2269_vm7 = vcmp.eq.s32.totalorder %v1919_v39, %v12525_v9  ;;  %9627 = vmatprep.subr.bf16.mxu0 %v9626_v60 }
 0x4b5   :  { %v1365_v42 = vpop.permute.xlu1 %1364  ;;  %v1097_v52 = vpop.permute.xlu0 %1096  ;;  %9629 = vmatpush1.bf16.msra.mxu0 %v9628_v21 }
 0x4b6   :  { %v1511_v1 = vsel %vm825_vm4, %v1365_v42, 0.0  ;;  %v1447_v26 = vsel %vm761_vm5, %v1097_v52, 0.0  ;;  %9631 = vmatprep.subr.bf16.mxu0 %v9630_v46 }
 0x4b7   :  { %v1643_v20 = vadd.f32 %v1642_v25, %v1511_v1  ;;  %v1574_v7 = vadd.f32 %v1573_v54, %v1447_v26 }
 0x4b9   :  { %v2873_v27 = vpop.permute.xlu1 %2872  ;;  %v2605_v24 = vpop.permute.xlu0 %2604  ;;  %9633 = vmatpush1.bf16.msra.mxu0 %v9632_v11 }
 0x4ba   :  { %v3019_v44 = vsel %vm2333_vm6, %v2873_v27, 0.0  ;;  %v2955_v32 = vsel %vm2269_vm7, %v2605_v24, 0.0 }
 0x4bb   :  { %v3151_v16 = vadd.f32 %v3150_v19, %v3019_v44  ;;  %v3082_v6 = vadd.f32 %v3081_v48, %v2955_v32 }
 0x4bd   :  { %v683_v38 = vpop.permute.xlu1 %682  ;;  %v415_v49 = vpop.permute.xlu0 %414 }
 0x4be   :  { %vm826_vm8 = vcmp.eq.s32.totalorder %v683_v38, %v12525_v9  ;;  %vm762_vm9 = vcmp.eq.s32.totalorder %v415_v49, %v12525_v9 }
 0x4c1   :  { %v2191_v63 = vpop.permute.xlu1 %2190  ;;  %v1923_v0 = vpop.permute.xlu0 %1922 }
 0x4c2   :  { %vm2334_vm10 = vcmp.eq.s32.totalorder %v2191_v63, %v12525_v9  ;;  %vm2270_vm11 = vcmp.eq.s32.totalorder %v1923_v0, %v12525_v9 }
 0x4c5   :  { %v1369_v10 = vpop.permute.xlu1 %1368  ;;  %v1101_v37 = vpop.permute.xlu0 %1100 }
 0x4c6   :  { %v1512_v12 = vsel %vm826_vm8, %v1369_v10, 0.0  ;;  %v1448_v50 = vsel %vm762_vm9, %v1101_v37, 0.0 }
 0x4c7   :  { %v1644_v2 = vadd.f32 %v1643_v20, %v1512_v12  ;;  %v1575_v25 = vadd.f32 %v1574_v7, %v1448_v50 }
 0x4c9   :  { %v2877_v54 = vpop.permute.xlu1 %2876  ;;  %v2609_v13 = vpop.permute.xlu0 %2608 }
 0x4ca   :  { %v3020_v23 = vsel %vm2334_vm10, %v2877_v54, 0.0  ;;  %v2956_v18 = vsel %vm2270_vm11, %v2609_v13, 0.0 }
 0x4cb   :  { %v3152_v3 = vadd.f32 %v3151_v16, %v3020_v23  ;;  %v3083_v19 = vadd.f32 %v3082_v6, %v2956_v18 }
 0x4cd   :  { %v687_v48 = vpop.permute.xlu1 %686  ;;  %v419_v55 = vpop.permute.xlu0 %418 }
 0x4ce   :  { %vm827_vm12 = vcmp.eq.s32.totalorder %v687_v48, %v12525_v9  ;;  %vm763_vm13 = vcmp.eq.s32.totalorder %v419_v55, %v12525_v9 }
 0x4d1   :  { %v2195_v34 = vpop.permute.xlu1 %2194  ;;  %v1927_v57 = vpop.permute.xlu0 %1926 }
 0x4d2   :  { %vm2335_vm0 = vcmp.eq.s32.totalorder %v2195_v34, %v12525_v9  ;;  %vm2271_vm1 = vcmp.eq.s32.totalorder %v1927_v57, %v12525_v9 }
 0x4d5   :  { %v1373_v28 = vpop.permute.xlu1 %1372  ;;  %v1105_v61 = vpop.permute.xlu0 %1104 }
 0x4d6   :  { %v1513_v45 = vsel %vm827_vm12, %v1373_v28, 0.0  ;;  %v1449_v43 = vsel %vm763_vm13, %v1105_v61, 0.0 }
 0x4d7   :  { %v1645_v22 = vadd.f32 %v1644_v2, %v1513_v45  ;;  %v1576_v62 = vadd.f32 %v1575_v25, %v1449_v43 }
 0x4d9   :  { %v2881_v8 = vpop.permute.xlu1 %2880  ;;  %v2613_v40 = vpop.permute.xlu0 %2612 }
 0x4da   :  { %v3021_v24 = vsel %vm2335_vm0, %v2881_v8, 0.0  ;;  %v2957_v46 = vsel %vm2271_vm1, %v2613_v40, 0.0  ;;  %vm3166_vm0 = vcmask 1041409   ;;  %vm3171_vm1 = vcmask 1043459  }
 0x4db   :  { %v3153_v49 = vadd.f32 %v3152_v3, %v3021_v24  ;;  %v3084_v63 = vadd.f32 %v3083_v19, %v2957_v46 }
 0x4dd   :  { %v691_v15 = vpop.permute.xlu1 %690  ;;  %v423_v53 = vpop.permute.xlu0 %422 }
 0x4de   :  { %vm828_vm14 = vcmp.eq.s32.totalorder %v691_v15, %v12525_v9  ;;  %vm764_vm15 = vcmp.eq.s32.totalorder %v423_v53, %v12525_v9 }
 0x4e1   :  { %v2199_v29 = vpop.permute.xlu1 %2198  ;;  %v1931_v17 = vpop.permute.xlu0 %1930 }
 0x4e2   :  { %vm2336_vm2 = vcmp.eq.s32.totalorder %v2199_v29, %v12525_v9  ;;  %vm2272_vm3 = vcmp.eq.s32.totalorder %v1931_v17, %v12525_v9 }
 0x4e5   :  { %v1377_v35 = vpop.permute.xlu1 %1376  ;;  %v1109_v36 = vpop.permute.xlu0 %1108 }
 0x4e6   :  { %v1514_v21 = vsel %vm828_vm14, %v1377_v35, 0.0  ;;  %v1450_v27 = vsel %vm764_vm15, %v1109_v36, 0.0 }
 0x4e7   :  { %v1646_v44 = vadd.f32 %v1645_v22, %v1514_v21  ;;  %v1577_v32 = vadd.f32 %v1576_v62, %v1450_v27 }
 0x4e9   :  { %v2885_v39 = vpop.permute.xlu1 %2884  ;;  %v2617_v41 = vpop.permute.xlu0 %2616 }
 0x4ea   :  { %v3022_v11 = vsel %vm2336_vm2, %v2885_v39, 0.0  ;;  %v2958_v38 = vsel %vm2272_vm3, %v2617_v41, 0.0  ;;  %vm3174_vm2 = vcmask 1041408   ;;  %vm3176_vm3 = vcmask 1043456  }
 0x4eb   :  { %v3154_v25 = vadd.f32 %v3153_v49, %v3022_v11  ;;  %v3085_v54 = vadd.f32 %v3084_v63, %v2958_v38  ;;  %v3244_v38 = vld [vmem:[#allocation7 + $0x1e0] sm:$0xff]  ;;  %v3250_v49 = vld [vmem:[#allocation7 + $0x210] sm:$0xff] }
 0x4ec   :  { %v9636_v63 = vpack.c.bf16 %v3250_v49, %v3244_v38 }
 0x4ed   :  { %v695_v59 = vpop.permute.xlu1 %694  ;;  %v427_v30 = vpop.permute.xlu0 %426 }
 0x4ee   :  { %vm829_vm4 = vcmp.eq.s32.totalorder %v695_v59, %v12525_v9  ;;  %vm765_vm5 = vcmp.eq.s32.totalorder %v427_v30, %v12525_v9 }
 0x4f1   :  { %v2203_v47 = vpop.permute.xlu1 %2202  ;;  %v1935_v58 = vpop.permute.xlu0 %1934 }
 0x4f2   :  { %vm2337_vm8 = vcmp.eq.s32.totalorder %v2203_v47, %v12525_v9  ;;  %vm2273_vm9 = vcmp.eq.s32.totalorder %v1935_v58, %v12525_v9 }
 0x4f5   :  { %v1381_v51 = vpop.permute.xlu1 %1380  ;;  %v1113_v42 = vpop.permute.xlu0 %1112 }
 0x4f6   :  { %v1515_v16 = vsel %vm829_vm4, %v1381_v51, 0.0  ;;  %v1451_v6 = vsel %vm765_vm5, %v1113_v42, 0.0 }
 0x4f7   :  { %v1647_v50 = vadd.f32 %v1646_v44, %v1515_v16  ;;  %v1578_v2 = vadd.f32 %v1577_v32, %v1451_v6  ;;  %v3245_v16 = vld [vmem:[#allocation7 + $0x1e8] sm:$0xff]  ;;  %v3251_v6 = vld [vmem:[#allocation7 + $0x218] sm:$0xff] }
 0x4f8   :  { %v9634_v11 = vpack.c.bf16 %v3251_v6, %v3245_v16  ;;  %v3204_v16 = vld [vmem:[#allocation7 + $0xa0] sm:$0xff]  ;;  %v3211_v6 = vld [vmem:[#allocation7 + $0xd8] sm:$0xff] }
 0x4f9   :  { %v2889_v52 = vpop.permute.xlu1 %2888  ;;  %v2621_v60 = vpop.permute.xlu0 %2620 }
 0x4fa   :  { %v3023_v13 = vsel %vm2337_vm8, %v2889_v52, 0.0  ;;  %v2959_v23 = vsel %vm2273_vm9, %v2621_v60, 0.0  ;;  %9635 = vmatprep.subr.bf16.mxu0 %v9634_v11  ;;  %v3217_v11 = vld [vmem:[#allocation7 + $0x108] sm:$0xff] }
 0x4fb   :  { %v3155_v57 = vadd.f32 %v3154_v25, %v3023_v13  ;;  %v3086_v28 = vadd.f32 %v3085_v54, %v2959_v23  ;;  %9637 = vmatpush1.bf16.msra.mxu0 %v9636_v63  ;;  %v3275_v25 = vld [vmem:[#allocation7 + $0x2d8] sm:$0xff]  ;;  %v11118_v54 = vmov 0.0   ;;  %v9654_v49 = vpack.c.bf16 %v3217_v11, %v3211_v6  ;;  %v3210_v63 = vld [vmem:[#allocation7 + $0xd0] sm:$0xff] }
 0x4fc   :  { %3344 = vmatprep.mubr.f32.mxu0 %v11118_v54 }
 0x4fd   :  { %v699_v5 = vpop.permute.xlu1 %698  ;;  %v431_v4 = vpop.permute.xlu0 %430 }
 0x4fe   :  { %vm830_vm6 = vcmp.eq.s32.totalorder %v699_v5, %v12525_v9  ;;  %vm766_vm7 = vcmp.eq.s32.totalorder %v431_v4, %v12525_v9 }
 0x501   :  { %v2207_v1 = vpop.permute.xlu1 %2206  ;;  %v1939_v26 = vpop.permute.xlu0 %1938 }
 0x502   :  { %vm2338_vm10 = vcmp.eq.s32.totalorder %v2207_v1, %v12525_v9  ;;  %vm2274_vm11 = vcmp.eq.s32.totalorder %v1939_v26, %v12525_v9 }
 0x505   :  { %v1385_v31 = vpop.permute.xlu1 %1384  ;;  %v1117_v14 = vpop.permute.xlu0 %1116 }
 0x506   :  { %v1516_v0 = vsel %vm830_vm6, %v1385_v31, 0.0  ;;  %v1452_v10 = vsel %vm766_vm7, %v1117_v14, 0.0 }
 0x507   :  { %v1648_v18 = vadd.f32 %v1647_v50, %v1516_v0  ;;  %v1579_v3 = vadd.f32 %v1578_v2, %v1452_v10  ;;  %v3257_v0 = vld [vmem:[#allocation7 + $0x248] sm:$0xff]  ;;  %v3263_v10 = vld [vmem:[#allocation7 + $0x278] sm:$0xff]  ;;  %v3262_v50 = vld [vmem:[#allocation7 + $0x270] sm:$0xff] }
 0x508   :  { %v3269_v2 = vld [vmem:[#allocation7 + $0x2a8] sm:$0xff] }
 0x509   :  { %v2893_v20 = vpop.permute.xlu1 %2892  ;;  %v2625_v7 = vpop.permute.xlu0 %2624  ;;  %v9642_v23 = vpack.c.bf16 %v3275_v25, %v3269_v2  ;;  %v3228_v2 = vld [vmem:[#allocation7 + $0x160] sm:$0xff]  ;;  %v3235_v25 = vld [vmem:[#allocation7 + $0x198] sm:$0xff] }
 0x50a   :  { %v3024_v19 = vsel %vm2338_vm10, %v2893_v20, 0.0  ;;  %v2960_v48 = vsel %vm2274_vm11, %v2625_v7, 0.0 }
 0x50b   :  { %v3156_v62 = vadd.f32 %v3155_v57, %v3024_v19  ;;  %v3087_v8 = vadd.f32 %v3086_v28, %v2960_v48  ;;  %v3187_v19 = vld [vmem:[#allocation7 + $0x18] sm:$0xff]  ;;  %v3193_v48 = vld [vmem:[#allocation7 + $0x48] sm:$0xff] }
 0x50c   :  { %v9806_v57 = vld [vmem:[#allocation8 + $0x4] ss:$24 sps:$4 sm:$0xff]   ;;  %v9811_v28 = vld [vmem:[#allocation8] ss:$24 sps:$4 sm:$0xff]  }
 0x50d   :  { %v703_v56 = vpop.permute.xlu1 %702  ;;  %v435_v33 = vpop.permute.xlu0 %434  ;;  %5259 = vmatprep.subr.bf16.mxu1 %v9806_v57 }
 0x50e   :  { %vm831_vm12 = vcmp.eq.s32.totalorder %v703_v56, %v12525_v9  ;;  %vm767_vm13 = vcmp.eq.s32.totalorder %v435_v33, %v12525_v9  ;;  %5260 = vmatpush1.bf16.msra.mxu1 %v9811_v28  ;;  %v3246_v28 = vld [vmem:[#allocation7 + $0x1f0] sm:$0xff] }
 0x511   :  { %v2211_v37 = vpop.permute.xlu1 %2210  ;;  %v1943_v12 = vpop.permute.xlu0 %1942 }
 0x512   :  { %vm2339_vm14 = vcmp.eq.s32.totalorder %v2211_v37, %v12525_v9  ;;  %vm2275_vm15 = vcmp.eq.s32.totalorder %v1943_v12, %v12525_v9  ;;  %v3256_v37 = vld [vmem:[#allocation7 + $0x240] sm:$0xff]  ;;  %v9638_v12 = vpack.c.bf16 %v3263_v10, %v3257_v0  ;;  %v3223_v10 = vld [vmem:[#allocation7 + $0x138] sm:$0xff] }
 0x513   :  { %v9640_v13 = vpack.c.bf16 %v3262_v50, %v3256_v37  ;;  %v3216_v0 = vld [vmem:[#allocation7 + $0x100] sm:$0xff]  ;;  %v3229_v37 = vld [vmem:[#allocation7 + $0x168] sm:$0xff]  ;;  %v3222_v50 = vld [vmem:[#allocation7 + $0x130] sm:$0xff] }
 0x514   :  { %9639 = vmatprep.subr.bf16.mxu0 %v9638_v12  ;;  %v9658_v12 = vpack.c.bf16 %v3229_v37, %v3223_v10  ;;  %v3248_v37 = vld [vmem:[#allocation7 + $0x200] sm:$0xff] }
 0x515   :  { %v1389_v55 = vpop.permute.xlu1 %1388  ;;  %v1121_v34 = vpop.permute.xlu0 %1120  ;;  %9641 = vmatpush1.bf16.msra.mxu0 %v9640_v13  ;;  %v3241_v13 = vld [vmem:[#allocation7 + $0x1c8] sm:$0xff] }
 0x516   :  { %v1517_v61 = vsel %vm831_vm12, %v1389_v55, 0.0  ;;  %v1453_v45 = vsel %vm767_vm13, %v1121_v34, 0.0  ;;  %9643 = vmatprep.subr.bf16.mxu0 %v9642_v23  ;;  %v9646_v34 = vpack.c.bf16 %v3193_v48, %v3187_v19  ;;  %v9660_v23 = vpack.c.bf16 %v3228_v2, %v3222_v50  ;;  %v3240_v19 = vld [vmem:[#allocation7 + $0x1c0] sm:$0xff]  ;;  %v3247_v48 = vld [vmem:[#allocation7 + $0x1f8] sm:$0xff] }
 0x517   :  { %v1649_v43 = vadd.f32 %v1648_v18, %v1517_v61  ;;  %v1580_v22 = vadd.f32 %v1579_v3, %v1453_v45  ;;  %v3268_v18 = vld [vmem:[#allocation7 + $0x2a0] sm:$0xff]  ;;  %v3274_v3 = vld [vmem:[#allocation7 + $0x2d0] sm:$0xff]  ;;  %v3267_v50 = vld [vmem:[#allocation7 + $0x298] sm:$0xff] }
 0x518   :  { %v9644_v55 = vpack.c.bf16 %v3274_v3, %v3268_v18  ;;  %v9812_v61 = vld [vmem:[#allocation8 + $0x34] ss:$24 sps:$4 sm:$0xff]   ;;  %v9817_v45 = vld [vmem:[#allocation8 + $0x30] ss:$24 sps:$4 sm:$0xff]   ;;  %v9662_v18 = vpack.c.bf16 %v3241_v13, %v3235_v25  ;;  %v3260_v13 = vld [vmem:[#allocation7 + $0x260] sm:$0xff] }
 0x519   :  { %v1650_v40 = vrot.slane %v1649_v43, 4  ;;  %v1581_v15 = vrot.slane %v1580_v22, 4  ;;  %v2897_v53 = vpop.permute.xlu1 %2896  ;;  %v2629_v29 = vpop.permute.xlu0 %2628  ;;  %5261 = vmatprep.subr.bf16.mxu1 %v9812_v61  ;;  %v3234_v3 = vld [vmem:[#allocation7 + $0x190] sm:$0xff]  ;;  %v3252_v61 = vld [vmem:[#allocation7 + $0x220] sm:$0xff] }
 0x51a   :  { %v3025_v17 = vsel %vm2339_vm14, %v2897_v53, 0.0  ;;  %v2961_v35 = vsel %vm2275_vm15, %v2629_v29, 0.0  ;;  %9645 = vmatpush1.bf16.msra.mxu0 %v9644_v55  ;;  %5262 = vmatpush1.bf16.msra.mxu1 %v9817_v45  ;;  %v9836_v53 = vld [vmem:[#allocation8 + $0xf4] ss:$24 sps:$4 sm:$0xff]   ;;  %v9841_v29 = vld [vmem:[#allocation8 + $0xf0] ss:$24 sps:$4 sm:$0xff]  }
 0x51b   :  { %v1651_v36 = vadd.f32 %v1650_v40, %v1649_v43  ;;  %v1582_v39 = vadd.f32 %v1581_v15, %v1580_v22  ;;  %v3157_v41 = vadd.f32 %v3156_v62, %v3025_v17  ;;  %v3088_v59 = vadd.f32 %v3087_v8, %v2961_v35  ;;  %9647 = vmatprep.subr.bf16.mxu0 %v9646_v34  ;;  %v9818_v43 = vld [vmem:[#allocation8 + $0x64] ss:$24 sps:$4 sm:$0xff]   ;;  %v9823_v22 = vld [vmem:[#allocation8 + $0x60] ss:$24 sps:$4 sm:$0xff]   ;;  %v9824_v62 = vld [vmem:[#allocation8 + $0x94] ss:$24 sps:$4 sm:$0xff]  }
 0x51c   :  { %5263 = vmatprep.subr.bf16.mxu1 %v9818_v43  ;;  %v9829_v8 = vld [vmem:[#allocation8 + $0x90] ss:$24 sps:$4 sm:$0xff]   ;;  %v9830_v40 = vld [vmem:[#allocation8 + $0xc4] ss:$24 sps:$4 sm:$0xff]   ;;  %v9835_v15 = vld [vmem:[#allocation8 + $0xc0] ss:$24 sps:$4 sm:$0xff]   ;;  %v9664_v34 = vpack.c.bf16 %v3240_v19, %v3234_v3 }
 0x51d   :  { %v1652_v30 = vrot.slane %v1651_v36, 2  ;;  %v1583_v47 = vrot.slane %v1582_v39, 2  ;;  %v3158_v58 = vrot.slane %v3157_v41, 4  ;;  %v3089_v51 = vrot.slane %v3088_v59, 4  ;;  %v9842_v17 = vld [vmem:[#allocation8 + $0x124] ss:$24 sps:$4 sm:$0xff]  }
 0x51e   :  { %5264 = vmatpush1.bf16.msra.mxu1 %v9823_v22  ;;  %v9847_v35 = vld [vmem:[#allocation8 + $0x120] ss:$24 sps:$4 sm:$0xff]   ;;  %v3253_v55 = vld [vmem:[#allocation7 + $0x228] sm:$0xff]  ;;  %v9668_v22 = vpack.c.bf16 %v3252_v61, %v3246_v28 }
 0x51f   :  { %v1653_v42 = vadd.f32 %v1652_v30, %v1651_v36  ;;  %v1584_v52 = vadd.f32 %v1583_v47, %v1582_v39  ;;  %v3159_v60 = vadd.f32 %v3158_v58, %v3157_v41  ;;  %v3090_v5 = vadd.f32 %v3089_v51, %v3088_v59  ;;  %5265 = vmatprep.subr.bf16.mxu1 %v9824_v62  ;;  %v9848_v36 = vld [vmem:[#allocation8 + $0x154] ss:$24 sps:$4 sm:$0xff]   ;;  %v9853_v39 = vld [vmem:[#allocation8 + $0x150] ss:$24 sps:$4 sm:$0xff]   ;;  %v9854_v41 = vld [vmem:[#allocation8 + $0x184] ss:$24 sps:$4 sm:$0xff]  }
 0x520   :  { %v9859_v59 = vld [vmem:[#allocation8 + $0x180] ss:$24 sps:$4 sm:$0xff]   ;;  %v9860_v30 = vld [vmem:[#allocation8 + $0x1b4] ss:$24 sps:$4 sm:$0xff]   ;;  %v9865_v47 = vld [vmem:[#allocation8 + $0x1b0] ss:$24 sps:$4 sm:$0xff]   ;;  %v9666_v57 = vpack.c.bf16 %v3253_v55, %v3247_v48 }
 0x521   :  { %v1654_v4 = vrot.slane %v1653_v42, 1  ;;  %v1585_v9 = vrot.slane %v1584_v52, 1  ;;  %v3160_v1 = vrot.slane %v3159_v60, 2  ;;  %v3091_v26 = vrot.slane %v3090_v5, 2  ;;  %v9866_v58 = vld [vmem:[#allocation8 + $0x1e4] ss:$24 sps:$4 sm:$0xff]  }
 0x522   :  { %5266 = vmatpush1.bf16.msra.mxu1 %v9829_v8  ;;  %v9871_v51 = vld [vmem:[#allocation8 + $0x1e0] ss:$24 sps:$4 sm:$0xff]   ;;  %v3265_v43 = vld [vmem:[#allocation7 + $0x288] sm:$0xff]  ;;  %v3258_v8 = vld [vmem:[#allocation7 + $0x250] sm:$0xff] }
 0x523   :  { %v1655_v31 = vadd.f32 %v1654_v4, %v1653_v42  ;;  %v1586_v14 = vadd.f32 %v1585_v9, %v1584_v52  ;;  %v3161_v20 = vadd.f32 %v3160_v1, %v3159_v60  ;;  %v3092_v7 = vadd.f32 %v3091_v26, %v3090_v5  ;;  %5267 = vmatprep.subr.bf16.mxu1 %v9830_v40  ;;  %v9872_v42 = vld [vmem:[#allocation8 + $0x214] ss:$24 sps:$4 sm:$0xff]   ;;  %v9877_v52 = vld [vmem:[#allocation8 + $0x210] ss:$24 sps:$4 sm:$0xff]   ;;  %v9878_v60 = vld [vmem:[#allocation8 + $0x244] ss:$24 sps:$4 sm:$0xff]  }
 0x524   :  { %v9883_v5 = vld [vmem:[#allocation8 + $0x240] ss:$24 sps:$4 sm:$0xff]   ;;  %v9884_v1 = vld [vmem:[#allocation8 + $0x274] ss:$24 sps:$4 sm:$0xff]   ;;  %v9889_v26 = vld [vmem:[#allocation8 + $0x270] ss:$24 sps:$4 sm:$0xff]  }
 0x525   :  { %v3162_v21 = vrot.slane %v3161_v20, 1  ;;  %v3093_v27 = vrot.slane %v3092_v7, 1  ;;  %v3167_v24 = vsel %vm3166_vm0, %v1655_v31, %v1586_v14  ;;  %v9890_v31 = vld [vmem:[#allocation8 + $0x2a4] ss:$24 sps:$4 sm:$0xff]   ;;  %v9895_v14 = vld [vmem:[#allocation8 + $0x2a0] ss:$24 sps:$4 sm:$0xff]  }
 0x526   :  { %5268 = vmatpush1.bf16.msra.mxu1 %v9835_v15  ;;  %v3259_v45 = vld [vmem:[#allocation7 + $0x258] sm:$0xff]  ;;  %v3264_v40 = vld [vmem:[#allocation7 + $0x280] sm:$0xff] }
 0x527   :  { %v3163_v46 = vadd.f32 %v3162_v21, %v3161_v20  ;;  %v3094_v56 = vadd.f32 %v3093_v27, %v3092_v7  ;;  %5269 = vmatprep.subr.bf16.mxu1 %v9836_v53  ;;  %v3186_v20 = vld [vmem:[#allocation7 + $0x10] sm:$0xff]  ;;  %v3192_v7 = vld [vmem:[#allocation7 + $0x40] sm:$0xff]  ;;  %v3199_v21 = vld [vmem:[#allocation7 + $0x78] sm:$0xff]  ;;  %v9670_v62 = vpack.c.bf16 %v3265_v43, %v3259_v45 }
 0x528   :  { %v3205_v27 = vld [vmem:[#allocation7 + $0xa8] sm:$0xff]  ;;  %v3271_v15 = vld [vmem:[#allocation7 + $0x2b8] sm:$0xff]  ;;  %v3272_v55 = vld [vmem:[#allocation7 + $0x2c0] sm:$0xff] }
 0x529   :  { %v3172_v33 = vsel %vm3171_vm1, %v3163_v46, %v3094_v56  ;;  %v9648_v46 = vpack.c.bf16 %v3192_v7, %v3186_v20  ;;  %v3277_v53 = vld [vmem:[#allocation7 + $0x2e8] sm:$0xff]  ;;  %v3218_v20 = vld [vmem:[#allocation7 + $0x110] sm:$0xff]  ;;  %v3279_v3 = vld [vmem:[#allocation7 + $0x2f8] sm:$0xff] }
 0x52a   :  { %v13496_v44 = vsel %vm3174_vm2, %v3167_v24, %v3172_v33  ;;  %5270 = vmatpush1.bf16.msra.mxu1 %v9841_v29  ;;  %v9650_v33 = vpack.c.bf16 %v3205_v27, %v3199_v21  ;;  %v9672_v29 = vpack.c.bf16 %v3264_v40, %v3258_v8  ;;  %v3225_v7 = vld [vmem:[#allocation7 + $0x148] sm:$0xff]  ;;  %v3231_v21 = vld [vmem:[#allocation7 + $0x178] sm:$0xff] }
 0x52b   :  { %v3177_v32 = vsel %vm3176_vm3, %v13496_v44, 0.0  ;;  %5271 = vmatprep.subr.bf16.mxu1 %v9842_v17  ;;  %v9674_v17 = vpack.c.bf16 %v3277_v53, %v3271_v15  ;;  %v9810_v28 = vld [vmem:[#allocation8 + $0xc] ss:$24 sps:$4 sm:$0xff]   ;;  %v9808_v61 = vld [vmem:[#allocation8 + $0x8] ss:$24 sps:$4 sm:$0xff]  }
 0x52c   :  { %3178 = vadd.xlane.f32.xlu0 %v3177_v32  ;;  %v3198_v32 = vld [vmem:[#allocation7 + $0x70] sm:$0xff]  ;;  %v9834_v15 = vld [vmem:[#allocation8 + $0xcc] ss:$24 sps:$4 sm:$0xff]   ;;  %v9832_v53 = vld [vmem:[#allocation8 + $0xc8] ss:$24 sps:$4 sm:$0xff]  }
 0x52d   :  { %v9652_v38 = vpack.c.bf16 %v3204_v16, %v3198_v32  ;;  %v3237_v32 = vld [vmem:[#allocation7 + $0x1a8] sm:$0xff]  ;;  %v3243_v16 = vld [vmem:[#allocation7 + $0x1d8] sm:$0xff] }
 0x52e   :  { %5272 = vmatpush1.bf16.msra.mxu1 %v9847_v35  ;;  %v3270_v35 = vld [vmem:[#allocation7 + $0x2b0] sm:$0xff]  ;;  %v9694_v11 = vpack.c.bf16 %v3243_v16, %v3237_v32  ;;  %v9902_v32 = vld [vmem:[#allocation8 + $0x300] ss:$24 sps:$4 sm:$0xff]  }
 0x52f   :  { %5273 = vmatprep.subr.bf16.mxu1 %v9848_v36  ;;  %v3276_v36 = vld [vmem:[#allocation7 + $0x2e0] sm:$0xff]  ;;  %v9816_v45 = vld [vmem:[#allocation8 + $0x3c] ss:$24 sps:$4 sm:$0xff]   ;;  %v9814_v43 = vld [vmem:[#allocation8 + $0x38] ss:$24 sps:$4 sm:$0xff]  }
 0x530   :  { %v9828_v8 = vld [vmem:[#allocation8 + $0x9c] ss:$24 sps:$4 sm:$0xff]   ;;  %v9826_v40 = vld [vmem:[#allocation8 + $0x98] ss:$24 sps:$4 sm:$0xff]   ;;  %v9905_v16 = vld [vmem:[#allocation8 + $0x308] ss:$24 sps:$4 sm:$0xff]  }
 0x532   :  { %5274 = vmatpush1.bf16.msra.mxu1 %v9853_v39  ;;  %v3189_v39 = vld [vmem:[#allocation7 + $0x28] sm:$0xff] }
 0x533   :  { %5275 = vmatprep.subr.bf16.mxu1 %v9854_v41  ;;  %v3195_v41 = vld [vmem:[#allocation7 + $0x58] sm:$0xff] }
 0x536   :  { %5276 = vmatpush1.bf16.msra.mxu1 %v9859_v59  ;;  %v9676_v59 = vpack.c.bf16 %v3276_v36, %v3270_v35  ;;  %v9896_v35 = vld [vmem:[#allocation8 + $0x2d4] ss:$24 sps:$4 sm:$0xff]   ;;  %v9901_v36 = vld [vmem:[#allocation8 + $0x2d0] ss:$24 sps:$4 sm:$0xff]  }
 0x537   :  { %5277 = vmatprep.subr.bf16.mxu1 %v9860_v30  ;;  %v9678_v30 = vpack.c.bf16 %v3195_v41, %v3189_v39  ;;  %v9844_v39 = vld [vmem:[#allocation8 + $0x128] ss:$24 sps:$4 sm:$0xff]   ;;  %v9852_v41 = vld [vmem:[#allocation8 + $0x15c] ss:$24 sps:$4 sm:$0xff]  }
 0x53a   :  { %5278 = vmatpush1.bf16.msra.mxu1 %v9865_v47  ;;  %v3188_v47 = vld [vmem:[#allocation7 + $0x20] sm:$0xff] }
 0x53b   :  { %5279 = vmatprep.subr.bf16.mxu1 %v9866_v58  ;;  %v3194_v58 = vld [vmem:[#allocation7 + $0x50] sm:$0xff] }
 0x53e   :  { %5280 = vmatpush1.bf16.msra.mxu1 %v9871_v51  ;;  %v3201_v51 = vld [vmem:[#allocation7 + $0x88] sm:$0xff] }
 0x53f   :  { %5281 = vmatprep.subr.bf16.mxu1 %v9872_v42  ;;  %v3207_v42 = vld [vmem:[#allocation7 + $0xb8] sm:$0xff] }
 0x542   :  { %5282 = vmatpush1.bf16.msra.mxu1 %v9877_v52  ;;  %v9680_v52 = vpack.c.bf16 %v3194_v58, %v3188_v47  ;;  %v9858_v47 = vld [vmem:[#allocation8 + $0x18c] ss:$24 sps:$4 sm:$0xff]   ;;  %v9856_v58 = vld [vmem:[#allocation8 + $0x188] ss:$24 sps:$4 sm:$0xff]  }
 0x543   :  { %5283 = vmatprep.subr.bf16.mxu1 %v9878_v60  ;;  %v9682_v60 = vpack.c.bf16 %v3207_v42, %v3201_v51  ;;  %v9864_v51 = vld [vmem:[#allocation8 + $0x1bc] ss:$24 sps:$4 sm:$0xff]   ;;  %v9862_v42 = vld [vmem:[#allocation8 + $0x1b8] ss:$24 sps:$4 sm:$0xff]  }
 0x546   :  { %5284 = vmatpush1.bf16.msra.mxu1 %v9883_v5  ;;  %v3200_v5 = vld [vmem:[#allocation7 + $0x80] sm:$0xff] }
 0x547   :  { %5285 = vmatprep.subr.bf16.mxu1 %v9884_v1  ;;  %v3219_v1 = vld [vmem:[#allocation7 + $0x118] sm:$0xff] }
 0x54a   :  { %5286 = vmatpush1.bf16.msra.mxu1 %v9889_v26 }
 0x54b   :  { %5287 = vmatprep.subr.bf16.mxu1 %v9890_v31 }
 0x54e   :  { %5288 = vmatpush1.bf16.msra.mxu1 %v9895_v14  ;;  %v3212_v14 = vld [vmem:[#allocation7 + $0xe0] sm:$0xff] }
 0x54f   :  { %v9688_v27 = vpack.c.bf16 %v3218_v20, %v3212_v14  ;;  %5289 = vmatprep.subr.bf16.mxu1 %v9896_v35  ;;  %v9894_v14 = vld [vmem:[#allocation8 + $0x2ac] ss:$24 sps:$4 sm:$0xff]   ;;  %v9892_v20 = vld [vmem:[#allocation8 + $0x2a8] ss:$24 sps:$4 sm:$0xff]  }
 0x550   :  { %v9958_v35 = vld [vmem:[#allocation8 + $0x4b4] ss:$24 sps:$4 sm:$0xff]  }
 0x552   :  { %5290 = vmatpush1.bf16.msra.mxu1 %v9901_v36  ;;  %v9961_v36 = vld [vmem:[#allocation8 + $0x4bc] ss:$24 sps:$4 sm:$0xff]  }
 0x5b9   :  { %v3179_v4 = vpop.xlane.xlu0 %3178 }
 0x5ba   :  { %v3180_v9 = vmax.f32 %v3179_v4, 1.0  ;;  %v3206_v4 = vld [vmem:[#allocation7 + $0xb0] sm:$0xff] }
 0x5bb   :  { %v9684_v26 = vpack.c.bf16 %v3206_v4, %v3200_v5  ;;  %v9876_v5 = vld [vmem:[#allocation8 + $0x21c] ss:$24 sps:$4 sm:$0xff]   ;;  %v9874_v4 = vld [vmem:[#allocation8 + $0x218] ss:$24 sps:$4 sm:$0xff]  }
 0x5bc   :  { %10846 = vrcp.f32 %v3180_v9  ;;  %v3213_v9 = vld [vmem:[#allocation7 + $0xe8] sm:$0xff] }
 0x5bd   :  { %v9686_v31 = vpack.c.bf16 %v3219_v1, %v3213_v9  ;;  %v9882_v9 = vld [vmem:[#allocation8 + $0x24c] ss:$24 sps:$4 sm:$0xff]   ;;  %v9880_v1 = vld [vmem:[#allocation8 + $0x248] ss:$24 sps:$4 sm:$0xff]  }
 0x5c6   :  { %v10847_v24 = vpop.eup %10846 }
 0x5c7   :  { %v13501_v56 = vmul.f32 %v10847_v24, %v13496_v44  ;;  %v9656_v44 = vpack.c.bf16 %v3216_v0, %v3210_v63  ;;  %v9690_v24 = vpack.c.bf16 %v3231_v21, %v3225_v7  ;;  %v3255_v63 = vld [vmem:[#allocation7 + $0x238] sm:$0xff] }
 0x5c8   :  { %v9900_v7 = vld [vmem:[#allocation8 + $0x2dc] ss:$24 sps:$4 sm:$0xff]   ;;  %v9898_v21 = vld [vmem:[#allocation8 + $0x2d8] ss:$24 sps:$4 sm:$0xff]  }
 0x5c9   :  { %3345 = vmatmul.mubr.f32.vlgmr.msra.gmra.mrb[0].mxu0 %v13501_v56 }
 0x5ca   :  { %9649 = vmatpush1.bf16.msra.mxu0 %v9648_v46  ;;  %3415 = vmatprep.mubr.f32.mxu0 %v11118_v54  ;;  %v3224_v46 = vld [vmem:[#allocation7 + $0x140] sm:$0xff] }
 0x5cb   :  { %9651 = vmatprep.subr.bf16.mxu0 %v9650_v33  ;;  %v3230_v33 = vld [vmem:[#allocation7 + $0x170] sm:$0xff] }
 0x5cc   :  { %v9692_v6 = vpack.c.bf16 %v3230_v33, %v3224_v46 }
 0x5ce   :  { %9653 = vmatpush1.bf16.msra.mxu0 %v9652_v38  ;;  %v3236_v38 = vld [vmem:[#allocation7 + $0x1a0] sm:$0xff] }
 0x5cf   :  { %9655 = vmatprep.subr.bf16.mxu0 %v9654_v49  ;;  %v3249_v49 = vld [vmem:[#allocation7 + $0x208] sm:$0xff] }
 0x5d0   :  { %v9698_v10 = vpack.c.bf16 %v3255_v63, %v3249_v49  ;;  %v9911_v49 = vld [vmem:[#allocation8 + $0x338] ss:$24 sps:$4 sm:$0xff]   ;;  %v9916_v63 = vld [vmem:[#allocation8 + $0x364] ss:$24 sps:$4 sm:$0xff]  }
 0x5d2   :  { %9657 = vmatpush1.bf16.msra.mxu0 %v9656_v44  ;;  %v3254_v44 = vld [vmem:[#allocation7 + $0x230] sm:$0xff] }
 0x5d3   :  { %9659 = vmatprep.subr.bf16.mxu0 %v9658_v12  ;;  %v3261_v12 = vld [vmem:[#allocation7 + $0x268] sm:$0xff]  ;;  %v9700_v2 = vpack.c.bf16 %v3254_v44, %v3248_v37 }
 0x5d4   :  { %v9702_v25 = vpack.c.bf16 %v3267_v50, %v3261_v12  ;;  %v9917_v37 = vld [vmem:[#allocation8 + $0x368] ss:$24 sps:$4 sm:$0xff]   ;;  %v9922_v44 = vld [vmem:[#allocation8 + $0x394] ss:$24 sps:$4 sm:$0xff]  }
 0x5d5   :  { %v9925_v12 = vld [vmem:[#allocation8 + $0x39c] ss:$24 sps:$4 sm:$0xff]   ;;  %v9920_v50 = vld [vmem:[#allocation8 + $0x390] ss:$24 sps:$4 sm:$0xff]  }
 0x5d6   :  { %9661 = vmatpush1.bf16.msra.mxu0 %v9660_v23  ;;  %v3266_v23 = vld [vmem:[#allocation7 + $0x290] sm:$0xff] }
 0x5d7   :  { %9663 = vmatprep.subr.bf16.mxu0 %v9662_v18  ;;  %v3273_v18 = vld [vmem:[#allocation7 + $0x2c8] sm:$0xff]  ;;  %v9704_v19 = vpack.c.bf16 %v3266_v23, %v3260_v13  ;;  %v9926_v23 = vld [vmem:[#allocation8 + $0x3c0] ss:$24 sps:$4 sm:$0xff]  }
 0x5d8   :  { %v9706_v48 = vpack.c.bf16 %v3279_v3, %v3273_v18  ;;  %v9931_v13 = vld [vmem:[#allocation8 + $0x3cc] ss:$24 sps:$4 sm:$0xff]   ;;  %v9929_v18 = vld [vmem:[#allocation8 + $0x3c8] ss:$24 sps:$4 sm:$0xff]  }
 0x5d9   :  { %v9934_v3 = vld [vmem:[#allocation8 + $0x3f4] ss:$24 sps:$4 sm:$0xff]  }
 0x5da   :  { %9665 = vmatpush1.bf16.msra.mxu0 %v9664_v34  ;;  %v3278_v34 = vld [vmem:[#allocation7 + $0x2f0] sm:$0xff] }
 0x5db   :  { %9667 = vmatprep.subr.bf16.mxu0 %v9666_v57  ;;  %v9708_v57 = vpack.c.bf16 %v3278_v34, %v3272_v55  ;;  %v9935_v55 = vld [vmem:[#allocation8 + $0x3f8] ss:$24 sps:$4 sm:$0xff]   ;;  %v9940_v34 = vld [vmem:[#allocation8 + $0x424] ss:$24 sps:$4 sm:$0xff]  }
 0x5de   :  { %9669 = vmatpush1.bf16.msra.mxu0 %v9668_v22  ;;  %v9822_v22 = vld [vmem:[#allocation8 + $0x6c] ss:$24 sps:$4 sm:$0xff]  }
 0x5df   :  { %9671 = vmatprep.subr.bf16.mxu0 %v9670_v62  ;;  %v9820_v62 = vld [vmem:[#allocation8 + $0x68] ss:$24 sps:$4 sm:$0xff]  }
 0x5e2   :  { %9673 = vmatpush1.bf16.msra.mxu0 %v9672_v29  ;;  %v9840_v29 = vld [vmem:[#allocation8 + $0xfc] ss:$24 sps:$4 sm:$0xff]  }
 0x5e3   :  { %9675 = vmatprep.subr.bf16.mxu0 %v9674_v17  ;;  %v9838_v17 = vld [vmem:[#allocation8 + $0xf8] ss:$24 sps:$4 sm:$0xff]  }
 0x5e6   :  { %9677 = vmatpush1.bf16.msra.mxu0 %v9676_v59  ;;  %v9904_v59 = vld [vmem:[#allocation8 + $0x304] ss:$24 sps:$4 sm:$0xff]  }
 0x5e7   :  { %9679 = vmatprep.subr.bf16.mxu0 %v9678_v30  ;;  %5300 = vmatprep.subr.bf16.mxu1 %v9904_v59  ;;  %v9850_v30 = vld [vmem:[#allocation8 + $0x158] ss:$24 sps:$4 sm:$0xff]   ;;  %v9964_v59 = vld [vmem:[#allocation8 + $0x4e4] ss:$24 sps:$4 sm:$0xff]  }
 0x5e9   :  { %3416 = vmatmul.mubr.f32.vlgmr.msra.gmra.mrb[2].mxu0 %v13501_v56 }
 0x5ea   :  { %9681 = vmatpush1.bf16.msra.mxu0 %v9680_v52  ;;  %3486 = vmatprep.mubr.f32.mxu0 %v11118_v54  ;;  %v3242_v54 = vld [vmem:[#allocation7 + $0x1d0] sm:$0xff]  ;;  %v9870_v52 = vld [vmem:[#allocation8 + $0x1ec] ss:$24 sps:$4 sm:$0xff]  }
 0x5eb   :  { %9683 = vmatprep.subr.bf16.mxu0 %v9682_v60  ;;  %v9696_v0 = vpack.c.bf16 %v3242_v54, %v3236_v38  ;;  %v9868_v60 = vld [vmem:[#allocation8 + $0x1e8] ss:$24 sps:$4 sm:$0xff]   ;;  %v9913_v38 = vld [vmem:[#allocation8 + $0x33c] ss:$24 sps:$4 sm:$0xff]  }
 0x5ec   :  { %v9908_v54 = vld [vmem:[#allocation8 + $0x330] ss:$24 sps:$4 sm:$0xff]  }
 0x5ee   :  { %9685 = vmatpush1.bf16.msra.mxu0 %v9684_v26  ;;  %v9888_v26 = vld [vmem:[#allocation8 + $0x27c] ss:$24 sps:$4 sm:$0xff]  }
 0x5ef   :  { %9687 = vmatprep.subr.bf16.mxu0 %v9686_v31  ;;  %v9886_v31 = vld [vmem:[#allocation8 + $0x278] ss:$24 sps:$4 sm:$0xff]  }
 0x5f2   :  { %9689 = vmatpush1.bf16.msra.mxu0 %v9688_v27  ;;  %v9907_v27 = vld [vmem:[#allocation8 + $0x30c] ss:$24 sps:$4 sm:$0xff]  }
 0x5f3   :  { %9691 = vmatprep.subr.bf16.mxu0 %v9690_v24 }
 0x5f6   :  { %9693 = vmatpush1.bf16.msra.mxu0 %v9692_v6 }
 0x5f7   :  { %9695 = vmatprep.subr.bf16.mxu0 %v9694_v11  ;;  %v9910_v11 = vld [vmem:[#allocation8 + $0x334] ss:$24 sps:$4 sm:$0xff]  }
 0x5fa   :  { %9697 = vmatpush1.bf16.msra.mxu0 %v9696_v0  ;;  %v9919_v0 = vld [vmem:[#allocation8 + $0x36c] ss:$24 sps:$4 sm:$0xff]  }
 0x5fb   :  { %9699 = vmatprep.subr.bf16.mxu0 %v9698_v10  ;;  %v9914_v10 = vld [vmem:[#allocation8 + $0x360] ss:$24 sps:$4 sm:$0xff]  }
 0x5fe   :  { %9701 = vmatpush1.bf16.msra.mxu0 %v9700_v2  ;;  %v9923_v2 = vld [vmem:[#allocation8 + $0x398] ss:$24 sps:$4 sm:$0xff]  }
 0x5ff   :  { %9703 = vmatprep.subr.bf16.mxu0 %v9702_v25  ;;  %v9928_v25 = vld [vmem:[#allocation8 + $0x3c4] ss:$24 sps:$4 sm:$0xff]  }
 0x602   :  { %9705 = vmatpush1.bf16.msra.mxu0 %v9704_v19  ;;  %v9937_v19 = vld [vmem:[#allocation8 + $0x3fc] ss:$24 sps:$4 sm:$0xff]  }
 0x603   :  { %9707 = vmatprep.subr.bf16.mxu0 %v9706_v48  ;;  %v9932_v48 = vld [vmem:[#allocation8 + $0x3f0] ss:$24 sps:$4 sm:$0xff]  }
 0x606   :  { %9709 = vmatpush1.bf16.msra.mxu0 %v9708_v57  ;;  %v9943_v57 = vld [vmem:[#allocation8 + $0x42c] ss:$24 sps:$4 sm:$0xff]  }
 0x607   :  { %5382 = vmatprep.subr.bf16.mxu0 %v9810_v28  ;;  %v9938_v28 = vld [vmem:[#allocation8 + $0x420] ss:$24 sps:$4 sm:$0xff]  }
 0x609   :  { %3487 = vmatmul.mubr.f32.vlgmr.msra.gmra.mrb[4].mxu0 %v13501_v56  ;;  %v9846_v56 = vld [vmem:[#allocation8 + $0x12c] ss:$24 sps:$4 sm:$0xff]  }
 0x60a   :  { %5383 = vmatpush1.bf16.msra.mxu0 %v9808_v61  ;;  %v9941_v61 = vld [vmem:[#allocation8 + $0x428] ss:$24 sps:$4 sm:$0xff]  }
 0x60b   :  { %5384 = vmatprep.subr.bf16.mxu0 %v9816_v45  ;;  %v9946_v45 = vld [vmem:[#allocation8 + $0x454] ss:$24 sps:$4 sm:$0xff]  }
 0x60e   :  { %5385 = vmatpush1.bf16.msra.mxu0 %v9814_v43  ;;  %v9949_v43 = vld [vmem:[#allocation8 + $0x45c] ss:$24 sps:$4 sm:$0xff]  }
 0x60f   :  { %5386 = vmatprep.subr.bf16.mxu0 %v9822_v22  ;;  %v9944_v22 = vld [vmem:[#allocation8 + $0x450] ss:$24 sps:$4 sm:$0xff]  }
 0x612   :  { %5387 = vmatpush1.bf16.msra.mxu0 %v9820_v62  ;;  %v9947_v62 = vld [vmem:[#allocation8 + $0x458] ss:$24 sps:$4 sm:$0xff]  }
 0x613   :  { %5388 = vmatprep.subr.bf16.mxu0 %v9828_v8  ;;  %v9952_v8 = vld [vmem:[#allocation8 + $0x484] ss:$24 sps:$4 sm:$0xff]  }
 0x616   :  { %5389 = vmatpush1.bf16.msra.mxu0 %v9826_v40  ;;  %v9955_v40 = vld [vmem:[#allocation8 + $0x48c] ss:$24 sps:$4 sm:$0xff]  }
 0x617   :  { %5390 = vmatprep.subr.bf16.mxu0 %v9834_v15 }
 0x61a   :  { %5391 = vmatpush1.bf16.msra.mxu0 %v9832_v53 }
 0x61b   :  { %5392 = vmatprep.subr.bf16.mxu0 %v9840_v29 }
 0x61e   :  { %5393 = vmatpush1.bf16.msra.mxu0 %v9838_v17  ;;  %v9950_v17 = vld [vmem:[#allocation8 + $0x480] ss:$24 sps:$4 sm:$0xff]  }
 0x61f   :  { %5394 = vmatprep.subr.bf16.mxu0 %v9846_v56  ;;  %v9953_v56 = vld [vmem:[#allocation8 + $0x488] ss:$24 sps:$4 sm:$0xff]  }
 0x622   :  { %5395 = vmatpush1.bf16.msra.mxu0 %v9844_v39  ;;  %v9956_v39 = vld [vmem:[#allocation8 + $0x4b0] ss:$24 sps:$4 sm:$0xff]  }
 0x623   :  { %5396 = vmatprep.subr.bf16.mxu0 %v9852_v41  ;;  %v9959_v41 = vld [vmem:[#allocation8 + $0x4b8] ss:$24 sps:$4 sm:$0xff]  }
 0x626   :  { %5397 = vmatpush1.bf16.msra.mxu0 %v9850_v30  ;;  %v9967_v30 = vld [vmem:[#allocation8 + $0x4ec] ss:$24 sps:$4 sm:$0xff]  }
 0x627   :  { %5398 = vmatprep.subr.bf16.mxu0 %v9858_v47  ;;  %v9962_v47 = vld [vmem:[#allocation8 + $0x4e0] ss:$24 sps:$4 sm:$0xff]  }
 0x62a   :  { %5399 = vmatpush1.bf16.msra.mxu0 %v9856_v58  ;;  %v9965_v58 = vld [vmem:[#allocation8 + $0x4e8] ss:$24 sps:$4 sm:$0xff]  }
 0x62b   :  { %5400 = vmatprep.subr.bf16.mxu0 %v9864_v51  ;;  %v9970_v51 = vld [vmem:[#allocation8 + $0x514] ss:$24 sps:$4 sm:$0xff]  }
 0x62e   :  { %5401 = vmatpush1.bf16.msra.mxu0 %v9862_v42  ;;  %v9973_v42 = vld [vmem:[#allocation8 + $0x51c] ss:$24 sps:$4 sm:$0xff]  }
 0x62f   :  { %5402 = vmatprep.subr.bf16.mxu0 %v9870_v52  ;;  %v9968_v52 = vld [vmem:[#allocation8 + $0x510] ss:$24 sps:$4 sm:$0xff]  }
 0x632   :  { %5403 = vmatpush1.bf16.msra.mxu0 %v9868_v60  ;;  %v9971_v60 = vld [vmem:[#allocation8 + $0x518] ss:$24 sps:$4 sm:$0xff]  }
 0x633   :  { %5404 = vmatprep.subr.bf16.mxu0 %v9876_v5  ;;  %v9976_v5 = vld [vmem:[#allocation8 + $0x544] ss:$24 sps:$4 sm:$0xff]  }
 0x636   :  { %5405 = vmatpush1.bf16.msra.mxu0 %v9874_v4  ;;  %v9979_v4 = vld [vmem:[#allocation8 + $0x54c] ss:$24 sps:$4 sm:$0xff]  }
 0x637   :  { %5406 = vmatprep.subr.bf16.mxu0 %v9882_v9  ;;  %v9974_v9 = vld [vmem:[#allocation8 + $0x540] ss:$24 sps:$4 sm:$0xff]  }
 0x63a   :  { %5407 = vmatpush1.bf16.msra.mxu0 %v9880_v1  ;;  %v9977_v1 = vld [vmem:[#allocation8 + $0x548] ss:$24 sps:$4 sm:$0xff]  }
 0x63b   :  { %5408 = vmatprep.subr.bf16.mxu0 %v9888_v26  ;;  %v9982_v26 = vld [vmem:[#allocation8 + $0x574] ss:$24 sps:$4 sm:$0xff]  }
 0x63e   :  { %5409 = vmatpush1.bf16.msra.mxu0 %v9886_v31  ;;  %v9985_v31 = vld [vmem:[#allocation8 + $0x57c] ss:$24 sps:$4 sm:$0xff]  }
 0x63f   :  { %5410 = vmatprep.subr.bf16.mxu0 %v9894_v14  ;;  %v9980_v14 = vld [vmem:[#allocation8 + $0x570] ss:$24 sps:$4 sm:$0xff]  }
 0x642   :  { %5411 = vmatpush1.bf16.msra.mxu0 %v9892_v20  ;;  %v9983_v20 = vld [vmem:[#allocation8 + $0x578] ss:$24 sps:$4 sm:$0xff]  }
 0x643   :  { %5412 = vmatprep.subr.bf16.mxu0 %v9900_v7  ;;  %v9988_v7 = vld [vmem:[#allocation8 + $0x5a4] ss:$24 sps:$4 sm:$0xff]  }
 0x646   :  { %5413 = vmatpush1.bf16.msra.mxu0 %v9898_v21  ;;  %v9991_v21 = vld [vmem:[#allocation8 + $0x5ac] ss:$24 sps:$4 sm:$0xff]  }
 0x647   :  { %5423 = vmatprep.subr.bf16.mxu0 %v9907_v27  ;;  %v9986_v27 = vld [vmem:[#allocation8 + $0x5a0] ss:$24 sps:$4 sm:$0xff]  }
 0x69c   :  { %v3346_v24 = vpop.f32.mrb[0].mxu0 }
 0x69d   :  { %v3348_v46 = vpop.f32.mrb[1].mxu0  ;;  %v13510_v6 = vpack.c.bf16 %v3346_v24, %v3346_v24  ;;  %v9989_v24 = vld [vmem:[#allocation8 + $0x5a8] ss:$24 sps:$4 sm:$0xff]  }
 0x69e   :  { %v13508_v33 = vpack.c.bf16 %v3348_v46, %v3348_v46  ;;  %v9994_v46 = vld [vmem:[#allocation8 + $0x5d4] ss:$24 sps:$4 sm:$0xff]  }
 0x6a0   :  { %5291 = vmatprep.mubr.bf16.mxu1 %v13508_v33  ;;  %5414 = vmatprep.mubr.bf16.mxu0 %v13508_v33 }
 0x6a1   :  { %5292 = vmatmul.mubr.bf16.vlgmr.msra.gmra.mrb[0].mxu1 %v13510_v6  ;;  %5415 = vmatmul.mubr.bf16.vlgmr.msra.gmra.mrb[8].mxu0 %v13510_v6 }
 0x6a2   :  { %5301 = vmatpush1.bf16.msra.mxu1 %v9902_v32  ;;  %5424 = vmatpush1.bf16.msra.mxu0 %v9905_v16  ;;  %v9997_v32 = vld [vmem:[#allocation8 + $0x5dc] ss:$24 sps:$4 sm:$0xff]   ;;  %v9992_v16 = vld [vmem:[#allocation8 + $0x5d0] ss:$24 sps:$4 sm:$0xff]  }
 0x6a3   :  { %5302 = vmatprep.subr.bf16.mxu1 %v9910_v11  ;;  %5425 = vmatprep.subr.bf16.mxu0 %v9913_v38  ;;  %v9995_v11 = vld [vmem:[#allocation8 + $0x5d8] ss:$24 sps:$4 sm:$0xff]   ;;  %v10000_v38 = vld [vmem:[#allocation8 + $0x604] ss:$24 sps:$4 sm:$0xff]  }
 0x6a6   :  { %5303 = vmatpush1.bf16.msra.mxu1 %v9908_v54  ;;  %5426 = vmatpush1.bf16.msra.mxu0 %v9911_v49  ;;  %v10003_v54 = vld [vmem:[#allocation8 + $0x60c] ss:$24 sps:$4 sm:$0xff]  }
 0x6a7   :  { %5304 = vmatprep.subr.bf16.mxu1 %v9916_v63  ;;  %5427 = vmatprep.subr.bf16.mxu0 %v9919_v0  ;;  %v9998_v0 = vld [vmem:[#allocation8 + $0x600] ss:$24 sps:$4 sm:$0xff]  }
 0x6aa   :  { %5305 = vmatpush1.bf16.msra.mxu1 %v9914_v10  ;;  %5428 = vmatpush1.bf16.msra.mxu0 %v9917_v37  ;;  %v10001_v37 = vld [vmem:[#allocation8 + $0x608] ss:$24 sps:$4 sm:$0xff]  }
 0x6ab   :  { %5306 = vmatprep.subr.bf16.mxu1 %v9922_v44  ;;  %5429 = vmatprep.subr.bf16.mxu0 %v9925_v12  ;;  %v10006_v12 = vld [vmem:[#allocation8 + $0x634] ss:$24 sps:$4 sm:$0xff]  }
 0x6ae   :  { %5307 = vmatpush1.bf16.msra.mxu1 %v9920_v50  ;;  %5430 = vmatpush1.bf16.msra.mxu0 %v9923_v2  ;;  %v10009_v50 = vld [vmem:[#allocation8 + $0x63c] ss:$24 sps:$4 sm:$0xff]   ;;  %v10004_v2 = vld [vmem:[#allocation8 + $0x630] ss:$24 sps:$4 sm:$0xff]  }
 0x6af   :  { %5308 = vmatprep.subr.bf16.mxu1 %v9928_v25  ;;  %5431 = vmatprep.subr.bf16.mxu0 %v9931_v13  ;;  %v10007_v25 = vld [vmem:[#allocation8 + $0x638] ss:$24 sps:$4 sm:$0xff]   ;;  %v10012_v13 = vld [vmem:[#allocation8 + $0x664] ss:$24 sps:$4 sm:$0xff]  }
 0x6b2   :  { %5309 = vmatpush1.bf16.msra.mxu1 %v9926_v23  ;;  %5432 = vmatpush1.bf16.msra.mxu0 %v9929_v18  ;;  %v10015_v23 = vld [vmem:[#allocation8 + $0x66c] ss:$24 sps:$4 sm:$0xff]   ;;  %v10010_v18 = vld [vmem:[#allocation8 + $0x660] ss:$24 sps:$4 sm:$0xff]  }
 0x6b3   :  { %5310 = vmatprep.subr.bf16.mxu1 %v9934_v3  ;;  %5433 = vmatprep.subr.bf16.mxu0 %v9937_v19  ;;  %v10013_v3 = vld [vmem:[#allocation8 + $0x668] ss:$24 sps:$4 sm:$0xff]   ;;  %v10018_v19 = vld [vmem:[#allocation8 + $0x694] ss:$24 sps:$4 sm:$0xff]  }
 0x6b6   :  { %5311 = vmatpush1.bf16.msra.mxu1 %v9932_v48  ;;  %5434 = vmatpush1.bf16.msra.mxu0 %v9935_v55  ;;  %v10021_v48 = vld [vmem:[#allocation8 + $0x69c] ss:$24 sps:$4 sm:$0xff]   ;;  %v10016_v55 = vld [vmem:[#allocation8 + $0x690] ss:$24 sps:$4 sm:$0xff]  }
 0x6b7   :  { %5312 = vmatprep.subr.bf16.mxu1 %v9940_v34  ;;  %5435 = vmatprep.subr.bf16.mxu0 %v9943_v57  ;;  %v10019_v34 = vld [vmem:[#allocation8 + $0x698] ss:$24 sps:$4 sm:$0xff]   ;;  %v10024_v57 = vld [vmem:[#allocation8 + $0x6c4] ss:$24 sps:$4 sm:$0xff]  }
 0x6ba   :  { %5313 = vmatpush1.bf16.msra.mxu1 %v9938_v28  ;;  %5436 = vmatpush1.bf16.msra.mxu0 %v9941_v61  ;;  %v10027_v28 = vld [vmem:[#allocation8 + $0x6cc] ss:$24 sps:$4 sm:$0xff]   ;;  %v10022_v61 = vld [vmem:[#allocation8 + $0x6c0] ss:$24 sps:$4 sm:$0xff]  }
 0x6bb   :  { %5314 = vmatprep.subr.bf16.mxu1 %v9946_v45  ;;  %5437 = vmatprep.subr.bf16.mxu0 %v9949_v43  ;;  %v10025_v45 = vld [vmem:[#allocation8 + $0x6c8] ss:$24 sps:$4 sm:$0xff]   ;;  %v10030_v43 = vld [vmem:[#allocation8 + $0x6f4] ss:$24 sps:$4 sm:$0xff]  }
 0x6bc   :  { %v13516_v15 = vpop.f32.mrb[2].mxu0 }
 0x6bd   :  { %v3419_v53 = vpop.f32.mrb[3].mxu0  ;;  %v13526_v10 = vpack.c.bf16 %v13516_v15, %v13516_v15  ;;  %v10039_v15 = vld [vmem:[#allocation8 + $0x72c] ss:$24 sps:$4 sm:$0xff]  }
 0x6be   :  { %v13518_v29 = vpack.c.bf16 %v3419_v53, %v3419_v53  ;;  %5315 = vmatpush1.bf16.msra.mxu1 %v9944_v22  ;;  %5438 = vmatpush1.bf16.msra.mxu0 %v9947_v62  ;;  %v10033_v22 = vld [vmem:[#allocation8 + $0x6fc] ss:$24 sps:$4 sm:$0xff]   ;;  %v10028_v62 = vld [vmem:[#allocation8 + $0x6f0] ss:$24 sps:$4 sm:$0xff]   ;;  %v10034_v53 = vld [vmem:[#allocation8 + $0x720] ss:$24 sps:$4 sm:$0xff]  }
 0x6bf   :  { %5316 = vmatprep.subr.bf16.mxu1 %v9952_v8  ;;  %5439 = vmatprep.subr.bf16.mxu0 %v9955_v40  ;;  %v10031_v8 = vld [vmem:[#allocation8 + $0x6f8] ss:$24 sps:$4 sm:$0xff]   ;;  %v10036_v40 = vld [vmem:[#allocation8 + $0x724] ss:$24 sps:$4 sm:$0xff]  }
 0x6c0   :  { %5332 = vmatprep.mubr.bf16.mxu1 %v13518_v29  ;;  %5455 = vmatprep.mubr.bf16.mxu0 %v13518_v29 }
 0x6c2   :  { %5317 = vmatpush1.bf16.msra.mxu1 %v9950_v17  ;;  %5440 = vmatpush1.bf16.msra.mxu0 %v9953_v56  ;;  %v10037_v17 = vld [vmem:[#allocation8 + $0x728] ss:$24 sps:$4 sm:$0xff]   ;;  %v10042_v56 = vld [vmem:[#allocation8 + $0x754] ss:$24 sps:$4 sm:$0xff]  }
 0x6c3   :  { %5318 = vmatprep.subr.bf16.mxu1 %v9958_v35  ;;  %5441 = vmatprep.subr.bf16.mxu0 %v9961_v36  ;;  %v10045_v35 = vld [vmem:[#allocation8 + $0x75c] ss:$24 sps:$4 sm:$0xff]   ;;  %v10040_v36 = vld [vmem:[#allocation8 + $0x750] ss:$24 sps:$4 sm:$0xff]  }
 0x6c6   :  { %5319 = vmatpush1.bf16.msra.mxu1 %v9956_v39  ;;  %5442 = vmatpush1.bf16.msra.mxu0 %v9959_v41  ;;  %v10043_v39 = vld [vmem:[#allocation8 + $0x758] ss:$24 sps:$4 sm:$0xff]   ;;  %v10048_v41 = vld [vmem:[#allocation8 + $0x784] ss:$24 sps:$4 sm:$0xff]  }
 0x6c7   :  { %5320 = vmatprep.subr.bf16.mxu1 %v9964_v59  ;;  %5443 = vmatprep.subr.bf16.mxu0 %v9967_v30  ;;  %v10051_v59 = vld [vmem:[#allocation8 + $0x78c] ss:$24 sps:$4 sm:$0xff]   ;;  %v10046_v30 = vld [vmem:[#allocation8 + $0x780] ss:$24 sps:$4 sm:$0xff]  }
 0x6ca   :  { %5321 = vmatpush1.bf16.msra.mxu1 %v9962_v47  ;;  %5444 = vmatpush1.bf16.msra.mxu0 %v9965_v58  ;;  %v10049_v47 = vld [vmem:[#allocation8 + $0x788] ss:$24 sps:$4 sm:$0xff]   ;;  %v10054_v58 = vld [vmem:[#allocation8 + $0x7b4] ss:$24 sps:$4 sm:$0xff]  }
 0x6cb   :  { %5322 = vmatprep.subr.bf16.mxu1 %v9970_v51  ;;  %5445 = vmatprep.subr.bf16.mxu0 %v9973_v42  ;;  %v10057_v51 = vld [vmem:[#allocation8 + $0x7bc] ss:$24 sps:$4 sm:$0xff]   ;;  %v10052_v42 = vld [vmem:[#allocation8 + $0x7b0] ss:$24 sps:$4 sm:$0xff]  }
 0x6ce   :  { %5323 = vmatpush1.bf16.msra.mxu1 %v9968_v52  ;;  %5446 = vmatpush1.bf16.msra.mxu0 %v9971_v60  ;;  %v10055_v52 = vld [vmem:[#allocation8 + $0x7b8] ss:$24 sps:$4 sm:$0xff]   ;;  %v10060_v60 = vld [vmem:[#allocation8 + $0x7e4] ss:$24 sps:$4 sm:$0xff]  }
 0x6cf   :  { %5324 = vmatprep.subr.bf16.mxu1 %v9976_v5  ;;  %5447 = vmatprep.subr.bf16.mxu0 %v9979_v4  ;;  %v10063_v5 = vld [vmem:[#allocation8 + $0x7ec] ss:$24 sps:$4 sm:$0xff]   ;;  %v10058_v4 = vld [vmem:[#allocation8 + $0x7e0] ss:$24 sps:$4 sm:$0xff]  }
 0x6d2   :  { %5325 = vmatpush1.bf16.msra.mxu1 %v9974_v9  ;;  %5448 = vmatpush1.bf16.msra.mxu0 %v9977_v1  ;;  %v10061_v9 = vld [vmem:[#allocation8 + $0x7e8] ss:$24 sps:$4 sm:$0xff]   ;;  %v10066_v1 = vld [vmem:[#allocation8 + $0x814] ss:$24 sps:$4 sm:$0xff]  }
 0x6d3   :  { %5326 = vmatprep.subr.bf16.mxu1 %v9982_v26  ;;  %5449 = vmatprep.subr.bf16.mxu0 %v9985_v31  ;;  %v10069_v26 = vld [vmem:[#allocation8 + $0x81c] ss:$24 sps:$4 sm:$0xff]   ;;  %v10064_v31 = vld [vmem:[#allocation8 + $0x810] ss:$24 sps:$4 sm:$0xff]  }
 0x6d6   :  { %5327 = vmatpush1.bf16.msra.mxu1 %v9980_v14  ;;  %5450 = vmatpush1.bf16.msra.mxu0 %v9983_v20  ;;  %v10067_v14 = vld [vmem:[#allocation8 + $0x818] ss:$24 sps:$4 sm:$0xff]   ;;  %v10072_v20 = vld [vmem:[#allocation8 + $0x844] ss:$24 sps:$4 sm:$0xff]  }
 0x6d7   :  { %5328 = vmatprep.subr.bf16.mxu1 %v9988_v7  ;;  %5451 = vmatprep.subr.bf16.mxu0 %v9991_v21  ;;  %v10075_v7 = vld [vmem:[#allocation8 + $0x84c] ss:$24 sps:$4 sm:$0xff]   ;;  %v10070_v21 = vld [vmem:[#allocation8 + $0x840] ss:$24 sps:$4 sm:$0xff]  }
 0x6da   :  { %5329 = vmatpush1.bf16.msra.mxu1 %v9986_v27  ;;  %5452 = vmatpush1.bf16.msra.mxu0 %v9989_v24  ;;  %v10073_v27 = vld [vmem:[#allocation8 + $0x848] ss:$24 sps:$4 sm:$0xff]   ;;  %v10078_v24 = vld [vmem:[#allocation8 + $0x874] ss:$24 sps:$4 sm:$0xff]  }
 0x6db   :  { %5330 = vmatprep.subr.bf16.mxu1 %v9994_v46  ;;  %5453 = vmatprep.subr.bf16.mxu0 %v9997_v32  ;;  %v10081_v46 = vld [vmem:[#allocation8 + $0x87c] ss:$24 sps:$4 sm:$0xff]   ;;  %v10076_v32 = vld [vmem:[#allocation8 + $0x870] ss:$24 sps:$4 sm:$0xff]  }
 0x6dc   :  { %v13522_v49 = vpop.f32.mrb[4].mxu0 }
 0x6dd   :  { %v3490_v63 = vpop.f32.mrb[5].mxu0 }
 0x6de   :  { %5331 = vmatpush1.bf16.msra.mxu1 %v9992_v16  ;;  %5454 = vmatpush1.bf16.msra.mxu0 %v9995_v11  ;;  %v13528_v44 = vpack.c.bf16 %v3490_v63, %v3490_v63  ;;  %v10079_v16 = vld [vmem:[#allocation8 + $0x878] ss:$24 sps:$4 sm:$0xff]   ;;  %v10084_v11 = vld [vmem:[#allocation8 + $0x8a4] ss:$24 sps:$4 sm:$0xff]   ;;  %v10085_v63 = vld [vmem:[#allocation8 + $0x8a8] ss:$24 sps:$4 sm:$0xff]  }
 0x6df   :  { %5341 = vmatprep.subr.bf16.mxu1 %v10000_v38  ;;  %5464 = vmatprep.subr.bf16.mxu0 %v10003_v54  ;;  %v10087_v38 = vld [vmem:[#allocation8 + $0x8ac] ss:$24 sps:$4 sm:$0xff]   ;;  %v10082_v54 = vld [vmem:[#allocation8 + $0x8a0] ss:$24 sps:$4 sm:$0xff]  }
 0x6e1   :  { %5333 = vmatmul.mubr.bf16.vlgmr.msra.gmra.mrb[0].mxu1 %v13526_v10  ;;  %5456 = vmatmul.mubr.bf16.vlgmr.msra.gmra.mrb[8].mxu0 %v13526_v10 }
 0x6e2   :  { %5342 = vmatpush1.bf16.msra.mxu1 %v9998_v0  ;;  %5373 = vmatprep.mubr.bf16.mxu1 %v13528_v44  ;;  %v10090_v0 = vld [vmem:[#allocation8 + $0x8d4] ss:$24 sps:$4 sm:$0xff]  }
 0x6e3   :  { %5465 = vmatpush1.bf16.msra.mxu0 %v10001_v37  ;;  %5496 = vmatprep.mubr.bf16.mxu0 %v13528_v44  ;;  %v10093_v37 = vld [vmem:[#allocation8 + $0x8dc] ss:$24 sps:$4 sm:$0xff]  }
 0x6e4   :  { %5343 = vmatprep.subr.bf16.mxu1 %v10006_v12  ;;  %5466 = vmatprep.subr.bf16.mxu0 %v10009_v50  ;;  %v10088_v12 = vld [vmem:[#allocation8 + $0x8d0] ss:$24 sps:$4 sm:$0xff]  }
 0x6e5   :  { %v10091_v50 = vld [vmem:[#allocation8 + $0x8d8] ss:$24 sps:$4 sm:$0xff]  }
 0x6e6   :  { %5344 = vmatpush1.bf16.msra.mxu1 %v10004_v2  ;;  %v10096_v2 = vld [vmem:[#allocation8 + $0x14] ss:$24 sps:$4 sm:$0xff]  }
 0x6e7   :  { %5467 = vmatpush1.bf16.msra.mxu0 %v10007_v25  ;;  %5345 = vmatprep.subr.bf16.mxu1 %v10012_v13  ;;  %v10094_v25 = vld [vmem:[#allocation8 + $0x10] ss:$24 sps:$4 sm:$0xff]   ;;  %v13536_v13 = vpack.c.bf16 %v13522_v49, %v13522_v49  ;;  %v10103_v49 = vld [vmem:[#allocation8 + $0xa0] ss:$24 sps:$4 sm:$0xff]  }
 0x6e8   :  { %5468 = vmatprep.subr.bf16.mxu0 %v10015_v23  ;;  %v10099_v23 = vld [vmem:[#allocation8 + $0x44] ss:$24 sps:$4 sm:$0xff]  }
 0x6ea   :  { %5346 = vmatpush1.bf16.msra.mxu1 %v10010_v18  ;;  %v10097_v18 = vld [vmem:[#allocation8 + $0x40] ss:$24 sps:$4 sm:$0xff]  }
 0x6eb   :  { %5469 = vmatpush1.bf16.msra.mxu0 %v10013_v3  ;;  %5347 = vmatprep.subr.bf16.mxu1 %v10018_v19  ;;  %v10102_v3 = vld [vmem:[#allocation8 + $0x74] ss:$24 sps:$4 sm:$0xff]   ;;  %v10100_v19 = vld [vmem:[#allocation8 + $0x70] ss:$24 sps:$4 sm:$0xff]  }
 0x6ec   :  { %5470 = vmatprep.subr.bf16.mxu0 %v10021_v48  ;;  %v10105_v48 = vld [vmem:[#allocation8 + $0xa4] ss:$24 sps:$4 sm:$0xff]  }
 0x6ee   :  { %5348 = vmatpush1.bf16.msra.mxu1 %v10016_v55  ;;  %v10108_v55 = vld [vmem:[#allocation8 + $0xd4] ss:$24 sps:$4 sm:$0xff]  }
 0x6ef   :  { %5471 = vmatpush1.bf16.msra.mxu0 %v10019_v34  ;;  %5349 = vmatprep.subr.bf16.mxu1 %v10024_v57  ;;  %v10106_v34 = vld [vmem:[#allocation8 + $0xd0] ss:$24 sps:$4 sm:$0xff]   ;;  %v10111_v57 = vld [vmem:[#allocation8 + $0x104] ss:$24 sps:$4 sm:$0xff]  }
 0x6f0   :  { %5472 = vmatprep.subr.bf16.mxu0 %v10027_v28  ;;  %v10109_v28 = vld [vmem:[#allocation8 + $0x100] ss:$24 sps:$4 sm:$0xff]  }
 0x6f2   :  { %5350 = vmatpush1.bf16.msra.mxu1 %v10022_v61  ;;  %v10114_v61 = vld [vmem:[#allocation8 + $0x134] ss:$24 sps:$4 sm:$0xff]  }
 0x6f3   :  { %5473 = vmatpush1.bf16.msra.mxu0 %v10025_v45  ;;  %5351 = vmatprep.subr.bf16.mxu1 %v10030_v43  ;;  %v10117_v45 = vld [vmem:[#allocation8 + $0x164] ss:$24 sps:$4 sm:$0xff]   ;;  %v10115_v43 = vld [vmem:[#allocation8 + $0x160] ss:$24 sps:$4 sm:$0xff]  }
 0x6f4   :  { %5474 = vmatprep.subr.bf16.mxu0 %v10033_v22  ;;  %v10120_v22 = vld [vmem:[#allocation8 + $0x194] ss:$24 sps:$4 sm:$0xff]  }
 0x6f6   :  { %5352 = vmatpush1.bf16.msra.mxu1 %v10028_v62  ;;  %v10118_v62 = vld [vmem:[#allocation8 + $0x190] ss:$24 sps:$4 sm:$0xff]  }
 0x6f7   :  { %5475 = vmatpush1.bf16.msra.mxu0 %v10031_v8  ;;  %5353 = vmatprep.subr.bf16.mxu1 %v10036_v40  ;;  %v10123_v8 = vld [vmem:[#allocation8 + $0x1c4] ss:$24 sps:$4 sm:$0xff]   ;;  %v10121_v40 = vld [vmem:[#allocation8 + $0x1c0] ss:$24 sps:$4 sm:$0xff]  }
 0x6f8   :  { %5476 = vmatprep.subr.bf16.mxu0 %v10039_v15  ;;  %v10126_v15 = vld [vmem:[#allocation8 + $0x1f4] ss:$24 sps:$4 sm:$0xff]  }
 0x6fa   :  { %5354 = vmatpush1.bf16.msra.mxu1 %v10034_v53  ;;  %v10220_v53 = vld [vmem:[#allocation11] ss:$16 sps:$4 sm:$0xff]  }
 0x6fb   :  { %5477 = vmatpush1.bf16.msra.mxu0 %v10037_v17  ;;  %5355 = vmatprep.subr.bf16.mxu1 %v10042_v56  ;;  %v10222_v17 = vld [vmem:[#allocation11 + $0x4] ss:$16 sps:$4 sm:$0xff]  }
 0x6fc   :  { %5478 = vmatprep.subr.bf16.mxu0 %v10045_v35  ;;  %v10124_v56 = vld [vmem:[#allocation8 + $0x1f0] ss:$24 sps:$4 sm:$0xff]   ;;  %v10129_v35 = vld [vmem:[#allocation8 + $0x224] ss:$24 sps:$4 sm:$0xff]  }
 0x6fe   :  { %5356 = vmatpush1.bf16.msra.mxu1 %v10040_v36  ;;  %v10226_v36 = vld [vmem:[#allocation11 + $0x20] ss:$16 sps:$4 sm:$0xff]  }
 0x6ff   :  { %5479 = vmatpush1.bf16.msra.mxu0 %v10043_v39  ;;  %5357 = vmatprep.subr.bf16.mxu1 %v10048_v41  ;;  %v10228_v39 = vld [vmem:[#allocation11 + $0x24] ss:$16 sps:$4 sm:$0xff]  }
 0x700   :  { %5480 = vmatprep.subr.bf16.mxu0 %v10051_v59  ;;  %v10127_v41 = vld [vmem:[#allocation8 + $0x220] ss:$24 sps:$4 sm:$0xff]   ;;  %v10132_v59 = vld [vmem:[#allocation8 + $0x254] ss:$24 sps:$4 sm:$0xff]  }
 0x702   :  { %5358 = vmatpush1.bf16.msra.mxu1 %v10046_v30  ;;  %v10232_v30 = vld [vmem:[#allocation11 + $0x40] ss:$16 sps:$4 sm:$0xff]  }
 0x703   :  { %5481 = vmatpush1.bf16.msra.mxu0 %v10049_v47  ;;  %5359 = vmatprep.subr.bf16.mxu1 %v10054_v58  ;;  %v10234_v47 = vld [vmem:[#allocation11 + $0x44] ss:$16 sps:$4 sm:$0xff]  }
 0x704   :  { %5482 = vmatprep.subr.bf16.mxu0 %v10057_v51  ;;  %v10130_v58 = vld [vmem:[#allocation8 + $0x250] ss:$24 sps:$4 sm:$0xff]   ;;  %v10135_v51 = vld [vmem:[#allocation8 + $0x284] ss:$24 sps:$4 sm:$0xff]  }
 0x706   :  { %5360 = vmatpush1.bf16.msra.mxu1 %v10052_v42  ;;  %v10238_v42 = vld [vmem:[#allocation11 + $0x60] ss:$16 sps:$4 sm:$0xff]  }
 0x707   :  { %5483 = vmatpush1.bf16.msra.mxu0 %v10055_v52  ;;  %5361 = vmatprep.subr.bf16.mxu1 %v10060_v60  ;;  %v10240_v52 = vld [vmem:[#allocation11 + $0x64] ss:$16 sps:$4 sm:$0xff]  }
 0x708   :  { %5484 = vmatprep.subr.bf16.mxu0 %v10063_v5  ;;  %v10133_v60 = vld [vmem:[#allocation8 + $0x280] ss:$24 sps:$4 sm:$0xff]   ;;  %v10138_v5 = vld [vmem:[#allocation8 + $0x2b4] ss:$24 sps:$4 sm:$0xff]  }
 0x70a   :  { %5362 = vmatpush1.bf16.msra.mxu1 %v10058_v4  ;;  %v10244_v4 = vld [vmem:[#allocation11 + $0x80] ss:$16 sps:$4 sm:$0xff]  }
 0x70b   :  { %5485 = vmatpush1.bf16.msra.mxu0 %v10061_v9  ;;  %5363 = vmatprep.subr.bf16.mxu1 %v10066_v1  ;;  %v10246_v9 = vld [vmem:[#allocation11 + $0x84] ss:$16 sps:$4 sm:$0xff]  }
 0x70c   :  { %5486 = vmatprep.subr.bf16.mxu0 %v10069_v26  ;;  %v10136_v1 = vld [vmem:[#allocation8 + $0x2b0] ss:$24 sps:$4 sm:$0xff]   ;;  %v10141_v26 = vld [vmem:[#allocation8 + $0x2e4] ss:$24 sps:$4 sm:$0xff]  }
 0x70e   :  { %5364 = vmatpush1.bf16.msra.mxu1 %v10064_v31  ;;  %v10250_v31 = vld [vmem:[#allocation11 + $0xa0] ss:$16 sps:$4 sm:$0xff]  }
 0x70f   :  { %5487 = vmatpush1.bf16.msra.mxu0 %v10067_v14  ;;  %5365 = vmatprep.subr.bf16.mxu1 %v10072_v20  ;;  %v10252_v14 = vld [vmem:[#allocation11 + $0xa4] ss:$16 sps:$4 sm:$0xff]  }
 0x710   :  { %5488 = vmatprep.subr.bf16.mxu0 %v10075_v7  ;;  %v10139_v20 = vld [vmem:[#allocation8 + $0x2e0] ss:$24 sps:$4 sm:$0xff]   ;;  %v10144_v7 = vld [vmem:[#allocation8 + $0x314] ss:$24 sps:$4 sm:$0xff]  }
 0x712   :  { %5366 = vmatpush1.bf16.msra.mxu1 %v10070_v21  ;;  %v10256_v21 = vld [vmem:[#allocation11 + $0xc0] ss:$16 sps:$4 sm:$0xff]  }
 0x713   :  { %5489 = vmatpush1.bf16.msra.mxu0 %v10073_v27  ;;  %5367 = vmatprep.subr.bf16.mxu1 %v10078_v24  ;;  %v10258_v27 = vld [vmem:[#allocation11 + $0xc4] ss:$16 sps:$4 sm:$0xff]  }
 0x714   :  { %5490 = vmatprep.subr.bf16.mxu0 %v10081_v46  ;;  %v10142_v24 = vld [vmem:[#allocation8 + $0x310] ss:$24 sps:$4 sm:$0xff]   ;;  %v10147_v46 = vld [vmem:[#allocation8 + $0x344] ss:$24 sps:$4 sm:$0xff]  }
 0x716   :  { %5368 = vmatpush1.bf16.msra.mxu1 %v10076_v32  ;;  %v10261_v32 = vld [vmem:[#allocation11 + $0xe4] ss:$16 sps:$4 sm:$0xff]  }
 0x717   :  { %5491 = vmatpush1.bf16.msra.mxu0 %v10079_v16  ;;  %5369 = vmatprep.subr.bf16.mxu1 %v10084_v11  ;;  %v10259_v16 = vld [vmem:[#allocation11 + $0xe0] ss:$16 sps:$4 sm:$0xff]  }
 0x718   :  { %5492 = vmatprep.subr.bf16.mxu0 %v10087_v38  ;;  %v10145_v11 = vld [vmem:[#allocation8 + $0x340] ss:$24 sps:$4 sm:$0xff]  }
 0x719   :  { %v10267_v38 = vld [vmem:[#allocation11 + $0x104] ss:$16 sps:$4 sm:$0xff]  }
 0x71a   :  { %5370 = vmatpush1.bf16.msra.mxu1 %v10082_v54  ;;  %v10150_v54 = vld [vmem:[#allocation8 + $0x374] ss:$24 sps:$4 sm:$0xff]  }
 0x71b   :  { %5493 = vmatpush1.bf16.msra.mxu0 %v10085_v63  ;;  %5371 = vmatprep.subr.bf16.mxu1 %v10090_v0  ;;  %v10265_v63 = vld [vmem:[#allocation11 + $0x100] ss:$16 sps:$4 sm:$0xff]  }
 0x71c   :  { %5494 = vmatprep.subr.bf16.mxu0 %v10093_v37  ;;  %v10148_v0 = vld [vmem:[#allocation8 + $0x370] ss:$24 sps:$4 sm:$0xff]  }
 0x71d   :  { %v10273_v37 = vld [vmem:[#allocation11 + $0x124] ss:$16 sps:$4 sm:$0xff]  }
 0x71e   :  { %5372 = vmatpush1.bf16.msra.mxu1 %v10088_v12  ;;  %v10153_v12 = vld [vmem:[#allocation8 + $0x3a4] ss:$24 sps:$4 sm:$0xff]  }
 0x71f   :  { %5495 = vmatpush1.bf16.msra.mxu0 %v10091_v50  ;;  %5505 = vmatprep.subr.bf16.mxu1 %v10096_v2  ;;  %v10271_v50 = vld [vmem:[#allocation11 + $0x120] ss:$16 sps:$4 sm:$0xff]   ;;  %v10279_v2 = vld [vmem:[#allocation11 + $0x144] ss:$16 sps:$4 sm:$0xff]  }
 0x720   :  { %7990 = vmatprep.subr.bf16.mxu0 %v10222_v17  ;;  %v10169_v17 = vld [vmem:[#allocation8 + $0x4c0] ss:$24 sps:$4 sm:$0xff]  }
 0x721   :  { %5374 = vmatmul.mubr.bf16.vlgmr.msra.gmra.mrb[0].mxu1 %v13536_v13 }
 0x722   :  { %5497 = vmatmul.mubr.bf16.vlgmr.msra.gmra.mrb[8].mxu0 %v13536_v13  ;;  %5506 = vmatpush1.bf16.msra.mxu1 %v10094_v25  ;;  %v10277_v25 = vld [vmem:[#allocation11 + $0x140] ss:$16 sps:$4 sm:$0xff]  }
 0x723   :  { %5537 = vmatprep.mubr.bf16.mxu1 %v13508_v33  ;;  %5507 = vmatprep.subr.bf16.mxu1 %v10099_v23  ;;  %v10112_v33 = vld [vmem:[#allocation8 + $0x130] ss:$24 sps:$4 sm:$0xff]  }
 0x724   :  { %7991 = vmatpush1.bf16.msra.mxu0 %v10220_v53  ;;  %v10154_v23 = vld [vmem:[#allocation8 + $0x3d0] ss:$24 sps:$4 sm:$0xff]  }
 0x725   :  { %7992 = vmatprep.subr.bf16.mxu0 %v10228_v39  ;;  %v10307_v53 = vld [vmem:[#allocation11 + $0x1e0] ss:$16 sps:$4 sm:$0xff]  }
 0x726   :  { %5508 = vmatpush1.bf16.msra.mxu1 %v10097_v18  ;;  %v10285_v18 = vld [vmem:[#allocation11 + $0x164] ss:$16 sps:$4 sm:$0xff]  }
 0x727   :  { %5509 = vmatprep.subr.bf16.mxu1 %v10102_v3  ;;  %v10159_v3 = vld [vmem:[#allocation8 + $0x404] ss:$24 sps:$4 sm:$0xff]  }
 0x728   :  { %7993 = vmatpush1.bf16.msra.mxu0 %v10226_v36  ;;  %v10172_v36 = vld [vmem:[#allocation8 + $0x4f0] ss:$24 sps:$4 sm:$0xff]   ;;  %v10177_v39 = vld [vmem:[#allocation8 + $0x524] ss:$24 sps:$4 sm:$0xff]  }
 0x729   :  { %7994 = vmatprep.subr.bf16.mxu0 %v10234_v47  ;;  %v10183_v47 = vld [vmem:[#allocation8 + $0x584] ss:$24 sps:$4 sm:$0xff]  }
 0x72a   :  { %5510 = vmatpush1.bf16.msra.mxu1 %v10100_v19  ;;  %v10283_v19 = vld [vmem:[#allocation11 + $0x160] ss:$16 sps:$4 sm:$0xff]  }
 0x72b   :  { %5511 = vmatprep.subr.bf16.mxu1 %v10105_v48  ;;  %v10157_v48 = vld [vmem:[#allocation8 + $0x400] ss:$24 sps:$4 sm:$0xff]  }
 0x72c   :  { %7995 = vmatpush1.bf16.msra.mxu0 %v10232_v30  ;;  %v10178_v30 = vld [vmem:[#allocation8 + $0x550] ss:$24 sps:$4 sm:$0xff]  }
 0x72d   :  { %7996 = vmatprep.subr.bf16.mxu0 %v10240_v52  ;;  %v10189_v52 = vld [vmem:[#allocation8 + $0x5e4] ss:$24 sps:$4 sm:$0xff]  }
 0x72e   :  { %5512 = vmatpush1.bf16.msra.mxu1 %v10103_v49  ;;  %v10162_v49 = vld [vmem:[#allocation8 + $0x434] ss:$24 sps:$4 sm:$0xff]  }
 0x72f   :  { %5513 = vmatprep.subr.bf16.mxu1 %v10108_v55  ;;  %v10291_v55 = vld [vmem:[#allocation11 + $0x184] ss:$16 sps:$4 sm:$0xff]  }
 0x730   :  { %7997 = vmatpush1.bf16.msra.mxu0 %v10238_v42  ;;  %v10184_v42 = vld [vmem:[#allocation8 + $0x5b0] ss:$24 sps:$4 sm:$0xff]  }
 0x731   :  { %7998 = vmatprep.subr.bf16.mxu0 %v10246_v9  ;;  %v10195_v9 = vld [vmem:[#allocation8 + $0x644] ss:$24 sps:$4 sm:$0xff]  }
 0x732   :  { %5514 = vmatpush1.bf16.msra.mxu1 %v10106_v34  ;;  %v10160_v34 = vld [vmem:[#allocation8 + $0x430] ss:$24 sps:$4 sm:$0xff]  }
 0x733   :  { %5515 = vmatprep.subr.bf16.mxu1 %v10111_v57  ;;  %v10289_v57 = vld [vmem:[#allocation11 + $0x180] ss:$16 sps:$4 sm:$0xff]  }
 0x734   :  { %7999 = vmatpush1.bf16.msra.mxu0 %v10244_v4  ;;  %v10190_v4 = vld [vmem:[#allocation8 + $0x610] ss:$24 sps:$4 sm:$0xff]  }
 0x735   :  { %8000 = vmatprep.subr.bf16.mxu0 %v10252_v14  ;;  %v10201_v14 = vld [vmem:[#allocation8 + $0x6a4] ss:$24 sps:$4 sm:$0xff]  }
 0x736   :  { %5516 = vmatpush1.bf16.msra.mxu1 %v10109_v28  ;;  %v10165_v28 = vld [vmem:[#allocation8 + $0x464] ss:$24 sps:$4 sm:$0xff]  }
 0x737   :  { %5517 = vmatprep.subr.bf16.mxu1 %v10114_v61  ;;  %v10297_v61 = vld [vmem:[#allocation11 + $0x1a4] ss:$16 sps:$4 sm:$0xff]  }
 0x738   :  { %8001 = vmatpush1.bf16.msra.mxu0 %v10250_v31  ;;  %v10196_v31 = vld [vmem:[#allocation8 + $0x670] ss:$24 sps:$4 sm:$0xff]  }
 0x739   :  { %8002 = vmatprep.subr.bf16.mxu0 %v10258_v27  ;;  %v10207_v27 = vld [vmem:[#allocation8 + $0x704] ss:$24 sps:$4 sm:$0xff]  }
 0x73a   :  { %5518 = vmatpush1.bf16.msra.mxu1 %v10112_v33  ;;  %v10163_v33 = vld [vmem:[#allocation8 + $0x460] ss:$24 sps:$4 sm:$0xff]  }
 0x73b   :  { %5519 = vmatprep.subr.bf16.mxu1 %v10117_v45  ;;  %v10295_v45 = vld [vmem:[#allocation11 + $0x1a0] ss:$16 sps:$4 sm:$0xff]  }
 0x73c   :  { %8003 = vmatpush1.bf16.msra.mxu0 %v10256_v21  ;;  %v10202_v21 = vld [vmem:[#allocation8 + $0x6d0] ss:$24 sps:$4 sm:$0xff]  }
 0x73d   :  { %8004 = vmatprep.subr.bf16.mxu0 %v10261_v32  ;;  %v10211_v32 = vld [vmem:[#allocation8 + $0x760] ss:$24 sps:$4 sm:$0xff]  }
 0x73e   :  { %5520 = vmatpush1.bf16.msra.mxu1 %v10115_v43  ;;  %v10168_v43 = vld [vmem:[#allocation8 + $0x494] ss:$24 sps:$4 sm:$0xff]  }
 0x73f   :  { %5521 = vmatprep.subr.bf16.mxu1 %v10120_v22  ;;  %v10303_v22 = vld [vmem:[#allocation11 + $0x1c4] ss:$16 sps:$4 sm:$0xff]  }
 0x740   :  { %8005 = vmatpush1.bf16.msra.mxu0 %v10259_v16  ;;  %v10216_v16 = vld [vmem:[#allocation8 + $0x794] ss:$24 sps:$4 sm:$0xff]  }
 0x741   :  { %8006 = vmatprep.subr.bf16.mxu0 %v10267_v38  ;;  %v10219_v38 = vld [vmem:[#allocation8 + $0x7c4] ss:$24 sps:$4 sm:$0xff]  }
 0x742   :  { %5522 = vmatpush1.bf16.msra.mxu1 %v10118_v62  ;;  %v10301_v62 = vld [vmem:[#allocation11 + $0x1c0] ss:$16 sps:$4 sm:$0xff]  }
 0x743   :  { %5523 = vmatprep.subr.bf16.mxu1 %v10123_v8  ;;  %v10166_v8 = vld [vmem:[#allocation8 + $0x490] ss:$24 sps:$4 sm:$0xff]  }
 0x744   :  { %8007 = vmatpush1.bf16.msra.mxu0 %v10265_v63  ;;  %v10225_v63 = vld [vmem:[#allocation8 + $0x7f4] ss:$24 sps:$4 sm:$0xff]  }
 0x745   :  { %8008 = vmatprep.subr.bf16.mxu0 %v10273_v37  ;;  %v10231_v37 = vld [vmem:[#allocation8 + $0x824] ss:$24 sps:$4 sm:$0xff]  }
 0x746   :  { %5524 = vmatpush1.bf16.msra.mxu1 %v10121_v40  ;;  %v10309_v40 = vld [vmem:[#allocation11 + $0x1e4] ss:$16 sps:$4 sm:$0xff]  }
 0x747   :  { %5525 = vmatprep.subr.bf16.mxu1 %v10126_v15  ;;  %v10171_v15 = vld [vmem:[#allocation8 + $0x4c4] ss:$24 sps:$4 sm:$0xff]  }
 0x748   :  { %8009 = vmatpush1.bf16.msra.mxu0 %v10271_v50  ;;  %v10237_v50 = vld [vmem:[#allocation8 + $0x854] ss:$24 sps:$4 sm:$0xff]  }
 0x749   :  { %8010 = vmatprep.subr.bf16.mxu0 %v10279_v2  ;;  %v10243_v2 = vld [vmem:[#allocation8 + $0x884] ss:$24 sps:$4 sm:$0xff]  }
 0x74a   :  { %5526 = vmatpush1.bf16.msra.mxu1 %v10124_v56  ;;  %v10174_v56 = vld [vmem:[#allocation8 + $0x4f4] ss:$24 sps:$4 sm:$0xff]  }
 0x74b   :  { %5527 = vmatprep.subr.bf16.mxu1 %v10129_v35  ;;  %v10315_v35 = vld [vmem:[#allocation11 + $0x204] ss:$16 sps:$4 sm:$0xff]  }
 0x74c   :  { %8011 = vmatpush1.bf16.msra.mxu0 %v10277_v25  ;;  %v10249_v25 = vld [vmem:[#allocation8 + $0x8b4] ss:$24 sps:$4 sm:$0xff]  }
 0x74d   :  { %8012 = vmatprep.subr.bf16.mxu0 %v10285_v18  ;;  %v10255_v18 = vld [vmem:[#allocation8 + $0x8e4] ss:$24 sps:$4 sm:$0xff]  }
 0x74e   :  { %5528 = vmatpush1.bf16.msra.mxu1 %v10127_v41  ;;  %v10175_v41 = vld [vmem:[#allocation8 + $0x520] ss:$24 sps:$4 sm:$0xff]  }
 0x74f   :  { %5529 = vmatprep.subr.bf16.mxu1 %v10132_v59  ;;  %v10180_v59 = vld [vmem:[#allocation8 + $0x554] ss:$24 sps:$4 sm:$0xff]  }
 0x750   :  { %8013 = vmatpush1.bf16.msra.mxu0 %v10283_v19  ;;  %v10264_v19 = vld [vmem:[#allocation11 + $0xc] ss:$16 sps:$4 sm:$0xff]  }
 0x751   :  { %8014 = vmatprep.subr.bf16.mxu0 %v10291_v55  ;;  %v10268_v55 = vld [vmem:[#allocation11 + $0x28] ss:$16 sps:$4 sm:$0xff]  }
 0x752   :  { %5530 = vmatpush1.bf16.msra.mxu1 %v10130_v58  ;;  %v10181_v58 = vld [vmem:[#allocation8 + $0x580] ss:$24 sps:$4 sm:$0xff]  }
 0x753   :  { %5531 = vmatprep.subr.bf16.mxu1 %v10135_v51  ;;  %v10186_v51 = vld [vmem:[#allocation8 + $0x5b4] ss:$24 sps:$4 sm:$0xff]  }
 0x754   :  { %8015 = vmatpush1.bf16.msra.mxu0 %v10289_v57  ;;  %v10274_v57 = vld [vmem:[#allocation11 + $0x48] ss:$16 sps:$4 sm:$0xff]  }
 0x755   :  { %8016 = vmatprep.subr.bf16.mxu0 %v10297_v61  ;;  %v10280_v61 = vld [vmem:[#allocation11 + $0x68] ss:$16 sps:$4 sm:$0xff]  }
 0x756   :  { %5532 = vmatpush1.bf16.msra.mxu1 %v10133_v60  ;;  %v10187_v60 = vld [vmem:[#allocation8 + $0x5e0] ss:$24 sps:$4 sm:$0xff]  }
 0x757   :  { %5533 = vmatprep.subr.bf16.mxu1 %v10138_v5  ;;  %v10192_v5 = vld [vmem:[#allocation8 + $0x614] ss:$24 sps:$4 sm:$0xff]  }
 0x758   :  { %8017 = vmatpush1.bf16.msra.mxu0 %v10295_v45  ;;  %v10286_v45 = vld [vmem:[#allocation11 + $0x88] ss:$16 sps:$4 sm:$0xff]  }
 0x759   :  { %8018 = vmatprep.subr.bf16.mxu0 %v10303_v22  ;;  %v14300_v22 = vld [vmem:[#allocation24_spill] sm:$0xff] }
 0x75a   :  { %5534 = vmatpush1.bf16.msra.mxu1 %v10136_v1  ;;  %v10193_v1 = vld [vmem:[#allocation8 + $0x640] ss:$24 sps:$4 sm:$0xff]  }
 0x75b   :  { %5535 = vmatprep.subr.bf16.mxu1 %v10141_v26  ;;  %v10198_v26 = vld [vmem:[#allocation8 + $0x674] ss:$24 sps:$4 sm:$0xff]  }
 0x75c   :  { %8019 = vmatpush1.bf16.msra.mxu0 %v10301_v62  ;;  %v3803_v62 = vsub.s32 3, %v14300_v22 }
 0x75d   :  { %8020 = vmatprep.subr.bf16.mxu0 %v10309_v40 }
 0x75e   :  { %5536 = vmatpush1.bf16.msra.mxu1 %v10139_v20  ;;  %v10199_v20 = vld [vmem:[#allocation8 + $0x6a0] ss:$24 sps:$4 sm:$0xff]  }
 0x75f   :  { %5546 = vmatprep.subr.bf16.mxu1 %v10144_v7  ;;  %v10204_v7 = vld [vmem:[#allocation8 + $0x6d4] ss:$24 sps:$4 sm:$0xff]  }
 0x760   :  { %8021 = vmatpush1.bf16.msra.mxu0 %v10307_v53 }
 0x761   :  { %5538 = vmatmul.mubr.bf16.vlgmr.msra.gmra.mrb[4].mxu1 %v13510_v6  ;;  %v10151_v6 = vld [vmem:[#allocation8 + $0x3a0] ss:$24 sps:$4 sm:$0xff]   ;;  %8031 = vmatprep.subr.bf16.mxu0 %v10315_v35 }
 0x762   :  { %5547 = vmatpush1.bf16.msra.mxu1 %v10142_v24  ;;  %5578 = vmatprep.mubr.bf16.mxu1 %v13518_v29  ;;  %v10156_v29 = vld [vmem:[#allocation8 + $0x3d4] ss:$24 sps:$4 sm:$0xff]  }
 0x763   :  { %5548 = vmatprep.subr.bf16.mxu1 %v10147_v46  ;;  %v10210_v24 = vld [vmem:[#allocation8 + $0x734] ss:$24 sps:$4 sm:$0xff]   ;;  %v10213_v46 = vld [vmem:[#allocation8 + $0x764] ss:$24 sps:$4 sm:$0xff]  }
 0x764   :  { %v10300_v35 = vld [vmem:[#allocation11 + $0xcc] ss:$16 sps:$4 sm:$0xff]  }
 0x766   :  { %5549 = vmatpush1.bf16.msra.mxu1 %v10145_v11  ;;  %v10214_v11 = vld [vmem:[#allocation8 + $0x790] ss:$24 sps:$4 sm:$0xff]  }
 0x767   :  { %5550 = vmatprep.subr.bf16.mxu1 %v10150_v54  ;;  %v10217_v54 = vld [vmem:[#allocation8 + $0x7c0] ss:$24 sps:$4 sm:$0xff]  }
 0x76a   :  { %5551 = vmatpush1.bf16.msra.mxu1 %v10148_v0  ;;  %v10223_v0 = vld [vmem:[#allocation8 + $0x7f0] ss:$24 sps:$4 sm:$0xff]  }
 0x76b   :  { %5552 = vmatprep.subr.bf16.mxu1 %v10153_v12  ;;  %v10229_v12 = vld [vmem:[#allocation8 + $0x820] ss:$24 sps:$4 sm:$0xff]  }
 0x76e   :  { %5553 = vmatpush1.bf16.msra.mxu1 %v10151_v6  ;;  %v10235_v6 = vld [vmem:[#allocation8 + $0x850] ss:$24 sps:$4 sm:$0xff]  }
 0x76f   :  { %5554 = vmatprep.subr.bf16.mxu1 %v10156_v29  ;;  %v10241_v29 = vld [vmem:[#allocation8 + $0x880] ss:$24 sps:$4 sm:$0xff]  }
 0x772   :  { %5555 = vmatpush1.bf16.msra.mxu1 %v10154_v23  ;;  %v10247_v23 = vld [vmem:[#allocation8 + $0x8b0] ss:$24 sps:$4 sm:$0xff]  }
 0x773   :  { %5556 = vmatprep.subr.bf16.mxu1 %v10159_v3  ;;  %v10253_v3 = vld [vmem:[#allocation8 + $0x8e0] ss:$24 sps:$4 sm:$0xff]  }
 0x776   :  { %5557 = vmatpush1.bf16.msra.mxu1 %v10157_v48  ;;  %v10262_v48 = vld [vmem:[#allocation11 + $0x8] ss:$16 sps:$4 sm:$0xff]  }
 0x777   :  { %5558 = vmatprep.subr.bf16.mxu1 %v10162_v49  ;;  %v10270_v49 = vld [vmem:[#allocation11 + $0x2c] ss:$16 sps:$4 sm:$0xff]  }
 0x77a   :  { %5559 = vmatpush1.bf16.msra.mxu1 %v10160_v34  ;;  %v10276_v34 = vld [vmem:[#allocation11 + $0x4c] ss:$16 sps:$4 sm:$0xff]  }
 0x77b   :  { %5560 = vmatprep.subr.bf16.mxu1 %v10165_v28  ;;  %v10282_v28 = vld [vmem:[#allocation11 + $0x6c] ss:$16 sps:$4 sm:$0xff]  }
 0x77e   :  { %5561 = vmatpush1.bf16.msra.mxu1 %v10163_v33  ;;  %v10288_v33 = vld [vmem:[#allocation11 + $0x8c] ss:$16 sps:$4 sm:$0xff]  }
 0x77f   :  { %5562 = vmatprep.subr.bf16.mxu1 %v10168_v43  ;;  %v13546_v43 = vld [vmem:[#allocation10] sm:$0x3f] }
 0x782   :  { %5563 = vmatpush1.bf16.msra.mxu1 %v10166_v8  ;;  %v14301_v8 = vld [vmem:[#allocation25_spill] sm:$0xff] }
 0x783   :  { %5564 = vmatprep.subr.bf16.mxu1 %v10171_v15  ;;  %v3792_v40 = vrot.slane %v13546_v43, %v14301_v8  ;;  %v14302_v15 = vld [vmem:[#allocation26_spill] sm:$0xff] }
 0x784   :  { %v3796_v53 = vrot.slane %v13546_v43, %v14302_v15 }
 0x786   :  { %5565 = vmatpush1.bf16.msra.mxu1 %v10169_v17  ;;  %v10292_v17 = vld [vmem:[#allocation11 + $0xa8] ss:$16 sps:$4 sm:$0xff]  }
 0x787   :  { %5566 = vmatprep.subr.bf16.mxu1 %v10174_v56  ;;  %v3804_v56 = vrot.slane %v13546_v43, %v3803_v62 }
 0x78a   :  { %5567 = vmatpush1.bf16.msra.mxu1 %v10172_v36 }
 0x78b   :  { %5568 = vmatprep.subr.bf16.mxu1 %v10177_v39 }
 0x78e   :  { %5569 = vmatpush1.bf16.msra.mxu1 %v10175_v41 }
 0x78f   :  { %5570 = vmatprep.subr.bf16.mxu1 %v10180_v59 }
 0x792   :  { %5571 = vmatpush1.bf16.msra.mxu1 %v10178_v30 }
 0x793   :  { %5572 = vmatprep.subr.bf16.mxu1 %v10183_v47 }
 0x796   :  { %5573 = vmatpush1.bf16.msra.mxu1 %v10181_v58 }
 0x797   :  { %5574 = vmatprep.subr.bf16.mxu1 %v10186_v51  ;;  %v10298_v51 = vld [vmem:[#allocation11 + $0xc8] ss:$16 sps:$4 sm:$0xff]  }
 0x79a   :  { %5575 = vmatpush1.bf16.msra.mxu1 %v10184_v42 }
 0x79b   :  { %5576 = vmatprep.subr.bf16.mxu1 %v10189_v52 }
 0x79e   :  { %5577 = vmatpush1.bf16.msra.mxu1 %v10187_v60 }
 0x79f   :  { %5587 = vmatprep.subr.bf16.mxu1 %v10192_v5  ;;  %v10306_v5 = vld [vmem:[#allocation11 + $0xec] ss:$16 sps:$4 sm:$0xff]  }
 0x7a1   :  { %5579 = vmatmul.mubr.bf16.vlgmr.msra.gmra.mrb[4].mxu1 %v13526_v10  ;;  %v10205_v10 = vld [vmem:[#allocation8 + $0x700] ss:$24 sps:$4 sm:$0xff]  }
 0x7a2   :  { %5588 = vmatpush1.bf16.msra.mxu1 %v10190_v4  ;;  %5619 = vmatprep.mubr.bf16.mxu1 %v13528_v44  ;;  %v10208_v44 = vld [vmem:[#allocation8 + $0x730] ss:$24 sps:$4 sm:$0xff]  }
 0x7a3   :  { %5589 = vmatprep.subr.bf16.mxu1 %v10195_v9  ;;  %v10304_v9 = vld [vmem:[#allocation11 + $0xe8] ss:$16 sps:$4 sm:$0xff]  }
 0x7a6   :  { %5590 = vmatpush1.bf16.msra.mxu1 %v10193_v1  ;;  %v10312_v1 = vld [vmem:[#allocation11 + $0x10c] ss:$16 sps:$4 sm:$0xff]  }
 0x7a7   :  { %5591 = vmatprep.subr.bf16.mxu1 %v10198_v26  ;;  %v10310_v26 = vld [vmem:[#allocation11 + $0x108] ss:$16 sps:$4 sm:$0xff]  }
 0x7aa   :  { %5592 = vmatpush1.bf16.msra.mxu1 %v10196_v31  ;;  %v10318_v31 = vld [vmem:[#allocation11 + $0x12c] ss:$16 sps:$4 sm:$0xff]  }
 0x7ab   :  { %5593 = vmatprep.subr.bf16.mxu1 %v10201_v14 }
 0x7ae   :  { %5594 = vmatpush1.bf16.msra.mxu1 %v10199_v20 }
 0x7af   :  { %5595 = vmatprep.subr.bf16.mxu1 %v10204_v7  ;;  %v10316_v7 = vld [vmem:[#allocation11 + $0x128] ss:$16 sps:$4 sm:$0xff]  }
 0x7b2   :  { %5596 = vmatpush1.bf16.msra.mxu1 %v10202_v21 }
 0x7b3   :  { %5597 = vmatprep.subr.bf16.mxu1 %v10207_v27 }
 0x7b6   :  { %5598 = vmatpush1.bf16.msra.mxu1 %v10205_v10  ;;  %v10313_v10 = vld [vmem:[#allocation11 + $0x200] ss:$16 sps:$4 sm:$0xff]  }
 0x7b7   :  { %5599 = vmatprep.subr.bf16.mxu1 %v10210_v24 }
 0x7ba   :  { %5600 = vmatpush1.bf16.msra.mxu1 %v10208_v44  ;;  %v10321_v44 = vld [vmem:[#allocation11 + $0x224] ss:$16 sps:$4 sm:$0xff]  }
 0x7bb   :  { %5601 = vmatprep.subr.bf16.mxu1 %v10213_v46  ;;  %v10324_v46 = vld [vmem:[#allocation11 + $0x14c] ss:$16 sps:$4 sm:$0xff]  }
 0x7be   :  { %5602 = vmatpush1.bf16.msra.mxu1 %v10211_v32 }
 0x7bf   :  { %5603 = vmatprep.subr.bf16.mxu1 %v10216_v16  ;;  %v10322_v16 = vld [vmem:[#allocation11 + $0x148] ss:$16 sps:$4 sm:$0xff]  }
 0x7c2   :  { %5604 = vmatpush1.bf16.msra.mxu1 %v10214_v11  ;;  %v10319_v11 = vld [vmem:[#allocation11 + $0x220] ss:$16 sps:$4 sm:$0xff]  }
 0x7c3   :  { %5605 = vmatprep.subr.bf16.mxu1 %v10219_v38  ;;  %v10330_v38 = vld [vmem:[#allocation11 + $0x16c] ss:$16 sps:$4 sm:$0xff]  }
 0x7c6   :  { %5606 = vmatpush1.bf16.msra.mxu1 %v10217_v54  ;;  %v10327_v54 = vld [vmem:[#allocation11 + $0x244] ss:$16 sps:$4 sm:$0xff]  }
 0x7c7   :  { %5607 = vmatprep.subr.bf16.mxu1 %v10225_v63  ;;  %v10328_v63 = vld [vmem:[#allocation11 + $0x168] ss:$16 sps:$4 sm:$0xff]  }
 0x7ca   :  { %5608 = vmatpush1.bf16.msra.mxu1 %v10223_v0  ;;  %v10325_v0 = vld [vmem:[#allocation11 + $0x240] ss:$16 sps:$4 sm:$0xff]  }
 0x7cb   :  { %5609 = vmatprep.subr.bf16.mxu1 %v10231_v37  ;;  %v10336_v37 = vld [vmem:[#allocation11 + $0x18c] ss:$16 sps:$4 sm:$0xff]  }
 0x7ce   :  { %5610 = vmatpush1.bf16.msra.mxu1 %v10229_v12  ;;  %v10333_v12 = vld [vmem:[#allocation11 + $0x264] ss:$16 sps:$4 sm:$0xff]  }
 0x7cf   :  { %5611 = vmatprep.subr.bf16.mxu1 %v10237_v50  ;;  %v10334_v50 = vld [vmem:[#allocation11 + $0x188] ss:$16 sps:$4 sm:$0xff]  }
 0x7d2   :  { %5612 = vmatpush1.bf16.msra.mxu1 %v10235_v6  ;;  %v10331_v6 = vld [vmem:[#allocation11 + $0x260] ss:$16 sps:$4 sm:$0xff]  }
 0x7d3   :  { %5613 = vmatprep.subr.bf16.mxu1 %v10243_v2  ;;  %v10342_v2 = vld [vmem:[#allocation11 + $0x1ac] ss:$16 sps:$4 sm:$0xff]  }
 0x7d6   :  { %5614 = vmatpush1.bf16.msra.mxu1 %v10241_v29  ;;  %v10339_v29 = vld [vmem:[#allocation11 + $0x284] ss:$16 sps:$4 sm:$0xff]  }
 0x7d7   :  { %5615 = vmatprep.subr.bf16.mxu1 %v10249_v25  ;;  %v10340_v25 = vld [vmem:[#allocation11 + $0x1a8] ss:$16 sps:$4 sm:$0xff]  }
 0x7da   :  { %5616 = vmatpush1.bf16.msra.mxu1 %v10247_v23  ;;  %v10337_v23 = vld [vmem:[#allocation11 + $0x280] ss:$16 sps:$4 sm:$0xff]  }
 0x7db   :  { %5617 = vmatprep.subr.bf16.mxu1 %v10255_v18  ;;  %v10348_v18 = vld [vmem:[#allocation11 + $0x1cc] ss:$16 sps:$4 sm:$0xff]  }
 0x7de   :  { %5618 = vmatpush1.bf16.msra.mxu1 %v10253_v3  ;;  %v10345_v3 = vld [vmem:[#allocation11 + $0x2a4] ss:$16 sps:$4 sm:$0xff]  }
 0x7df   :  { %8236 = vmatprep.subr.bf16.mxu1 %v10264_v19  ;;  %v10346_v19 = vld [vmem:[#allocation11 + $0x1c8] ss:$16 sps:$4 sm:$0xff]  }
 0x7e1   :  { %5620 = vmatmul.mubr.bf16.vlgmr.msra.gmra.mrb[4].mxu1 %v13536_v13  ;;  %v10294_v13 = vld [vmem:[#allocation11 + $0xac] ss:$16 sps:$4 sm:$0xff]  }
 0x7e2   :  { %8237 = vmatpush1.bf16.msra.mxu1 %v10262_v48  ;;  %v10343_v48 = vld [vmem:[#allocation11 + $0x2a0] ss:$16 sps:$4 sm:$0xff]  }
 0x7e3   :  { %8238 = vmatprep.subr.bf16.mxu1 %v10270_v49  ;;  %v10354_v49 = vld [vmem:[#allocation11 + $0x1ec] ss:$16 sps:$4 sm:$0xff]  }
 0x7e6   :  { %8239 = vmatpush1.bf16.msra.mxu1 %v10268_v55  ;;  %v10351_v55 = vld [vmem:[#allocation11 + $0x2c4] ss:$16 sps:$4 sm:$0xff]  }
 0x7e7   :  { %8240 = vmatprep.subr.bf16.mxu1 %v10276_v34  ;;  %v10352_v34 = vld [vmem:[#allocation11 + $0x1e8] ss:$16 sps:$4 sm:$0xff]  }
 0x7ea   :  { %8241 = vmatpush1.bf16.msra.mxu1 %v10274_v57  ;;  %v10349_v57 = vld [vmem:[#allocation11 + $0x2c0] ss:$16 sps:$4 sm:$0xff]  }
 0x7eb   :  { %8242 = vmatprep.subr.bf16.mxu1 %v10282_v28  ;;  %v10360_v28 = vld [vmem:[#allocation11 + $0x20c] ss:$16 sps:$4 sm:$0xff]  }
 0x7ee   :  { %8243 = vmatpush1.bf16.msra.mxu1 %v10280_v61  ;;  %v10357_v61 = vld [vmem:[#allocation11 + $0x2e4] ss:$16 sps:$4 sm:$0xff]  }
 0x7ef   :  { %8244 = vmatprep.subr.bf16.mxu1 %v10288_v33  ;;  %v10358_v33 = vld [vmem:[#allocation11 + $0x208] ss:$16 sps:$4 sm:$0xff]  }
 0x7f2   :  { %8245 = vmatpush1.bf16.msra.mxu1 %v10286_v45  ;;  %v10355_v45 = vld [vmem:[#allocation11 + $0x2e0] ss:$16 sps:$4 sm:$0xff]  }
 0x7f3   :  { %8246 = vmatprep.subr.bf16.mxu1 %v10294_v13  ;;  %v10366_v13 = vld [vmem:[#allocation11 + $0x22c] ss:$16 sps:$4 sm:$0xff]  }
 0x7f4   :  { %v5375_v36 = vpop.f32.mrb[0].mxu1 }
 0x7f5   :  { %v9710_v39 = vadd.f32 %v5375_v36, %v3792_v40  ;;  %v13556_v41 = vpop.f32.mrb[8].mxu0  ;;  %v5377_v59 = vpop.f32.mrb[1].mxu1  ;;  %v10363_v40 = vld [vmem:[#allocation11 + $0x304] ss:$16 sps:$4 sm:$0xff]   ;;  %v10370_v36 = vld [vmem:[#allocation11 + $0x248] ss:$16 sps:$4 sm:$0xff]  }
 0x7f6   :  { %v9711_v30 = vadd.f32 %v5377_v59, %v3796_v53  ;;  %v5500_v47 = vpop.f32.mrb[9].mxu0  ;;  %v5379_v58 = vpop.f32.mrb[2].mxu1  ;;  %8247 = vmatpush1.bf16.msra.mxu1 %v10292_v17  ;;  %v10364_v53 = vld [vmem:[#allocation11 + $0x228] ss:$16 sps:$4 sm:$0xff]   ;;  %v10361_v17 = vld [vmem:[#allocation11 + $0x300] ss:$16 sps:$4 sm:$0xff]  }
 0x7f7   :  { %v9713_v42 = vadd.f32 %v5500_v47, %v3804_v56  ;;  %v5502_v52 = vpop.f32.mrb[10].mxu0  ;;  %v5380_v60 = vpop.f32.mrb[3].mxu1  ;;  %8248 = vmatprep.subr.bf16.mxu1 %v10300_v35  ;;  %10848 = vtanh.f32 %v9710_v39  ;;  %v10372_v56 = vld [vmem:[#allocation11 + $0x24c] ss:$16 sps:$4 sm:$0xff]   ;;  %v10369_v35 = vld [vmem:[#allocation11 + $0x324] ss:$16 sps:$4 sm:$0xff]  }
 0x7f8   :  { %v5503_v4 = vpop.f32.mrb[11].mxu0  ;;  %10850 = vtanh.f32 %v9711_v30  ;;  %v10367_v39 = vld [vmem:[#allocation11 + $0x320] ss:$16 sps:$4 sm:$0xff]   ;;  %v10378_v59 = vld [vmem:[#allocation11 + $0x26c] ss:$16 sps:$4 sm:$0xff]   ;;  %v3799_v58 = vsub.s32 2, %v14300_v22 }
 0x7f9   :  { %10852 = vtanh.f32 %v9713_v42  ;;  %v10375_v30 = vld [vmem:[#allocation11 + $0x344] ss:$16 sps:$4 sm:$0xff]   ;;  %v10376_v47 = vld [vmem:[#allocation11 + $0x268] ss:$16 sps:$4 sm:$0xff]   ;;  %v10384_v42 = vld [vmem:[#allocation11 + $0x28c] ss:$16 sps:$4 sm:$0xff]  }
 0x7fa   :  { %8249 = vmatpush1.bf16.msra.mxu1 %v10298_v51  ;;  %v10373_v51 = vld [vmem:[#allocation11 + $0x340] ss:$16 sps:$4 sm:$0xff]   ;;  %v10381_v52 = vld [vmem:[#allocation11 + $0x364] ss:$16 sps:$4 sm:$0xff]   ;;  %v10382_v60 = vld [vmem:[#allocation11 + $0x288] ss:$16 sps:$4 sm:$0xff]  }
 0x7fb   :  { %8250 = vmatprep.subr.bf16.mxu1 %v10306_v5  ;;  %v3800_v5 = vrot.slane %v13546_v43, %v3799_v58  ;;  %v10379_v4 = vld [vmem:[#allocation11 + $0x360] ss:$16 sps:$4 sm:$0xff]  }
 0x7fe   :  { %8251 = vmatpush1.bf16.msra.mxu1 %v10304_v9  ;;  %v10390_v9 = vld [vmem:[#allocation11 + $0x2ac] ss:$16 sps:$4 sm:$0xff]  }
 0x7ff   :  { %8252 = vmatprep.subr.bf16.mxu1 %v10312_v1  ;;  %v10387_v1 = vld [vmem:[#allocation11 + $0x384] ss:$16 sps:$4 sm:$0xff]  }
 0x801   :  { %v13558_v14 = vpop.eup %10848 }
 0x802   :  { %8253 = vmatpush1.bf16.msra.mxu1 %v10310_v26  ;;  %v13560_v20 = vpop.eup %10850  ;;  %v13568_v24 = vpack.c.bf16 %v13558_v14, %v13558_v14  ;;  %v10388_v26 = vld [vmem:[#allocation11 + $0x2a8] ss:$16 sps:$4 sm:$0xff]  }
 0x803   :  { %8254 = vmatprep.subr.bf16.mxu1 %v10318_v31  ;;  %v13562_v21 = vpop.eup %10852  ;;  %v5653_v27 = vpack.c.bf16 %v13560_v20, %v13560_v20  ;;  %v9712_v31 = vadd.f32 %v13556_v41, %v3800_v5  ;;  %v10408_v41 = vld [vmem:[#allocation11 + $0x30c] ss:$16 sps:$4 sm:$0xff]   ;;  %v10439_v5 = vld [vmem:[#allocation11 + $0x428] ss:$16 sps:$4 sm:$0xff]  }
 0x804   :  { %v5655_v32 = vpack.c.bf16 %v13562_v21, %v13562_v21 }
 0x805   :  { %8022 = vmatprep.mubr.bf16.mxu0 %v5653_v27  ;;  %8268 = vmatprep.mubr.bf16.mxu1 %v5653_v27  ;;  %v10396_v27 = vld [vmem:[#allocation11 + $0x2cc] ss:$16 sps:$4 sm:$0xff]   ;;  %10854 = vtanh.f32 %v9712_v31 }
 0x806   :  { %8023 = vmatmul.mubr.bf16.vlgmr.msra.gmra.mrb[12].mxu0 %v13568_v24  ;;  %8255 = vmatpush1.bf16.msra.mxu1 %v10316_v7  ;;  %v10385_v7 = vld [vmem:[#allocation11 + $0x380] ss:$16 sps:$4 sm:$0xff]   ;;  %v10453_v31 = vld [vmem:[#allocation11 + $0x46c] ss:$16 sps:$4 sm:$0xff]  }
 0x807   :  { %8032 = vmatpush1.bf16.msra.mxu0 %v10313_v10  ;;  %8063 = vmatprep.mubr.bf16.mxu0 %v5655_v32  ;;  %v10393_v10 = vld [vmem:[#allocation11 + $0x3a4] ss:$16 sps:$4 sm:$0xff]  }
 0x808   :  { %8033 = vmatprep.subr.bf16.mxu0 %v10321_v44  ;;  %8256 = vmatprep.subr.bf16.mxu1 %v10324_v46  ;;  %v10391_v44 = vld [vmem:[#allocation11 + $0x3a0] ss:$16 sps:$4 sm:$0xff]   ;;  %v10402_v46 = vld [vmem:[#allocation11 + $0x2ec] ss:$16 sps:$4 sm:$0xff]  }
 0x80a   :  { %8257 = vmatpush1.bf16.msra.mxu1 %v10322_v16  ;;  %v10400_v16 = vld [vmem:[#allocation11 + $0x2e8] ss:$16 sps:$4 sm:$0xff]  }
 0x80b   :  { %8034 = vmatpush1.bf16.msra.mxu0 %v10319_v11  ;;  %8258 = vmatprep.subr.bf16.mxu1 %v10330_v38  ;;  %v10397_v11 = vld [vmem:[#allocation11 + $0x3c0] ss:$16 sps:$4 sm:$0xff]   ;;  %v10405_v38 = vld [vmem:[#allocation11 + $0x3e4] ss:$16 sps:$4 sm:$0xff]  }
 0x80c   :  { %8035 = vmatprep.subr.bf16.mxu0 %v10327_v54  ;;  %v10406_v54 = vld [vmem:[#allocation11 + $0x308] ss:$16 sps:$4 sm:$0xff]  }
 0x80e   :  { %8259 = vmatpush1.bf16.msra.mxu1 %v10328_v63  ;;  %v10403_v63 = vld [vmem:[#allocation11 + $0x3e0] ss:$16 sps:$4 sm:$0xff]  }
 0x80f   :  { %8036 = vmatpush1.bf16.msra.mxu0 %v10325_v0  ;;  %8260 = vmatprep.subr.bf16.mxu1 %v10336_v37  ;;  %v10411_v0 = vld [vmem:[#allocation11 + $0x32c] ss:$16 sps:$4 sm:$0xff]   ;;  %v10432_v37 = vld [vmem:[#allocation11 + $0x404] ss:$16 sps:$4 sm:$0xff]  }
 0x810   :  { %8037 = vmatprep.subr.bf16.mxu0 %v10333_v12  ;;  %v13579_v12 = vpop.eup %10854 }
 0x812   :  { %8261 = vmatpush1.bf16.msra.mxu1 %v10334_v50  ;;  %v10409_v50 = vld [vmem:[#allocation11 + $0x328] ss:$16 sps:$4 sm:$0xff]  }
 0x813   :  { %8038 = vmatpush1.bf16.msra.mxu0 %v10331_v6  ;;  %8262 = vmatprep.subr.bf16.mxu1 %v10342_v2  ;;  %v10414_v6 = vld [vmem:[#allocation11 + $0x34c] ss:$16 sps:$4 sm:$0xff]   ;;  %v10430_v2 = vld [vmem:[#allocation11 + $0x400] ss:$16 sps:$4 sm:$0xff]  }
 0x814   :  { %8039 = vmatprep.subr.bf16.mxu0 %v10339_v29  ;;  %v5654_v29 = vpack.c.bf16 %v13579_v12, %v13579_v12 }
 0x816   :  { %8263 = vmatpush1.bf16.msra.mxu1 %v10340_v25  ;;  %v10438_v25 = vld [vmem:[#allocation11 + $0x424] ss:$16 sps:$4 sm:$0xff]  }
 0x817   :  { %8040 = vmatpush1.bf16.msra.mxu0 %v10337_v23  ;;  %8264 = vmatprep.subr.bf16.mxu1 %v10348_v18  ;;  %v10412_v23 = vld [vmem:[#allocation11 + $0x348] ss:$16 sps:$4 sm:$0xff]   ;;  %v10417_v18 = vld [vmem:[#allocation11 + $0x36c] ss:$16 sps:$4 sm:$0xff]  }
 0x818   :  { %8041 = vmatprep.subr.bf16.mxu0 %v10345_v3  ;;  %v10436_v3 = vld [vmem:[#allocation11 + $0x420] ss:$16 sps:$4 sm:$0xff]  }
 0x81a   :  { %8265 = vmatpush1.bf16.msra.mxu1 %v10346_v19  ;;  %v10444_v19 = vld [vmem:[#allocation11 + $0x444] ss:$16 sps:$4 sm:$0xff]  }
 0x81b   :  { %8042 = vmatpush1.bf16.msra.mxu0 %v10343_v48  ;;  %8266 = vmatprep.subr.bf16.mxu1 %v10354_v49  ;;  %v10415_v48 = vld [vmem:[#allocation11 + $0x368] ss:$16 sps:$4 sm:$0xff]   ;;  %v10420_v49 = vld [vmem:[#allocation11 + $0x38c] ss:$16 sps:$4 sm:$0xff]  }
 0x81c   :  { %8043 = vmatprep.subr.bf16.mxu0 %v10351_v55  ;;  %v10442_v55 = vld [vmem:[#allocation11 + $0x440] ss:$16 sps:$4 sm:$0xff]  }
 0x81e   :  { %8267 = vmatpush1.bf16.msra.mxu1 %v10352_v34  ;;  %v10450_v34 = vld [vmem:[#allocation11 + $0x464] ss:$16 sps:$4 sm:$0xff]  }
 0x81f   :  { %8044 = vmatpush1.bf16.msra.mxu0 %v10349_v57  ;;  %8277 = vmatprep.subr.bf16.mxu1 %v10360_v28  ;;  %v10418_v57 = vld [vmem:[#allocation11 + $0x388] ss:$16 sps:$4 sm:$0xff]   ;;  %v10423_v28 = vld [vmem:[#allocation11 + $0x3ac] ss:$16 sps:$4 sm:$0xff]  }
 0x820   :  { %8045 = vmatprep.subr.bf16.mxu0 %v10357_v61  ;;  %v10448_v61 = vld [vmem:[#allocation11 + $0x460] ss:$16 sps:$4 sm:$0xff]  }
 0x821   :  { %8269 = vmatmul.mubr.bf16.vlgmr.msra.gmra.mrb[8].mxu1 %v13568_v24  ;;  %v10394_v24 = vld [vmem:[#allocation11 + $0x2c8] ss:$16 sps:$4 sm:$0xff]  }
 0x822   :  { %8278 = vmatpush1.bf16.msra.mxu1 %v10358_v33  ;;  %8309 = vmatprep.mubr.bf16.mxu1 %v5655_v32  ;;  %v10399_v32 = vld [vmem:[#allocation11 + $0x3c4] ss:$16 sps:$4 sm:$0xff]  }
 0x823   :  { %8046 = vmatpush1.bf16.msra.mxu0 %v10355_v45  ;;  %8279 = vmatprep.subr.bf16.mxu1 %v10366_v13  ;;  %v10456_v33 = vld [vmem:[#allocation11 + $0x484] ss:$16 sps:$4 sm:$0xff]   ;;  %v10421_v45 = vld [vmem:[#allocation11 + $0x3a8] ss:$16 sps:$4 sm:$0xff]   ;;  %v10426_v13 = vld [vmem:[#allocation11 + $0x3cc] ss:$16 sps:$4 sm:$0xff]  }
 0x824   :  { %8047 = vmatprep.subr.bf16.mxu0 %v10363_v40  ;;  %v10454_v40 = vld [vmem:[#allocation11 + $0x480] ss:$16 sps:$4 sm:$0xff]  }
 0x826   :  { %8280 = vmatpush1.bf16.msra.mxu1 %v10364_v53  ;;  %v10462_v53 = vld [vmem:[#allocation11 + $0x4a4] ss:$16 sps:$4 sm:$0xff]  }
 0x827   :  { %8048 = vmatpush1.bf16.msra.mxu0 %v10361_v17  ;;  %8281 = vmatprep.subr.bf16.mxu1 %v10372_v56  ;;  %v10424_v17 = vld [vmem:[#allocation11 + $0x3c8] ss:$16 sps:$4 sm:$0xff]   ;;  %v10429_v56 = vld [vmem:[#allocation11 + $0x3ec] ss:$16 sps:$4 sm:$0xff]  }
 0x828   :  { %8049 = vmatprep.subr.bf16.mxu0 %v10369_v35  ;;  %v10460_v35 = vld [vmem:[#allocation11 + $0x4a0] ss:$16 sps:$4 sm:$0xff]  }
 0x82a   :  { %8282 = vmatpush1.bf16.msra.mxu1 %v10370_v36  ;;  %v10468_v36 = vld [vmem:[#allocation11 + $0x4c4] ss:$16 sps:$4 sm:$0xff]  }
 0x82b   :  { %8050 = vmatpush1.bf16.msra.mxu0 %v10367_v39  ;;  %8283 = vmatprep.subr.bf16.mxu1 %v10378_v59  ;;  %v10427_v39 = vld [vmem:[#allocation11 + $0x3e8] ss:$16 sps:$4 sm:$0xff]   ;;  %v10435_v59 = vld [vmem:[#allocation11 + $0x40c] ss:$16 sps:$4 sm:$0xff]  }
 0x82c   :  { %8051 = vmatprep.subr.bf16.mxu0 %v10375_v30  ;;  %v10466_v30 = vld [vmem:[#allocation11 + $0x4c0] ss:$16 sps:$4 sm:$0xff]  }
 0x82e   :  { %8284 = vmatpush1.bf16.msra.mxu1 %v10376_v47  ;;  %v10474_v47 = vld [vmem:[#allocation11 + $0x4e4] ss:$16 sps:$4 sm:$0xff]  }
 0x82f   :  { %8052 = vmatpush1.bf16.msra.mxu0 %v10373_v51  ;;  %8285 = vmatprep.subr.bf16.mxu1 %v10384_v42  ;;  %v10433_v51 = vld [vmem:[#allocation11 + $0x408] ss:$16 sps:$4 sm:$0xff]   ;;  %v10441_v42 = vld [vmem:[#allocation11 + $0x42c] ss:$16 sps:$4 sm:$0xff]  }
 0x830   :  { %8053 = vmatprep.subr.bf16.mxu0 %v10381_v52  ;;  %v10472_v52 = vld [vmem:[#allocation11 + $0x4e0] ss:$16 sps:$4 sm:$0xff]  }
 0x832   :  { %8286 = vmatpush1.bf16.msra.mxu1 %v10382_v60  ;;  %v10480_v60 = vld [vmem:[#allocation11 + $0x504] ss:$16 sps:$4 sm:$0xff]  }
 0x833   :  { %8054 = vmatpush1.bf16.msra.mxu0 %v10379_v4  ;;  %8287 = vmatprep.subr.bf16.mxu1 %v10390_v9  ;;  %v10447_v4 = vld [vmem:[#allocation11 + $0x44c] ss:$16 sps:$4 sm:$0xff]   ;;  %v10478_v9 = vld [vmem:[#allocation11 + $0x500] ss:$16 sps:$4 sm:$0xff]  }
 0x834   :  { %8055 = vmatprep.subr.bf16.mxu0 %v10387_v1  ;;  %v10486_v1 = vld [vmem:[#allocation11 + $0x524] ss:$16 sps:$4 sm:$0xff]  }
 0x836   :  { %8288 = vmatpush1.bf16.msra.mxu1 %v10388_v26  ;;  %v10445_v26 = vld [vmem:[#allocation11 + $0x448] ss:$16 sps:$4 sm:$0xff]  }
 0x837   :  { %8056 = vmatpush1.bf16.msra.mxu0 %v10385_v7  ;;  %8289 = vmatprep.subr.bf16.mxu1 %v10396_v27  ;;  %v10484_v7 = vld [vmem:[#allocation11 + $0x520] ss:$16 sps:$4 sm:$0xff]   ;;  %v10492_v27 = vld [vmem:[#allocation11 + $0x544] ss:$16 sps:$4 sm:$0xff]  }
 0x838   :  { %8057 = vmatprep.subr.bf16.mxu0 %v10393_v10  ;;  %v10451_v10 = vld [vmem:[#allocation11 + $0x468] ss:$16 sps:$4 sm:$0xff]  }
 0x83a   :  { %8290 = vmatpush1.bf16.msra.mxu1 %v10394_v24  ;;  %v10459_v24 = vld [vmem:[#allocation11 + $0x48c] ss:$16 sps:$4 sm:$0xff]  }
 0x83b   :  { %8058 = vmatpush1.bf16.msra.mxu0 %v10391_v44  ;;  %8291 = vmatprep.subr.bf16.mxu1 %v10402_v46  ;;  %v10490_v44 = vld [vmem:[#allocation11 + $0x540] ss:$16 sps:$4 sm:$0xff]   ;;  %v10498_v46 = vld [vmem:[#allocation11 + $0x564] ss:$16 sps:$4 sm:$0xff]  }
 0x83c   :  { %8059 = vmatprep.subr.bf16.mxu0 %v10399_v32  ;;  %v10457_v32 = vld [vmem:[#allocation11 + $0x488] ss:$16 sps:$4 sm:$0xff]  }
 0x83e   :  { %8292 = vmatpush1.bf16.msra.mxu1 %v10400_v16  ;;  %v10465_v16 = vld [vmem:[#allocation11 + $0x4ac] ss:$16 sps:$4 sm:$0xff]  }
 0x83f   :  { %8060 = vmatpush1.bf16.msra.mxu0 %v10397_v11  ;;  %8293 = vmatprep.subr.bf16.mxu1 %v10408_v41  ;;  %v10496_v11 = vld [vmem:[#allocation11 + $0x560] ss:$16 sps:$4 sm:$0xff]   ;;  %v10504_v41 = vld [vmem:[#allocation11 + $0x584] ss:$16 sps:$4 sm:$0xff]  }
 0x840   :  { %8061 = vmatprep.subr.bf16.mxu0 %v10405_v38  ;;  %v10463_v38 = vld [vmem:[#allocation11 + $0x4a8] ss:$16 sps:$4 sm:$0xff]  }
 0x842   :  { %8294 = vmatpush1.bf16.msra.mxu1 %v10406_v54  ;;  %v10471_v54 = vld [vmem:[#allocation11 + $0x4cc] ss:$16 sps:$4 sm:$0xff]  }
 0x843   :  { %8062 = vmatpush1.bf16.msra.mxu0 %v10403_v63  ;;  %8295 = vmatprep.subr.bf16.mxu1 %v10411_v0  ;;  %v10502_v63 = vld [vmem:[#allocation11 + $0x580] ss:$16 sps:$4 sm:$0xff]   ;;  %v10510_v0 = vld [vmem:[#allocation11 + $0x5a4] ss:$16 sps:$4 sm:$0xff]  }
 0x844   :  { %8072 = vmatprep.subr.bf16.mxu0 %v10432_v37  ;;  %v10469_v37 = vld [vmem:[#allocation11 + $0x4c8] ss:$16 sps:$4 sm:$0xff]  }
 0x846   :  { %8064 = vmatmul.mubr.bf16.vlgmr.msra.gmra.mrb[12].mxu0 %v5654_v29  ;;  %8296 = vmatpush1.bf16.msra.mxu1 %v10409_v50  ;;  %v10477_v50 = vld [vmem:[#allocation11 + $0x4ec] ss:$16 sps:$4 sm:$0xff]  }
 0x847   :  { %8297 = vmatprep.subr.bf16.mxu1 %v10414_v6  ;;  %8073 = vmatpush1.bf16.msra.mxu0 %v10430_v2  ;;  %v10508_v6 = vld [vmem:[#allocation11 + $0x5a0] ss:$16 sps:$4 sm:$0xff]   ;;  %v10516_v2 = vld [vmem:[#allocation11 + $0x5c4] ss:$16 sps:$4 sm:$0xff]  }
 0x848   :  { %8074 = vmatprep.subr.bf16.mxu0 %v10438_v25  ;;  %v10483_v25 = vld [vmem:[#allocation11 + $0x50c] ss:$16 sps:$4 sm:$0xff]  }
 0x84a   :  { %8298 = vmatpush1.bf16.msra.mxu1 %v10412_v23  ;;  %v10514_v23 = vld [vmem:[#allocation11 + $0x5c0] ss:$16 sps:$4 sm:$0xff]  }
 0x84b   :  { %8299 = vmatprep.subr.bf16.mxu1 %v10417_v18  ;;  %8075 = vmatpush1.bf16.msra.mxu0 %v10436_v3  ;;  %v10522_v18 = vld [vmem:[#allocation11 + $0x5e4] ss:$16 sps:$4 sm:$0xff]   ;;  %v10481_v3 = vld [vmem:[#allocation11 + $0x508] ss:$16 sps:$4 sm:$0xff]  }
 0x84c   :  { %8076 = vmatprep.subr.bf16.mxu0 %v10444_v19  ;;  %v10489_v19 = vld [vmem:[#allocation11 + $0x52c] ss:$16 sps:$4 sm:$0xff]  }
 0x84e   :  { %8300 = vmatpush1.bf16.msra.mxu1 %v10415_v48  ;;  %v10520_v48 = vld [vmem:[#allocation11 + $0x5e0] ss:$16 sps:$4 sm:$0xff]  }
 0x84f   :  { %8301 = vmatprep.subr.bf16.mxu1 %v10420_v49  ;;  %8077 = vmatpush1.bf16.msra.mxu0 %v10442_v55  ;;  %v10528_v49 = vld [vmem:[#allocation11 + $0x604] ss:$16 sps:$4 sm:$0xff]   ;;  %v10487_v55 = vld [vmem:[#allocation11 + $0x528] ss:$16 sps:$4 sm:$0xff]  }
 0x850   :  { %8078 = vmatprep.subr.bf16.mxu0 %v10450_v34  ;;  %v10495_v34 = vld [vmem:[#allocation11 + $0x54c] ss:$16 sps:$4 sm:$0xff]  }
 0x852   :  { %8302 = vmatpush1.bf16.msra.mxu1 %v10418_v57  ;;  %v10493_v57 = vld [vmem:[#allocation11 + $0x548] ss:$16 sps:$4 sm:$0xff]  }
 0x853   :  { %8303 = vmatprep.subr.bf16.mxu1 %v10423_v28  ;;  %8079 = vmatpush1.bf16.msra.mxu0 %v10448_v61  ;;  %v10501_v28 = vld [vmem:[#allocation11 + $0x56c] ss:$16 sps:$4 sm:$0xff]   ;;  %v10499_v61 = vld [vmem:[#allocation11 + $0x568] ss:$16 sps:$4 sm:$0xff]  }
 0x854   :  { %8080 = vmatprep.subr.bf16.mxu0 %v10456_v33  ;;  %v10507_v33 = vld [vmem:[#allocation11 + $0x58c] ss:$16 sps:$4 sm:$0xff]  }
 0x856   :  { %8304 = vmatpush1.bf16.msra.mxu1 %v10421_v45  ;;  %v10505_v45 = vld [vmem:[#allocation11 + $0x588] ss:$16 sps:$4 sm:$0xff]  }
 0x857   :  { %8305 = vmatprep.subr.bf16.mxu1 %v10426_v13  ;;  %8081 = vmatpush1.bf16.msra.mxu0 %v10454_v40  ;;  %v10513_v13 = vld [vmem:[#allocation11 + $0x5ac] ss:$16 sps:$4 sm:$0xff]   ;;  %v10511_v40 = vld [vmem:[#allocation11 + $0x5a8] ss:$16 sps:$4 sm:$0xff]  }
 0x858   :  { %8082 = vmatprep.subr.bf16.mxu0 %v10462_v53  ;;  %v10519_v53 = vld [vmem:[#allocation11 + $0x5cc] ss:$16 sps:$4 sm:$0xff]  }
 0x85a   :  { %8306 = vmatpush1.bf16.msra.mxu1 %v10424_v17  ;;  %v10517_v17 = vld [vmem:[#allocation11 + $0x5c8] ss:$16 sps:$4 sm:$0xff]  }
 0x85b   :  { %8307 = vmatprep.subr.bf16.mxu1 %v10429_v56  ;;  %8083 = vmatpush1.bf16.msra.mxu0 %v10460_v35  ;;  %v10525_v56 = vld [vmem:[#allocation11 + $0x5ec] ss:$16 sps:$4 sm:$0xff]   ;;  %v10523_v35 = vld [vmem:[#allocation11 + $0x5e8] ss:$16 sps:$4 sm:$0xff]  }
 0x85c   :  { %8084 = vmatprep.subr.bf16.mxu0 %v10468_v36  ;;  %v10531_v36 = vld [vmem:[#allocation11 + $0x60c] ss:$16 sps:$4 sm:$0xff]  }
 0x85e   :  { %8308 = vmatpush1.bf16.msra.mxu1 %v10427_v39  ;;  %v3807_v39 = vsub.s32 4, %v14300_v22 }
 0x85f   :  { %8318 = vmatprep.subr.bf16.mxu1 %v10435_v59  ;;  %8085 = vmatpush1.bf16.msra.mxu0 %v10466_v30  ;;  %v3811_v59 = vsub.s32 5, %v14300_v22 }
 0x860   :  { %8086 = vmatprep.subr.bf16.mxu0 %v10474_v47  ;;  %v3808_v30 = vrot.slane %v13546_v43, %v3807_v39  ;;  %v10586_v39 = vld [vmem:[#allocation11 + $0x740] ss:$16 sps:$4 sm:$0xff]  }
 0x861   :  { %8310 = vmatmul.mubr.bf16.vlgmr.msra.gmra.mrb[8].mxu1 %v5654_v29  ;;  %v10475_v29 = vld [vmem:[#allocation11 + $0x4e8] ss:$16 sps:$4 sm:$0xff]   ;;  %v3812_v47 = vrot.slane %v13546_v43, %v3811_v59 }
 0x862   :  { %8319 = vmatpush1.bf16.msra.mxu1 %v10433_v51  ;;  %v10589_v59 = vld [vmem:[#allocation11 + $0x748] ss:$16 sps:$4 sm:$0xff]  }
 0x863   :  { %8320 = vmatprep.subr.bf16.mxu1 %v10441_v42  ;;  %8087 = vmatpush1.bf16.msra.mxu0 %v10472_v52 }
 0x864   :  { %8088 = vmatprep.subr.bf16.mxu0 %v10480_v60 }
 0x866   :  { %8321 = vmatpush1.bf16.msra.mxu1 %v10439_v5 }
 0x867   :  { %8322 = vmatprep.subr.bf16.mxu1 %v10447_v4  ;;  %8089 = vmatpush1.bf16.msra.mxu0 %v10478_v9 }
 0x868   :  { %8090 = vmatprep.subr.bf16.mxu0 %v10486_v1 }
 0x86a   :  { %8323 = vmatpush1.bf16.msra.mxu1 %v10445_v26  ;;  %v5641_v26 = vrot.slane %v13560_v20, 2  ;;  %v10540_v20 = vld [vmem:[#allocation11 + $0x644] ss:$16 sps:$4 sm:$0xff]  }
 0x86b   :  { %8324 = vmatprep.subr.bf16.mxu1 %v10453_v31  ;;  %8091 = vmatpush1.bf16.msra.mxu0 %v10484_v7  ;;  %v10526_v7 = vld [vmem:[#allocation11 + $0x600] ss:$16 sps:$4 sm:$0xff]  }
 0x86c   :  { %8092 = vmatprep.subr.bf16.mxu0 %v10492_v27  ;;  %v10529_v27 = vld [vmem:[#allocation11 + $0x608] ss:$16 sps:$4 sm:$0xff]  }
 0x86e   :  { %8325 = vmatpush1.bf16.msra.mxu1 %v10451_v10  ;;  %v10534_v10 = vld [vmem:[#allocation11 + $0x624] ss:$16 sps:$4 sm:$0xff]  }
 0x86f   :  { %8326 = vmatprep.subr.bf16.mxu1 %v10459_v24  ;;  %8093 = vmatpush1.bf16.msra.mxu0 %v10490_v44  ;;  %v10537_v24 = vld [vmem:[#allocation11 + $0x62c] ss:$16 sps:$4 sm:$0xff]   ;;  %v5659_v44 = vpack.c.bf16 %v5641_v26, %v5641_v26  ;;  %v10606_v26 = vld [vmem:[#allocation11 + $0x7a4] ss:$16 sps:$4 sm:$0xff]  }
 0x870   :  { %8094 = vmatprep.subr.bf16.mxu0 %v10498_v46  ;;  %v10532_v46 = vld [vmem:[#allocation11 + $0x620] ss:$16 sps:$4 sm:$0xff]  }
 0x872   :  { %8327 = vmatpush1.bf16.msra.mxu1 %v10457_v32  ;;  %v10535_v32 = vld [vmem:[#allocation11 + $0x628] ss:$16 sps:$4 sm:$0xff]  }
 0x873   :  { %8328 = vmatprep.subr.bf16.mxu1 %v10465_v16  ;;  %8095 = vmatpush1.bf16.msra.mxu0 %v10496_v11  ;;  %v10543_v16 = vld [vmem:[#allocation11 + $0x64c] ss:$16 sps:$4 sm:$0xff]   ;;  %v10538_v11 = vld [vmem:[#allocation11 + $0x640] ss:$16 sps:$4 sm:$0xff]  }
 0x874   :  { %8096 = vmatprep.subr.bf16.mxu0 %v10504_v41  ;;  %v10541_v41 = vld [vmem:[#allocation11 + $0x648] ss:$16 sps:$4 sm:$0xff]  }
 0x876   :  { %8329 = vmatpush1.bf16.msra.mxu1 %v10463_v38  ;;  %v10546_v38 = vld [vmem:[#allocation11 + $0x664] ss:$16 sps:$4 sm:$0xff]  }
 0x877   :  { %8330 = vmatprep.subr.bf16.mxu1 %v10471_v54  ;;  %8097 = vmatpush1.bf16.msra.mxu0 %v10502_v63  ;;  %v10549_v54 = vld [vmem:[#allocation11 + $0x66c] ss:$16 sps:$4 sm:$0xff]   ;;  %v10544_v63 = vld [vmem:[#allocation11 + $0x660] ss:$16 sps:$4 sm:$0xff]  }
 0x878   :  { %8098 = vmatprep.subr.bf16.mxu0 %v10510_v0  ;;  %v10547_v0 = vld [vmem:[#allocation11 + $0x668] ss:$16 sps:$4 sm:$0xff]  }
 0x87a   :  { %8331 = vmatpush1.bf16.msra.mxu1 %v10469_v37  ;;  %v10552_v37 = vld [vmem:[#allocation11 + $0x684] ss:$16 sps:$4 sm:$0xff]  }
 0x87b   :  { %8332 = vmatprep.subr.bf16.mxu1 %v10477_v50  ;;  %8099 = vmatpush1.bf16.msra.mxu0 %v10508_v6  ;;  %v10555_v50 = vld [vmem:[#allocation11 + $0x68c] ss:$16 sps:$4 sm:$0xff]   ;;  %v10550_v6 = vld [vmem:[#allocation11 + $0x680] ss:$16 sps:$4 sm:$0xff]  }
 0x87c   :  { %8100 = vmatprep.subr.bf16.mxu0 %v10516_v2  ;;  %v10553_v2 = vld [vmem:[#allocation11 + $0x688] ss:$16 sps:$4 sm:$0xff]  }
 0x87e   :  { %8333 = vmatpush1.bf16.msra.mxu1 %v10475_v29  ;;  %v10558_v29 = vld [vmem:[#allocation11 + $0x6a4] ss:$16 sps:$4 sm:$0xff]  }
 0x87f   :  { %8334 = vmatprep.subr.bf16.mxu1 %v10483_v25  ;;  %8101 = vmatpush1.bf16.msra.mxu0 %v10514_v23  ;;  %v10561_v25 = vld [vmem:[#allocation11 + $0x6ac] ss:$16 sps:$4 sm:$0xff]   ;;  %v10556_v23 = vld [vmem:[#allocation11 + $0x6a0] ss:$16 sps:$4 sm:$0xff]  }
 0x880   :  { %8102 = vmatprep.subr.bf16.mxu0 %v10522_v18  ;;  %v10559_v18 = vld [vmem:[#allocation11 + $0x6a8] ss:$16 sps:$4 sm:$0xff]  }
 0x882   :  { %8335 = vmatpush1.bf16.msra.mxu1 %v10481_v3  ;;  %v10564_v3 = vld [vmem:[#allocation11 + $0x6c4] ss:$16 sps:$4 sm:$0xff]  }
 0x883   :  { %8336 = vmatprep.subr.bf16.mxu1 %v10489_v19  ;;  %8103 = vmatpush1.bf16.msra.mxu0 %v10520_v48  ;;  %v10567_v19 = vld [vmem:[#allocation11 + $0x6cc] ss:$16 sps:$4 sm:$0xff]   ;;  %v10562_v48 = vld [vmem:[#allocation11 + $0x6c0] ss:$16 sps:$4 sm:$0xff]  }
 0x884   :  { %8113 = vmatprep.subr.bf16.mxu0 %v10528_v49  ;;  %v10565_v49 = vld [vmem:[#allocation11 + $0x6c8] ss:$16 sps:$4 sm:$0xff]  }
 0x886   :  { %8337 = vmatpush1.bf16.msra.mxu1 %v10487_v55  ;;  %v10570_v55 = vld [vmem:[#allocation11 + $0x6e4] ss:$16 sps:$4 sm:$0xff]  }
 0x887   :  { %8338 = vmatprep.subr.bf16.mxu1 %v10495_v34  ;;  %v10573_v34 = vld [vmem:[#allocation11 + $0x6ec] ss:$16 sps:$4 sm:$0xff]  }
 0x88a   :  { %8339 = vmatpush1.bf16.msra.mxu1 %v10493_v57  ;;  %v10568_v57 = vld [vmem:[#allocation11 + $0x6e0] ss:$16 sps:$4 sm:$0xff]  }
 0x88b   :  { %8340 = vmatprep.subr.bf16.mxu1 %v10501_v28  ;;  %v10571_v28 = vld [vmem:[#allocation11 + $0x6e8] ss:$16 sps:$4 sm:$0xff]  }
 0x88e   :  { %8341 = vmatpush1.bf16.msra.mxu1 %v10499_v61  ;;  %v10576_v61 = vld [vmem:[#allocation11 + $0x704] ss:$16 sps:$4 sm:$0xff]  }
 0x88f   :  { %8342 = vmatprep.subr.bf16.mxu1 %v10507_v33  ;;  %v10579_v33 = vld [vmem:[#allocation11 + $0x70c] ss:$16 sps:$4 sm:$0xff]  }
 0x892   :  { %8343 = vmatpush1.bf16.msra.mxu1 %v10505_v45  ;;  %v10574_v45 = vld [vmem:[#allocation11 + $0x700] ss:$16 sps:$4 sm:$0xff]  }
 0x893   :  { %8344 = vmatprep.subr.bf16.mxu1 %v10513_v13  ;;  %v10577_v13 = vld [vmem:[#allocation11 + $0x708] ss:$16 sps:$4 sm:$0xff]  }
 0x896   :  { %8345 = vmatpush1.bf16.msra.mxu1 %v10511_v40  ;;  %v10582_v40 = vld [vmem:[#allocation11 + $0x724] ss:$16 sps:$4 sm:$0xff]  }
 0x897   :  { %8346 = vmatprep.subr.bf16.mxu1 %v10519_v53  ;;  %v10585_v53 = vld [vmem:[#allocation11 + $0x72c] ss:$16 sps:$4 sm:$0xff]  }
 0x89a   :  { %8347 = vmatpush1.bf16.msra.mxu1 %v10517_v17  ;;  %v10580_v17 = vld [vmem:[#allocation11 + $0x720] ss:$16 sps:$4 sm:$0xff]  }
 0x89b   :  { %8348 = vmatprep.subr.bf16.mxu1 %v10525_v56  ;;  %v10583_v56 = vld [vmem:[#allocation11 + $0x728] ss:$16 sps:$4 sm:$0xff]  }
 0x89e   :  { %8349 = vmatpush1.bf16.msra.mxu1 %v10523_v35  ;;  %v10588_v35 = vld [vmem:[#allocation11 + $0x744] ss:$16 sps:$4 sm:$0xff]  }
 0x89f   :  { %8359 = vmatprep.subr.bf16.mxu1 %v10531_v36  ;;  %v10591_v36 = vld [vmem:[#allocation11 + $0x74c] ss:$16 sps:$4 sm:$0xff]  }
 0x8b4   :  { %v5621_v51 = vpop.f32.mrb[4].mxu1 }
 0x8b5   :  { %v9714_v42 = vadd.f32 %v5621_v51, %v3808_v30  ;;  %v5623_v52 = vpop.f32.mrb[5].mxu1  ;;  %v10594_v30 = vld [vmem:[#allocation11 + $0x764] ss:$16 sps:$4 sm:$0xff]   ;;  %v10592_v51 = vld [vmem:[#allocation11 + $0x760] ss:$16 sps:$4 sm:$0xff]  }
 0x8b6   :  { %v9715_v60 = vadd.f32 %v5623_v52, %v3812_v47  ;;  %v5625_v5 = vpop.f32.mrb[6].mxu1  ;;  %v10597_v47 = vld [vmem:[#allocation11 + $0x76c] ss:$16 sps:$4 sm:$0xff]   ;;  %v10600_v52 = vld [vmem:[#allocation11 + $0x784] ss:$16 sps:$4 sm:$0xff]  }
 0x8b7   :  { %10856 = vtanh.f32 %v9714_v42  ;;  %v5626_v4 = vpop.f32.mrb[7].mxu1  ;;  %v10595_v42 = vld [vmem:[#allocation11 + $0x768] ss:$16 sps:$4 sm:$0xff]   ;;  %v10598_v5 = vld [vmem:[#allocation11 + $0x780] ss:$16 sps:$4 sm:$0xff]  }
 0x8b8   :  { %10858 = vtanh.f32 %v9715_v60  ;;  %v10603_v60 = vld [vmem:[#allocation11 + $0x78c] ss:$16 sps:$4 sm:$0xff]   ;;  %v10601_v4 = vld [vmem:[#allocation11 + $0x788] ss:$16 sps:$4 sm:$0xff]  }
 0x8c1   :  { %v13587_v9 = vpop.eup %10856 }
 0x8c2   :  { %v13589_v1 = vpop.eup %10858  ;;  %v5656_v43 = vpack.c.bf16 %v13587_v9, %v13587_v9 }
 0x8c3   :  { %v5657_v31 = vpack.c.bf16 %v13589_v1, %v13589_v1 }
 0x8c5   :  { %8104 = vmatprep.mubr.bf16.mxu0 %v5657_v31  ;;  %8350 = vmatprep.mubr.bf16.mxu1 %v5657_v31  ;;  %v10609_v31 = vld [vmem:[#allocation11 + $0x7ac] ss:$16 sps:$4 sm:$0xff]  }
 0x8c6   :  { %8105 = vmatmul.mubr.bf16.vlgmr.msra.gmra.mrb[12].mxu0 %v5656_v43  ;;  %8351 = vmatmul.mubr.bf16.vlgmr.msra.gmra.mrb[8].mxu1 %v5656_v43  ;;  %v10612_v43 = vld [vmem:[#allocation11 + $0x7c4] ss:$16 sps:$4 sm:$0xff]  }
 0x8c7   :  { %8114 = vmatpush1.bf16.msra.mxu0 %v10526_v7  ;;  %8360 = vmatpush1.bf16.msra.mxu1 %v10529_v27  ;;  %v10604_v7 = vld [vmem:[#allocation11 + $0x7a0] ss:$16 sps:$4 sm:$0xff]   ;;  %v10607_v27 = vld [vmem:[#allocation11 + $0x7a8] ss:$16 sps:$4 sm:$0xff]  }
 0x8c8   :  { %8145 = vmatprep.mubr.bf16.mxu0 %v5659_v44  ;;  %8391 = vmatprep.mubr.bf16.mxu1 %v5659_v44  ;;  %v10613_v44 = vld [vmem:[#allocation11 + $0x7c8] ss:$16 sps:$4 sm:$0xff]  }
 0x8c9   :  { %8115 = vmatprep.subr.bf16.mxu0 %v10534_v10  ;;  %8361 = vmatprep.subr.bf16.mxu1 %v10537_v24  ;;  %v10615_v10 = vld [vmem:[#allocation11 + $0x7cc] ss:$16 sps:$4 sm:$0xff]   ;;  %v10610_v24 = vld [vmem:[#allocation11 + $0x7c0] ss:$16 sps:$4 sm:$0xff]  }
 0x8cb   :  { %8116 = vmatpush1.bf16.msra.mxu0 %v10532_v46  ;;  %8362 = vmatpush1.bf16.msra.mxu1 %v10535_v32  ;;  %v10618_v46 = vld [vmem:[#allocation11 + $0x7e4] ss:$16 sps:$4 sm:$0xff]   ;;  %v10621_v32 = vld [vmem:[#allocation11 + $0x7ec] ss:$16 sps:$4 sm:$0xff]  }
 0x8cc   :  { %8117 = vmatprep.subr.bf16.mxu0 %v10540_v20  ;;  %8363 = vmatprep.subr.bf16.mxu1 %v10543_v16  ;;  %v10616_v20 = vld [vmem:[#allocation11 + $0x7e0] ss:$16 sps:$4 sm:$0xff]   ;;  %v10619_v16 = vld [vmem:[#allocation11 + $0x7e8] ss:$16 sps:$4 sm:$0xff]  }
 0x8cf   :  { %8118 = vmatpush1.bf16.msra.mxu0 %v10538_v11  ;;  %8364 = vmatpush1.bf16.msra.mxu1 %v10541_v41  ;;  %v5640_v11 = vrot.slane %v13558_v14, 2  ;;  %v10624_v41 = vld [vmem:[#allocation11 + $0x804] ss:$16 sps:$4 sm:$0xff]   ;;  %v10631_v14 = vld [vmem:[#allocation11 + $0x828] ss:$16 sps:$4 sm:$0xff]  }
 0x8d0   :  { %8119 = vmatprep.subr.bf16.mxu0 %v10546_v38  ;;  %8365 = vmatprep.subr.bf16.mxu1 %v10549_v54  ;;  %v10627_v38 = vld [vmem:[#allocation11 + $0x80c] ss:$16 sps:$4 sm:$0xff]   ;;  %v5643_v54 = vrot.slane %v13562_v21, 2 }
 0x8d1   :  { %v10639_v21 = vld [vmem:[#allocation11 + $0x84c] ss:$16 sps:$4 sm:$0xff]  }
 0x8d3   :  { %8120 = vmatpush1.bf16.msra.mxu0 %v10544_v63  ;;  %8366 = vmatpush1.bf16.msra.mxu1 %v10547_v0  ;;  %v10622_v63 = vld [vmem:[#allocation11 + $0x800] ss:$16 sps:$4 sm:$0xff]   ;;  %v5658_v0 = vpack.c.bf16 %v5640_v11, %v5640_v11  ;;  %v10702_v11 = vld [vmem:[#allocation11 + $0x9a4] ss:$16 sps:$4 sm:$0xff]  }
 0x8d4   :  { %8121 = vmatprep.subr.bf16.mxu0 %v10552_v37  ;;  %8367 = vmatprep.subr.bf16.mxu1 %v10555_v50  ;;  %v10625_v37 = vld [vmem:[#allocation11 + $0x808] ss:$16 sps:$4 sm:$0xff]   ;;  %v5661_v50 = vpack.c.bf16 %v5643_v54, %v5643_v54 }
 0x8d5   :  { %v10703_v54 = vld [vmem:[#allocation11 + $0x9a8] ss:$16 sps:$4 sm:$0xff]  }
 0x8d7   :  { %8122 = vmatpush1.bf16.msra.mxu0 %v10550_v6  ;;  %8368 = vmatpush1.bf16.msra.mxu1 %v10553_v2  ;;  %v10630_v6 = vld [vmem:[#allocation11 + $0x824] ss:$16 sps:$4 sm:$0xff]   ;;  %v10633_v2 = vld [vmem:[#allocation11 + $0x82c] ss:$16 sps:$4 sm:$0xff]  }
 0x8d8   :  { %8123 = vmatprep.subr.bf16.mxu0 %v10558_v29  ;;  %8369 = vmatprep.subr.bf16.mxu1 %v10561_v25  ;;  %v10628_v29 = vld [vmem:[#allocation11 + $0x820] ss:$16 sps:$4 sm:$0xff]   ;;  %v10636_v25 = vld [vmem:[#allocation11 + $0x844] ss:$16 sps:$4 sm:$0xff]  }
 0x8db   :  { %8124 = vmatpush1.bf16.msra.mxu0 %v10556_v23  ;;  %8370 = vmatpush1.bf16.msra.mxu1 %v10559_v18  ;;  %v10634_v23 = vld [vmem:[#allocation11 + $0x840] ss:$16 sps:$4 sm:$0xff]   ;;  %v10637_v18 = vld [vmem:[#allocation11 + $0x848] ss:$16 sps:$4 sm:$0xff]  }
 0x8dc   :  { %8125 = vmatprep.subr.bf16.mxu0 %v10564_v3  ;;  %8371 = vmatprep.subr.bf16.mxu1 %v10567_v19  ;;  %v10642_v3 = vld [vmem:[#allocation11 + $0x864] ss:$16 sps:$4 sm:$0xff]   ;;  %v10645_v19 = vld [vmem:[#allocation11 + $0x86c] ss:$16 sps:$4 sm:$0xff]  }
 0x8df   :  { %8126 = vmatpush1.bf16.msra.mxu0 %v10562_v48  ;;  %8372 = vmatpush1.bf16.msra.mxu1 %v10565_v49  ;;  %v10640_v48 = vld [vmem:[#allocation11 + $0x860] ss:$16 sps:$4 sm:$0xff]   ;;  %v10643_v49 = vld [vmem:[#allocation11 + $0x868] ss:$16 sps:$4 sm:$0xff]  }
 0x8e0   :  { %8127 = vmatprep.subr.bf16.mxu0 %v10570_v55  ;;  %8373 = vmatprep.subr.bf16.mxu1 %v10573_v34  ;;  %v10648_v55 = vld [vmem:[#allocation11 + $0x884] ss:$16 sps:$4 sm:$0xff]   ;;  %v10651_v34 = vld [vmem:[#allocation11 + $0x88c] ss:$16 sps:$4 sm:$0xff]  }
 0x8e3   :  { %8128 = vmatpush1.bf16.msra.mxu0 %v10568_v57  ;;  %8374 = vmatpush1.bf16.msra.mxu1 %v10571_v28  ;;  %v10646_v57 = vld [vmem:[#allocation11 + $0x880] ss:$16 sps:$4 sm:$0xff]   ;;  %v10649_v28 = vld [vmem:[#allocation11 + $0x888] ss:$16 sps:$4 sm:$0xff]  }
 0x8e4   :  { %8129 = vmatprep.subr.bf16.mxu0 %v10576_v61  ;;  %8375 = vmatprep.subr.bf16.mxu1 %v10579_v33  ;;  %v10654_v61 = vld [vmem:[#allocation11 + $0x8a4] ss:$16 sps:$4 sm:$0xff]   ;;  %v10657_v33 = vld [vmem:[#allocation11 + $0x8ac] ss:$16 sps:$4 sm:$0xff]  }
 0x8e7   :  { %8130 = vmatpush1.bf16.msra.mxu0 %v10574_v45  ;;  %8376 = vmatpush1.bf16.msra.mxu1 %v10577_v13  ;;  %v10652_v45 = vld [vmem:[#allocation11 + $0x8a0] ss:$16 sps:$4 sm:$0xff]   ;;  %v10655_v13 = vld [vmem:[#allocation11 + $0x8a8] ss:$16 sps:$4 sm:$0xff]  }
 0x8e8   :  { %8131 = vmatprep.subr.bf16.mxu0 %v10582_v40  ;;  %8377 = vmatprep.subr.bf16.mxu1 %v10585_v53  ;;  %v10660_v40 = vld [vmem:[#allocation11 + $0x8c4] ss:$16 sps:$4 sm:$0xff]   ;;  %v10663_v53 = vld [vmem:[#allocation11 + $0x8cc] ss:$16 sps:$4 sm:$0xff]  }
 0x8eb   :  { %8132 = vmatpush1.bf16.msra.mxu0 %v10580_v17  ;;  %8378 = vmatpush1.bf16.msra.mxu1 %v10583_v56  ;;  %v10658_v17 = vld [vmem:[#allocation11 + $0x8c0] ss:$16 sps:$4 sm:$0xff]   ;;  %v10661_v56 = vld [vmem:[#allocation11 + $0x8c8] ss:$16 sps:$4 sm:$0xff]  }
 0x8ec   :  { %8133 = vmatprep.subr.bf16.mxu0 %v10588_v35  ;;  %8379 = vmatprep.subr.bf16.mxu1 %v10591_v36  ;;  %v10666_v35 = vld [vmem:[#allocation11 + $0x8e4] ss:$16 sps:$4 sm:$0xff]   ;;  %v10669_v36 = vld [vmem:[#allocation11 + $0x8ec] ss:$16 sps:$4 sm:$0xff]  }
 0x8ef   :  { %8134 = vmatpush1.bf16.msra.mxu0 %v10586_v39  ;;  %8380 = vmatpush1.bf16.msra.mxu1 %v10589_v59  ;;  %v10664_v39 = vld [vmem:[#allocation11 + $0x8e0] ss:$16 sps:$4 sm:$0xff]   ;;  %v10667_v59 = vld [vmem:[#allocation11 + $0x8e8] ss:$16 sps:$4 sm:$0xff]  }
 0x8f0   :  { %8135 = vmatprep.subr.bf16.mxu0 %v10594_v30  ;;  %8381 = vmatprep.subr.bf16.mxu1 %v10597_v47  ;;  %v10672_v30 = vld [vmem:[#allocation11 + $0x904] ss:$16 sps:$4 sm:$0xff]   ;;  %v10675_v47 = vld [vmem:[#allocation11 + $0x90c] ss:$16 sps:$4 sm:$0xff]  }
 0x8f3   :  { %8136 = vmatpush1.bf16.msra.mxu0 %v10592_v51  ;;  %8382 = vmatpush1.bf16.msra.mxu1 %v10595_v42  ;;  %v10670_v51 = vld [vmem:[#allocation11 + $0x900] ss:$16 sps:$4 sm:$0xff]   ;;  %v10673_v42 = vld [vmem:[#allocation11 + $0x908] ss:$16 sps:$4 sm:$0xff]  }
 0x8f4   :  { %8137 = vmatprep.subr.bf16.mxu0 %v10600_v52  ;;  %8383 = vmatprep.subr.bf16.mxu1 %v10603_v60  ;;  %v10678_v52 = vld [vmem:[#allocation11 + $0x924] ss:$16 sps:$4 sm:$0xff]   ;;  %v10681_v60 = vld [vmem:[#allocation11 + $0x92c] ss:$16 sps:$4 sm:$0xff]  }
 0x8f7   :  { %8138 = vmatpush1.bf16.msra.mxu0 %v10598_v5  ;;  %8384 = vmatpush1.bf16.msra.mxu1 %v10601_v4  ;;  %v10676_v5 = vld [vmem:[#allocation11 + $0x920] ss:$16 sps:$4 sm:$0xff]   ;;  %v10679_v4 = vld [vmem:[#allocation11 + $0x928] ss:$16 sps:$4 sm:$0xff]  }
 0x8f8   :  { %8139 = vmatprep.subr.bf16.mxu0 %v10606_v26  ;;  %8385 = vmatprep.subr.bf16.mxu1 %v10609_v31  ;;  %v10684_v26 = vld [vmem:[#allocation11 + $0x944] ss:$16 sps:$4 sm:$0xff]   ;;  %v10687_v31 = vld [vmem:[#allocation11 + $0x94c] ss:$16 sps:$4 sm:$0xff]  }
 0x8fb   :  { %8140 = vmatpush1.bf16.msra.mxu0 %v10604_v7  ;;  %8386 = vmatpush1.bf16.msra.mxu1 %v10607_v27  ;;  %v10682_v7 = vld [vmem:[#allocation11 + $0x940] ss:$16 sps:$4 sm:$0xff]   ;;  %v10685_v27 = vld [vmem:[#allocation11 + $0x948] ss:$16 sps:$4 sm:$0xff]  }
 0x8fc   :  { %8141 = vmatprep.subr.bf16.mxu0 %v10612_v43  ;;  %8387 = vmatprep.subr.bf16.mxu1 %v10615_v10  ;;  %v10690_v43 = vld [vmem:[#allocation11 + $0x964] ss:$16 sps:$4 sm:$0xff]   ;;  %v10693_v10 = vld [vmem:[#allocation11 + $0x96c] ss:$16 sps:$4 sm:$0xff]  }
 0x8ff   :  { %8142 = vmatpush1.bf16.msra.mxu0 %v10610_v24  ;;  %8388 = vmatpush1.bf16.msra.mxu1 %v10613_v44  ;;  %v10688_v24 = vld [vmem:[#allocation11 + $0x960] ss:$16 sps:$4 sm:$0xff]   ;;  %v10691_v44 = vld [vmem:[#allocation11 + $0x968] ss:$16 sps:$4 sm:$0xff]  }
 0x900   :  { %8143 = vmatprep.subr.bf16.mxu0 %v10618_v46  ;;  %8389 = vmatprep.subr.bf16.mxu1 %v10621_v32  ;;  %v10696_v46 = vld [vmem:[#allocation11 + $0x984] ss:$16 sps:$4 sm:$0xff]   ;;  %v10699_v32 = vld [vmem:[#allocation11 + $0x98c] ss:$16 sps:$4 sm:$0xff]  }
 0x903   :  { %8144 = vmatpush1.bf16.msra.mxu0 %v10616_v20  ;;  %8390 = vmatpush1.bf16.msra.mxu1 %v10619_v16  ;;  %v10694_v20 = vld [vmem:[#allocation11 + $0x980] ss:$16 sps:$4 sm:$0xff]   ;;  %v10697_v16 = vld [vmem:[#allocation11 + $0x988] ss:$16 sps:$4 sm:$0xff]  }
 0x904   :  { %8154 = vmatprep.subr.bf16.mxu0 %v10624_v41  ;;  %8400 = vmatprep.subr.bf16.mxu1 %v10627_v38  ;;  %v10705_v41 = vld [vmem:[#allocation11 + $0x9ac] ss:$16 sps:$4 sm:$0xff]   ;;  %v10700_v38 = vld [vmem:[#allocation11 + $0x9a0] ss:$16 sps:$4 sm:$0xff]  }
 0x906   :  { %8146 = vmatmul.mubr.bf16.vlgmr.msra.gmra.mrb[12].mxu0 %v5658_v0  ;;  %8392 = vmatmul.mubr.bf16.vlgmr.msra.gmra.mrb[8].mxu1 %v5658_v0  ;;  %v10711_v0 = vld [vmem:[#allocation11 + $0x9cc] ss:$16 sps:$4 sm:$0xff]  }
 0x907   :  { %8155 = vmatpush1.bf16.msra.mxu0 %v10622_v63  ;;  %8186 = vmatprep.mubr.bf16.mxu0 %v5661_v50  ;;  %v10708_v63 = vld [vmem:[#allocation11 + $0x9c4] ss:$16 sps:$4 sm:$0xff]  }
 0x908   :  { %8401 = vmatpush1.bf16.msra.mxu1 %v10625_v37  ;;  %8432 = vmatprep.mubr.bf16.mxu1 %v5661_v50  ;;  %v10706_v37 = vld [vmem:[#allocation11 + $0x9c0] ss:$16 sps:$4 sm:$0xff]   ;;  %v10709_v50 = vld [vmem:[#allocation11 + $0x9c8] ss:$16 sps:$4 sm:$0xff]  }
 0x909   :  { %8156 = vmatprep.subr.bf16.mxu0 %v10630_v6  ;;  %8402 = vmatprep.subr.bf16.mxu1 %v10633_v2  ;;  %v10714_v6 = vld [vmem:[#allocation11 + $0x9e4] ss:$16 sps:$4 sm:$0xff]   ;;  %v10717_v2 = vld [vmem:[#allocation11 + $0x9ec] ss:$16 sps:$4 sm:$0xff]  }
 0x90b   :  { %8157 = vmatpush1.bf16.msra.mxu0 %v10628_v29  ;;  %v10712_v29 = vld [vmem:[#allocation11 + $0x9e0] ss:$16 sps:$4 sm:$0xff]  }
 0x90c   :  { %8403 = vmatpush1.bf16.msra.mxu1 %v10631_v14  ;;  %8158 = vmatprep.subr.bf16.mxu0 %v10636_v25  ;;  %v10715_v14 = vld [vmem:[#allocation11 + $0x9e8] ss:$16 sps:$4 sm:$0xff]   ;;  %v5642_v25 = vrot.slane %v13579_v12, 2 }
 0x90d   :  { %8404 = vmatprep.subr.bf16.mxu1 %v10639_v21  ;;  %v10720_v21 = vld [vmem:[#allocation11 + $0xa04] ss:$16 sps:$4 sm:$0xff]   ;;  %v10727_v12 = vld [vmem:[#allocation11 + $0xa28] ss:$16 sps:$4 sm:$0xff]  }
 0x90f   :  { %8159 = vmatpush1.bf16.msra.mxu0 %v10634_v23  ;;  %v10723_v23 = vld [vmem:[#allocation11 + $0xa0c] ss:$16 sps:$4 sm:$0xff]  }
 0x910   :  { %8405 = vmatpush1.bf16.msra.mxu1 %v10637_v18  ;;  %8160 = vmatprep.subr.bf16.mxu0 %v10642_v3  ;;  %v5645_v18 = vrot.slane %v13589_v1, 2  ;;  %v10718_v3 = vld [vmem:[#allocation11 + $0xa00] ss:$16 sps:$4 sm:$0xff]   ;;  %v10735_v1 = vld [vmem:[#allocation11 + $0xa4c] ss:$16 sps:$4 sm:$0xff]  }
 0x911   :  { %8406 = vmatprep.subr.bf16.mxu1 %v10645_v19  ;;  %v5660_v19 = vpack.c.bf16 %v5642_v25, %v5642_v25  ;;  %v10796_v25 = vld [vmem:[#allocation11 + $0xba0] ss:$16 sps:$4 sm:$0xff]  }
 0x913   :  { %8161 = vmatpush1.bf16.msra.mxu0 %v10640_v48  ;;  %v10721_v48 = vld [vmem:[#allocation11 + $0xa08] ss:$16 sps:$4 sm:$0xff]  }
 0x914   :  { %8407 = vmatpush1.bf16.msra.mxu1 %v10643_v49  ;;  %8162 = vmatprep.subr.bf16.mxu0 %v10648_v55  ;;  %v10726_v49 = vld [vmem:[#allocation11 + $0xa24] ss:$16 sps:$4 sm:$0xff]   ;;  %v5663_v55 = vpack.c.bf16 %v5645_v18, %v5645_v18  ;;  %v10807_v18 = vld [vmem:[#allocation11 + $0xbcc] ss:$16 sps:$4 sm:$0xff]  }
 0x915   :  { %8408 = vmatprep.subr.bf16.mxu1 %v10651_v34  ;;  %v10729_v34 = vld [vmem:[#allocation11 + $0xa2c] ss:$16 sps:$4 sm:$0xff]  }
 0x917   :  { %8163 = vmatpush1.bf16.msra.mxu0 %v10646_v57  ;;  %v10724_v57 = vld [vmem:[#allocation11 + $0xa20] ss:$16 sps:$4 sm:$0xff]  }
 0x918   :  { %8409 = vmatpush1.bf16.msra.mxu1 %v10649_v28  ;;  %8164 = vmatprep.subr.bf16.mxu0 %v10654_v61  ;;  %v10732_v28 = vld [vmem:[#allocation11 + $0xa44] ss:$16 sps:$4 sm:$0xff]   ;;  %v10730_v61 = vld [vmem:[#allocation11 + $0xa40] ss:$16 sps:$4 sm:$0xff]  }
 0x919   :  { %8410 = vmatprep.subr.bf16.mxu1 %v10657_v33  ;;  %v10733_v33 = vld [vmem:[#allocation11 + $0xa48] ss:$16 sps:$4 sm:$0xff]  }
 0x91b   :  { %8165 = vmatpush1.bf16.msra.mxu0 %v10652_v45  ;;  %v10738_v45 = vld [vmem:[#allocation11 + $0xa64] ss:$16 sps:$4 sm:$0xff]  }
 0x91c   :  { %8411 = vmatpush1.bf16.msra.mxu1 %v10655_v13  ;;  %8166 = vmatprep.subr.bf16.mxu0 %v10660_v40  ;;  %v10741_v13 = vld [vmem:[#allocation11 + $0xa6c] ss:$16 sps:$4 sm:$0xff]   ;;  %v10736_v40 = vld [vmem:[#allocation11 + $0xa60] ss:$16 sps:$4 sm:$0xff]  }
 0x91d   :  { %8412 = vmatprep.subr.bf16.mxu1 %v10663_v53  ;;  %v10739_v53 = vld [vmem:[#allocation11 + $0xa68] ss:$16 sps:$4 sm:$0xff]  }
 0x91f   :  { %8167 = vmatpush1.bf16.msra.mxu0 %v10658_v17  ;;  %v10744_v17 = vld [vmem:[#allocation11 + $0xa84] ss:$16 sps:$4 sm:$0xff]  }
 0x920   :  { %8413 = vmatpush1.bf16.msra.mxu1 %v10661_v56  ;;  %8168 = vmatprep.subr.bf16.mxu0 %v10666_v35  ;;  %v10747_v56 = vld [vmem:[#allocation11 + $0xa8c] ss:$16 sps:$4 sm:$0xff]   ;;  %v10742_v35 = vld [vmem:[#allocation11 + $0xa80] ss:$16 sps:$4 sm:$0xff]  }
 0x921   :  { %8414 = vmatprep.subr.bf16.mxu1 %v10669_v36  ;;  %v10745_v36 = vld [vmem:[#allocation11 + $0xa88] ss:$16 sps:$4 sm:$0xff]  }
 0x923   :  { %8169 = vmatpush1.bf16.msra.mxu0 %v10664_v39  ;;  %v10750_v39 = vld [vmem:[#allocation11 + $0xaa4] ss:$16 sps:$4 sm:$0xff]  }
 0x924   :  { %8415 = vmatpush1.bf16.msra.mxu1 %v10667_v59  ;;  %8170 = vmatprep.subr.bf16.mxu0 %v10672_v30  ;;  %v10753_v59 = vld [vmem:[#allocation11 + $0xaac] ss:$16 sps:$4 sm:$0xff]   ;;  %v10748_v30 = vld [vmem:[#allocation11 + $0xaa0] ss:$16 sps:$4 sm:$0xff]  }
 0x925   :  { %8416 = vmatprep.subr.bf16.mxu1 %v10675_v47  ;;  %v10751_v47 = vld [vmem:[#allocation11 + $0xaa8] ss:$16 sps:$4 sm:$0xff]  }
 0x927   :  { %8171 = vmatpush1.bf16.msra.mxu0 %v10670_v51  ;;  %v10756_v51 = vld [vmem:[#allocation11 + $0xac4] ss:$16 sps:$4 sm:$0xff]  }
 0x928   :  { %8417 = vmatpush1.bf16.msra.mxu1 %v10673_v42  ;;  %8172 = vmatprep.subr.bf16.mxu0 %v10678_v52  ;;  %v10759_v42 = vld [vmem:[#allocation11 + $0xacc] ss:$16 sps:$4 sm:$0xff]   ;;  %v10754_v52 = vld [vmem:[#allocation11 + $0xac0] ss:$16 sps:$4 sm:$0xff]  }
 0x929   :  { %8418 = vmatprep.subr.bf16.mxu1 %v10681_v60  ;;  %v10757_v60 = vld [vmem:[#allocation11 + $0xac8] ss:$16 sps:$4 sm:$0xff]  }
 0x92b   :  { %8173 = vmatpush1.bf16.msra.mxu0 %v10676_v5  ;;  %v10762_v5 = vld [vmem:[#allocation11 + $0xae4] ss:$16 sps:$4 sm:$0xff]  }
 0x92c   :  { %8419 = vmatpush1.bf16.msra.mxu1 %v10679_v4  ;;  %8174 = vmatprep.subr.bf16.mxu0 %v10684_v26  ;;  %v10765_v4 = vld [vmem:[#allocation11 + $0xaec] ss:$16 sps:$4 sm:$0xff]   ;;  %v10760_v26 = vld [vmem:[#allocation11 + $0xae0] ss:$16 sps:$4 sm:$0xff]  }
 0x92d   :  { %8420 = vmatprep.subr.bf16.mxu1 %v10687_v31  ;;  %v10763_v31 = vld [vmem:[#allocation11 + $0xae8] ss:$16 sps:$4 sm:$0xff]  }
 0x92f   :  { %8175 = vmatpush1.bf16.msra.mxu0 %v10682_v7  ;;  %v10768_v7 = vld [vmem:[#allocation11 + $0xb04] ss:$16 sps:$4 sm:$0xff]  }
 0x930   :  { %8421 = vmatpush1.bf16.msra.mxu1 %v10685_v27  ;;  %8176 = vmatprep.subr.bf16.mxu0 %v10690_v43  ;;  %v10771_v27 = vld [vmem:[#allocation11 + $0xb0c] ss:$16 sps:$4 sm:$0xff]   ;;  %v10766_v43 = vld [vmem:[#allocation11 + $0xb00] ss:$16 sps:$4 sm:$0xff]  }
 0x931   :  { %8422 = vmatprep.subr.bf16.mxu1 %v10693_v10  ;;  %v10769_v10 = vld [vmem:[#allocation11 + $0xb08] ss:$16 sps:$4 sm:$0xff]  }
 0x933   :  { %8177 = vmatpush1.bf16.msra.mxu0 %v10688_v24  ;;  %v10774_v24 = vld [vmem:[#allocation11 + $0xb24] ss:$16 sps:$4 sm:$0xff]  }
 0x934   :  { %8423 = vmatpush1.bf16.msra.mxu1 %v10691_v44  ;;  %8178 = vmatprep.subr.bf16.mxu0 %v10696_v46  ;;  %v10777_v44 = vld [vmem:[#allocation11 + $0xb2c] ss:$16 sps:$4 sm:$0xff]   ;;  %v10772_v46 = vld [vmem:[#allocation11 + $0xb20] ss:$16 sps:$4 sm:$0xff]  }
 0x935   :  { %8424 = vmatprep.subr.bf16.mxu1 %v10699_v32  ;;  %v10775_v32 = vld [vmem:[#allocation11 + $0xb28] ss:$16 sps:$4 sm:$0xff]  }
 0x937   :  { %8179 = vmatpush1.bf16.msra.mxu0 %v10694_v20  ;;  %v10780_v20 = vld [vmem:[#allocation11 + $0xb44] ss:$16 sps:$4 sm:$0xff]  }
 0x938   :  { %8425 = vmatpush1.bf16.msra.mxu1 %v10697_v16  ;;  %8180 = vmatprep.subr.bf16.mxu0 %v10702_v11  ;;  %v10783_v16 = vld [vmem:[#allocation11 + $0xb4c] ss:$16 sps:$4 sm:$0xff]   ;;  %v10778_v11 = vld [vmem:[#allocation11 + $0xb40] ss:$16 sps:$4 sm:$0xff]  }
 0x939   :  { %8426 = vmatprep.subr.bf16.mxu1 %v10705_v41  ;;  %v10781_v41 = vld [vmem:[#allocation11 + $0xb48] ss:$16 sps:$4 sm:$0xff]  }
 0x93b   :  { %8181 = vmatpush1.bf16.msra.mxu0 %v10700_v38  ;;  %v10786_v38 = vld [vmem:[#allocation11 + $0xb64] ss:$16 sps:$4 sm:$0xff]  }
 0x93c   :  { %8427 = vmatpush1.bf16.msra.mxu1 %v10703_v54  ;;  %8182 = vmatprep.subr.bf16.mxu0 %v10708_v63  ;;  %v10789_v54 = vld [vmem:[#allocation11 + $0xb6c] ss:$16 sps:$4 sm:$0xff]   ;;  %v10784_v63 = vld [vmem:[#allocation11 + $0xb60] ss:$16 sps:$4 sm:$0xff]  }
 0x93d   :  { %8428 = vmatprep.subr.bf16.mxu1 %v10711_v0  ;;  %v10787_v0 = vld [vmem:[#allocation11 + $0xb68] ss:$16 sps:$4 sm:$0xff]  }
 0x93f   :  { %8183 = vmatpush1.bf16.msra.mxu0 %v10706_v37  ;;  %v10792_v37 = vld [vmem:[#allocation11 + $0xb84] ss:$16 sps:$4 sm:$0xff]  }
 0x940   :  { %8429 = vmatpush1.bf16.msra.mxu1 %v10709_v50  ;;  %8184 = vmatprep.subr.bf16.mxu0 %v10714_v6  ;;  %v10795_v50 = vld [vmem:[#allocation11 + $0xb8c] ss:$16 sps:$4 sm:$0xff]   ;;  %v10790_v6 = vld [vmem:[#allocation11 + $0xb80] ss:$16 sps:$4 sm:$0xff]  }
 0x941   :  { %8430 = vmatprep.subr.bf16.mxu1 %v10717_v2  ;;  %v10793_v2 = vld [vmem:[#allocation11 + $0xb88] ss:$16 sps:$4 sm:$0xff]  }
 0x943   :  { %8185 = vmatpush1.bf16.msra.mxu0 %v10712_v29  ;;  %v10798_v29 = vld [vmem:[#allocation11 + $0xba4] ss:$16 sps:$4 sm:$0xff]  }
 0x944   :  { %8431 = vmatpush1.bf16.msra.mxu1 %v10715_v14  ;;  %8195 = vmatprep.subr.bf16.mxu0 %v10720_v21  ;;  %v10801_v14 = vld [vmem:[#allocation11 + $0xbac] ss:$16 sps:$4 sm:$0xff]   ;;  %v10799_v21 = vld [vmem:[#allocation11 + $0xba8] ss:$16 sps:$4 sm:$0xff]  }
 0x945   :  { %8441 = vmatprep.subr.bf16.mxu1 %v10723_v23  ;;  %v10804_v23 = vld [vmem:[#allocation11 + $0xbc4] ss:$16 sps:$4 sm:$0xff]  }
 0x946   :  { %8187 = vmatmul.mubr.bf16.vlgmr.msra.gmra.mrb[12].mxu0 %v5660_v19 }
 0x947   :  { %8433 = vmatmul.mubr.bf16.vlgmr.msra.gmra.mrb[8].mxu1 %v5660_v19  ;;  %8196 = vmatpush1.bf16.msra.mxu0 %v10718_v3  ;;  %v10802_v3 = vld [vmem:[#allocation11 + $0xbc0] ss:$16 sps:$4 sm:$0xff]   ;;  %v10805_v19 = vld [vmem:[#allocation11 + $0xbc8] ss:$16 sps:$4 sm:$0xff]  }
 0x948   :  { %8227 = vmatprep.mubr.bf16.mxu0 %v5663_v55  ;;  %8442 = vmatpush1.bf16.msra.mxu1 %v10721_v48  ;;  %v10810_v48 = vld [vmem:[#allocation11 + $0xbe4] ss:$16 sps:$4 sm:$0xff]  }
 0x949   :  { %8473 = vmatprep.mubr.bf16.mxu1 %v5663_v55  ;;  %8197 = vmatprep.subr.bf16.mxu0 %v10726_v49  ;;  %v10813_v49 = vld [vmem:[#allocation11 + $0xbec] ss:$16 sps:$4 sm:$0xff]   ;;  %v10808_v55 = vld [vmem:[#allocation11 + $0xbe0] ss:$16 sps:$4 sm:$0xff]  }
 0x94a   :  { %8443 = vmatprep.subr.bf16.mxu1 %v10729_v34  ;;  %v10811_v34 = vld [vmem:[#allocation11 + $0xbe8] ss:$16 sps:$4 sm:$0xff]  }
 0x94b   :  { %8198 = vmatpush1.bf16.msra.mxu0 %v10724_v57  ;;  %v5644_v57 = vrot.slane %v13587_v9, 2  ;;  %v10821_v9 = vld [vmem:[#allocation14 + $0x18] sm:$0xff]  }
 0x94c   :  { %8444 = vmatpush1.bf16.msra.mxu1 %v10727_v12  ;;  %8199 = vmatprep.subr.bf16.mxu0 %v10732_v28  ;;  %v10814_v12 = vld [vmem:[#allocation14 + $0x40] sm:$0xff]  }
 0x94d   :  { %8445 = vmatprep.subr.bf16.mxu1 %v10735_v1  ;;  %v10815_v28 = vld [vmem:[#allocation14] sm:$0xff]   ;;  %v5662_v1 = vpack.c.bf16 %v5644_v57, %v5644_v57 }
 0x94f   :  { %8200 = vmatpush1.bf16.msra.mxu0 %v10730_v61  ;;  %v10816_v61 = vld [vmem:[#allocation14 + $0x48] sm:$0xff]  }
 0x950   :  { %8446 = vmatpush1.bf16.msra.mxu1 %v10733_v33  ;;  %8201 = vmatprep.subr.bf16.mxu0 %v10738_v45  ;;  %v10817_v33 = vld [vmem:[#allocation14 + $0x8] sm:$0xff]   ;;  %v10818_v45 = vld [vmem:[#allocation14 + $0x50] sm:$0xff]  }
 0x951   :  { %8447 = vmatprep.subr.bf16.mxu1 %v10741_v13  ;;  %v10819_v13 = vld [vmem:[#allocation14 + $0x10] sm:$0xff]  }
 0x953   :  { %8202 = vmatpush1.bf16.msra.mxu0 %v10736_v40  ;;  %v10820_v40 = vld [vmem:[#allocation14 + $0x58] sm:$0xff]  }
 0x954   :  { %8448 = vmatpush1.bf16.msra.mxu1 %v10739_v53  ;;  %8203 = vmatprep.subr.bf16.mxu0 %v10744_v17  ;;  %v10822_v53 = vld [vmem:[#allocation14 + $0x60] sm:$0xff]  }
 0x955   :  { %8449 = vmatprep.subr.bf16.mxu1 %v10747_v56  ;;  %v10823_v17 = vld [vmem:[#allocation14 + $0x20] sm:$0xff]   ;;  %v10824_v56 = vld [vmem:[#allocation14 + $0x68] sm:$0xff]  }
 0x957   :  { %8204 = vmatpush1.bf16.msra.mxu0 %v10742_v35  ;;  %v10825_v35 = vld [vmem:[#allocation14 + $0x28] sm:$0xff]  }
 0x958   :  { %8450 = vmatpush1.bf16.msra.mxu1 %v10745_v36  ;;  %8205 = vmatprep.subr.bf16.mxu0 %v10750_v39  ;;  %v10826_v36 = vld [vmem:[#allocation14 + $0x70] sm:$0xff]  }
 0x959   :  { %8451 = vmatprep.subr.bf16.mxu1 %v10753_v59  ;;  %v10827_v39 = vld [vmem:[#allocation14 + $0x30] sm:$0xff]   ;;  %v10828_v59 = vld [vmem:[#allocation14 + $0x78] sm:$0xff]  }
 0x95b   :  { %8206 = vmatpush1.bf16.msra.mxu0 %v10748_v30  ;;  %v10829_v30 = vld [vmem:[#allocation14 + $0x38] sm:$0xff]  }
 0x95c   :  { %8452 = vmatpush1.bf16.msra.mxu1 %v10751_v47  ;;  %8207 = vmatprep.subr.bf16.mxu0 %v10756_v51  ;;  %v10830_v47 = vld [vmem:[#allocation14 + $0xc0] sm:$0xff]   ;;  %v6048_v51 = vld [vmem:[#allocation13] sm:$0xf] }
 0x95d   :  { %8453 = vmatprep.subr.bf16.mxu1 %v10759_v42  ;;  %v6053_v42 = vrot.slane %v6048_v51, %v14301_v8 }
 0x95f   :  { %8208 = vmatpush1.bf16.msra.mxu0 %v10754_v52  ;;  %v6057_v52 = vrot.slane %v6048_v51, %v14302_v15 }
 0x960   :  { %8454 = vmatpush1.bf16.msra.mxu1 %v10757_v60  ;;  %8209 = vmatprep.subr.bf16.mxu0 %v10762_v5  ;;  %v6065_v60 = vrot.slane %v6048_v51, %v3803_v62  ;;  %v10833_v62 = vld [vmem:[#allocation14 + $0x88] sm:$0xff]  }
 0x961   :  { %8455 = vmatprep.subr.bf16.mxu1 %v10765_v4 }
 0x963   :  { %8210 = vmatpush1.bf16.msra.mxu0 %v10760_v26 }
 0x964   :  { %8456 = vmatpush1.bf16.msra.mxu1 %v10763_v31  ;;  %8211 = vmatprep.subr.bf16.mxu0 %v10768_v7 }
 0x965   :  { %8457 = vmatprep.subr.bf16.mxu1 %v10771_v27 }
 0x967   :  { %8212 = vmatpush1.bf16.msra.mxu0 %v10766_v43 }
 0x968   :  { %8458 = vmatpush1.bf16.msra.mxu1 %v10769_v10  ;;  %8213 = vmatprep.subr.bf16.mxu0 %v10774_v24 }
 0x969   :  { %8459 = vmatprep.subr.bf16.mxu1 %v10777_v44 }
 0x96b   :  { %8214 = vmatpush1.bf16.msra.mxu0 %v10772_v46 }
 0x96c   :  { %8460 = vmatpush1.bf16.msra.mxu1 %v10775_v32  ;;  %8215 = vmatprep.subr.bf16.mxu0 %v10780_v20 }
 0x96d   :  { %8461 = vmatprep.subr.bf16.mxu1 %v10783_v16 }
 0x96f   :  { %8216 = vmatpush1.bf16.msra.mxu0 %v10778_v11  ;;  %v10831_v11 = vld [vmem:[#allocation14 + $0x80] sm:$0xff]  }
 0x970   :  { %8462 = vmatpush1.bf16.msra.mxu1 %v10781_v41  ;;  %8217 = vmatprep.subr.bf16.mxu0 %v10786_v38  ;;  %v10832_v41 = vld [vmem:[#allocation14 + $0xc8] sm:$0xff]  }
 0x971   :  { %8463 = vmatprep.subr.bf16.mxu1 %v10789_v54  ;;  %v10834_v54 = vld [vmem:[#allocation14 + $0xd0] sm:$0xff]  }
 0x973   :  { %8218 = vmatpush1.bf16.msra.mxu0 %v10784_v63  ;;  %v10835_v63 = vld [vmem:[#allocation14 + $0x90] sm:$0xff]  }
 0x974   :  { %8464 = vmatpush1.bf16.msra.mxu1 %v10787_v0  ;;  %8219 = vmatprep.subr.bf16.mxu0 %v10792_v37  ;;  %v10836_v0 = vld [vmem:[#allocation14 + $0xd8] sm:$0xff]  }
 0x975   :  { %8465 = vmatprep.subr.bf16.mxu1 %v10795_v50  ;;  %v10837_v37 = vld [vmem:[#allocation14 + $0x98] sm:$0xff]   ;;  %v10838_v50 = vld [vmem:[#allocation14 + $0xe0] sm:$0xff]  }
 0x977   :  { %8220 = vmatpush1.bf16.msra.mxu0 %v10790_v6  ;;  %v10839_v6 = vld [vmem:[#allocation14 + $0xa0] sm:$0xff]  }
 0x978   :  { %8466 = vmatpush1.bf16.msra.mxu1 %v10793_v2  ;;  %8221 = vmatprep.subr.bf16.mxu0 %v10798_v29  ;;  %v10840_v2 = vld [vmem:[#allocation14 + $0xe8] sm:$0xff]  }
 0x979   :  { %8467 = vmatprep.subr.bf16.mxu1 %v10801_v14  ;;  %v10841_v29 = vld [vmem:[#allocation14 + $0xa8] sm:$0xff]   ;;  %v6061_v14 = vrot.slane %v6048_v51, %v3799_v58  ;;  %v9537_v58 = vld [vmem:[#allocation16] ss:$0 sm:$0xff] }
 0x97b   :  { %8222 = vmatpush1.bf16.msra.mxu0 %v10796_v25  ;;  %v10842_v25 = vld [vmem:[#allocation14 + $0xf0] sm:$0xff]  }
 0x97c   :  { %8468 = vmatpush1.bf16.msra.mxu1 %v10799_v21  ;;  %8223 = vmatprep.subr.bf16.mxu0 %v10804_v23  ;;  %v10843_v21 = vld [vmem:[#allocation14 + $0xb0] sm:$0xff]  }
 0x97d   :  { %8469 = vmatprep.subr.bf16.mxu1 %v10807_v18  ;;  %v10844_v18 = vld [vmem:[#allocation14 + $0xf8] sm:$0xff]  }
 0x97f   :  { %8224 = vmatpush1.bf16.msra.mxu0 %v10802_v3  ;;  %v10845_v3 = vld [vmem:[#allocation14 + $0xb8] sm:$0xff]  }
 0x980   :  { %8470 = vmatpush1.bf16.msra.mxu1 %v10805_v19  ;;  %8225 = vmatprep.subr.bf16.mxu0 %v10810_v48 }
 0x981   :  { %8471 = vmatprep.subr.bf16.mxu1 %v10813_v49 }
 0x983   :  { %8226 = vmatpush1.bf16.msra.mxu0 %v10808_v55 }
 0x984   :  { %8472 = vmatpush1.bf16.msra.mxu1 %v10811_v34  ;;  %9570 = vmatprep.subr.bf16.mxu0 %v10814_v12 }
 0x986   :  { %8228 = vmatmul.mubr.bf16.vlgmr.msra.gmra.mrb[12].mxu0 %v5662_v1 }
 0x987   :  { %8474 = vmatmul.mubr.bf16.vlgmr.msra.gmra.mrb[8].mxu1 %v5662_v1  ;;  %9571 = vmatpush3.bf16.msra.mxu0 %v10815_v28 }
 0x988   :  { %9572 = vmatprep.subr.bf16.mxu0 %v10816_v61 }
 0x98b   :  { %9573 = vmatpush3.bf16.msra.mxu0 %v10817_v33 }
 0x98c   :  { %9574 = vmatprep.subr.bf16.mxu0 %v10818_v45 }
 0x98f   :  { %9575 = vmatpush3.bf16.msra.mxu0 %v10819_v13 }
 0x990   :  { %9576 = vmatprep.subr.bf16.mxu0 %v10820_v40 }
 0x993   :  { %9577 = vmatpush3.bf16.msra.mxu0 %v10821_v9 }
 0x994   :  { %9578 = vmatprep.subr.bf16.mxu0 %v10822_v53 }
 0x997   :  { %9579 = vmatpush3.bf16.msra.mxu0 %v10823_v17 }
 0x998   :  { %9580 = vmatprep.subr.bf16.mxu0 %v10824_v56 }
 0x99b   :  { %9581 = vmatpush3.bf16.msra.mxu0 %v10825_v35 }
 0x99c   :  { %9582 = vmatprep.subr.bf16.mxu0 %v10826_v36 }
 0x99f   :  { %9583 = vmatpush3.bf16.msra.mxu0 %v10827_v39 }
 0x9a0   :  { %9584 = vmatprep.subr.bf16.mxu0 %v10828_v59 }
 0x9a3   :  { %9585 = vmatpush3.bf16.msra.mxu0 %v10829_v30 }
 0x9a4   :  { %9592 = vmatprep.subr.bf16.mxu0 %v10830_v47 }
 0xa59   :  { %v8229_v5 = vpop.f32.mrb[12].mxu0 }
 0xa5a   :  { %v9716_v4 = vadd.f32 %v8229_v5, %v6053_v42  ;;  %v8475_v26 = vpop.f32.mrb[8].mxu1  ;;  %v8231_v31 = vpop.f32.mrb[13].mxu0 }
 0xa5b   :  { %v9717_v7 = vadd.f32 %v8231_v31, %v6057_v52  ;;  %v8477_v27 = vpop.f32.mrb[9].mxu1  ;;  %v8233_v43 = vpop.f32.mrb[14].mxu0  ;;  %v9718_v23 = vadd.f32 %v8475_v26, %v6061_v14 }
 0xa5c   :  { %v8482_v10 = vmax.f32 %v9716_v4, 0.0  ;;  %v9719_v24 = vadd.f32 %v8477_v27, %v6065_v60  ;;  %v8479_v44 = vpop.f32.mrb[10].mxu1  ;;  %v8234_v46 = vpop.f32.mrb[15].mxu0 }
 0xa5d   :  { %v8483_v32 = vmax.f32 %v9717_v7, 0.0  ;;  %v8480_v20 = vpop.f32.mrb[11].mxu1  ;;  %v8484_v19 = vmax.f32 %v9718_v23, 0.0 }
 0xa5e   :  { %v8485_v16 = vmax.f32 %v9719_v24, 0.0  ;;  %v8486_v15 = vpack.c.bf16 %v8482_v10, %v8482_v10 }
 0xa5f   :  { %v8487_v8 = vpack.c.bf16 %v8483_v32, %v8483_v32  ;;  %v8488_v48 = vpack.c.bf16 %v8484_v19, %v8484_v19 }
 0xa60   :  { %v8489_v38 = vpack.c.bf16 %v8485_v16, %v8485_v16 }
 0xa61   :  { %8785 = vmatprep.mubr.bf16.mxu0 %v8487_v8 }
 0xa62   :  { %8786 = vmatmul.mubr.bf16.vlgmr.msra.gmra.mrb[16].mxu0 %v8486_v15 }
 0xa63   :  { %9593 = vmatpush3.bf16.msra.mxu0 %v10831_v11  ;;  %8825 = vmatprep.mubr.bf16.mxu0 %v8489_v38 }
 0xa64   :  { %9594 = vmatprep.subr.bf16.mxu0 %v10832_v41 }
 0xa67   :  { %9595 = vmatpush3.bf16.msra.mxu0 %v10833_v62 }
 0xa68   :  { %9596 = vmatprep.subr.bf16.mxu0 %v10834_v54 }
 0xa6b   :  { %9597 = vmatpush3.bf16.msra.mxu0 %v10835_v63 }
 0xa6c   :  { %9598 = vmatprep.subr.bf16.mxu0 %v10836_v0 }
 0xa6f   :  { %9599 = vmatpush3.bf16.msra.mxu0 %v10837_v37 }
 0xa70   :  { %9600 = vmatprep.subr.bf16.mxu0 %v10838_v50 }
 0xa73   :  { %9601 = vmatpush3.bf16.msra.mxu0 %v10839_v6 }
 0xa74   :  { %9602 = vmatprep.subr.bf16.mxu0 %v10840_v2 }
 0xa77   :  { %9603 = vmatpush3.bf16.msra.mxu0 %v10841_v29 }
 0xa78   :  { %9604 = vmatprep.subr.bf16.mxu0 %v10842_v25 }
 0xa7b   :  { %9605 = vmatpush3.bf16.msra.mxu0 %v10843_v21 }
 0xa7c   :  { %9606 = vmatprep.subr.bf16.mxu0 %v10844_v18 }
 0xa7f   :  { %9607 = vmatpush3.bf16.msra.mxu0 %v10845_v3 }
 0xa82   :  { %8826 = vmatmul.mubr.bf16.vlgmr.msra.gmra.mrb[20].mxu0 %v8488_v48 }
 0xb35   :  { %v9586_v49 = vpop.f32.mrb[16].mxu0 }
 0xb36   :  { %v9587_v55 = vpop.f32.mrb[17].mxu0 }
 0xb37   :  { %v9588_v34 = vadd.f32 %v9587_v55, %v9586_v49  ;;  %v9589_v57 = vpop.f32.mrb[18].mxu0 }
 0xb38   :  { %v9590_v22 = vpop.f32.mrb[19].mxu0 }
 0xb39   :  { %v8788_v1 = vadd.f32 %v9588_v34, %v9537_v58 }
 0xb55   :  { %v9608_v12 = vpop.f32.mrb[20].mxu0 }
 0xb56   :  { %v9609_v28 = vpop.f32.mrb[21].mxu0 }
 0xb57   :  { %v9610_v61 = vadd.f32 %v9609_v28, %v9608_v12  ;;  %v9611_v33 = vpop.f32.mrb[22].mxu0 }
 0xb58   :  { %v9612_v45 = vpop.f32.mrb[23].mxu0 }
 0xb59   :  { %v8828_v13 = vadd.f32 %v9610_v61, %v8788_v1 }
 0xb5b   :  { %v8833_v40 = vsel %vm3174_vm2, %v8828_v13, -inf }
 0xb5c   :  { %8834 = vmax.xlane.f32.xlu1 %v8833_v40 }
 0xbe9   :  { %v8835_v9 = vpop.xlane.xlu1 %8834 }
 0xbea   :  { %v8836_v53 = vsub.f32 %v8828_v13, %v8835_v9 }
 0xbec   :  { %v8837_v17 = vmul.f32 1.442695, %v8836_v53 }
 0xbee   :  { %10860 = vpow2.f32 %v8837_v17 }
 0xbf8   :  { %v10861_v56 = vpop.eup %10860 }
 0xbf9   :  { %v8839_v35 = vsel %vm3174_vm2, %v10861_v56, 0.0 }
 0xbfa   :  { %8840 = vadd.xlane.f32.xlu0 %v8839_v35 }
 0xc87   :  { %v8841_v36 = vpop.xlane.xlu0 %8840 }
 0xc88   :  { %10862 = vlog2.f32 %v8841_v36 }
 0xc92   :  { %v10863_v39 = vpop.eup %10862 }
 0xc93   :  { %v8843_v59 = vmul.f32 0.6931472, %v10863_v39 }
 0xc95   :  { %v8844_v30 = vsub.f32 %v8836_v53, %v8843_v59 }
 0xc97   :  { %8845 = vst [vmem:[#allocation17] sm:$0x3] %v8844_v30 }
 0xc98   :  { %11077 = shalt.err (!%p11074_p6)
}
 0xc99   :  { %s11078_s21 = scalar_lea.hbm %s13630_s9, 32 }
 0xc9a   :  { %p11079_p7 = scmp.ne.s32.totalorder %s13630_s9, %s11078_s21  ;;  %p11082_p8 = scmp.lt.u32.totalorder %s11078_s21, %s13630_s9 }
 0xc9c   :  { %p11084_p9 = pnand %p11082_p8, %p11079_p7 }
 0xc9e   :  { %11087 = shalt.err (!%p11084_p9)
}
 0xc9f   :  { %8855 = dma.vmem_to_hbm [thread:$0]  %s8853_s25, 32, %s13630_s9, [#allocation4]  }
 0xca0   :  { %11098 = dma.done.wait [#allocation4], 32  }
 0xca1   :  { %11099 = vsyncadd [#allocation4], 4294967264 }
 0xca2   :  { %8859 = vsyncpa [#allocation3], 1 }
 0xca3   :  { %8860 = vsyncpa [#allocation6], 1 }
 0xca4   :  { %8861 = vsyncpa [#allocation9], 1 }
 0xca5   :  { %8862 = vsyncpa [#allocation12], 1 }
 0xca6   :  { %8863 = vsyncpa [#allocation15], 1 }
 0xca7   :  { %8864 = vsyncpa [#allocation4], 1 }

</bundles_post_ra>
